<compile_context>
chip_gen: v6e
topology: v6e:2x2x1
jax: 0.10.0
libtpu: 0.0.40
codegen_flags: <defaults>
</compile_context>

<pallas_src>
import jax
import jax.numpy as jnp
from jax.experimental import pallas as pl
from jax.experimental.pallas import tpu as pltpu


# Fixed decoder geometry (from the PyTorch module).
_C1, _H1, _W1 = 32, 7, 7      # linear output viewed as NCHW
_C2, _H2, _W2 = 16, 14, 14    # after ConvTranspose2d #1
_C3, _H3, _W3 = 1, 28, 28     # after ConvTranspose2d #2
_N_MID = _C2 * _H2 * _W2      # 3136
_N_OUT = _C3 * _H3 * _W3      # 784
# TODO(synk): the reference rearrange says c=16,h=7,w=7 (=784 elems) which
# contradicts the 32*7*7 linear output and ConvTranspose2d(32,...); the only
# self-consistent interpretation (c=32) is implemented here.


# ----------------------------------------------------------------------------
# Fused Pallas kernel: the whole decoder for one batch tile.
#   stage 1: z @ W1 + b1, ReLU      (Linear folded with ConvTranspose #1)
#   stage 2: a1 @ W2 + b2, Sigmoid  (ConvTranspose #2 as a dense matrix)
# ----------------------------------------------------------------------------
def _decoder_kernel(z_ref, w1_ref, b1_ref, w2_ref, b2_ref, o_ref):
    a1 = jnp.dot(z_ref[...], w1_ref[...], preferred_element_type=jnp.float32)
    a1 = jnp.maximum(a1 + b1_ref[...], 0.0)                        # ReLU
    a2 = jnp.dot(a1, w2_ref[...], preferred_element_type=jnp.float32)
    a2 = a2 + b2_ref[0]                                            # scalar bias (SMEM)
    o_ref[...] = jax.nn.sigmoid(a2).astype(o_ref.dtype)            # EUP exp path


# ----------------------------------------------------------------------------
# Parameter folding (batch-independent prep, exact linear algebra).
# ----------------------------------------------------------------------------
def _placement(in_size, k, stride, padding, out_size):
    """0/1 tensor P[i, kk, o] = [o == stride*i - padding + kk]."""
    o = jnp.arange(out_size)[None, None, :]
    i = jnp.arange(in_size)[:, None, None]
    kk = jnp.arange(k)[None, :, None]
    return (o == (stride * i - padding + kk)).astype(jnp.float32)


def _convT_dense(w, h, wd, stride=2, padding=1):
    """Dense matrix of ConvTranspose2d with PyTorch (Cin,Cout,kH,kW) weights.

    Row order:  ci*h*wd + ih*wd + iw      (NCHW per image)
    Col order:  co*OH*OW + oh*OW + ow     (NCHW per image)
    """
    cin, cout, kh, kw = w.shape
    oh = (h - 1) * stride - 2 * padding + kh
    ow = (wd - 1) * stride - 2 * padding + kw
    ah = _placement(h, kh, stride, padding, oh)     # (h, kh, oh)
    aw = _placement(wd, kw, stride, padding, ow)    # (wd, kw, ow)
    m = jnp.einsum("icab,hao,wbp->ihwcop", w.astype(jnp.float32), ah, aw,
                   precision=jax.lax.Precision.HIGHEST)
    return m.reshape(cin * h * wd, cout * oh * ow)


def _fold_params(params):
    m1 = _convT_dense(params["ct1_w"], _H1, _W1)      # (1568, 3136)
    m2 = _convT_dense(params["ct2_w"], _H2, _W2)      # (3136, 784)
    hp = jax.lax.Precision.HIGHEST
    w1 = jnp.matmul(params["lin_w"].astype(jnp.float32), m1, precision=hp)
    b1 = (jnp.matmul(params["lin_b"].astype(jnp.float32), m1, precision=hp)
          + jnp.repeat(params["ct1_b"].astype(jnp.float32), _H2 * _W2))
    b2 = params["ct2_b"].reshape(1).astype(jnp.float32)
    return w1, b1.reshape(1, _N_MID), m2, b2


# ----------------------------------------------------------------------------
# Decoder forward (single fused Pallas call, batch-tiled grid).
# ----------------------------------------------------------------------------
@jax.jit
def decoder_forward(z, params):
    B, latent = z.shape
    w1, b1, w2, b2 = _fold_params(params)

    # Batch tile: multiple of 8 sublanes; 128 keeps peak VMEM (~24 MiB incl.
    # the double-buffered 9.8 MiB conv2 matrix) inside the v7x budget.
    tb = min(128, ((B + 7) // 8) * 8)
    bp = pl.cdiv(B, tb) * tb
    zp = jnp.pad(z.astype(jnp.float32), ((0, bp - B), (0, 0)))

    out = pl.pallas_call(
        _decoder_kernel,
        out_shape=jax.ShapeDtypeStruct((bp, _N_OUT), jnp.float32),
        grid=(bp // tb,),
        in_specs=[
            pl.BlockSpec((tb, latent), lambda i: (i, 0)),         # z tile (pipelined)
            pl.BlockSpec((latent, _N_MID), lambda i: (0, 0)),     # resident fused W1
            pl.BlockSpec((1, _N_MID), lambda i: (0, 0)),          # fused bias, lane-dense
            pl.BlockSpec((_N_MID, _N_OUT), lambda i: (0, 0)),     # resident conv2 matrix
            pl.BlockSpec(memory_space=pltpu.MemorySpace.SMEM),    # scalar conv2 bias
        ],
        out_specs=pl.BlockSpec((tb, _N_OUT), lambda i: (i, 0)),   # lane-dense store
        compiler_params=pltpu.CompilerParams(
            dimension_semantics=("parallel",),      # v7x: split batch over 2 TCs
            vmem_limit_bytes=48 * 1024 * 1024,
        ),
    )(zp, w1, b1, w2, b2)

    return out[:B].reshape(B, 1, _H3, _W3)          # free reshape, no transpose


# ----------------------------------------------------------------------------
# Pure-JAX reference (XLA conv) for the correctness check.
# ----------------------------------------------------------------------------
def decoder_forward_ref(z, params):
    B = z.shape[0]
    x = (z @ params["lin_w"] + params["lin_b"]).reshape(B, _C1, _H1, _W1)

    def ct(x, w, b, act):
        wc = jnp.flip(w, axis=(2, 3)).transpose(1, 0, 2, 3)   # OIHW
        y = jax.lax.conv_general_dilated(
            x, wc, window_strides=(1, 1), padding=[(2, 2), (2, 2)],
            lhs_dilation=(2, 2),
            dimension_numbers=("NCHW", "OIHW", "NCHW"))
        return act(y + b[None, :, None, None])

    x = ct(x, params["ct1_w"], params["ct1_b"], lambda v: jnp.maximum(v, 0.0))
    x = ct(x, params["ct2_w"], params["ct2_b"], jax.nn.sigmoid)
    return x


# ----------------------------------------------------------------------------
# Deterministic parameter init (PyTorch-like uniform fan-in bounds)
# ----------------------------------------------------------------------------
def init_params(latent_dim, key):
    ks = jax.random.split(key, 6)

    def u(k, shape, fan_in):
        bound = 1.0 / jnp.sqrt(float(fan_in))
        return jax.random.uniform(k, shape, jnp.float32, -bound, bound)

    return dict(
        lin_w=u(ks[0], (latent_dim, _C1 * _H1 * _W1), latent_dim),  # (in, out)
        lin_b=u(ks[1], (_C1 * _H1 * _W1,), latent_dim),
        ct1_w=u(ks[2], (_C1, _C2, 4, 4), _C2 * 4 * 4),              # (Cin,Cout,kH,kW)
        ct1_b=u(ks[3], (_C2,), _C2 * 4 * 4),
        ct2_w=u(ks[4], (_C2, _C3, 4, 4), _C3 * 4 * 4),
        ct2_b=u(ks[5], (_C3,), _C3 * 4 * 4),
    )


if __name__ == "__main__":
    latent_dim = 8
    key = jax.random.PRNGKey(0)
    kp, kz = jax.random.split(key)
    params = init_params(latent_dim, kp)
    z = jax.random.normal(kz, (2, latent_dim), jnp.float32)

    out = jax.block_until_ready(decoder_forward(z, params))
    assert out.shape == (2, 1, 28, 28), out.shape

    ref = decoder_forward_ref(z, params)
    err = float(jnp.max(jnp.abs(out - ref)))
    assert err < 1e-4, err
    print("KERNEL_OK")
</pallas_src>

<mosaic_0001>
module attributes {stable_mosaic.version = 11 : i64} {
  func.func @_decoder_kernel(%arg0: i32, %arg1: memref<8x8xf32, #tpu.memory_space<vmem>>, %arg2: memref<8x3136xf32, #tpu.memory_space<vmem>>, %arg3: memref<1x3136xf32, #tpu.memory_space<vmem>>, %arg4: memref<3136x784xf32, #tpu.memory_space<vmem>>, %arg5: memref<1xf32, #tpu.memory_space<smem>>, %arg6: memref<8x784xf32, #tpu.memory_space<vmem>>) attributes {dimension_semantics = [#tpu.dimension_semantics<parallel>], iteration_bounds = array<i64: 1>, scalar_prefetch = 0 : i64, scratch_operands = 0 : i64, tpu.core_type = #tpu.core_type<tc>, window_params = [{transform_indices = @transform_0, window_bounds = array<i64: 8, 8>}, {pipeline_mode = #tpu.pipeline_mode<synchronous>, transform_indices = @transform_1, window_bounds = array<i64: 8, 3136>}, {pipeline_mode = #tpu.pipeline_mode<synchronous>, transform_indices = @transform_2, window_bounds = array<i64: 1, 3136>}, {pipeline_mode = #tpu.pipeline_mode<synchronous>, transform_indices = @transform_3, window_bounds = array<i64: 3136, 784>}, {transform_indices = @transform_4, window_bounds = array<i64: 1>}, {transform_indices = @transform_5, window_bounds = array<i64: 8, 784>}]} {
    %c0 = arith.constant 0 : index
    %c0_0 = arith.constant 0 : index
    %0 = vector.load %arg1[%c0, %c0_0] : memref<8x8xf32, #tpu.memory_space<vmem>>, vector<8x8xf32>
    %c0_1 = arith.constant 0 : index
    %c0_2 = arith.constant 0 : index
    %1 = vector.load %arg2[%c0_1, %c0_2] : memref<8x3136xf32, #tpu.memory_space<vmem>>, vector<8x3136xf32>
    %cst = arith.constant dense<0.000000e+00> : vector<8x3136xf32>
    %2 = tpu.matmul %0, %1, %cst {dimension_numbers = #tpu.dot_dimension_numbers<[1], [0], [0], [1], [0, 0, 1, 1], [], []>} : vector<8x8xf32>, vector<8x3136xf32>, vector<8x3136xf32> -> vector<8x3136xf32>
    %c0_3 = arith.constant 0 : index
    %c0_4 = arith.constant 0 : index
    %3 = vector.load %arg3[%c0_3, %c0_4] : memref<1x3136xf32, #tpu.memory_space<vmem>>, vector<1x3136xf32>
    %4 = vector.broadcast %3 : vector<1x3136xf32> to vector<8x3136xf32>
    %5 = arith.addf %2, %4 : vector<8x3136xf32>
    %cst_5 = arith.constant 0.000000e+00 : f32
    %6 = vector.broadcast %cst_5 : f32 to vector<8x3136xf32>
    %7 = arith.maximumf %5, %6 : vector<8x3136xf32>
    %c0_6 = arith.constant 0 : index
    %c0_7 = arith.constant 0 : index
    %8 = vector.load %arg4[%c0_6, %c0_7] : memref<3136x784xf32, #tpu.memory_space<vmem>>, vector<3136x784xf32>
    %cst_8 = arith.constant dense<0.000000e+00> : vector<8x784xf32>
    %9 = tpu.matmul %7, %8, %cst_8 {dimension_numbers = #tpu.dot_dimension_numbers<[1], [0], [0], [1], [0, 0, 1, 1], [], []>} : vector<8x3136xf32>, vector<3136x784xf32>, vector<8x784xf32> -> vector<8x784xf32>
    %c0_9 = arith.constant 0 : index
    %10 = memref.load %arg5[%c0_9] : memref<1xf32, #tpu.memory_space<smem>>
    %11 = vector.broadcast %10 : f32 to vector<8x784xf32>
    %12 = arith.addf %9, %11 : vector<8x784xf32>
    %13 = arith.negf %12 : vector<8x784xf32>
    %14 = math.exp %13 : vector<8x784xf32>
    %cst_10 = arith.constant 1.000000e+00 : f32
    %15 = vector.broadcast %cst_10 : f32 to vector<8x784xf32>
    %16 = arith.addf %15, %14 : vector<8x784xf32>
    %17 = arith.divf %15, %16 : vector<8x784xf32>
    %c0_11 = arith.constant 0 : index
    %c0_12 = arith.constant 0 : index
    %18 = vector.load %arg6[%c0_11, %c0_12] : memref<8x784xf32, #tpu.memory_space<vmem>>, vector<8x784xf32>
    tpu.vector_store %arg6[%c0_11, %c0_12], %17 {strides = array<i32>} : memref<8x784xf32, #tpu.memory_space<vmem>>, vector<8x784xf32>,
    return
  }
  func.func @transform_0(%arg0: i32) -> (i32, i32) {
    %c0_i32 = arith.constant 0 : i32
    %c0_i32_0 = arith.constant 0 : i32
    return %arg0, %c0_i32 : i32, i32
  }
  func.func @transform_1(%arg0: i32) -> (i32, i32) {
    %c0_i32 = arith.constant 0 : i32
    %c0_i32_0 = arith.constant 0 : i32
    %c0_i32_1 = arith.constant 0 : i32
    return %c0_i32, %c0_i32_0 : i32, i32
  }
  func.func @transform_2(%arg0: i32) -> (i32, i32) {
    %c0_i32 = arith.constant 0 : i32
    %c0_i32_0 = arith.constant 0 : i32
    %c0_i32_1 = arith.constant 0 : i32
    return %c0_i32, %c0_i32_0 : i32, i32
  }
  func.func @transform_3(%arg0: i32) -> (i32, i32) {
    %c0_i32 = arith.constant 0 : i32
    %c0_i32_0 = arith.constant 0 : i32
    %c0_i32_1 = arith.constant 0 : i32
    return %c0_i32, %c0_i32_0 : i32, i32
  }
  func.func @transform_4(%arg0: i32) -> i32 {
    %c0_i32 = arith.constant 0 : i32
    %c0_i32_0 = arith.constant 0 : i32
    return %c0_i32 : i32
  }
  func.func @transform_5(%arg0: i32) -> (i32, i32) {
    %c0_i32 = arith.constant 0 : i32
    %c0_i32_0 = arith.constant 0 : i32
    return %arg0, %c0_i32 : i32, i32
  }
}

</mosaic_0001>

<bundles_post_ra>
// kernel: decoder_forward.1
= control target key start
LH: loop header
LB: loop body
LE: loop exit
PB: predicated region body
PF: predicated region fallthrough
CT: control target
= control target key end

     0   :  { %v8126_v3 = vmov 0.0   ;;  %vm180_vm0 = vcmask 64512   ;;  %vm8127_vm1 = vmmov 0   ;;  %vm3877_vm2 = vcmask 523264   ;;  %s16879_s1 = inlined_call_operand.vmem [shape: f32[8,3136], index: 1, kind: input, shape index: {}]   ;;  %s16880_s0 = inlined_call_operand.vmem [shape: f32[8,8], index: 0, kind: input, shape index: {}]   ;;  %s16881_s3 = inlined_call_operand.vmem [shape: f32[3136,784], index: 3, kind: input, shape index: {}]   ;;  %s16882_s2 = inlined_call_operand.vmem [shape: f32[1,3136], index: 2, kind: input, shape index: {}]   ;;  %s16883_s4 = inlined_call_operand.<no memory space> [shape: f32[1], index: 4, kind: input, shape index: {}]   ;;  %s16884_s5 = inlined_call_operand.vmem [shape: f32[8,784], index: 5, kind: output, shape index: {}]  }
   0x1   :  { %v23_v0 = vld [vmem:[%s16879_s1 + $0x8] sm:$0xff]  ;;  %v25_v1 = vld [vmem:[%s16879_s1 + $0x18] sm:$0xff]  ;;  %v22_v2 = vld [vmem:[%s16879_s1] sm:$0xff]  ;;  %248 = vmatprep.mubr.f32.mxu0 %v8126_v3  ;;  %319 = vmatprep.mubr.f32.mxu1 %v8126_v3  ;;  %vm7608_vm3 = vcmask 130048  }
   0x2   :  { %214 = vmatprep.subr.mxu0 %v23_v0  ;;  %285 = vmatprep.subr.mxu1 %v25_v1  ;;  %v24_v4 = vld [vmem:[%s16879_s1 + $0x10] sm:$0xff]  ;;  %v8175_v5 = vld [vmem:[%s16880_s0] sm:$0xff]  ;;  %v27_v6 = vld [vmem:[%s16879_s1 + $0x28] sm:$0xff] }
   0x3   :  { %215 = vmatpush1.msra.mxu0 %v22_v2  ;;  %286 = vmatpush1.msra.mxu1 %v24_v4  ;;  %v26_v7 = vld [vmem:[%s16879_s1 + $0x20] sm:$0xff]  ;;  %v29_v8 = vld [vmem:[%s16879_s1 + $0x38] sm:$0xff]  ;;  %v28_v9 = vld [vmem:[%s16879_s1 + $0x30] sm:$0xff] }
   0x4   :  { %7615 = vmatmul.mubr.msk.f32.vlgmr.msra.gmra.mxu0 %vm180_vm0, %v8175_v5  ;;  %7616 = vmatmul.mubr.msk.f32.vlgmr.msra.gmra.mxu1 %vm180_vm0, %v8175_v5  ;;  %v31_v10 = vld [vmem:[%s16879_s1 + $0x48] sm:$0xff]  ;;  %v30_v11 = vld [vmem:[%s16879_s1 + $0x40] sm:$0xff]  ;;  %v33_v12 = vld [vmem:[%s16879_s1 + $0x58] sm:$0xff] }
   0x5   :  { %356 = vmatprep.subr.mxu0 %v27_v6  ;;  %390 = vmatprep.mubr.f32.mxu0 %v8126_v3  ;;  %v32_v13 = vld [vmem:[%s16879_s1 + $0x50] sm:$0xff]  ;;  %v35_v14 = vld [vmem:[%s16879_s1 + $0x68] sm:$0xff]  ;;  %v34_v15 = vld [vmem:[%s16879_s1 + $0x60] sm:$0xff] }
   0x6   :  { %357 = vmatpush1.msra.mxu0 %v26_v7  ;;  %427 = vmatprep.subr.mxu1 %v29_v8  ;;  %v37_v16 = vld [vmem:[%s16879_s1 + $0x78] sm:$0xff]  ;;  %v36_v17 = vld [vmem:[%s16879_s1 + $0x70] sm:$0xff]  ;;  %v39_v18 = vld [vmem:[%s16879_s1 + $0x88] sm:$0xff] }
   0x7   :  { %428 = vmatpush1.msra.mxu1 %v28_v9  ;;  %461 = vmatprep.mubr.f32.mxu1 %v8126_v3  ;;  %v38_v19 = vld [vmem:[%s16879_s1 + $0x80] sm:$0xff]  ;;  %v41_v20 = vld [vmem:[%s16879_s1 + $0x98] sm:$0xff]  ;;  %v40_v21 = vld [vmem:[%s16879_s1 + $0x90] sm:$0xff] }
   0x8   :  { %7617 = vmatmul.mubr.msk.f32.vlgmr.msra.gmra.mxu0 %vm180_vm0, %v8175_v5  ;;  %7618 = vmatmul.mubr.msk.f32.vlgmr.msra.gmra.mxu1 %vm180_vm0, %v8175_v5  ;;  %v43_v22 = vld [vmem:[%s16879_s1 + $0xa8] sm:$0xff]  ;;  %v42_v23 = vld [vmem:[%s16879_s1 + $0xa0] sm:$0xff]  ;;  %v45_v24 = vld [vmem:[%s16879_s1 + $0xb8] sm:$0xff] }
   0x9   :  { %498 = vmatprep.subr.mxu0 %v31_v10  ;;  %532 = vmatprep.mubr.f32.mxu0 %v8126_v3  ;;  %v44_v25 = vld [vmem:[%s16879_s1 + $0xb0] sm:$0xff]  ;;  %v46_v26 = vld [vmem:[%s16879_s1 + $0xc0] sm:$0xff]  ;;  %v1236_v29 = vld [vmem:[%s16881_s3 + $0x348] sm:$0xff] }
   0xa   :  { %499 = vmatpush1.msra.mxu0 %v30_v11  ;;  %569 = vmatprep.subr.mxu1 %v33_v12  ;;  %v1237_v27 = vld [vmem:[%s16881_s3 + $0x350] sm:$0xff]  ;;  %v1230_v30 = vld [vmem:[%s16881_s3 + $0x318] sm:$0xff]  ;;  %v1460_v31 = vld [vmem:[%s16881_s3 + $0xa48] sm:$0xff] }
   0xb   :  { %570 = vmatpush1.msra.mxu1 %v32_v13  ;;  %603 = vmatprep.mubr.f32.mxu1 %v8126_v3  ;;  %v1461_v28 = vld [vmem:[%s16881_s3 + $0xa50] sm:$0xff]  ;;  %v1454_v33 = vld [vmem:[%s16881_s3 + $0xa18] sm:$0xff]  ;;  %v1223_v34 = vld [vmem:[%s16881_s3 + $0x2e0] sm:$0xff] }
   0xc   :  { %7619 = vmatmul.mubr.msk.f32.vlgmr.msra.gmra.mxu0 %vm180_vm0, %v8175_v5  ;;  %7620 = vmatmul.mubr.msk.f32.vlgmr.msra.gmra.mxu1 %vm180_vm0, %v8175_v5  ;;  %v1229_v32 = vld [vmem:[%s16881_s3 + $0x310] sm:$0xff]  ;;  %v1222_v36 = vld [vmem:[%s16881_s3 + $0x2d8] sm:$0xff]  ;;  %v1447_v37 = vld [vmem:[%s16881_s3 + $0x9e0] sm:$0xff] }
   0xd   :  { %640 = vmatprep.subr.mxu0 %v35_v14  ;;  %674 = vmatprep.mubr.f32.mxu0 %v8126_v3  ;;  %v1453_v35 = vld [vmem:[%s16881_s3 + $0xa10] sm:$0xff]  ;;  %v1216_v38 = vld [vmem:[%s16881_s3 + $0x2a8] sm:$0xff]  ;;  %v1446_v39 = vld [vmem:[%s16881_s3 + $0x9d8] sm:$0xff] }
   0xe   :  { %641 = vmatpush1.msra.mxu0 %v34_v15  ;;  %711 = vmatprep.subr.mxu1 %v37_v16  ;;  %v1215_v40 = vld [vmem:[%s16881_s3 + $0x2a0] sm:$0xff]  ;;  %v1440_v41 = vld [vmem:[%s16881_s3 + $0x9a8] sm:$0xff]  ;;  %v1209_v42 = vld [vmem:[%s16881_s3 + $0x270] sm:$0xff] }
   0xf   :  { %712 = vmatpush1.msra.mxu1 %v36_v17  ;;  %745 = vmatprep.mubr.f32.mxu1 %v8126_v3  ;;  %v1439_v43 = vld [vmem:[%s16881_s3 + $0x9a0] sm:$0xff]  ;;  %v1208_v44 = vld [vmem:[%s16881_s3 + $0x268] sm:$0xff]  ;;  %v1433_v45 = vld [vmem:[%s16881_s3 + $0x970] sm:$0xff] }
  0x10   :  { %7621 = vmatmul.mubr.msk.f32.vlgmr.msra.gmra.mxu0 %vm180_vm0, %v8175_v5  ;;  %7622 = vmatmul.mubr.msk.f32.vlgmr.msra.gmra.mxu1 %vm180_vm0, %v8175_v5  ;;  %v1202_v46 = vld [vmem:[%s16881_s3 + $0x238] sm:$0xff]  ;;  %v1432_v47 = vld [vmem:[%s16881_s3 + $0x968] sm:$0xff]  ;;  %v1201_v48 = vld [vmem:[%s16881_s3 + $0x230] sm:$0xff] }
  0x11   :  { %782 = vmatprep.subr.mxu0 %v39_v18  ;;  %816 = vmatprep.mubr.f32.mxu0 %v8126_v3  ;;  %v1426_v49 = vld [vmem:[%s16881_s3 + $0x938] sm:$0xff]  ;;  %v1195_v50 = vld [vmem:[%s16881_s3 + $0x200] sm:$0xff]  ;;  %v1425_v51 = vld [vmem:[%s16881_s3 + $0x930] sm:$0xff] }
  0x12   :  { %783 = vmatpush1.msra.mxu0 %v38_v19  ;;  %853 = vmatprep.subr.mxu1 %v41_v20  ;;  %v1194_v52 = vld [vmem:[%s16881_s3 + $0x1f8] sm:$0xff]  ;;  %v1419_v53 = vld [vmem:[%s16881_s3 + $0x900] sm:$0xff]  ;;  %v1188_v54 = vld [vmem:[%s16881_s3 + $0x1c8] sm:$0xff] }
  0x13   :  { %854 = vmatpush1.msra.mxu1 %v40_v21  ;;  %887 = vmatprep.mubr.f32.mxu1 %v8126_v3  ;;  %v1418_v55 = vld [vmem:[%s16881_s3 + $0x8f8] sm:$0xff]  ;;  %v1187_v56 = vld [vmem:[%s16881_s3 + $0x1c0] sm:$0xff]  ;;  %v1412_v57 = vld [vmem:[%s16881_s3 + $0x8c8] sm:$0xff] }
  0x14   :  { %7623 = vmatmul.mubr.msk.f32.vlgmr.msra.gmra.mxu0 %vm180_vm0, %v8175_v5  ;;  %7624 = vmatmul.mubr.msk.f32.vlgmr.msra.gmra.mxu1 %vm180_vm0, %v8175_v5  ;;  %v1181_v58 = vld [vmem:[%s16881_s3 + $0x190] sm:$0xff]  ;;  %v1411_v59 = vld [vmem:[%s16881_s3 + $0x8c0] sm:$0xff]  ;;  %v1180_v60 = vld [vmem:[%s16881_s3 + $0x188] sm:$0xff] }
  0x15   :  { %924 = vmatprep.subr.mxu0 %v43_v22  ;;  %958 = vmatprep.mubr.f32.mxu0 %v8126_v3  ;;  %v1405_v61 = vld [vmem:[%s16881_s3 + $0x890] sm:$0xff]  ;;  %v1174_v62 = vld [vmem:[%s16881_s3 + $0x158] sm:$0xff]  ;;  %v1404_v63 = vld [vmem:[%s16881_s3 + $0x888] sm:$0xff] }
  0x16   :  { %925 = vmatpush1.msra.mxu0 %v42_v23  ;;  %995 = vmatprep.subr.mxu1 %v45_v24  ;;  %v1173_v0 = vld [vmem:[%s16881_s3 + $0x150] sm:$0xff]  ;;  %v1398_v1 = vld [vmem:[%s16881_s3 + $0x858] sm:$0xff]  ;;  %v1167_v2 = vld [vmem:[%s16881_s3 + $0x120] sm:$0xff] }
  0x17   :  { %996 = vmatpush1.msra.mxu1 %v44_v25  ;;  %1029 = vmatprep.mubr.f32.mxu1 %v8126_v3  ;;  %v1397_v4 = vld [vmem:[%s16881_s3 + $0x850] sm:$0xff]  ;;  %v1391_v6 = vld [vmem:[%s16881_s3 + $0x820] sm:$0xff]  ;;  %v1160_v7 = vld [vmem:[%s16881_s3 + $0xe8] sm:$0xff] }
  0x18   :  { %7625 = vmatmul.mubr.msk.f32.vlgmr.msra.gmra.mxu0 %vm180_vm0, %v8175_v5  ;;  %8070 = vmatprep.subr.mxu0 %v8126_v3  ;;  %v1390_v8 = vld [vmem:[%s16881_s3 + $0x818] sm:$0xff]  ;;  %v1159_v9 = vld [vmem:[%s16881_s3 + $0xe0] sm:$0xff]  ;;  %v1384_v10 = vld [vmem:[%s16881_s3 + $0x7e8] sm:$0xff] }
  0x19   :  { %7626 = vmatmul.mubr.msk.f32.vlgmr.msra.gmra.mxu1 %vm180_vm0, %v8175_v5  ;;  %8071 = vmatpush3.msra.mxu0 %v46_v26  ;;  %v1153_v11 = vld [vmem:[%s16881_s3 + $0xb0] sm:$0xff]  ;;  %v1383_v12 = vld [vmem:[%s16881_s3 + $0x7e0] sm:$0xff]  ;;  %v1152_v13 = vld [vmem:[%s16881_s3 + $0xa8] sm:$0xff] }
  0x1a   :  { %8072 = vmatprep.mubr.msk.f32.mxu0 %vm8127_vm1, %v8126_v3  ;;  %3881 = vmatprep.subr.mxu1 %v1237_v27  ;;  %v1377_v14 = vld [vmem:[%s16881_s3 + $0x7b0] sm:$0xff]  ;;  %v1146_v15 = vld [vmem:[%s16881_s3 + $0x78] sm:$0xff]  ;;  %v1376_v16 = vld [vmem:[%s16881_s3 + $0x7a8] sm:$0xff] }
  0x1b   :  { %3952 = vmatprep.subr.mxu0 %v1461_v28  ;;  %3882 = vmatpush1.msra.mxu1 %v1236_v29  ;;  %v1145_v17 = vld [vmem:[%s16881_s3 + $0x70] sm:$0xff]  ;;  %v1370_v18 = vld [vmem:[%s16881_s3 + $0x778] sm:$0xff]  ;;  %v1139_v19 = vld [vmem:[%s16881_s3 + $0x40] sm:$0xff] }
  0x1c   :  { %8073 = vmatmul.mubr.msk.f32.vlgmr.msra.gmra.mxu0 %vm180_vm0, %v8175_v5  ;;  %3883 = vmatprep.subr.mxu1 %v1230_v30  ;;  %v1166_v5 = vld [vmem:[%s16881_s3 + $0x118] sm:$0xff]  ;;  %v1369_v20 = vld [vmem:[%s16881_s3 + $0x770] sm:$0xff]  ;;  %v1363_v22 = vld [vmem:[%s16881_s3 + $0x740] sm:$0xff] }
  0x1d   :  { %3953 = vmatpush1.msra.mxu0 %v1460_v31  ;;  %3884 = vmatpush1.msra.mxu1 %v1229_v32  ;;  %v1138_v21 = vld [vmem:[%s16881_s3 + $0x38] sm:$0xff]  ;;  %v1132_v23 = vld [vmem:[%s16881_s3 + $0x8] sm:$0xff]  ;;  %v1131_v25 = vld [vmem:[%s16881_s3] sm:$0xff] }
  0x1e   :  { %3954 = vmatprep.subr.mxu0 %v1454_v33  ;;  %3885 = vmatprep.subr.mxu1 %v1223_v34  ;;  %v1362_v24 = vld [vmem:[%s16881_s3 + $0x738] sm:$0xff]  ;;  %v1356_v26 = vld [vmem:[%s16881_s3 + $0x708] sm:$0xff]  ;;  %v1349_v27 = vld [vmem:[%s16881_s3 + $0x6d0] sm:$0xff] }
  0x1f   :  { %3955 = vmatpush1.msra.mxu0 %v1453_v35  ;;  %3886 = vmatpush1.msra.mxu1 %v1222_v36  ;;  %v1355_v28 = vld [vmem:[%s16881_s3 + $0x700] sm:$0xff]  ;;  %v1348_v29 = vld [vmem:[%s16881_s3 + $0x6c8] sm:$0xff]  ;;  %v1573_v30 = vld [vmem:[%s16881_s3 + $0xdd0] sm:$0xff] }
  0x20   :  { %3956 = vmatprep.subr.mxu0 %v1447_v37  ;;  %3887 = vmatprep.subr.mxu1 %v1216_v38  ;;  %v1342_v31 = vld [vmem:[%s16881_s3 + $0x698] sm:$0xff]  ;;  %v1572_v32 = vld [vmem:[%s16881_s3 + $0xdc8] sm:$0xff]  ;;  %v1341_v33 = vld [vmem:[%s16881_s3 + $0x690] sm:$0xff] }
  0x21   :  { %3957 = vmatpush1.msra.mxu0 %v1446_v39  ;;  %3888 = vmatpush1.msra.mxu1 %v1215_v40  ;;  %v1566_v34 = vld [vmem:[%s16881_s3 + $0xd98] sm:$0xff]  ;;  %v1335_v35 = vld [vmem:[%s16881_s3 + $0x660] sm:$0xff]  ;;  %v1565_v36 = vld [vmem:[%s16881_s3 + $0xd90] sm:$0xff] }
  0x22   :  { %3958 = vmatprep.subr.mxu0 %v1440_v41  ;;  %3889 = vmatprep.subr.mxu1 %v1209_v42  ;;  %v1334_v37 = vld [vmem:[%s16881_s3 + $0x658] sm:$0xff]  ;;  %v1559_v38 = vld [vmem:[%s16881_s3 + $0xd60] sm:$0xff]  ;;  %v1328_v39 = vld [vmem:[%s16881_s3 + $0x628] sm:$0xff] }
  0x23   :  { %3959 = vmatpush1.msra.mxu0 %v1439_v43  ;;  %3890 = vmatpush1.msra.mxu1 %v1208_v44  ;;  %v1558_v40 = vld [vmem:[%s16881_s3 + $0xd58] sm:$0xff]  ;;  %v1327_v41 = vld [vmem:[%s16881_s3 + $0x620] sm:$0xff]  ;;  %v1552_v42 = vld [vmem:[%s16881_s3 + $0xd28] sm:$0xff] }
  0x24   :  { %3960 = vmatprep.subr.mxu0 %v1433_v45  ;;  %3891 = vmatprep.subr.mxu1 %v1202_v46  ;;  %v1321_v43 = vld [vmem:[%s16881_s3 + $0x5f0] sm:$0xff]  ;;  %v1551_v44 = vld [vmem:[%s16881_s3 + $0xd20] sm:$0xff]  ;;  %v1320_v45 = vld [vmem:[%s16881_s3 + $0x5e8] sm:$0xff] }
  0x25   :  { %3961 = vmatpush1.msra.mxu0 %v1432_v47  ;;  %3892 = vmatpush1.msra.mxu1 %v1201_v48  ;;  %v1545_v46 = vld [vmem:[%s16881_s3 + $0xcf0] sm:$0xff]  ;;  %v1314_v47 = vld [vmem:[%s16881_s3 + $0x5b8] sm:$0xff]  ;;  %v1544_v48 = vld [vmem:[%s16881_s3 + $0xce8] sm:$0xff] }
  0x26   :  { %3962 = vmatprep.subr.mxu0 %v1426_v49  ;;  %3893 = vmatprep.subr.mxu1 %v1195_v50  ;;  %v1313_v49 = vld [vmem:[%s16881_s3 + $0x5b0] sm:$0xff]  ;;  %v1538_v50 = vld [vmem:[%s16881_s3 + $0xcb8] sm:$0xff] }
  0x27   :  { %3963 = vmatpush1.msra.mxu0 %v1425_v51  ;;  %3894 = vmatpush1.msra.mxu1 %v1194_v52  ;;  %v1307_v51 = vld [vmem:[%s16881_s3 + $0x580] sm:$0xff]  ;;  %v1537_v52 = vld [vmem:[%s16881_s3 + $0xcb0] sm:$0xff] }
  0x28   :  { %3964 = vmatprep.subr.mxu0 %v1419_v53  ;;  %3895 = vmatprep.subr.mxu1 %v1188_v54  ;;  %v1306_v53 = vld [vmem:[%s16881_s3 + $0x578] sm:$0xff]  ;;  %v1531_v54 = vld [vmem:[%s16881_s3 + $0xc80] sm:$0xff] }
  0x29   :  { %3965 = vmatpush1.msra.mxu0 %v1418_v55  ;;  %3896 = vmatpush1.msra.mxu1 %v1187_v56  ;;  %v1300_v55 = vld [vmem:[%s16881_s3 + $0x548] sm:$0xff]  ;;  %v1530_v56 = vld [vmem:[%s16881_s3 + $0xc78] sm:$0xff] }
  0x2a   :  { %3966 = vmatprep.subr.mxu0 %v1412_v57  ;;  %3897 = vmatprep.subr.mxu1 %v1181_v58  ;;  %v1299_v57 = vld [vmem:[%s16881_s3 + $0x540] sm:$0xff]  ;;  %v1524_v58 = vld [vmem:[%s16881_s3 + $0xc48] sm:$0xff] }
  0x2b   :  { %3967 = vmatpush1.msra.mxu0 %v1411_v59  ;;  %3898 = vmatpush1.msra.mxu1 %v1180_v60  ;;  %v1293_v59 = vld [vmem:[%s16881_s3 + $0x510] sm:$0xff]  ;;  %v1523_v60 = vld [vmem:[%s16881_s3 + $0xc40] sm:$0xff] }
  0x2c   :  { %3968 = vmatprep.subr.mxu0 %v1405_v61  ;;  %3899 = vmatprep.subr.mxu1 %v1174_v62  ;;  %v1292_v61 = vld [vmem:[%s16881_s3 + $0x508] sm:$0xff]  ;;  %v1517_v62 = vld [vmem:[%s16881_s3 + $0xc10] sm:$0xff] }
  0x2d   :  { %3969 = vmatpush1.msra.mxu0 %v1404_v63  ;;  %3900 = vmatpush1.msra.mxu1 %v1173_v0  ;;  %v1286_v63 = vld [vmem:[%s16881_s3 + $0x4d8] sm:$0xff]  ;;  %v1516_v0 = vld [vmem:[%s16881_s3 + $0xc08] sm:$0xff] }
  0x2e   :  { %3970 = vmatprep.subr.mxu0 %v1398_v1  ;;  %3901 = vmatprep.subr.mxu1 %v1167_v2  ;;  %v1285_v1 = vld [vmem:[%s16881_s3 + $0x4d0] sm:$0xff]  ;;  %v1510_v2 = vld [vmem:[%s16881_s3 + $0xbd8] sm:$0xff] }
  0x2f   :  { %3971 = vmatpush1.msra.mxu0 %v1397_v4  ;;  %3902 = vmatpush1.msra.mxu1 %v1166_v5  ;;  %v1279_v4 = vld [vmem:[%s16881_s3 + $0x4a0] sm:$0xff]  ;;  %v1509_v5 = vld [vmem:[%s16881_s3 + $0xbd0] sm:$0xff] }
  0x30   :  { %3972 = vmatprep.subr.mxu0 %v1391_v6  ;;  %3903 = vmatprep.subr.mxu1 %v1160_v7  ;;  %v1278_v6 = vld [vmem:[%s16881_s3 + $0x498] sm:$0xff]  ;;  %v1503_v7 = vld [vmem:[%s16881_s3 + $0xba0] sm:$0xff] }
  0x31   :  { %3973 = vmatpush1.msra.mxu0 %v1390_v8  ;;  %3904 = vmatpush1.msra.mxu1 %v1159_v9  ;;  %v1272_v8 = vld [vmem:[%s16881_s3 + $0x468] sm:$0xff]  ;;  %v1502_v9 = vld [vmem:[%s16881_s3 + $0xb98] sm:$0xff] }
  0x32   :  { %3974 = vmatprep.subr.mxu0 %v1384_v10  ;;  %3905 = vmatprep.subr.mxu1 %v1153_v11  ;;  %v1271_v10 = vld [vmem:[%s16881_s3 + $0x460] sm:$0xff]  ;;  %v1496_v11 = vld [vmem:[%s16881_s3 + $0xb68] sm:$0xff] }
  0x33   :  { %3975 = vmatpush1.msra.mxu0 %v1383_v12  ;;  %3906 = vmatpush1.msra.mxu1 %v1152_v13  ;;  %v1265_v12 = vld [vmem:[%s16881_s3 + $0x430] sm:$0xff]  ;;  %v1495_v13 = vld [vmem:[%s16881_s3 + $0xb60] sm:$0xff] }
  0x34   :  { %3976 = vmatprep.subr.mxu0 %v1377_v14  ;;  %3907 = vmatprep.subr.mxu1 %v1146_v15  ;;  %v1264_v14 = vld [vmem:[%s16881_s3 + $0x428] sm:$0xff]  ;;  %v1489_v15 = vld [vmem:[%s16881_s3 + $0xb30] sm:$0xff] }
  0x35   :  { %3977 = vmatpush1.msra.mxu0 %v1376_v16  ;;  %3908 = vmatpush1.msra.mxu1 %v1145_v17  ;;  %v1258_v16 = vld [vmem:[%s16881_s3 + $0x3f8] sm:$0xff]  ;;  %v1488_v17 = vld [vmem:[%s16881_s3 + $0xb28] sm:$0xff] }
  0x36   :  { %3978 = vmatprep.subr.mxu0 %v1370_v18  ;;  %3909 = vmatprep.subr.mxu1 %v1139_v19  ;;  %v1257_v18 = vld [vmem:[%s16881_s3 + $0x3f0] sm:$0xff]  ;;  %v1482_v19 = vld [vmem:[%s16881_s3 + $0xaf8] sm:$0xff] }
  0x37   :  { %3979 = vmatpush1.msra.mxu0 %v1369_v20  ;;  %3910 = vmatpush1.msra.mxu1 %v1138_v21  ;;  %v1251_v20 = vld [vmem:[%s16881_s3 + $0x3c0] sm:$0xff]  ;;  %v1481_v21 = vld [vmem:[%s16881_s3 + $0xaf0] sm:$0xff] }
  0x38   :  { %3980 = vmatprep.subr.mxu0 %v1363_v22  ;;  %3911 = vmatprep.subr.mxu1 %v1132_v23  ;;  %v1250_v22 = vld [vmem:[%s16881_s3 + $0x3b8] sm:$0xff]  ;;  %v1475_v23 = vld [vmem:[%s16881_s3 + $0xac0] sm:$0xff] }
  0x39   :  { %3981 = vmatpush1.msra.mxu0 %v1362_v24  ;;  %3912 = vmatpush1.msra.mxu1 %v1131_v25  ;;  %v1244_v24 = vld [vmem:[%s16881_s3 + $0x388] sm:$0xff]  ;;  %v1474_v25 = vld [vmem:[%s16881_s3 + $0xab8] sm:$0xff] }
  0x3a   :  { %3982 = vmatprep.subr.mxu0 %v1356_v26  ;;  %3913 = vmatprep.subr.mxu1 %v1349_v27  ;;  %v1243_v26 = vld [vmem:[%s16881_s3 + $0x380] sm:$0xff]  ;;  %v1468_v27 = vld [vmem:[%s16881_s3 + $0xa88] sm:$0xff] }
  0x3b   :  { %3983 = vmatpush1.msra.mxu0 %v1355_v28  ;;  %3914 = vmatpush2.msra.mxu1 %v1348_v29  ;;  %v1685_v28 = vld [vmem:[%s16881_s3 + $0x1150] sm:$0xff]  ;;  %v1467_v29 = vld [vmem:[%s16881_s3 + $0xa80] sm:$0xff] }
  0x3c   :  { %3984 = vmatprep.subr.mxu0 %v1573_v30  ;;  %3915 = vmatprep.subr.mxu1 %v1342_v31  ;;  %v1909_v30 = vld [vmem:[%s16881_s3 + $0x1850] sm:$0xff]  ;;  %v55_v31 = vlaneseq }
  0x3d   :  { %3985 = vmatpush2.msra.mxu0 %v1572_v32  ;;  %3916 = vmatpush2.msra.mxu1 %v1341_v33 }
  0x3e   :  { %3986 = vmatprep.subr.mxu0 %v1566_v34  ;;  %3917 = vmatprep.subr.mxu1 %v1335_v35  ;;  %v8669_v32 = vshrl.u32 %v55_v31, 7  ;;  %v8680_v35 = vld [vmem:[%s16882_s2] sm:$0xff]  ;;  %v1650_v31 = vld [vmem:[%s16881_s3 + $0x1038] sm:$0xff] }
  0x3f   :  { %3987 = vmatpush2.msra.mxu0 %v1565_v36  ;;  %3918 = vmatpush2.msra.mxu1 %v1334_v37 }
  0x40   :  { %3988 = vmatprep.subr.mxu0 %v1559_v38  ;;  %3919 = vmatprep.subr.mxu1 %v1328_v39  ;;  %v8672_v33 = vsub.s32 2, %v8669_v32  ;;  %v8675_v34 = vsub.s32 0, %v8669_v32  ;;  %v8683_v36 = vsub.s32 1, %v8669_v32  ;;  %v8686_v37 = vsub.s32 3, %v8669_v32 }
  0x41   :  { %3989 = vmatpush2.msra.mxu0 %v1558_v40  ;;  %3920 = vmatpush2.msra.mxu1 %v1327_v41 }
  0x42   :  { %3990 = vmatprep.subr.mxu0 %v1552_v42  ;;  %3921 = vmatprep.subr.mxu1 %v1321_v43  ;;  %v66_v38 = vrot.slane %v8680_v35, %v8672_v33  ;;  %v58_v39 = vrot.slane %v8680_v35, %v8675_v34  ;;  %v62_v40 = vrot.slane %v8680_v35, %v8683_v36 }
  0x43   :  { %3991 = vmatpush2.msra.mxu0 %v1551_v44  ;;  %3922 = vmatpush2.msra.mxu1 %v1320_v45  ;;  %v70_v41 = vrot.slane %v8680_v35, %v8686_v37 }
  0x44   :  { %3992 = vmatprep.subr.mxu0 %v1545_v46  ;;  %3923 = vmatprep.subr.mxu1 %v1314_v47 }
  0x45   :  { %3993 = vmatpush2.msra.mxu0 %v1544_v48  ;;  %3924 = vmatpush2.msra.mxu1 %v1313_v49 }
  0x46   :  { %3994 = vmatprep.subr.mxu0 %v1538_v50  ;;  %3925 = vmatprep.subr.mxu1 %v1307_v51 }
  0x47   :  { %3995 = vmatpush2.msra.mxu0 %v1537_v52  ;;  %3926 = vmatpush2.msra.mxu1 %v1306_v53 }
  0x48   :  { %3996 = vmatprep.subr.mxu0 %v1531_v54  ;;  %3927 = vmatprep.subr.mxu1 %v1300_v55 }
  0x49   :  { %3997 = vmatpush2.msra.mxu0 %v1530_v56  ;;  %3928 = vmatpush2.msra.mxu1 %v1299_v57  ;;  %v1684_v56 = vld [vmem:[%s16881_s3 + $0x1148] sm:$0xff] }
  0x4a   :  { %3998 = vmatprep.subr.mxu0 %v1524_v58  ;;  %3929 = vmatprep.subr.mxu1 %v1293_v59  ;;  %v1908_v57 = vld [vmem:[%s16881_s3 + $0x1848] sm:$0xff] }
  0x4b   :  { %3999 = vmatpush2.msra.mxu0 %v1523_v60  ;;  %3930 = vmatpush2.msra.mxu1 %v1292_v61  ;;  %v1678_v60 = vld [vmem:[%s16881_s3 + $0x1118] sm:$0xff] }
  0x4c   :  { %4000 = vmatprep.subr.mxu0 %v1517_v62  ;;  %3931 = vmatprep.subr.mxu1 %v1286_v63  ;;  %v1902_v61 = vld [vmem:[%s16881_s3 + $0x1818] sm:$0xff]  ;;  %v8727_v62 = vsub.s32 4, %v8669_v32  ;;  %v8730_v63 = vsub.s32 6, %v8669_v32 }
  0x4d   :  { %4001 = vmatpush2.msra.mxu0 %v1516_v0  ;;  %3932 = vmatpush2.msra.mxu1 %v1285_v1  ;;  %v1677_v0 = vld [vmem:[%s16881_s3 + $0x1110] sm:$0xff] }
  0x4e   :  { %4002 = vmatprep.subr.mxu0 %v1510_v2  ;;  %3933 = vmatprep.subr.mxu1 %v1279_v4  ;;  %v1901_v1 = vld [vmem:[%s16881_s3 + $0x1810] sm:$0xff]  ;;  %v8743_v2 = vld [vmem:[%s16882_s2 + $0x8] sm:$0xff] }
  0x4f   :  { %4003 = vmatpush2.msra.mxu0 %v1509_v5  ;;  %3934 = vmatpush2.msra.mxu1 %v1278_v6  ;;  %v1671_v6 = vld [vmem:[%s16881_s3 + $0x10e0] sm:$0xff] }
  0x50   :  { %4004 = vmatprep.subr.mxu0 %v1503_v7  ;;  %3935 = vmatprep.subr.mxu1 %v1272_v8  ;;  %v1895_v7 = vld [vmem:[%s16881_s3 + $0x17e0] sm:$0xff]  ;;  %v114_v8 = vrot.slane %v8743_v2, %v8730_v63 }
  0x51   :  { %4005 = vmatpush2.msra.mxu0 %v1502_v9  ;;  %3936 = vmatpush2.msra.mxu1 %v1271_v10  ;;  %v106_v9 = vrot.slane %v8743_v2, %v8727_v62  ;;  %v8762_v10 = vld [vmem:[%s16882_s2 + $0x10] sm:$0xff] }
  0x52   :  { %4006 = vmatprep.subr.mxu0 %v1496_v11  ;;  %3937 = vmatprep.subr.mxu1 %v1265_v12  ;;  %v1670_v11 = vld [vmem:[%s16881_s3 + $0x10d8] sm:$0xff] }
  0x53   :  { %4007 = vmatpush2.msra.mxu0 %v1495_v13  ;;  %3938 = vmatpush2.msra.mxu1 %v1264_v14  ;;  %v1894_v12 = vld [vmem:[%s16881_s3 + $0x17d8] sm:$0xff] }
  0x54   :  { %4008 = vmatprep.subr.mxu0 %v1489_v15  ;;  %3939 = vmatprep.subr.mxu1 %v1258_v16  ;;  %v1664_v15 = vld [vmem:[%s16881_s3 + $0x10a8] sm:$0xff] }
  0x55   :  { %4009 = vmatpush2.msra.mxu0 %v1488_v17  ;;  %3940 = vmatpush2.msra.mxu1 %v1257_v18  ;;  %v1888_v16 = vld [vmem:[%s16881_s3 + $0x17a8] sm:$0xff]  ;;  %v1663_v17 = vld [vmem:[%s16881_s3 + $0x10a0] sm:$0xff] }
  0x56   :  { %4010 = vmatprep.subr.mxu0 %v1482_v19  ;;  %3941 = vmatprep.subr.mxu1 %v1251_v20  ;;  %v1887_v18 = vld [vmem:[%s16881_s3 + $0x17a0] sm:$0xff] }
  0x57   :  { %4011 = vmatpush2.msra.mxu0 %v1481_v21  ;;  %3942 = vmatpush2.msra.mxu1 %v1250_v22  ;;  %v130_v21 = vrot.slane %v8762_v10, %v8672_v33  ;;  %v1657_v22 = vld [vmem:[%s16881_s3 + $0x1070] sm:$0xff] }
  0x58   :  { %4012 = vmatprep.subr.mxu0 %v1475_v23  ;;  %3943 = vmatprep.subr.mxu1 %v1244_v24  ;;  %v1881_v23 = vld [vmem:[%s16881_s3 + $0x1770] sm:$0xff] }
  0x59   :  { %4013 = vmatpush2.msra.mxu0 %v1474_v25  ;;  %3944 = vmatpush2.msra.mxu1 %v1243_v26  ;;  %v122_v26 = vrot.slane %v8762_v10, %v8675_v34 }
  0x5a   :  { %4014 = vmatprep.subr.mxu0 %v1468_v27  ;;  %4023 = vmatprep.subr.mxu1 %v1685_v28  ;;  %v1656_v27 = vld [vmem:[%s16881_s3 + $0x1068] sm:$0xff] }
  0x5b   :  { %4015 = vmatpush2.msra.mxu0 %v1467_v29  ;;  %v1880_v28 = vld [vmem:[%s16881_s3 + $0x1768] sm:$0xff] }
  0x5c   :  { %4094 = vmatprep.subr.mxu0 %v1909_v30 }
  0xc4   :  { %v250_v42 = vpop.f32.mrf.mxu0  ;;  %v321_v43 = vpop.f32.mrf.mxu1 }
  0xc5   :  { %v322_v44 = vadd.f32 %v321_v43, %v66_v38  ;;  %v251_v45 = vadd.f32 %v250_v42, %v58_v39  ;;  %v1874_v38 = vld [vmem:[%s16881_s3 + $0x1738] sm:$0xff]  ;;  %v1649_v39 = vld [vmem:[%s16881_s3 + $0x1030] sm:$0xff]  ;;  %v1643_v43 = vld [vmem:[%s16881_s3 + $0x1000] sm:$0xff] }
  0xc6   :  { %v252_v46 = vpop.f32.mrf.mxu0  ;;  %v323_v47 = vpop.f32.mrf.mxu1 }
  0xc7   :  { %v253_v48 = vadd.f32 %v252_v46, %v62_v40  ;;  %v324_v49 = vadd.f32 %v323_v47, %v70_v41  ;;  %v8696_v50 = vmax.f32 %v322_v44, 0.0  ;;  %v8706_v55 = vmax.f32 %v251_v45, 0.0  ;;  %v1873_v40 = vld [vmem:[%s16881_s3 + $0x1730] sm:$0xff]  ;;  %v1867_v44 = vld [vmem:[%s16881_s3 + $0x1700] sm:$0xff] }
  0xc8   :  { %v8698_v51 = vpop.f32.mrf.mxu0  ;;  %v8700_v52 = vpop.f32.mrf.mxu1  ;;  %v8829_v45 = vsub.s32 5, %v8669_v32 }
  0xc9   :  { %v8702_v53 = vmax.f32 %v253_v48, 0.0  ;;  %v8704_v54 = vmax.f32 %v324_v49, 0.0  ;;  %v138_v48 = vrot.slane %v8762_v10, %v8727_v62  ;;  %v1642_v49 = vld [vmem:[%s16881_s3 + $0xff8] sm:$0xff] }
  0xca   :  { %v8714_v58 = vpop.f32.mrf.mxu0  ;;  %v8716_v59 = vpop.f32.mrf.mxu1 }
  0xcb   :  { %3945 = vmatprep.mubr.f32.mxu1 %v8702_v53  ;;  %4016 = vmatprep.mubr.f32.mxu0 %v8704_v54 }
  0xcc   :  { %3946 = vmatmul.mubr.f32.vlgmr.msra.gmra.mxu1 %v8706_v55  ;;  %4017 = vmatmul.mubr.f32.vlgmr.msra.gmra.mxu0 %v8696_v50  ;;  %v8745_v4 = vpop.f32.mrf.mxu1  ;;  %v8747_v5 = vpop.f32.mrf.mxu0 }
  0xcd   :  { %4024 = vmatpush1.msra.mxu1 %v1684_v56  ;;  %4095 = vmatpush1.msra.mxu0 %v1908_v57  ;;  %v1866_v56 = vld [vmem:[%s16881_s3 + $0x16f8] sm:$0xff] }
  0xce   :  { %4025 = vmatprep.subr.mxu1 %v1678_v60  ;;  %4096 = vmatprep.subr.mxu0 %v1902_v61  ;;  %v8770_v13 = vpop.f32.mrf.mxu1  ;;  %v8772_v14 = vpop.f32.mrf.mxu0  ;;  %v146_v61 = vrot.slane %v8762_v10, %v8730_v63 }
  0xcf   :  { %4026 = vmatpush1.msra.mxu1 %v1677_v0  ;;  %4097 = vmatpush1.msra.mxu0 %v1901_v1  ;;  %v1636_v0 = vld [vmem:[%s16881_s3 + $0xfc8] sm:$0xff] }
  0xd0   :  { %4027 = vmatprep.subr.mxu1 %v1671_v6  ;;  %4098 = vmatprep.subr.mxu0 %v1895_v7  ;;  %v747_v19 = vpop.f32.mrf.mxu1  ;;  %v676_v20 = vpop.f32.mrf.mxu0  ;;  %v1860_v1 = vld [vmem:[%s16881_s3 + $0x16c8] sm:$0xff]  ;;  %v142_v6 = vrot.slane %v8762_v10, %v8829_v45  ;;  %v1635_v7 = vld [vmem:[%s16881_s3 + $0xfc0] sm:$0xff]  ;;  %v1853_v10 = vld [vmem:[%s16881_s3 + $0x1690] sm:$0xff] }
  0xd1   :  { %4028 = vmatpush1.msra.mxu1 %v1670_v11  ;;  %4099 = vmatpush1.msra.mxu0 %v1894_v12  ;;  %v8794_v24 = vadd.f32 %v747_v19, %v114_v8  ;;  %v8796_v25 = vadd.f32 %v676_v20, %v106_v9  ;;  %v1859_v8 = vld [vmem:[%s16881_s3 + $0x16c0] sm:$0xff]  ;;  %v1629_v11 = vld [vmem:[%s16881_s3 + $0xf90] sm:$0xff]  ;;  %v1622_v20 = vld [vmem:[%s16881_s3 + $0xf58] sm:$0xff] }
  0xd2   :  { %4029 = vmatprep.subr.mxu1 %v1664_v15  ;;  %4100 = vmatprep.subr.mxu0 %v1888_v16  ;;  %v8806_v29 = vpop.f32.mrf.mxu1  ;;  %v8808_v30 = vpop.f32.mrf.mxu0  ;;  %v1628_v16 = vld [vmem:[%s16881_s3 + $0xf88] sm:$0xff] }
  0xd3   :  { %4030 = vmatpush1.msra.mxu1 %v1663_v17  ;;  %4101 = vmatpush1.msra.mxu0 %v1887_v18  ;;  %v1852_v17 = vld [vmem:[%s16881_s3 + $0x1688] sm:$0xff] }
  0xd4   :  { %4031 = vmatprep.subr.mxu1 %v1657_v22  ;;  %4102 = vmatprep.subr.mxu0 %v1881_v23  ;;  %v889_v41 = vpop.f32.mrf.mxu1  ;;  %v818_v42 = vpop.f32.mrf.mxu0  ;;  %v1621_v23 = vld [vmem:[%s16881_s3 + $0xf50] sm:$0xff] }
  0xd5   :  { %4032 = vmatpush1.msra.mxu1 %v1656_v27  ;;  %4103 = vmatpush1.msra.mxu0 %v1880_v28  ;;  %v8831_v46 = vadd.f32 %v889_v41, %v130_v21  ;;  %v8833_v47 = vadd.f32 %v818_v42, %v122_v26  ;;  %v1846_v21 = vld [vmem:[%s16881_s3 + $0x1658] sm:$0xff]  ;;  %v1845_v26 = vld [vmem:[%s16881_s3 + $0x1650] sm:$0xff]  ;;  %v1615_v28 = vld [vmem:[%s16881_s3 + $0xf20] sm:$0xff] }
  0xd6   :  { %4033 = vmatprep.subr.mxu1 %v1650_v31  ;;  %4104 = vmatprep.subr.mxu0 %v1874_v38  ;;  %v8843_v57 = vpop.f32.mrf.mxu1  ;;  %v8845_v60 = vpop.f32.mrf.mxu0  ;;  %v1839_v31 = vld [vmem:[%s16881_s3 + $0x1620] sm:$0xff]  ;;  %v1614_v38 = vld [vmem:[%s16881_s3 + $0xf18] sm:$0xff]  ;;  %v1608_v41 = vld [vmem:[%s16881_s3 + $0xee8] sm:$0xff] }
  0xd7   :  { %4034 = vmatpush1.msra.mxu1 %v1649_v39  ;;  %4105 = vmatpush1.msra.mxu0 %v1873_v40  ;;  %v1838_v39 = vld [vmem:[%s16881_s3 + $0x1618] sm:$0xff]  ;;  %v1832_v42 = vld [vmem:[%s16881_s3 + $0x15e8] sm:$0xff] }
  0xd8   :  { %4035 = vmatprep.subr.mxu1 %v1643_v43  ;;  %4106 = vmatprep.subr.mxu0 %v1867_v44  ;;  %v960_v9 = vpop.f32.mrf.mxu0  ;;  %v1607_v43 = vld [vmem:[%s16881_s3 + $0xee0] sm:$0xff] }
  0xd9   :  { %4036 = vmatpush1.msra.mxu1 %v1642_v49  ;;  %4107 = vmatpush1.msra.mxu0 %v1866_v56  ;;  %v1031_v12 = vpop.f32.mrf.mxu1  ;;  %v8869_v15 = vadd.f32 %v960_v9, %v138_v48  ;;  %v1831_v44 = vld [vmem:[%s16881_s3 + $0x15e0] sm:$0xff]  ;;  %v1601_v48 = vld [vmem:[%s16881_s3 + $0xeb0] sm:$0xff]  ;;  %v1600_v56 = vld [vmem:[%s16881_s3 + $0xea8] sm:$0xff] }
  0xda   :  { %4037 = vmatprep.subr.mxu1 %v1636_v0  ;;  %4108 = vmatprep.subr.mxu0 %v1860_v1  ;;  %v8877_v18 = vadd.f32 %v1031_v12, %v146_v61  ;;  %v962_v19 = vpop.f32.mrf.mxu0  ;;  %v1825_v49 = vld [vmem:[%s16881_s3 + $0x15b0] sm:$0xff]  ;;  %v1824_v61 = vld [vmem:[%s16881_s3 + $0x15a8] sm:$0xff]  ;;  %v1594_v0 = vld [vmem:[%s16881_s3 + $0xe78] sm:$0xff] }
  0xdb   :  { %4038 = vmatpush1.msra.mxu1 %v1635_v7  ;;  %4109 = vmatpush1.msra.mxu0 %v1859_v8  ;;  %v8885_v22 = vadd.f32 %v962_v19, %v142_v6  ;;  %v1818_v1 = vld [vmem:[%s16881_s3 + $0x1578] sm:$0xff]  ;;  %v1593_v6 = vld [vmem:[%s16881_s3 + $0xe70] sm:$0xff]  ;;  %v1587_v8 = vld [vmem:[%s16881_s3 + $0xe40] sm:$0xff] }
  0xdc   :  { %4039 = vmatprep.subr.mxu1 %v1629_v11  ;;  %4110 = vmatprep.subr.mxu0 %v1853_v10  ;;  %v8893_v27 = vpop.f32.mrf.mxu0  ;;  %v1817_v7 = vld [vmem:[%s16881_s3 + $0x1570] sm:$0xff]  ;;  %v1811_v9 = vld [vmem:[%s16881_s3 + $0x1540] sm:$0xff]  ;;  %v1586_v11 = vld [vmem:[%s16881_s3 + $0xe38] sm:$0xff] }
  0xdd   :  { %4040 = vmatpush1.msra.mxu1 %v1628_v16  ;;  %4111 = vmatpush1.msra.mxu0 %v1852_v17  ;;  %v1810_v10 = vld [vmem:[%s16881_s3 + $0x1538] sm:$0xff]  ;;  %v1580_v12 = vld [vmem:[%s16881_s3 + $0xe08] sm:$0xff]  ;;  %v1579_v17 = vld [vmem:[%s16881_s3 + $0xe00] sm:$0xff] }
  0xde   :  { %4041 = vmatprep.subr.mxu1 %v1622_v20  ;;  %4112 = vmatprep.subr.mxu0 %v1846_v21  ;;  %v8074_v40 = vpop.f32.mrf.mxu0  ;;  %v1804_v16 = vld [vmem:[%s16881_s3 + $0x1508] sm:$0xff]  ;;  %v1803_v19 = vld [vmem:[%s16881_s3 + $0x1500] sm:$0xff]  ;;  %v1797_v20 = vld [vmem:[%s16881_s3 + $0x14d0] sm:$0xff] }
  0xdf   :  { %4042 = vmatpush1.msra.mxu1 %v1621_v23  ;;  %4113 = vmatpush1.msra.mxu0 %v1845_v26  ;;  %v2021_v21 = vld [vmem:[%s16881_s3 + $0x1bd0] sm:$0xff]  ;;  %v1796_v23 = vld [vmem:[%s16881_s3 + $0x14c8] sm:$0xff]  ;;  %v1783_v40 = vld [vmem:[%s16881_s3 + $0x1460] sm:$0xff] }
  0xe0   :  { %4043 = vmatprep.subr.mxu1 %v1615_v28  ;;  %4114 = vmatprep.subr.mxu0 %v1839_v31  ;;  %v2020_v26 = vld [vmem:[%s16881_s3 + $0x1bc8] sm:$0xff]  ;;  %v1790_v28 = vld [vmem:[%s16881_s3 + $0x1498] sm:$0xff] }
  0xe1   :  { %4044 = vmatpush1.msra.mxu1 %v1614_v38  ;;  %4115 = vmatpush1.msra.mxu0 %v1838_v39  ;;  %v2014_v31 = vld [vmem:[%s16881_s3 + $0x1b98] sm:$0xff]  ;;  %v1789_v38 = vld [vmem:[%s16881_s3 + $0x1490] sm:$0xff] }
  0xe2   :  { %4045 = vmatprep.subr.mxu1 %v1608_v41  ;;  %4116 = vmatprep.subr.mxu0 %v1832_v42  ;;  %v2013_v39 = vld [vmem:[%s16881_s3 + $0x1b90] sm:$0xff]  ;;  %v2007_v41 = vld [vmem:[%s16881_s3 + $0x1b60] sm:$0xff]  ;;  %v1782_v42 = vld [vmem:[%s16881_s3 + $0x1458] sm:$0xff] }
  0xe3   :  { %4046 = vmatpush1.msra.mxu1 %v1607_v43  ;;  %4117 = vmatpush1.msra.mxu0 %v1831_v44  ;;  %v2006_v43 = vld [vmem:[%s16881_s3 + $0x1b58] sm:$0xff]  ;;  %v1776_v44 = vld [vmem:[%s16881_s3 + $0x1428] sm:$0xff] }
  0xe4   :  { %4047 = vmatprep.subr.mxu1 %v1601_v48  ;;  %4118 = vmatprep.subr.mxu0 %v1825_v49  ;;  %v2000_v48 = vld [vmem:[%s16881_s3 + $0x1b28] sm:$0xff]  ;;  %v1775_v49 = vld [vmem:[%s16881_s3 + $0x1420] sm:$0xff] }
  0xe5   :  { %4048 = vmatpush1.msra.mxu1 %v1600_v56  ;;  %4119 = vmatpush1.msra.mxu0 %v1824_v61  ;;  %v1999_v56 = vld [vmem:[%s16881_s3 + $0x1b20] sm:$0xff]  ;;  %v1769_v61 = vld [vmem:[%s16881_s3 + $0x13f0] sm:$0xff] }
  0xe6   :  { %4049 = vmatprep.subr.mxu1 %v1594_v0  ;;  %4120 = vmatprep.subr.mxu0 %v1818_v1  ;;  %v1993_v0 = vld [vmem:[%s16881_s3 + $0x1af0] sm:$0xff]  ;;  %v1768_v1 = vld [vmem:[%s16881_s3 + $0x13e8] sm:$0xff] }
  0xe7   :  { %4050 = vmatpush1.msra.mxu1 %v1593_v6  ;;  %4121 = vmatpush1.msra.mxu0 %v1817_v7  ;;  %v1992_v6 = vld [vmem:[%s16881_s3 + $0x1ae8] sm:$0xff]  ;;  %v1762_v7 = vld [vmem:[%s16881_s3 + $0x13b8] sm:$0xff] }
  0xe8   :  { %4051 = vmatprep.subr.mxu1 %v1587_v8  ;;  %4122 = vmatprep.subr.mxu0 %v1811_v9  ;;  %v1986_v8 = vld [vmem:[%s16881_s3 + $0x1ab8] sm:$0xff]  ;;  %v1761_v9 = vld [vmem:[%s16881_s3 + $0x13b0] sm:$0xff] }
  0xe9   :  { %4052 = vmatpush1.msra.mxu1 %v1586_v11  ;;  %4123 = vmatpush1.msra.mxu0 %v1810_v10  ;;  %v1985_v11 = vld [vmem:[%s16881_s3 + $0x1ab0] sm:$0xff]  ;;  %v1755_v10 = vld [vmem:[%s16881_s3 + $0x1380] sm:$0xff] }
  0xea   :  { %4053 = vmatprep.subr.mxu1 %v1580_v12  ;;  %4124 = vmatprep.subr.mxu0 %v1804_v16  ;;  %v1979_v12 = vld [vmem:[%s16881_s3 + $0x1a80] sm:$0xff]  ;;  %v1754_v16 = vld [vmem:[%s16881_s3 + $0x1378] sm:$0xff] }
  0xeb   :  { %4054 = vmatpush1.msra.mxu1 %v1579_v17  ;;  %4125 = vmatpush1.msra.mxu0 %v1803_v19  ;;  %v1978_v17 = vld [vmem:[%s16881_s3 + $0x1a78] sm:$0xff]  ;;  %v1748_v19 = vld [vmem:[%s16881_s3 + $0x1348] sm:$0xff] }
  0xec   :  { %4055 = vmatprep.subr.mxu1 %v1797_v20  ;;  %4126 = vmatprep.subr.mxu0 %v2021_v21  ;;  %v1972_v20 = vld [vmem:[%s16881_s3 + $0x1a48] sm:$0xff]  ;;  %v1747_v21 = vld [vmem:[%s16881_s3 + $0x1340] sm:$0xff] }
  0xed   :  { %4056 = vmatpush2.msra.mxu1 %v1796_v23  ;;  %4127 = vmatpush2.msra.mxu0 %v2020_v26  ;;  %v1971_v23 = vld [vmem:[%s16881_s3 + $0x1a40] sm:$0xff]  ;;  %v1741_v26 = vld [vmem:[%s16881_s3 + $0x1310] sm:$0xff] }
  0xee   :  { %4057 = vmatprep.subr.mxu1 %v1790_v28  ;;  %4128 = vmatprep.subr.mxu0 %v2014_v31  ;;  %v1965_v28 = vld [vmem:[%s16881_s3 + $0x1a10] sm:$0xff]  ;;  %v1740_v31 = vld [vmem:[%s16881_s3 + $0x1308] sm:$0xff] }
  0xef   :  { %4058 = vmatpush2.msra.mxu1 %v1789_v38  ;;  %4129 = vmatpush2.msra.mxu0 %v2013_v39  ;;  %v1964_v38 = vld [vmem:[%s16881_s3 + $0x1a08] sm:$0xff]  ;;  %v1734_v39 = vld [vmem:[%s16881_s3 + $0x12d8] sm:$0xff] }
  0xf0   :  { %4059 = vmatprep.subr.mxu1 %v1783_v40  ;;  %4130 = vmatprep.subr.mxu0 %v2007_v41  ;;  %v1958_v40 = vld [vmem:[%s16881_s3 + $0x19d8] sm:$0xff]  ;;  %v1733_v41 = vld [vmem:[%s16881_s3 + $0x12d0] sm:$0xff] }
  0xf1   :  { %4060 = vmatpush2.msra.mxu1 %v1782_v42  ;;  %4131 = vmatpush2.msra.mxu0 %v2006_v43  ;;  %v1957_v42 = vld [vmem:[%s16881_s3 + $0x19d0] sm:$0xff]  ;;  %v1727_v43 = vld [vmem:[%s16881_s3 + $0x12a0] sm:$0xff] }
  0xf2   :  { %4061 = vmatprep.subr.mxu1 %v1776_v44  ;;  %4132 = vmatprep.subr.mxu0 %v2000_v48  ;;  %v1951_v44 = vld [vmem:[%s16881_s3 + $0x19a0] sm:$0xff]  ;;  %v9094_v48 = vsub.s32 7, %v8669_v32  ;;  %v1720_v32 = vld [vmem:[%s16881_s3 + $0x1268] sm:$0xff] }
  0xf3   :  { %4062 = vmatpush2.msra.mxu1 %v1775_v49  ;;  %4133 = vmatpush2.msra.mxu0 %v1999_v56  ;;  %v1726_v49 = vld [vmem:[%s16881_s3 + $0x1298] sm:$0xff] }
  0xf4   :  { %4063 = vmatprep.subr.mxu1 %v1769_v61  ;;  %4134 = vmatprep.subr.mxu0 %v1993_v0  ;;  %v1950_v56 = vld [vmem:[%s16881_s3 + $0x1998] sm:$0xff]  ;;  %v78_v61 = vrot.slane %v8680_v35, %v8829_v45  ;;  %v1944_v0 = vld [vmem:[%s16881_s3 + $0x1968] sm:$0xff] }
  0xf5   :  { %4064 = vmatpush2.msra.mxu1 %v1768_v1  ;;  %4135 = vmatpush2.msra.mxu0 %v1992_v6  ;;  %v1719_v1 = vld [vmem:[%s16881_s3 + $0x1260] sm:$0xff] }
  0xf6   :  { %4065 = vmatprep.subr.mxu1 %v1762_v7  ;;  %4136 = vmatprep.subr.mxu0 %v1986_v8  ;;  %v1943_v6 = vld [vmem:[%s16881_s3 + $0x1960] sm:$0xff]  ;;  %v1713_v7 = vld [vmem:[%s16881_s3 + $0x1230] sm:$0xff] }
  0xf7   :  { %4066 = vmatpush2.msra.mxu1 %v1761_v9  ;;  %4137 = vmatpush2.msra.mxu0 %v1985_v11  ;;  %v1937_v8 = vld [vmem:[%s16881_s3 + $0x1930] sm:$0xff]  ;;  %v86_v9 = vrot.slane %v8680_v35, %v9094_v48  ;;  %v74_v11 = vrot.slane %v8680_v35, %v8727_v62 }
  0xf8   :  { %4067 = vmatprep.subr.mxu1 %v1755_v10  ;;  %4138 = vmatprep.subr.mxu0 %v1979_v12  ;;  %v395_v10 = vadd.f32 %v8714_v58, %v78_v61  ;;  %v82_v12 = vrot.slane %v8680_v35, %v8730_v63  ;;  %v1930_v58 = vld [vmem:[%s16881_s3 + $0x18f8] sm:$0xff]  ;;  %v1705_v35 = vld [vmem:[%s16881_s3 + $0x11f0] sm:$0xff] }
  0xf9   :  { %4068 = vmatpush2.msra.mxu1 %v1754_v16  ;;  %4139 = vmatpush2.msra.mxu0 %v1978_v17  ;;  %v1712_v16 = vld [vmem:[%s16881_s3 + $0x1228] sm:$0xff]  ;;  %v1929_v62 = vld [vmem:[%s16881_s3 + $0x18f0] sm:$0xff]  ;;  %v466_v63 = vadd.f32 %v8716_v59, %v86_v9  ;;  %v1698_v59 = vld [vmem:[%s16881_s3 + $0x11b8] sm:$0xff] }
  0xfa   :  { %4069 = vmatprep.subr.mxu1 %v1748_v19  ;;  %4140 = vmatprep.subr.mxu0 %v1972_v20  ;;  %v1936_v17 = vld [vmem:[%s16881_s3 + $0x1928] sm:$0xff]  ;;  %v1706_v19 = vld [vmem:[%s16881_s3 + $0x11f8] sm:$0xff]  ;;  %v1699_v20 = vld [vmem:[%s16881_s3 + $0x11c0] sm:$0xff] }
  0xfb   :  { %4070 = vmatpush2.msra.mxu1 %v1747_v21  ;;  %4141 = vmatpush2.msra.mxu0 %v1971_v23  ;;  %v1923_v21 = vld [vmem:[%s16881_s3 + $0x18c0] sm:$0xff]  ;;  %v393_v23 = vadd.f32 %v8698_v51, %v74_v11  ;;  %v1692_v51 = vld [vmem:[%s16881_s3 + $0x1188] sm:$0xff]  ;;  %v2126_v61 = vld [vmem:[%s16881_s3 + $0x1f18] sm:$0xff] }
  0xfc   :  { %4071 = vmatprep.subr.mxu1 %v1741_v26  ;;  %4142 = vmatprep.subr.mxu0 %v1965_v28  ;;  %v9155_v26 = vmax.f32 %v395_v10, 0.0  ;;  %v464_v28 = vadd.f32 %v8700_v52, %v82_v12  ;;  %v1916_v52 = vld [vmem:[%s16881_s3 + $0x1888] sm:$0xff]  ;;  %v2342_v9 = vld [vmem:[%s16881_s3 + $0x25d8] sm:$0xff]  ;;  %v2111_v12 = vld [vmem:[%s16881_s3 + $0x1ea0] sm:$0xff] }
  0xfd   :  { %4072 = vmatpush2.msra.mxu1 %v1740_v31  ;;  %4143 = vmatpush2.msra.mxu0 %v1964_v38  ;;  %v1922_v31 = vld [vmem:[%s16881_s3 + $0x18b8] sm:$0xff]  ;;  %v1691_v38 = vld [vmem:[%s16881_s3 + $0x1180] sm:$0xff]  ;;  %v2112_v11 = vld [vmem:[%s16881_s3 + $0x1ea8] sm:$0xff] }
  0xfe   :  { %4073 = vmatprep.subr.mxu1 %v1734_v39  ;;  %4144 = vmatprep.subr.mxu0 %v1958_v40  ;;  %v9173_v39 = vmax.f32 %v466_v63, 0.0  ;;  %v1915_v40 = vld [vmem:[%s16881_s3 + $0x1880] sm:$0xff]  ;;  %v2336_v10 = vld [vmem:[%s16881_s3 + $0x25a8] sm:$0xff]  ;;  %v2322_v63 = vld [vmem:[%s16881_s3 + $0x2538] sm:$0xff] }
  0xff   :  { %4074 = vmatpush2.msra.mxu1 %v1733_v41  ;;  %4145 = vmatpush2.msra.mxu0 %v1957_v42  ;;  %v9178_v41 = vmax.f32 %v393_v23, 0.0  ;;  %v9180_v42 = vmax.f32 %v464_v28, 0.0  ;;  %v2091_v23 = vld [vmem:[%s16881_s3 + $0x1e00] sm:$0xff] }
 0x100   :  { %4075 = vmatprep.subr.mxu1 %v1727_v43  ;;  %4146 = vmatprep.subr.mxu0 %v1951_v44  ;;  %v2133_v43 = vld [vmem:[%s16881_s3 + $0x1f50] sm:$0xff]  ;;  %v2315_v28 = vld [vmem:[%s16881_s3 + $0x2500] sm:$0xff] }
 0x101   :  { %4076 = vmatpush2.msra.mxu1 %v1726_v49  ;;  %4147 = vmatpush2.msra.mxu0 %v1950_v56  ;;  %v2357_v44 = vld [vmem:[%s16881_s3 + $0x2650] sm:$0xff]  ;;  %v2132_v49 = vld [vmem:[%s16881_s3 + $0x1f48] sm:$0xff] }
 0x102   :  { %4077 = vmatprep.subr.mxu1 %v1720_v32  ;;  %4148 = vmatprep.subr.mxu0 %v1944_v0  ;;  %v2356_v56 = vld [vmem:[%s16881_s3 + $0x2648] sm:$0xff]  ;;  %v2350_v32 = vld [vmem:[%s16881_s3 + $0x2618] sm:$0xff]  ;;  %v2125_v0 = vld [vmem:[%s16881_s3 + $0x1f10] sm:$0xff] }
 0x103   :  { %4078 = vmatpush2.msra.mxu1 %v1719_v1  ;;  %4149 = vmatpush2.msra.mxu0 %v1943_v6  ;;  %v2349_v1 = vld [vmem:[%s16881_s3 + $0x2610] sm:$0xff]  ;;  %v2119_v6 = vld [vmem:[%s16881_s3 + $0x1ee0] sm:$0xff] }
 0x104   :  { %4079 = vmatprep.subr.mxu1 %v1713_v7  ;;  %4150 = vmatprep.subr.mxu0 %v1937_v8  ;;  %v2343_v7 = vld [vmem:[%s16881_s3 + $0x25e0] sm:$0xff]  ;;  %v2118_v8 = vld [vmem:[%s16881_s3 + $0x1ed8] sm:$0xff] }
 0x105   :  { %4080 = vmatpush2.msra.mxu1 %v1712_v16  ;;  %4151 = vmatpush2.msra.mxu0 %v1936_v17  ;;  %v2335_v16 = vld [vmem:[%s16881_s3 + $0x25a0] sm:$0xff]  ;;  %v2105_v17 = vld [vmem:[%s16881_s3 + $0x1e70] sm:$0xff] }
 0x106   :  { %4081 = vmatprep.subr.mxu1 %v1706_v19  ;;  %4152 = vmatprep.subr.mxu0 %v1930_v58  ;;  %v2329_v19 = vld [vmem:[%s16881_s3 + $0x2570] sm:$0xff]  ;;  %v2104_v58 = vld [vmem:[%s16881_s3 + $0x1e68] sm:$0xff] }
 0x107   :  { %4082 = vmatpush2.msra.mxu1 %v1705_v35  ;;  %4153 = vmatpush2.msra.mxu0 %v1929_v62  ;;  %v2328_v35 = vld [vmem:[%s16881_s3 + $0x2568] sm:$0xff]  ;;  %v2098_v62 = vld [vmem:[%s16881_s3 + $0x1e38] sm:$0xff] }
 0x108   :  { %4083 = vmatprep.subr.mxu1 %v1699_v20  ;;  %4154 = vmatprep.subr.mxu0 %v1923_v21  ;;  %v2097_v20 = vld [vmem:[%s16881_s3 + $0x1e30] sm:$0xff] }
 0x109   :  { %4084 = vmatpush2.msra.mxu1 %v1698_v59  ;;  %4155 = vmatpush2.msra.mxu0 %v1922_v31  ;;  %v2321_v21 = vld [vmem:[%s16881_s3 + $0x2530] sm:$0xff]  ;;  %v2090_v59 = vld [vmem:[%s16881_s3 + $0x1df8] sm:$0xff] }
 0x10a   :  { %4085 = vmatprep.subr.mxu1 %v1692_v51  ;;  %4087 = vmatprep.mubr.f32.mxu1 %v9155_v26  ;;  %v2314_v31 = vld [vmem:[%s16881_s3 + $0x24f8] sm:$0xff]  ;;  %v2084_v51 = vld [vmem:[%s16881_s3 + $0x1dc8] sm:$0xff] }
 0x10b   :  { %4156 = vmatprep.subr.mxu0 %v1916_v52  ;;  %4086 = vmatpush2.msra.mxu1 %v1691_v38  ;;  %v2308_v52 = vld [vmem:[%s16881_s3 + $0x24c8] sm:$0xff]  ;;  %v2083_v38 = vld [vmem:[%s16881_s3 + $0x1dc0] sm:$0xff] }
 0x10c   :  { %4157 = vmatpush2.msra.mxu0 %v1915_v40  ;;  %4088 = vmatmul.mubr.f32.vlgmr.msra.gmra.mxu1 %v9178_v41  ;;  %v2307_v40 = vld [vmem:[%s16881_s3 + $0x24c0] sm:$0xff] }
 0x10d   :  { %4158 = vmatprep.mubr.f32.mxu0 %v9173_v39  ;;  %4165 = vmatprep.subr.mxu1 %v2133_v43  ;;  %v2077_v43 = vld [vmem:[%s16881_s3 + $0x1d90] sm:$0xff] }
 0x10e   :  { %4236 = vmatprep.subr.mxu0 %v2357_v44  ;;  %4159 = vmatmul.mubr.f32.vlgmr.msra.gmra.mxu0 %v9180_v42  ;;  %v2301_v44 = vld [vmem:[%s16881_s3 + $0x2490] sm:$0xff] }
 0x10f   :  { %4166 = vmatpush1.msra.mxu1 %v2132_v49  ;;  %4237 = vmatpush1.msra.mxu0 %v2356_v56  ;;  %v2076_v49 = vld [vmem:[%s16881_s3 + $0x1d88] sm:$0xff] }
 0x110   :  { %4167 = vmatprep.subr.mxu1 %v2126_v61  ;;  %4238 = vmatprep.subr.mxu0 %v2350_v32  ;;  %v2300_v56 = vld [vmem:[%s16881_s3 + $0x2488] sm:$0xff]  ;;  %v2070_v61 = vld [vmem:[%s16881_s3 + $0x1d58] sm:$0xff] }
 0x111   :  { %4168 = vmatpush1.msra.mxu1 %v2125_v0  ;;  %4239 = vmatpush1.msra.mxu0 %v2349_v1  ;;  %v2294_v32 = vld [vmem:[%s16881_s3 + $0x2458] sm:$0xff]  ;;  %v2069_v0 = vld [vmem:[%s16881_s3 + $0x1d50] sm:$0xff] }
 0x112   :  { %4169 = vmatprep.subr.mxu1 %v2119_v6  ;;  %4240 = vmatprep.subr.mxu0 %v2343_v7  ;;  %v2293_v1 = vld [vmem:[%s16881_s3 + $0x2450] sm:$0xff]  ;;  %v2063_v6 = vld [vmem:[%s16881_s3 + $0x1d20] sm:$0xff] }
 0x113   :  { %4170 = vmatpush1.msra.mxu1 %v2118_v8  ;;  %4241 = vmatpush1.msra.mxu0 %v2342_v9  ;;  %v2287_v7 = vld [vmem:[%s16881_s3 + $0x2420] sm:$0xff]  ;;  %v2062_v8 = vld [vmem:[%s16881_s3 + $0x1d18] sm:$0xff] }
 0x114   :  { %4171 = vmatprep.subr.mxu1 %v2112_v11  ;;  %4242 = vmatprep.subr.mxu0 %v2336_v10  ;;  %v2286_v9 = vld [vmem:[%s16881_s3 + $0x2418] sm:$0xff]  ;;  %v2056_v11 = vld [vmem:[%s16881_s3 + $0x1ce8] sm:$0xff] }
 0x115   :  { %4172 = vmatpush1.msra.mxu1 %v2111_v12  ;;  %4243 = vmatpush1.msra.mxu0 %v2335_v16  ;;  %v2280_v10 = vld [vmem:[%s16881_s3 + $0x23e8] sm:$0xff]  ;;  %v2055_v12 = vld [vmem:[%s16881_s3 + $0x1ce0] sm:$0xff] }
 0x116   :  { %4173 = vmatprep.subr.mxu1 %v2105_v17  ;;  %4244 = vmatprep.subr.mxu0 %v2329_v19  ;;  %v2279_v16 = vld [vmem:[%s16881_s3 + $0x23e0] sm:$0xff]  ;;  %v2049_v17 = vld [vmem:[%s16881_s3 + $0x1cb0] sm:$0xff] }
 0x117   :  { %4174 = vmatpush1.msra.mxu1 %v2104_v58  ;;  %4245 = vmatpush1.msra.mxu0 %v2328_v35  ;;  %v2273_v19 = vld [vmem:[%s16881_s3 + $0x23b0] sm:$0xff]  ;;  %v2048_v58 = vld [vmem:[%s16881_s3 + $0x1ca8] sm:$0xff] }
 0x118   :  { %4175 = vmatprep.subr.mxu1 %v2098_v62  ;;  %4246 = vmatprep.subr.mxu0 %v2322_v63  ;;  %v2272_v35 = vld [vmem:[%s16881_s3 + $0x23a8] sm:$0xff]  ;;  %v2042_v62 = vld [vmem:[%s16881_s3 + $0x1c78] sm:$0xff] }
 0x119   :  { %4176 = vmatpush1.msra.mxu1 %v2097_v20  ;;  %4247 = vmatpush1.msra.mxu0 %v2321_v21  ;;  %v2266_v63 = vld [vmem:[%s16881_s3 + $0x2378] sm:$0xff]  ;;  %v2041_v20 = vld [vmem:[%s16881_s3 + $0x1c70] sm:$0xff] }
 0x11a   :  { %4177 = vmatprep.subr.mxu1 %v2091_v23  ;;  %4248 = vmatprep.subr.mxu0 %v2315_v28  ;;  %v2265_v21 = vld [vmem:[%s16881_s3 + $0x2370] sm:$0xff]  ;;  %v2035_v23 = vld [vmem:[%s16881_s3 + $0x1c40] sm:$0xff] }
 0x11b   :  { %4178 = vmatpush1.msra.mxu1 %v2090_v59  ;;  %4249 = vmatpush1.msra.mxu0 %v2314_v31  ;;  %v2259_v28 = vld [vmem:[%s16881_s3 + $0x2340] sm:$0xff]  ;;  %v2034_v59 = vld [vmem:[%s16881_s3 + $0x1c38] sm:$0xff] }
 0x11c   :  { %4179 = vmatprep.subr.mxu1 %v2084_v51  ;;  %4250 = vmatprep.subr.mxu0 %v2308_v52  ;;  %v2258_v31 = vld [vmem:[%s16881_s3 + $0x2338] sm:$0xff]  ;;  %v2028_v51 = vld [vmem:[%s16881_s3 + $0x1c08] sm:$0xff] }
 0x11d   :  { %4180 = vmatpush1.msra.mxu1 %v2083_v38  ;;  %4251 = vmatpush1.msra.mxu0 %v2307_v40  ;;  %v2252_v52 = vld [vmem:[%s16881_s3 + $0x2308] sm:$0xff]  ;;  %v2027_v38 = vld [vmem:[%s16881_s3 + $0x1c00] sm:$0xff] }
 0x11e   :  { %4181 = vmatprep.subr.mxu1 %v2077_v43  ;;  %4252 = vmatprep.subr.mxu0 %v2301_v44  ;;  %v2251_v40 = vld [vmem:[%s16881_s3 + $0x2300] sm:$0xff]  ;;  %v2245_v43 = vld [vmem:[%s16881_s3 + $0x22d0] sm:$0xff] }
 0x11f   :  { %4182 = vmatpush1.msra.mxu1 %v2076_v49  ;;  %4253 = vmatpush1.msra.mxu0 %v2300_v56  ;;  %v2469_v44 = vld [vmem:[%s16881_s3 + $0x29d0] sm:$0xff]  ;;  %v2244_v49 = vld [vmem:[%s16881_s3 + $0x22c8] sm:$0xff] }
 0x120   :  { %4183 = vmatprep.subr.mxu1 %v2070_v61  ;;  %4254 = vmatprep.subr.mxu0 %v2294_v32  ;;  %v2468_v56 = vld [vmem:[%s16881_s3 + $0x29c8] sm:$0xff]  ;;  %v2238_v61 = vld [vmem:[%s16881_s3 + $0x2298] sm:$0xff] }
 0x121   :  { %4184 = vmatpush1.msra.mxu1 %v2069_v0  ;;  %4255 = vmatpush1.msra.mxu0 %v2293_v1  ;;  %v2462_v32 = vld [vmem:[%s16881_s3 + $0x2998] sm:$0xff]  ;;  %v2237_v0 = vld [vmem:[%s16881_s3 + $0x2290] sm:$0xff] }
 0x122   :  { %4185 = vmatprep.subr.mxu1 %v2063_v6  ;;  %4256 = vmatprep.subr.mxu0 %v2287_v7  ;;  %v2461_v1 = vld [vmem:[%s16881_s3 + $0x2990] sm:$0xff]  ;;  %v2231_v6 = vld [vmem:[%s16881_s3 + $0x2260] sm:$0xff] }
 0x123   :  { %4186 = vmatpush1.msra.mxu1 %v2062_v8  ;;  %4257 = vmatpush1.msra.mxu0 %v2286_v9  ;;  %v2455_v7 = vld [vmem:[%s16881_s3 + $0x2960] sm:$0xff]  ;;  %v2230_v8 = vld [vmem:[%s16881_s3 + $0x2258] sm:$0xff] }
 0x124   :  { %4187 = vmatprep.subr.mxu1 %v2056_v11  ;;  %4258 = vmatprep.subr.mxu0 %v2280_v10  ;;  %v2454_v9 = vld [vmem:[%s16881_s3 + $0x2958] sm:$0xff]  ;;  %v2224_v11 = vld [vmem:[%s16881_s3 + $0x2228] sm:$0xff] }
 0x125   :  { %4188 = vmatpush1.msra.mxu1 %v2055_v12  ;;  %4259 = vmatpush1.msra.mxu0 %v2279_v16  ;;  %v2448_v10 = vld [vmem:[%s16881_s3 + $0x2928] sm:$0xff]  ;;  %v2223_v12 = vld [vmem:[%s16881_s3 + $0x2220] sm:$0xff] }
 0x126   :  { %4189 = vmatprep.subr.mxu1 %v2049_v17  ;;  %4260 = vmatprep.subr.mxu0 %v2273_v19  ;;  %v2447_v16 = vld [vmem:[%s16881_s3 + $0x2920] sm:$0xff]  ;;  %v2217_v17 = vld [vmem:[%s16881_s3 + $0x21f0] sm:$0xff] }
 0x127   :  { %4190 = vmatpush1.msra.mxu1 %v2048_v58  ;;  %4261 = vmatpush1.msra.mxu0 %v2272_v35  ;;  %v2441_v19 = vld [vmem:[%s16881_s3 + $0x28f0] sm:$0xff]  ;;  %v2216_v58 = vld [vmem:[%s16881_s3 + $0x21e8] sm:$0xff] }
 0x128   :  { %4191 = vmatprep.subr.mxu1 %v2042_v62  ;;  %4262 = vmatprep.subr.mxu0 %v2266_v63  ;;  %v2440_v35 = vld [vmem:[%s16881_s3 + $0x28e8] sm:$0xff]  ;;  %v2210_v62 = vld [vmem:[%s16881_s3 + $0x21b8] sm:$0xff] }
 0x129   :  { %4192 = vmatpush1.msra.mxu1 %v2041_v20  ;;  %4263 = vmatpush1.msra.mxu0 %v2265_v21  ;;  %v2434_v63 = vld [vmem:[%s16881_s3 + $0x28b8] sm:$0xff]  ;;  %v2209_v20 = vld [vmem:[%s16881_s3 + $0x21b0] sm:$0xff] }
 0x12a   :  { %4193 = vmatprep.subr.mxu1 %v2035_v23  ;;  %4264 = vmatprep.subr.mxu0 %v2259_v28  ;;  %v2433_v21 = vld [vmem:[%s16881_s3 + $0x28b0] sm:$0xff]  ;;  %v2203_v23 = vld [vmem:[%s16881_s3 + $0x2180] sm:$0xff] }
 0x12b   :  { %4194 = vmatpush1.msra.mxu1 %v2034_v59  ;;  %4265 = vmatpush1.msra.mxu0 %v2258_v31  ;;  %v2427_v28 = vld [vmem:[%s16881_s3 + $0x2880] sm:$0xff]  ;;  %v2202_v59 = vld [vmem:[%s16881_s3 + $0x2178] sm:$0xff] }
 0x12c   :  { %4195 = vmatprep.subr.mxu1 %v2028_v51  ;;  %4266 = vmatprep.subr.mxu0 %v2252_v52  ;;  %v2426_v31 = vld [vmem:[%s16881_s3 + $0x2878] sm:$0xff]  ;;  %v2196_v51 = vld [vmem:[%s16881_s3 + $0x2148] sm:$0xff] }
 0x12d   :  { %4196 = vmatpush1.msra.mxu1 %v2027_v38  ;;  %4267 = vmatpush1.msra.mxu0 %v2251_v40  ;;  %v2420_v52 = vld [vmem:[%s16881_s3 + $0x2848] sm:$0xff]  ;;  %v2195_v38 = vld [vmem:[%s16881_s3 + $0x2140] sm:$0xff] }
 0x12e   :  { %4197 = vmatprep.subr.mxu1 %v2245_v43  ;;  %4268 = vmatprep.subr.mxu0 %v2469_v44  ;;  %v2419_v40 = vld [vmem:[%s16881_s3 + $0x2840] sm:$0xff]  ;;  %v2189_v43 = vld [vmem:[%s16881_s3 + $0x2110] sm:$0xff] }
 0x12f   :  { %4198 = vmatpush2.msra.mxu1 %v2244_v49  ;;  %4269 = vmatpush2.msra.mxu0 %v2468_v56  ;;  %v2413_v44 = vld [vmem:[%s16881_s3 + $0x2810] sm:$0xff]  ;;  %v2188_v49 = vld [vmem:[%s16881_s3 + $0x2108] sm:$0xff] }
 0x130   :  { %4199 = vmatprep.subr.mxu1 %v2238_v61  ;;  %4270 = vmatprep.subr.mxu0 %v2462_v32  ;;  %v2412_v56 = vld [vmem:[%s16881_s3 + $0x2808] sm:$0xff]  ;;  %v2182_v61 = vld [vmem:[%s16881_s3 + $0x20d8] sm:$0xff] }
 0x131   :  { %4200 = vmatpush2.msra.mxu1 %v2237_v0  ;;  %4271 = vmatpush2.msra.mxu0 %v2461_v1  ;;  %v2406_v32 = vld [vmem:[%s16881_s3 + $0x27d8] sm:$0xff]  ;;  %v102_v0 = vrot.slane %v8743_v2, %v8686_v37  ;;  %v2181_v1 = vld [vmem:[%s16881_s3 + $0x20d0] sm:$0xff] }
 0x132   :  { %4201 = vmatprep.subr.mxu1 %v2231_v6  ;;  %4272 = vmatprep.subr.mxu0 %v2455_v7  ;;  %v2405_v6 = vld [vmem:[%s16881_s3 + $0x27d0] sm:$0xff]  ;;  %v2175_v7 = vld [vmem:[%s16881_s3 + $0x20a0] sm:$0xff] }
 0x133   :  { %4202 = vmatpush2.msra.mxu1 %v2230_v8  ;;  %4273 = vmatpush2.msra.mxu0 %v2454_v9  ;;  %v2399_v8 = vld [vmem:[%s16881_s3 + $0x27a0] sm:$0xff]  ;;  %v94_v9 = vrot.slane %v8743_v2, %v8683_v36  ;;  %v2392_v2 = vld [vmem:[%s16881_s3 + $0x2768] sm:$0xff] }
 0x134   :  { %4203 = vmatprep.subr.mxu1 %v2224_v11  ;;  %4274 = vmatprep.subr.mxu0 %v2448_v10  ;;  %v2174_v11 = vld [vmem:[%s16881_s3 + $0x2098] sm:$0xff] }
 0x135   :  { %4204 = vmatpush2.msra.mxu1 %v2223_v12  ;;  %4275 = vmatpush2.msra.mxu0 %v2447_v16  ;;  %v2398_v10 = vld [vmem:[%s16881_s3 + $0x2798] sm:$0xff]  ;;  %v608_v12 = vadd.f32 %v8770_v13, %v102_v0  ;;  %v2168_v16 = vld [vmem:[%s16881_s3 + $0x2068] sm:$0xff]  ;;  %v537_v13 = vadd.f32 %v8772_v14, %v94_v9 }
 0x136   :  { %4205 = vmatprep.subr.mxu1 %v2217_v17  ;;  %4276 = vmatprep.subr.mxu0 %v2441_v19  ;;  %v2167_v17 = vld [vmem:[%s16881_s3 + $0x2060] sm:$0xff]  ;;  %v8124_v14 = vld [vmem:[%s16882_s2 + $0x8] sm:$0xff] }
 0x137   :  { %4206 = vmatpush2.msra.mxu1 %v2216_v58  ;;  %4277 = vmatpush2.msra.mxu0 %v2440_v35  ;;  %v2391_v19 = vld [vmem:[%s16881_s3 + $0x2760] sm:$0xff]  ;;  %v2161_v58 = vld [vmem:[%s16881_s3 + $0x2030] sm:$0xff]  ;;  %v2804_v9 = vld [vmem:[%s16881_s3 + $0x3448] sm:$0xff] }
 0x138   :  { %4207 = vmatprep.subr.mxu1 %v2210_v62  ;;  %4278 = vmatprep.subr.mxu0 %v2434_v63  ;;  %v2385_v35 = vld [vmem:[%s16881_s3 + $0x2730] sm:$0xff]  ;;  %v2160_v62 = vld [vmem:[%s16881_s3 + $0x2028] sm:$0xff] }
 0x139   :  { %4208 = vmatpush2.msra.mxu1 %v2209_v20  ;;  %4279 = vmatpush2.msra.mxu0 %v2433_v21  ;;  %v2384_v63 = vld [vmem:[%s16881_s3 + $0x2728] sm:$0xff]  ;;  %v98_v20 = vrot.slane %v8124_v14, %v8672_v33  ;;  %v90_v21 = vrot.slane %v8124_v14, %v8675_v34  ;;  %v2153_v33 = vld [vmem:[%s16881_s3 + $0x1ff0] sm:$0xff]  ;;  %v9557_v34 = vmax.f32 %v537_v13, 0.0  ;;  %v2566_v13 = vld [vmem:[%s16881_s3 + $0x2cd8] sm:$0xff] }
 0x13a   :  { %4209 = vmatprep.subr.mxu1 %v2203_v23  ;;  %4280 = vmatprep.subr.mxu0 %v2427_v28  ;;  %v9545_v23 = vmax.f32 %v608_v12, 0.0  ;;  %v2154_v28 = vld [vmem:[%s16881_s3 + $0x1ff8] sm:$0xff] }
 0x13b   :  { %4210 = vmatpush2.msra.mxu1 %v2202_v59  ;;  %4281 = vmatpush2.msra.mxu0 %v2426_v31  ;;  %v2378_v59 = vld [vmem:[%s16881_s3 + $0x26f8] sm:$0xff]  ;;  %v110_v31 = vrot.slane %v8124_v14, %v8829_v45  ;;  %v118_v45 = vrot.slane %v8124_v14, %v9094_v48  ;;  %v2783_v14 = vld [vmem:[%s16881_s3 + $0x33a0] sm:$0xff] }
 0x13c   :  { %4211 = vmatprep.subr.mxu1 %v2196_v51  ;;  %4282 = vmatprep.subr.mxu0 %v2420_v52  ;;  %v2377_v51 = vld [vmem:[%s16881_s3 + $0x26f0] sm:$0xff]  ;;  %v2147_v52 = vld [vmem:[%s16881_s3 + $0x1fc0] sm:$0xff]  ;;  %v2798_v12 = vld [vmem:[%s16881_s3 + $0x3418] sm:$0xff] }
 0x13d   :  { %4212 = vmatpush2.msra.mxu1 %v2195_v38  ;;  %4283 = vmatpush2.msra.mxu0 %v2419_v40  ;;  %v2371_v38 = vld [vmem:[%s16881_s3 + $0x26c0] sm:$0xff]  ;;  %v606_v40 = vadd.f32 %v8745_v4, %v98_v20  ;;  %v2140_v4 = vld [vmem:[%s16881_s3 + $0x1f88] sm:$0xff]  ;;  %v2553_v20 = vld [vmem:[%s16881_s3 + $0x2c70] sm:$0xff] }
 0x13e   :  { %4213 = vmatprep.subr.mxu1 %v2189_v43  ;;  %4284 = vmatprep.subr.mxu0 %v2413_v44  ;;  %v535_v43 = vadd.f32 %v8747_v5, %v90_v21  ;;  %v679_v44 = vadd.f32 %v8808_v30, %v110_v31  ;;  %v2364_v5 = vld [vmem:[%s16881_s3 + $0x2688] sm:$0xff]  ;;  %v2139_v30 = vld [vmem:[%s16881_s3 + $0x1f80] sm:$0xff]  ;;  %v2777_v21 = vld [vmem:[%s16881_s3 + $0x3370] sm:$0xff] }
 0x13f   :  { %4214 = vmatpush2.msra.mxu1 %v2188_v49  ;;  %4285 = vmatpush2.msra.mxu0 %v2412_v56  ;;  %v2146_v49 = vld [vmem:[%s16881_s3 + $0x1fb8] sm:$0xff]  ;;  %v9593_v0 = vmax.f32 %v606_v40, 0.0 }
 0x140   :  { %4215 = vmatprep.subr.mxu1 %v2182_v61  ;;  %4286 = vmatprep.subr.mxu0 %v2406_v32  ;;  %v2370_v56 = vld [vmem:[%s16881_s3 + $0x26b8] sm:$0xff]  ;;  %v2363_v61 = vld [vmem:[%s16881_s3 + $0x2680] sm:$0xff]  ;;  %v750_v32 = vadd.f32 %v8806_v29, %v118_v45  ;;  %v2580_v29 = vld [vmem:[%s16881_s3 + $0x2d48] sm:$0xff] }
 0x141   :  { %4216 = vmatpush2.msra.mxu1 %v2181_v1  ;;  %4287 = vmatpush2.msra.mxu0 %v2405_v6  ;;  %v9595_v1 = vmax.f32 %v535_v43, 0.0  ;;  %v9597_v6 = vmax.f32 %v679_v44, 0.0  ;;  %v2546_v31 = vld [vmem:[%s16881_s3 + $0x2c38] sm:$0xff]  ;;  %v2539_v45 = vld [vmem:[%s16881_s3 + $0x2c00] sm:$0xff]  ;;  %v2532_v44 = vld [vmem:[%s16881_s3 + $0x2bc8] sm:$0xff] }
 0x142   :  { %4217 = vmatprep.subr.mxu1 %v2175_v7  ;;  %4288 = vmatprep.subr.mxu0 %v2399_v8  ;;  %v2581_v7 = vld [vmem:[%s16881_s3 + $0x2d50] sm:$0xff]  ;;  %v2538_v40 = vld [vmem:[%s16881_s3 + $0x2bf8] sm:$0xff] }
 0x143   :  { %4218 = vmatpush2.msra.mxu1 %v2174_v11  ;;  %4289 = vmatpush2.msra.mxu0 %v2398_v10  ;;  %v2805_v8 = vld [vmem:[%s16881_s3 + $0x3450] sm:$0xff]  ;;  %v9613_v11 = vmax.f32 %v750_v32, 0.0  ;;  %v2574_v10 = vld [vmem:[%s16881_s3 + $0x2d18] sm:$0xff]  ;;  %v2748_v32 = vld [vmem:[%s16881_s3 + $0x3288] sm:$0xff] }
 0x144   :  { %4219 = vmatprep.subr.mxu1 %v2168_v16  ;;  %4290 = vmatprep.subr.mxu0 %v2392_v2  ;;  %v2573_v16 = vld [vmem:[%s16881_s3 + $0x2d10] sm:$0xff]  ;;  %v2762_v43 = vld [vmem:[%s16881_s3 + $0x32f8] sm:$0xff] }
 0x145   :  { %4220 = vmatpush2.msra.mxu1 %v2167_v17  ;;  %4291 = vmatpush2.msra.mxu0 %v2391_v19  ;;  %v2797_v2 = vld [vmem:[%s16881_s3 + $0x3410] sm:$0xff]  ;;  %v2567_v17 = vld [vmem:[%s16881_s3 + $0x2ce0] sm:$0xff] }
 0x146   :  { %4221 = vmatprep.subr.mxu1 %v2161_v58  ;;  %4292 = vmatprep.subr.mxu0 %v2385_v35  ;;  %v2791_v19 = vld [vmem:[%s16881_s3 + $0x33e0] sm:$0xff]  ;;  %v2790_v58 = vld [vmem:[%s16881_s3 + $0x33d8] sm:$0xff]  ;;  %v2560_v35 = vld [vmem:[%s16881_s3 + $0x2ca8] sm:$0xff] }
 0x147   :  { %4222 = vmatpush2.msra.mxu1 %v2160_v62  ;;  %4293 = vmatpush2.msra.mxu0 %v2384_v63  ;;  %v2784_v62 = vld [vmem:[%s16881_s3 + $0x33a8] sm:$0xff]  ;;  %v2559_v63 = vld [vmem:[%s16881_s3 + $0x2ca0] sm:$0xff] }
 0x148   :  { %4223 = vmatprep.subr.mxu1 %v2154_v28  ;;  %4294 = vmatprep.subr.mxu0 %v2378_v59  ;;  %v2552_v28 = vld [vmem:[%s16881_s3 + $0x2c68] sm:$0xff] }
 0x149   :  { %4300 = vmatprep.mubr.f32.mxu0 %v9545_v23  ;;  %4224 = vmatpush2.msra.mxu1 %v2153_v33  ;;  %v2776_v59 = vld [vmem:[%s16881_s3 + $0x3368] sm:$0xff]  ;;  %v2770_v33 = vld [vmem:[%s16881_s3 + $0x3338] sm:$0xff] }
 0x14a   :  { %4295 = vmatpush2.msra.mxu0 %v2377_v51  ;;  %4225 = vmatprep.subr.mxu1 %v2147_v52  ;;  %v2545_v51 = vld [vmem:[%s16881_s3 + $0x2c30] sm:$0xff] }
 0x14b   :  { %4229 = vmatprep.mubr.f32.mxu1 %v9557_v34  ;;  %4296 = vmatprep.subr.mxu0 %v2371_v38  ;;  %v2769_v52 = vld [vmem:[%s16881_s3 + $0x3330] sm:$0xff]  ;;  %v2763_v38 = vld [vmem:[%s16881_s3 + $0x3300] sm:$0xff] }
 0x14c   :  { %4226 = vmatpush2.msra.mxu1 %v2146_v49  ;;  %4297 = vmatpush2.msra.mxu0 %v2370_v56  ;;  %v2756_v49 = vld [vmem:[%s16881_s3 + $0x32c8] sm:$0xff]  ;;  %v2531_v56 = vld [vmem:[%s16881_s3 + $0x2bc0] sm:$0xff] }
 0x14d   :  { %4227 = vmatprep.subr.mxu1 %v2140_v4  ;;  %4298 = vmatprep.subr.mxu0 %v2364_v5  ;;  %v2755_v4 = vld [vmem:[%s16881_s3 + $0x32c0] sm:$0xff]  ;;  %v2525_v5 = vld [vmem:[%s16881_s3 + $0x2b90] sm:$0xff] }
 0x14e   :  { %4228 = vmatpush2.msra.mxu1 %v2139_v30  ;;  %4299 = vmatpush2.msra.mxu0 %v2363_v61  ;;  %v2749_v30 = vld [vmem:[%s16881_s3 + $0x3290] sm:$0xff]  ;;  %v2524_v61 = vld [vmem:[%s16881_s3 + $0x2b88] sm:$0xff] }
 0x14f   :  { %4230 = vmatmul.mubr.f32.vlgmr.msra.gmra.mxu1 %v9595_v1  ;;  %4301 = vmatmul.mubr.f32.vlgmr.msra.gmra.mxu0 %v9593_v0 }
 0x150   :  { %4307 = vmatprep.subr.mxu1 %v2581_v7  ;;  %4378 = vmatprep.subr.mxu0 %v2805_v8  ;;  %v2518_v7 = vld [vmem:[%s16881_s3 + $0x2b58] sm:$0xff] }
 0x151   :  { %4308 = vmatpush1.msra.mxu1 %v2580_v29  ;;  %4371 = vmatprep.mubr.f32.mxu1 %v9597_v6  ;;  %v2742_v8 = vld [vmem:[%s16881_s3 + $0x3258] sm:$0xff]  ;;  %v2517_v29 = vld [vmem:[%s16881_s3 + $0x2b50] sm:$0xff] }
 0x152   :  { %4379 = vmatpush1.msra.mxu0 %v2804_v9  ;;  %4442 = vmatprep.mubr.f32.mxu0 %v9613_v11  ;;  %v2741_v9 = vld [vmem:[%s16881_s3 + $0x3250] sm:$0xff] }
 0x153   :  { %4309 = vmatprep.subr.mxu1 %v2574_v10  ;;  %4380 = vmatprep.subr.mxu0 %v2798_v12  ;;  %v2511_v10 = vld [vmem:[%s16881_s3 + $0x2b20] sm:$0xff] }
 0x154   :  { %4310 = vmatpush1.msra.mxu1 %v2573_v16  ;;  %4381 = vmatpush1.msra.mxu0 %v2797_v2  ;;  %v2735_v12 = vld [vmem:[%s16881_s3 + $0x3220] sm:$0xff]  ;;  %v2510_v16 = vld [vmem:[%s16881_s3 + $0x2b18] sm:$0xff] }
 0x155   :  { %4311 = vmatprep.subr.mxu1 %v2567_v17  ;;  %4382 = vmatprep.subr.mxu0 %v2791_v19  ;;  %v2734_v2 = vld [vmem:[%s16881_s3 + $0x3218] sm:$0xff]  ;;  %v2504_v17 = vld [vmem:[%s16881_s3 + $0x2ae8] sm:$0xff] }
 0x156   :  { %4312 = vmatpush1.msra.mxu1 %v2566_v13  ;;  %4383 = vmatpush1.msra.mxu0 %v2790_v58  ;;  %v2728_v19 = vld [vmem:[%s16881_s3 + $0x31e8] sm:$0xff]  ;;  %v2503_v13 = vld [vmem:[%s16881_s3 + $0x2ae0] sm:$0xff] }
 0x157   :  { %4313 = vmatprep.subr.mxu1 %v2560_v35  ;;  %4384 = vmatprep.subr.mxu0 %v2784_v62  ;;  %v2727_v58 = vld [vmem:[%s16881_s3 + $0x31e0] sm:$0xff]  ;;  %v2497_v35 = vld [vmem:[%s16881_s3 + $0x2ab0] sm:$0xff] }
 0x158   :  { %4314 = vmatpush1.msra.mxu1 %v2559_v63  ;;  %4385 = vmatpush1.msra.mxu0 %v2783_v14  ;;  %v2721_v62 = vld [vmem:[%s16881_s3 + $0x31b0] sm:$0xff]  ;;  %v2496_v63 = vld [vmem:[%s16881_s3 + $0x2aa8] sm:$0xff] }
 0x159   :  { %4315 = vmatprep.subr.mxu1 %v2553_v20  ;;  %4386 = vmatprep.subr.mxu0 %v2777_v21  ;;  %v2720_v14 = vld [vmem:[%s16881_s3 + $0x31a8] sm:$0xff]  ;;  %v2490_v20 = vld [vmem:[%s16881_s3 + $0x2a78] sm:$0xff] }
 0x15a   :  { %4316 = vmatpush1.msra.mxu1 %v2552_v28  ;;  %4387 = vmatpush1.msra.mxu0 %v2776_v59  ;;  %v2714_v21 = vld [vmem:[%s16881_s3 + $0x3178] sm:$0xff]  ;;  %v2489_v28 = vld [vmem:[%s16881_s3 + $0x2a70] sm:$0xff] }
 0x15b   :  { %4317 = vmatprep.subr.mxu1 %v2546_v31  ;;  %4388 = vmatprep.subr.mxu0 %v2770_v33  ;;  %v2713_v59 = vld [vmem:[%s16881_s3 + $0x3170] sm:$0xff]  ;;  %v2483_v31 = vld [vmem:[%s16881_s3 + $0x2a40] sm:$0xff] }
 0x15c   :  { %4318 = vmatpush1.msra.mxu1 %v2545_v51  ;;  %4389 = vmatpush1.msra.mxu0 %v2769_v52  ;;  %v2707_v33 = vld [vmem:[%s16881_s3 + $0x3140] sm:$0xff]  ;;  %v2482_v51 = vld [vmem:[%s16881_s3 + $0x2a38] sm:$0xff] }
 0x15d   :  { %4319 = vmatprep.subr.mxu1 %v2539_v45  ;;  %4390 = vmatprep.subr.mxu0 %v2763_v38  ;;  %v2706_v52 = vld [vmem:[%s16881_s3 + $0x3138] sm:$0xff]  ;;  %v2476_v45 = vld [vmem:[%s16881_s3 + $0x2a08] sm:$0xff] }
 0x15e   :  { %4320 = vmatpush1.msra.mxu1 %v2538_v40  ;;  %4391 = vmatpush1.msra.mxu0 %v2762_v43  ;;  %v2700_v38 = vld [vmem:[%s16881_s3 + $0x3108] sm:$0xff]  ;;  %v2475_v40 = vld [vmem:[%s16881_s3 + $0x2a00] sm:$0xff] }
 0x15f   :  { %4321 = vmatprep.subr.mxu1 %v2532_v44  ;;  %4392 = vmatprep.subr.mxu0 %v2756_v49  ;;  %v2699_v43 = vld [vmem:[%s16881_s3 + $0x3100] sm:$0xff]  ;;  %v2693_v44 = vld [vmem:[%s16881_s3 + $0x30d0] sm:$0xff] }
 0x160   :  { %4322 = vmatpush1.msra.mxu1 %v2531_v56  ;;  %4393 = vmatpush1.msra.mxu0 %v2755_v4  ;;  %v2917_v49 = vld [vmem:[%s16881_s3 + $0x37d0] sm:$0xff]  ;;  %v2692_v56 = vld [vmem:[%s16881_s3 + $0x30c8] sm:$0xff] }
 0x161   :  { %4323 = vmatprep.subr.mxu1 %v2525_v5  ;;  %4394 = vmatprep.subr.mxu0 %v2749_v30  ;;  %v2916_v4 = vld [vmem:[%s16881_s3 + $0x37c8] sm:$0xff]  ;;  %v2686_v5 = vld [vmem:[%s16881_s3 + $0x3098] sm:$0xff] }
 0x162   :  { %4324 = vmatpush1.msra.mxu1 %v2524_v61  ;;  %4395 = vmatpush1.msra.mxu0 %v2748_v32  ;;  %v2910_v30 = vld [vmem:[%s16881_s3 + $0x3798] sm:$0xff]  ;;  %v2685_v61 = vld [vmem:[%s16881_s3 + $0x3090] sm:$0xff] }
 0x163   :  { %4325 = vmatprep.subr.mxu1 %v2518_v7  ;;  %4396 = vmatprep.subr.mxu0 %v2742_v8  ;;  %v2909_v32 = vld [vmem:[%s16881_s3 + $0x3790] sm:$0xff]  ;;  %v2679_v7 = vld [vmem:[%s16881_s3 + $0x3060] sm:$0xff] }
 0x164   :  { %4326 = vmatpush1.msra.mxu1 %v2517_v29  ;;  %4397 = vmatpush1.msra.mxu0 %v2741_v9  ;;  %v2903_v8 = vld [vmem:[%s16881_s3 + $0x3760] sm:$0xff]  ;;  %v2678_v29 = vld [vmem:[%s16881_s3 + $0x3058] sm:$0xff] }
 0x165   :  { %4327 = vmatprep.subr.mxu1 %v2511_v10  ;;  %4398 = vmatprep.subr.mxu0 %v2735_v12  ;;  %v2902_v9 = vld [vmem:[%s16881_s3 + $0x3758] sm:$0xff]  ;;  %v2672_v10 = vld [vmem:[%s16881_s3 + $0x3028] sm:$0xff] }
 0x166   :  { %4328 = vmatpush1.msra.mxu1 %v2510_v16  ;;  %4399 = vmatpush1.msra.mxu0 %v2734_v2  ;;  %v2896_v12 = vld [vmem:[%s16881_s3 + $0x3728] sm:$0xff]  ;;  %v2671_v16 = vld [vmem:[%s16881_s3 + $0x3020] sm:$0xff] }
 0x167   :  { %4329 = vmatprep.subr.mxu1 %v2504_v17  ;;  %4400 = vmatprep.subr.mxu0 %v2728_v19  ;;  %v2895_v2 = vld [vmem:[%s16881_s3 + $0x3720] sm:$0xff]  ;;  %v2665_v17 = vld [vmem:[%s16881_s3 + $0x2ff0] sm:$0xff] }
 0x168   :  { %4330 = vmatpush1.msra.mxu1 %v2503_v13  ;;  %4401 = vmatpush1.msra.mxu0 %v2727_v58  ;;  %v2889_v19 = vld [vmem:[%s16881_s3 + $0x36f0] sm:$0xff]  ;;  %v2664_v13 = vld [vmem:[%s16881_s3 + $0x2fe8] sm:$0xff] }
 0x169   :  { %4331 = vmatprep.subr.mxu1 %v2497_v35  ;;  %4402 = vmatprep.subr.mxu0 %v2721_v62  ;;  %v2888_v58 = vld [vmem:[%s16881_s3 + $0x36e8] sm:$0xff]  ;;  %v2658_v35 = vld [vmem:[%s16881_s3 + $0x2fb8] sm:$0xff] }
 0x16a   :  { %4332 = vmatpush1.msra.mxu1 %v2496_v63  ;;  %4403 = vmatpush1.msra.mxu0 %v2720_v14  ;;  %v2882_v62 = vld [vmem:[%s16881_s3 + $0x36b8] sm:$0xff]  ;;  %v2657_v63 = vld [vmem:[%s16881_s3 + $0x2fb0] sm:$0xff] }
 0x16b   :  { %4333 = vmatprep.subr.mxu1 %v2490_v20  ;;  %4404 = vmatprep.subr.mxu0 %v2714_v21  ;;  %v2881_v14 = vld [vmem:[%s16881_s3 + $0x36b0] sm:$0xff]  ;;  %v2651_v20 = vld [vmem:[%s16881_s3 + $0x2f80] sm:$0xff] }
 0x16c   :  { %4334 = vmatpush1.msra.mxu1 %v2489_v28  ;;  %4405 = vmatpush1.msra.mxu0 %v2713_v59  ;;  %v2875_v21 = vld [vmem:[%s16881_s3 + $0x3680] sm:$0xff]  ;;  %v2650_v28 = vld [vmem:[%s16881_s3 + $0x2f78] sm:$0xff] }
 0x16d   :  { %4335 = vmatprep.subr.mxu1 %v2483_v31  ;;  %4406 = vmatprep.subr.mxu0 %v2707_v33  ;;  %v2874_v59 = vld [vmem:[%s16881_s3 + $0x3678] sm:$0xff]  ;;  %v2644_v31 = vld [vmem:[%s16881_s3 + $0x2f48] sm:$0xff] }
 0x16e   :  { %4336 = vmatpush1.msra.mxu1 %v2482_v51  ;;  %4407 = vmatpush1.msra.mxu0 %v2706_v52  ;;  %v2868_v33 = vld [vmem:[%s16881_s3 + $0x3648] sm:$0xff]  ;;  %v2643_v51 = vld [vmem:[%s16881_s3 + $0x2f40] sm:$0xff] }
 0x16f   :  { %4337 = vmatprep.subr.mxu1 %v2476_v45  ;;  %4408 = vmatprep.subr.mxu0 %v2700_v38  ;;  %v2867_v52 = vld [vmem:[%s16881_s3 + $0x3640] sm:$0xff]  ;;  %v2637_v45 = vld [vmem:[%s16881_s3 + $0x2f10] sm:$0xff] }
 0x170   :  { %4338 = vmatpush1.msra.mxu1 %v2475_v40  ;;  %4409 = vmatpush1.msra.mxu0 %v2699_v43  ;;  %v2861_v38 = vld [vmem:[%s16881_s3 + $0x3610] sm:$0xff]  ;;  %v2636_v40 = vld [vmem:[%s16881_s3 + $0x2f08] sm:$0xff] }
 0x171   :  { %4339 = vmatprep.subr.mxu1 %v2693_v44  ;;  %4410 = vmatprep.subr.mxu0 %v2917_v49  ;;  %v2860_v43 = vld [vmem:[%s16881_s3 + $0x3608] sm:$0xff]  ;;  %v2630_v44 = vld [vmem:[%s16881_s3 + $0x2ed8] sm:$0xff] }
 0x172   :  { %4340 = vmatpush2.msra.mxu1 %v2692_v56  ;;  %4411 = vmatpush2.msra.mxu0 %v2916_v4  ;;  %v2854_v49 = vld [vmem:[%s16881_s3 + $0x35d8] sm:$0xff]  ;;  %v2629_v56 = vld [vmem:[%s16881_s3 + $0x2ed0] sm:$0xff] }
 0x173   :  { %4341 = vmatprep.subr.mxu1 %v2686_v5  ;;  %4412 = vmatprep.subr.mxu0 %v2910_v30  ;;  %v2853_v4 = vld [vmem:[%s16881_s3 + $0x35d0] sm:$0xff]  ;;  %v2623_v5 = vld [vmem:[%s16881_s3 + $0x2ea0] sm:$0xff] }
 0x174   :  { %4342 = vmatpush2.msra.mxu1 %v2685_v61  ;;  %4413 = vmatpush2.msra.mxu0 %v2909_v32  ;;  %v2847_v30 = vld [vmem:[%s16881_s3 + $0x35a0] sm:$0xff]  ;;  %v2622_v61 = vld [vmem:[%s16881_s3 + $0x2e98] sm:$0xff] }
 0x175   :  { %4343 = vmatprep.subr.mxu1 %v2679_v7  ;;  %4414 = vmatprep.subr.mxu0 %v2903_v8  ;;  %v2846_v32 = vld [vmem:[%s16881_s3 + $0x3598] sm:$0xff]  ;;  %v2616_v7 = vld [vmem:[%s16881_s3 + $0x2e68] sm:$0xff] }
 0x176   :  { %4344 = vmatpush2.msra.mxu1 %v2678_v29  ;;  %4415 = vmatpush2.msra.mxu0 %v2902_v9  ;;  %v2840_v8 = vld [vmem:[%s16881_s3 + $0x3568] sm:$0xff]  ;;  %v2615_v29 = vld [vmem:[%s16881_s3 + $0x2e60] sm:$0xff] }
 0x177   :  { %4345 = vmatprep.subr.mxu1 %v2672_v10  ;;  %4416 = vmatprep.subr.mxu0 %v2896_v12  ;;  %v2839_v9 = vld [vmem:[%s16881_s3 + $0x3560] sm:$0xff]  ;;  %v2609_v10 = vld [vmem:[%s16881_s3 + $0x2e30] sm:$0xff] }
 0x178   :  { %4346 = vmatpush2.msra.mxu1 %v2671_v16  ;;  %4417 = vmatpush2.msra.mxu0 %v2895_v2  ;;  %v2833_v12 = vld [vmem:[%s16881_s3 + $0x3530] sm:$0xff]  ;;  %v2608_v16 = vld [vmem:[%s16881_s3 + $0x2e28] sm:$0xff] }
 0x179   :  { %4347 = vmatprep.subr.mxu1 %v2665_v17  ;;  %4418 = vmatprep.subr.mxu0 %v2889_v19  ;;  %v2832_v2 = vld [vmem:[%s16881_s3 + $0x3528] sm:$0xff]  ;;  %v2602_v17 = vld [vmem:[%s16881_s3 + $0x2df8] sm:$0xff] }
 0x17a   :  { %4348 = vmatpush2.msra.mxu1 %v2664_v13  ;;  %4419 = vmatpush2.msra.mxu0 %v2888_v58  ;;  %v2826_v19 = vld [vmem:[%s16881_s3 + $0x34f8] sm:$0xff]  ;;  %v9962_v13 = vld [vmem:[%s16882_s2 + $0x10] sm:$0xff] }
 0x17b   :  { %4349 = vmatprep.subr.mxu1 %v2658_v35  ;;  %4420 = vmatprep.subr.mxu0 %v2882_v62  ;;  %v126_v58 = vrot.slane %v9962_v13, %v8683_v36  ;;  %v2601_v35 = vld [vmem:[%s16881_s3 + $0x2df0] sm:$0xff]  ;;  %v2819_v36 = vld [vmem:[%s16881_s3 + $0x34c0] sm:$0xff] }
 0x17c   :  { %4350 = vmatpush2.msra.mxu1 %v2657_v63  ;;  %4421 = vmatpush2.msra.mxu0 %v2881_v14  ;;  %v2825_v62 = vld [vmem:[%s16881_s3 + $0x34f0] sm:$0xff]  ;;  %v134_v63 = vrot.slane %v9962_v13, %v8686_v37  ;;  %v2595_v14 = vld [vmem:[%s16881_s3 + $0x2dc0] sm:$0xff]  ;;  %v2818_v37 = vld [vmem:[%s16881_s3 + $0x34b8] sm:$0xff] }
 0x17d   :  { %4351 = vmatprep.subr.mxu1 %v2651_v20  ;;  %4422 = vmatprep.subr.mxu0 %v2875_v21  ;;  %v2594_v20 = vld [vmem:[%s16881_s3 + $0x2db8] sm:$0xff]  ;;  %v2588_v21 = vld [vmem:[%s16881_s3 + $0x2d88] sm:$0xff] }
 0x17e   :  { %4352 = vmatpush2.msra.mxu1 %v2650_v28  ;;  %4423 = vmatpush2.msra.mxu0 %v2874_v59  ;;  %v2812_v28 = vld [vmem:[%s16881_s3 + $0x3488] sm:$0xff]  ;;  %v821_v59 = vadd.f32 %v8845_v60, %v126_v58  ;;  %v3029_v60 = vld [vmem:[%s16881_s3 + $0x3b50] sm:$0xff] }
 0x17f   :  { %4353 = vmatprep.subr.mxu1 %v2644_v31  ;;  %4424 = vmatprep.subr.mxu0 %v2868_v33  ;;  %v2587_v31 = vld [vmem:[%s16881_s3 + $0x2d80] sm:$0xff]  ;;  %v3217_v58 = vld [vmem:[%s16881_s3 + $0x4130] sm:$0xff] }
 0x180   :  { %4354 = vmatpush2.msra.mxu1 %v2643_v51  ;;  %4425 = vmatpush2.msra.mxu0 %v2867_v52  ;;  %v2811_v33 = vld [vmem:[%s16881_s3 + $0x3480] sm:$0xff]  ;;  %v892_v51 = vadd.f32 %v8843_v57, %v134_v63  ;;  %v10001_v52 = vmax.f32 %v8794_v24, 0.0  ;;  %v3028_v24 = vld [vmem:[%s16881_s3 + $0x3b48] sm:$0xff]  ;;  %v10015_v57 = vmax.f32 %v821_v59, 0.0  ;;  %v2986_v63 = vld [vmem:[%s16881_s3 + $0x39f8] sm:$0xff] }
 0x181   :  { %4355 = vmatprep.subr.mxu1 %v2637_v45  ;;  %4426 = vmatprep.subr.mxu0 %v2861_v38  ;;  %v10004_v45 = vmax.f32 %v8796_v25, 0.0  ;;  %v3253_v38 = vld [vmem:[%s16881_s3 + $0x4250] sm:$0xff]  ;;  %v3252_v25 = vld [vmem:[%s16881_s3 + $0x4248] sm:$0xff] }
 0x182   :  { %4356 = vmatpush2.msra.mxu1 %v2636_v40  ;;  %4427 = vmatpush2.msra.mxu0 %v2860_v43  ;;  %v10022_v40 = vmax.f32 %v892_v51, 0.0  ;;  %v3022_v43 = vld [vmem:[%s16881_s3 + $0x3b18] sm:$0xff]  ;;  %v3197_v59 = vld [vmem:[%s16881_s3 + $0x4090] sm:$0xff] }
 0x183   :  { %4357 = vmatprep.subr.mxu1 %v2630_v44  ;;  %4428 = vmatprep.subr.mxu0 %v2854_v49  ;;  %v3246_v44 = vld [vmem:[%s16881_s3 + $0x4218] sm:$0xff]  ;;  %v3021_v49 = vld [vmem:[%s16881_s3 + $0x3b10] sm:$0xff] }
 0x184   :  { %4358 = vmatpush2.msra.mxu1 %v2629_v56  ;;  %4429 = vmatpush2.msra.mxu0 %v2853_v4  ;;  %v3245_v56 = vld [vmem:[%s16881_s3 + $0x4210] sm:$0xff]  ;;  %v3015_v4 = vld [vmem:[%s16881_s3 + $0x3ae0] sm:$0xff]  ;;  %v2966_v51 = vld [vmem:[%s16881_s3 + $0x3958] sm:$0xff] }
 0x185   :  { %4359 = vmatprep.subr.mxu1 %v2623_v5  ;;  %4430 = vmatprep.subr.mxu0 %v2847_v30  ;;  %v3239_v5 = vld [vmem:[%s16881_s3 + $0x41e0] sm:$0xff]  ;;  %v3014_v30 = vld [vmem:[%s16881_s3 + $0x3ad8] sm:$0xff] }
 0x186   :  { %4360 = vmatpush2.msra.mxu1 %v2622_v61  ;;  %4431 = vmatpush2.msra.mxu0 %v2846_v32  ;;  %v3238_v61 = vld [vmem:[%s16881_s3 + $0x41d8] sm:$0xff]  ;;  %v3008_v32 = vld [vmem:[%s16881_s3 + $0x3aa8] sm:$0xff] }
 0x187   :  { %4361 = vmatprep.subr.mxu1 %v2616_v7  ;;  %4432 = vmatprep.subr.mxu0 %v2840_v8  ;;  %v3232_v7 = vld [vmem:[%s16881_s3 + $0x41a8] sm:$0xff]  ;;  %v3007_v8 = vld [vmem:[%s16881_s3 + $0x3aa0] sm:$0xff] }
 0x188   :  { %4362 = vmatpush2.msra.mxu1 %v2615_v29  ;;  %4433 = vmatpush2.msra.mxu0 %v2839_v9  ;;  %v3231_v29 = vld [vmem:[%s16881_s3 + $0x41a0] sm:$0xff]  ;;  %v3001_v9 = vld [vmem:[%s16881_s3 + $0x3a70] sm:$0xff] }
 0x189   :  { %4363 = vmatprep.subr.mxu1 %v2609_v10  ;;  %4434 = vmatprep.subr.mxu0 %v2833_v12  ;;  %v3225_v10 = vld [vmem:[%s16881_s3 + $0x4170] sm:$0xff]  ;;  %v3000_v12 = vld [vmem:[%s16881_s3 + $0x3a68] sm:$0xff] }
 0x18a   :  { %4364 = vmatpush2.msra.mxu1 %v2608_v16  ;;  %4435 = vmatpush2.msra.mxu0 %v2832_v2  ;;  %v3224_v16 = vld [vmem:[%s16881_s3 + $0x4168] sm:$0xff]  ;;  %v2994_v2 = vld [vmem:[%s16881_s3 + $0x3a38] sm:$0xff] }
 0x18b   :  { %4365 = vmatprep.subr.mxu1 %v2602_v17  ;;  %4436 = vmatprep.subr.mxu0 %v2826_v19  ;;  %v3218_v17 = vld [vmem:[%s16881_s3 + $0x4138] sm:$0xff]  ;;  %v2993_v19 = vld [vmem:[%s16881_s3 + $0x3a30] sm:$0xff] }
 0x18c   :  { %4366 = vmatpush2.msra.mxu1 %v2601_v35  ;;  %4437 = vmatpush2.msra.mxu0 %v2825_v62  ;;  %v2987_v35 = vld [vmem:[%s16881_s3 + $0x3a00] sm:$0xff] }
 0x18d   :  { %4367 = vmatprep.subr.mxu1 %v2595_v14  ;;  %4438 = vmatprep.subr.mxu0 %v2819_v36  ;;  %v3211_v62 = vld [vmem:[%s16881_s3 + $0x4100] sm:$0xff]  ;;  %v3210_v14 = vld [vmem:[%s16881_s3 + $0x40f8] sm:$0xff]  ;;  %v2980_v36 = vld [vmem:[%s16881_s3 + $0x39c8] sm:$0xff] }
 0x18e   :  { %4368 = vmatpush2.msra.mxu1 %v2594_v20  ;;  %4439 = vmatpush2.msra.mxu0 %v2818_v37  ;;  %v3204_v20 = vld [vmem:[%s16881_s3 + $0x40c8] sm:$0xff]  ;;  %v2979_v37 = vld [vmem:[%s16881_s3 + $0x39c0] sm:$0xff] }
 0x18f   :  { %4369 = vmatprep.subr.mxu1 %v2588_v21  ;;  %4440 = vmatprep.subr.mxu0 %v2812_v28  ;;  %v3203_v21 = vld [vmem:[%s16881_s3 + $0x40c0] sm:$0xff]  ;;  %v2973_v28 = vld [vmem:[%s16881_s3 + $0x3990] sm:$0xff] }
 0x190   :  { %4370 = vmatpush2.msra.mxu1 %v2587_v31  ;;  %4441 = vmatpush2.msra.mxu0 %v2811_v33  ;;  %v2972_v31 = vld [vmem:[%s16881_s3 + $0x3988] sm:$0xff] }
 0x191   :  { %4372 = vmatmul.mubr.f32.vlgmr.msra.gmra.mxu1 %v10004_v45  ;;  %4443 = vmatmul.mubr.f32.vlgmr.msra.gmra.mxu0 %v10001_v52  ;;  %v3196_v33 = vld [vmem:[%s16881_s3 + $0x4088] sm:$0xff] }
 0x192   :  { %4449 = vmatprep.subr.mxu1 %v3029_v60  ;;  %4520 = vmatprep.subr.mxu0 %v3253_v38  ;;  %v3190_v60 = vld [vmem:[%s16881_s3 + $0x4058] sm:$0xff]  ;;  %v2965_v38 = vld [vmem:[%s16881_s3 + $0x3950] sm:$0xff] }
 0x193   :  { %4450 = vmatpush1.msra.mxu1 %v3028_v24  ;;  %4513 = vmatprep.mubr.f32.mxu1 %v10015_v57  ;;  %v3189_v24 = vld [vmem:[%s16881_s3 + $0x4050] sm:$0xff] }
 0x194   :  { %4521 = vmatpush1.msra.mxu0 %v3252_v25  ;;  %4584 = vmatprep.mubr.f32.mxu0 %v10022_v40  ;;  %v2959_v25 = vld [vmem:[%s16881_s3 + $0x3920] sm:$0xff] }
 0x195   :  { %4451 = vmatprep.subr.mxu1 %v3022_v43  ;;  %4522 = vmatprep.subr.mxu0 %v3246_v44  ;;  %v3183_v43 = vld [vmem:[%s16881_s3 + $0x4020] sm:$0xff]  ;;  %v2958_v44 = vld [vmem:[%s16881_s3 + $0x3918] sm:$0xff] }
 0x196   :  { %4452 = vmatpush1.msra.mxu1 %v3021_v49  ;;  %4523 = vmatpush1.msra.mxu0 %v3245_v56  ;;  %v3182_v49 = vld [vmem:[%s16881_s3 + $0x4018] sm:$0xff]  ;;  %v2952_v56 = vld [vmem:[%s16881_s3 + $0x38e8] sm:$0xff] }
 0x197   :  { %4453 = vmatprep.subr.mxu1 %v3015_v4  ;;  %4524 = vmatprep.subr.mxu0 %v3239_v5  ;;  %v3176_v4 = vld [vmem:[%s16881_s3 + $0x3fe8] sm:$0xff]  ;;  %v2951_v5 = vld [vmem:[%s16881_s3 + $0x38e0] sm:$0xff] }
 0x198   :  { %4454 = vmatpush1.msra.mxu1 %v3014_v30  ;;  %4525 = vmatpush1.msra.mxu0 %v3238_v61  ;;  %v3175_v30 = vld [vmem:[%s16881_s3 + $0x3fe0] sm:$0xff]  ;;  %v2945_v61 = vld [vmem:[%s16881_s3 + $0x38b0] sm:$0xff] }
 0x199   :  { %4455 = vmatprep.subr.mxu1 %v3008_v32  ;;  %4526 = vmatprep.subr.mxu0 %v3232_v7  ;;  %v3169_v32 = vld [vmem:[%s16881_s3 + $0x3fb0] sm:$0xff]  ;;  %v2944_v7 = vld [vmem:[%s16881_s3 + $0x38a8] sm:$0xff] }
 0x19a   :  { %4456 = vmatpush1.msra.mxu1 %v3007_v8  ;;  %4527 = vmatpush1.msra.mxu0 %v3231_v29  ;;  %v3168_v8 = vld [vmem:[%s16881_s3 + $0x3fa8] sm:$0xff]  ;;  %v2938_v29 = vld [vmem:[%s16881_s3 + $0x3878] sm:$0xff] }
 0x19b   :  { %4457 = vmatprep.subr.mxu1 %v3001_v9  ;;  %4528 = vmatprep.subr.mxu0 %v3225_v10  ;;  %v3162_v9 = vld [vmem:[%s16881_s3 + $0x3f78] sm:$0xff]  ;;  %v2937_v10 = vld [vmem:[%s16881_s3 + $0x3870] sm:$0xff] }
 0x19c   :  { %4458 = vmatpush1.msra.mxu1 %v3000_v12  ;;  %4529 = vmatpush1.msra.mxu0 %v3224_v16  ;;  %v3161_v12 = vld [vmem:[%s16881_s3 + $0x3f70] sm:$0xff]  ;;  %v2931_v16 = vld [vmem:[%s16881_s3 + $0x3840] sm:$0xff] }
 0x19d   :  { %4459 = vmatprep.subr.mxu1 %v2994_v2  ;;  %4530 = vmatprep.subr.mxu0 %v3218_v17  ;;  %v3155_v2 = vld [vmem:[%s16881_s3 + $0x3f40] sm:$0xff]  ;;  %v2930_v17 = vld [vmem:[%s16881_s3 + $0x3838] sm:$0xff] }
 0x19e   :  { %4460 = vmatpush1.msra.mxu1 %v2993_v19  ;;  %4531 = vmatpush1.msra.mxu0 %v3217_v58  ;;  %v3154_v19 = vld [vmem:[%s16881_s3 + $0x3f38] sm:$0xff]  ;;  %v2924_v58 = vld [vmem:[%s16881_s3 + $0x3808] sm:$0xff] }
 0x19f   :  { %4461 = vmatprep.subr.mxu1 %v2987_v35  ;;  %4532 = vmatprep.subr.mxu0 %v3211_v62  ;;  %v3148_v35 = vld [vmem:[%s16881_s3 + $0x3f08] sm:$0xff]  ;;  %v2923_v62 = vld [vmem:[%s16881_s3 + $0x3800] sm:$0xff] }
 0x1a0   :  { %4462 = vmatpush1.msra.mxu1 %v2986_v63  ;;  %4533 = vmatpush1.msra.mxu0 %v3210_v14  ;;  %v3147_v63 = vld [vmem:[%s16881_s3 + $0x3f00] sm:$0xff]  ;;  %v3141_v14 = vld [vmem:[%s16881_s3 + $0x3ed0] sm:$0xff] }
 0x1a1   :  { %4463 = vmatprep.subr.mxu1 %v2980_v36  ;;  %4534 = vmatprep.subr.mxu0 %v3204_v20  ;;  %v3365_v36 = vld [vmem:[%s16881_s3 + $0x45d0] sm:$0xff]  ;;  %v3140_v20 = vld [vmem:[%s16881_s3 + $0x3ec8] sm:$0xff] }
 0x1a2   :  { %4464 = vmatpush1.msra.mxu1 %v2979_v37  ;;  %4535 = vmatpush1.msra.mxu0 %v3203_v21  ;;  %v3364_v37 = vld [vmem:[%s16881_s3 + $0x45c8] sm:$0xff]  ;;  %v3134_v21 = vld [vmem:[%s16881_s3 + $0x3e98] sm:$0xff] }
 0x1a3   :  { %4465 = vmatprep.subr.mxu1 %v2973_v28  ;;  %4536 = vmatprep.subr.mxu0 %v3197_v59  ;;  %v3358_v28 = vld [vmem:[%s16881_s3 + $0x4598] sm:$0xff]  ;;  %v3133_v59 = vld [vmem:[%s16881_s3 + $0x3e90] sm:$0xff] }
 0x1a4   :  { %4466 = vmatpush1.msra.mxu1 %v2972_v31  ;;  %4537 = vmatpush1.msra.mxu0 %v3196_v33  ;;  %v3357_v31 = vld [vmem:[%s16881_s3 + $0x4590] sm:$0xff]  ;;  %v3127_v33 = vld [vmem:[%s16881_s3 + $0x3e60] sm:$0xff] }
 0x1a5   :  { %4467 = vmatprep.subr.mxu1 %v2966_v51  ;;  %4538 = vmatprep.subr.mxu0 %v3190_v60  ;;  %v3351_v51 = vld [vmem:[%s16881_s3 + $0x4560] sm:$0xff]  ;;  %v3126_v60 = vld [vmem:[%s16881_s3 + $0x3e58] sm:$0xff] }
 0x1a6   :  { %4468 = vmatpush1.msra.mxu1 %v2965_v38  ;;  %4539 = vmatpush1.msra.mxu0 %v3189_v24  ;;  %v3350_v38 = vld [vmem:[%s16881_s3 + $0x4558] sm:$0xff]  ;;  %v3120_v24 = vld [vmem:[%s16881_s3 + $0x3e28] sm:$0xff] }
 0x1a7   :  { %4469 = vmatprep.subr.mxu1 %v2959_v25  ;;  %4540 = vmatprep.subr.mxu0 %v3183_v43  ;;  %v3344_v25 = vld [vmem:[%s16881_s3 + $0x4528] sm:$0xff]  ;;  %v3119_v43 = vld [vmem:[%s16881_s3 + $0x3e20] sm:$0xff] }
 0x1a8   :  { %4470 = vmatpush1.msra.mxu1 %v2958_v44  ;;  %4541 = vmatpush1.msra.mxu0 %v3182_v49  ;;  %v3343_v44 = vld [vmem:[%s16881_s3 + $0x4520] sm:$0xff]  ;;  %v3113_v49 = vld [vmem:[%s16881_s3 + $0x3df0] sm:$0xff] }
 0x1a9   :  { %4471 = vmatprep.subr.mxu1 %v2952_v56  ;;  %4542 = vmatprep.subr.mxu0 %v3176_v4  ;;  %v3337_v56 = vld [vmem:[%s16881_s3 + $0x44f0] sm:$0xff]  ;;  %v3112_v4 = vld [vmem:[%s16881_s3 + $0x3de8] sm:$0xff] }
 0x1aa   :  { %4472 = vmatpush1.msra.mxu1 %v2951_v5  ;;  %4543 = vmatpush1.msra.mxu0 %v3175_v30  ;;  %v3336_v5 = vld [vmem:[%s16881_s3 + $0x44e8] sm:$0xff]  ;;  %v3106_v30 = vld [vmem:[%s16881_s3 + $0x3db8] sm:$0xff] }
 0x1ab   :  { %4473 = vmatprep.subr.mxu1 %v2945_v61  ;;  %4544 = vmatprep.subr.mxu0 %v3169_v32  ;;  %v3330_v61 = vld [vmem:[%s16881_s3 + $0x44b8] sm:$0xff]  ;;  %v3105_v32 = vld [vmem:[%s16881_s3 + $0x3db0] sm:$0xff] }
 0x1ac   :  { %4474 = vmatpush1.msra.mxu1 %v2944_v7  ;;  %4545 = vmatpush1.msra.mxu0 %v3168_v8  ;;  %v3329_v7 = vld [vmem:[%s16881_s3 + $0x44b0] sm:$0xff]  ;;  %v3099_v8 = vld [vmem:[%s16881_s3 + $0x3d80] sm:$0xff] }
 0x1ad   :  { %4475 = vmatprep.subr.mxu1 %v2938_v29  ;;  %4546 = vmatprep.subr.mxu0 %v3162_v9  ;;  %v3323_v29 = vld [vmem:[%s16881_s3 + $0x4480] sm:$0xff]  ;;  %v3098_v9 = vld [vmem:[%s16881_s3 + $0x3d78] sm:$0xff] }
 0x1ae   :  { %4476 = vmatpush1.msra.mxu1 %v2937_v10  ;;  %4547 = vmatpush1.msra.mxu0 %v3161_v12  ;;  %v3322_v10 = vld [vmem:[%s16881_s3 + $0x4478] sm:$0xff]  ;;  %v3092_v12 = vld [vmem:[%s16881_s3 + $0x3d48] sm:$0xff] }
 0x1af   :  { %4477 = vmatprep.subr.mxu1 %v2931_v16  ;;  %4548 = vmatprep.subr.mxu0 %v3155_v2  ;;  %v3316_v16 = vld [vmem:[%s16881_s3 + $0x4448] sm:$0xff]  ;;  %v3091_v2 = vld [vmem:[%s16881_s3 + $0x3d40] sm:$0xff] }
 0x1b0   :  { %4478 = vmatpush1.msra.mxu1 %v2930_v17  ;;  %4549 = vmatpush1.msra.mxu0 %v3154_v19  ;;  %v3315_v17 = vld [vmem:[%s16881_s3 + $0x4440] sm:$0xff]  ;;  %v3085_v19 = vld [vmem:[%s16881_s3 + $0x3d10] sm:$0xff] }
 0x1b1   :  { %4479 = vmatprep.subr.mxu1 %v2924_v58  ;;  %4550 = vmatprep.subr.mxu0 %v3148_v35  ;;  %v3309_v58 = vld [vmem:[%s16881_s3 + $0x4410] sm:$0xff]  ;;  %v3084_v35 = vld [vmem:[%s16881_s3 + $0x3d08] sm:$0xff] }
 0x1b2   :  { %4480 = vmatpush1.msra.mxu1 %v2923_v62  ;;  %4551 = vmatpush1.msra.mxu0 %v3147_v63  ;;  %v3308_v62 = vld [vmem:[%s16881_s3 + $0x4408] sm:$0xff]  ;;  %v3078_v63 = vld [vmem:[%s16881_s3 + $0x3cd8] sm:$0xff] }
 0x1b3   :  { %4481 = vmatprep.subr.mxu1 %v3141_v14  ;;  %4552 = vmatprep.subr.mxu0 %v3365_v36  ;;  %v3302_v14 = vld [vmem:[%s16881_s3 + $0x43d8] sm:$0xff]  ;;  %v3077_v36 = vld [vmem:[%s16881_s3 + $0x3cd0] sm:$0xff] }
 0x1b4   :  { %4482 = vmatpush2.msra.mxu1 %v3140_v20  ;;  %4553 = vmatpush2.msra.mxu0 %v3364_v37  ;;  %v3301_v20 = vld [vmem:[%s16881_s3 + $0x43d0] sm:$0xff]  ;;  %v3071_v37 = vld [vmem:[%s16881_s3 + $0x3ca0] sm:$0xff] }
 0x1b5   :  { %4483 = vmatprep.subr.mxu1 %v3134_v21  ;;  %4554 = vmatprep.subr.mxu0 %v3358_v28  ;;  %v3295_v21 = vld [vmem:[%s16881_s3 + $0x43a0] sm:$0xff]  ;;  %v3070_v28 = vld [vmem:[%s16881_s3 + $0x3c98] sm:$0xff] }
 0x1b6   :  { %4484 = vmatpush2.msra.mxu1 %v3133_v59  ;;  %4555 = vmatpush2.msra.mxu0 %v3357_v31  ;;  %v3294_v59 = vld [vmem:[%s16881_s3 + $0x4398] sm:$0xff]  ;;  %v3064_v31 = vld [vmem:[%s16881_s3 + $0x3c68] sm:$0xff] }
 0x1b7   :  { %4485 = vmatprep.subr.mxu1 %v3127_v33  ;;  %4556 = vmatprep.subr.mxu0 %v3351_v51  ;;  %v3288_v33 = vld [vmem:[%s16881_s3 + $0x4368] sm:$0xff]  ;;  %v3063_v51 = vld [vmem:[%s16881_s3 + $0x3c60] sm:$0xff] }
 0x1b8   :  { %4486 = vmatpush2.msra.mxu1 %v3126_v60  ;;  %4557 = vmatpush2.msra.mxu0 %v3350_v38  ;;  %v3287_v60 = vld [vmem:[%s16881_s3 + $0x4360] sm:$0xff]  ;;  %v3057_v38 = vld [vmem:[%s16881_s3 + $0x3c30] sm:$0xff] }
 0x1b9   :  { %4487 = vmatprep.subr.mxu1 %v3120_v24  ;;  %4558 = vmatprep.subr.mxu0 %v3344_v25  ;;  %v3281_v24 = vld [vmem:[%s16881_s3 + $0x4330] sm:$0xff]  ;;  %v3056_v25 = vld [vmem:[%s16881_s3 + $0x3c28] sm:$0xff] }
 0x1ba   :  { %4488 = vmatpush2.msra.mxu1 %v3119_v43  ;;  %4559 = vmatpush2.msra.mxu0 %v3343_v44  ;;  %v3280_v43 = vld [vmem:[%s16881_s3 + $0x4328] sm:$0xff]  ;;  %v3050_v44 = vld [vmem:[%s16881_s3 + $0x3bf8] sm:$0xff] }
 0x1bb   :  { %4489 = vmatprep.subr.mxu1 %v3113_v49  ;;  %4560 = vmatprep.subr.mxu0 %v3337_v56  ;;  %v3274_v49 = vld [vmem:[%s16881_s3 + $0x42f8] sm:$0xff]  ;;  %v3049_v56 = vld [vmem:[%s16881_s3 + $0x3bf0] sm:$0xff] }
 0x1bc   :  { %4490 = vmatpush2.msra.mxu1 %v3112_v4  ;;  %4561 = vmatpush2.msra.mxu0 %v3336_v5  ;;  %v3273_v4 = vld [vmem:[%s16881_s3 + $0x42f0] sm:$0xff]  ;;  %v150_v5 = vrot.slane %v9962_v13, %v9094_v48  ;;  %v3266_v48 = vld [vmem:[%s16881_s3 + $0x42b8] sm:$0xff]  ;;  %v3036_v13 = vld [vmem:[%s16881_s3 + $0x3b88] sm:$0xff] }
 0x1bd   :  { %4491 = vmatprep.subr.mxu1 %v3106_v30  ;;  %4562 = vmatprep.subr.mxu0 %v3330_v61  ;;  %v3043_v30 = vld [vmem:[%s16881_s3 + $0x3bc0] sm:$0xff] }
 0x1be   :  { %4492 = vmatpush2.msra.mxu1 %v3105_v32  ;;  %4563 = vmatpush2.msra.mxu0 %v3329_v7  ;;  %v3267_v61 = vld [vmem:[%s16881_s3 + $0x42c0] sm:$0xff]  ;;  %v1033_v32 = vpop.f32.mrf.mxu1  ;;  %v3042_v7 = vld [vmem:[%s16881_s3 + $0x3bb8] sm:$0xff] }
 0x1bf   :  { %4493 = vmatprep.subr.mxu1 %v3099_v8  ;;  %4564 = vmatprep.subr.mxu0 %v3323_v29  ;;  %v3260_v8 = vld [vmem:[%s16881_s3 + $0x4288] sm:$0xff]  ;;  %v3035_v29 = vld [vmem:[%s16881_s3 + $0x3b80] sm:$0xff] }
 0x1c0   :  { %4494 = vmatpush2.msra.mxu1 %v3098_v9  ;;  %4565 = vmatpush2.msra.mxu0 %v3322_v10  ;;  %v3259_v9 = vld [vmem:[%s16881_s3 + $0x4280] sm:$0xff]  ;;  %v1034_v10 = vadd.f32 %v1033_v32, %v150_v5  ;;  %v3658_v5 = vld [vmem:[%s16881_s3 + $0x4ef8] sm:$0xff] }
 0x1c1   :  { %4495 = vmatprep.subr.mxu1 %v3092_v12  ;;  %4566 = vmatprep.subr.mxu0 %v3316_v16  ;;  %v10401_v12 = vmax.f32 %v8831_v46, 0.0  ;;  %v10404_v16 = vmax.f32 %v8833_v47, 0.0  ;;  %v3476_v46 = vld [vmem:[%s16881_s3 + $0x4948] sm:$0xff]  ;;  %v3427_v32 = vld [vmem:[%s16881_s3 + $0x47c0] sm:$0xff] }
 0x1c2   :  { %4496 = vmatpush2.msra.mxu1 %v3091_v2  ;;  %4567 = vmatpush2.msra.mxu0 %v3315_v17  ;;  %v3477_v2 = vld [vmem:[%s16881_s3 + $0x4950] sm:$0xff]  ;;  %v3700_v47 = vld [vmem:[%s16881_s3 + $0x5048] sm:$0xff] }
 0x1c3   :  { %4497 = vmatprep.subr.mxu1 %v3085_v19  ;;  %4568 = vmatprep.subr.mxu0 %v3309_v58  ;;  %v3701_v17 = vld [vmem:[%s16881_s3 + $0x5050] sm:$0xff]  ;;  %v10416_v19 = vmax.f32 %v8885_v22, 0.0  ;;  %v10423_v58 = vmax.f32 %v1034_v10, 0.0  ;;  %v3694_v22 = vld [vmem:[%s16881_s3 + $0x5018] sm:$0xff] }
 0x1c4   :  { %4498 = vmatpush2.msra.mxu1 %v3084_v35  ;;  %4569 = vmatpush2.msra.mxu0 %v3308_v62  ;;  %v3470_v35 = vld [vmem:[%s16881_s3 + $0x4918] sm:$0xff]  ;;  %v3469_v62 = vld [vmem:[%s16881_s3 + $0x4910] sm:$0xff] }
 0x1c5   :  { %4499 = vmatprep.subr.mxu1 %v3078_v63  ;;  %4570 = vmatprep.subr.mxu0 %v3302_v14  ;;  %v3693_v63 = vld [vmem:[%s16881_s3 + $0x5010] sm:$0xff]  ;;  %v3463_v14 = vld [vmem:[%s16881_s3 + $0x48e0] sm:$0xff]  ;;  %v3638_v10 = vld [vmem:[%s16881_s3 + $0x4e58] sm:$0xff] }
 0x1c6   :  { %4500 = vmatpush2.msra.mxu1 %v3077_v36  ;;  %4571 = vmatpush2.msra.mxu0 %v3301_v20  ;;  %v3687_v36 = vld [vmem:[%s16881_s3 + $0x4fe0] sm:$0xff]  ;;  %v3462_v20 = vld [vmem:[%s16881_s3 + $0x48d8] sm:$0xff] }
 0x1c7   :  { %4501 = vmatprep.subr.mxu1 %v3071_v37  ;;  %4572 = vmatprep.subr.mxu0 %v3295_v21  ;;  %v3686_v37 = vld [vmem:[%s16881_s3 + $0x4fd8] sm:$0xff]  ;;  %v3456_v21 = vld [vmem:[%s16881_s3 + $0x48a8] sm:$0xff] }
 0x1c8   :  { %4502 = vmatpush2.msra.mxu1 %v3070_v28  ;;  %4573 = vmatpush2.msra.mxu0 %v3294_v59  ;;  %v3680_v28 = vld [vmem:[%s16881_s3 + $0x4fa8] sm:$0xff]  ;;  %v3455_v59 = vld [vmem:[%s16881_s3 + $0x48a0] sm:$0xff] }
 0x1c9   :  { %4503 = vmatprep.subr.mxu1 %v3064_v31  ;;  %4574 = vmatprep.subr.mxu0 %v3288_v33  ;;  %v3679_v31 = vld [vmem:[%s16881_s3 + $0x4fa0] sm:$0xff]  ;;  %v3449_v33 = vld [vmem:[%s16881_s3 + $0x4870] sm:$0xff] }
 0x1ca   :  { %4504 = vmatpush2.msra.mxu1 %v3063_v51  ;;  %4575 = vmatpush2.msra.mxu0 %v3287_v60  ;;  %v3673_v51 = vld [vmem:[%s16881_s3 + $0x4f70] sm:$0xff]  ;;  %v3448_v60 = vld [vmem:[%s16881_s3 + $0x4868] sm:$0xff] }
 0x1cb   :  { %4505 = vmatprep.subr.mxu1 %v3057_v38  ;;  %4576 = vmatprep.subr.mxu0 %v3281_v24  ;;  %v3672_v38 = vld [vmem:[%s16881_s3 + $0x4f68] sm:$0xff]  ;;  %v3442_v24 = vld [vmem:[%s16881_s3 + $0x4838] sm:$0xff] }
 0x1cc   :  { %4506 = vmatpush2.msra.mxu1 %v3056_v25  ;;  %4577 = vmatpush2.msra.mxu0 %v3280_v43  ;;  %v3666_v25 = vld [vmem:[%s16881_s3 + $0x4f38] sm:$0xff]  ;;  %v3441_v43 = vld [vmem:[%s16881_s3 + $0x4830] sm:$0xff] }
 0x1cd   :  { %4507 = vmatprep.subr.mxu1 %v3050_v44  ;;  %4578 = vmatprep.subr.mxu0 %v3274_v49  ;;  %v3665_v44 = vld [vmem:[%s16881_s3 + $0x4f30] sm:$0xff]  ;;  %v3435_v49 = vld [vmem:[%s16881_s3 + $0x4800] sm:$0xff] }
 0x1ce   :  { %4508 = vmatpush2.msra.mxu1 %v3049_v56  ;;  %4579 = vmatpush2.msra.mxu0 %v3273_v4  ;;  %v3659_v56 = vld [vmem:[%s16881_s3 + $0x4f00] sm:$0xff]  ;;  %v3434_v4 = vld [vmem:[%s16881_s3 + $0x47f8] sm:$0xff] }
 0x1cf   :  { %4509 = vmatprep.subr.mxu1 %v3043_v30  ;;  %4580 = vmatprep.subr.mxu0 %v3267_v61  ;;  %v3428_v30 = vld [vmem:[%s16881_s3 + $0x47c8] sm:$0xff] }
 0x1d0   :  { %4510 = vmatpush2.msra.mxu1 %v3042_v7  ;;  %4581 = vmatpush2.msra.mxu0 %v3266_v48  ;;  %v3652_v61 = vld [vmem:[%s16881_s3 + $0x4ec8] sm:$0xff]  ;;  %v3651_v7 = vld [vmem:[%s16881_s3 + $0x4ec0] sm:$0xff]  ;;  %v3421_v48 = vld [vmem:[%s16881_s3 + $0x4790] sm:$0xff] }
 0x1d1   :  { %4511 = vmatprep.subr.mxu1 %v3036_v13  ;;  %4582 = vmatprep.subr.mxu0 %v3260_v8  ;;  %v3645_v13 = vld [vmem:[%s16881_s3 + $0x4e90] sm:$0xff]  ;;  %v3420_v8 = vld [vmem:[%s16881_s3 + $0x4788] sm:$0xff] }
 0x1d2   :  { %4512 = vmatpush2.msra.mxu1 %v3035_v29  ;;  %4583 = vmatpush2.msra.mxu0 %v3259_v9  ;;  %v3644_v29 = vld [vmem:[%s16881_s3 + $0x4e88] sm:$0xff]  ;;  %v3414_v9 = vld [vmem:[%s16881_s3 + $0x4758] sm:$0xff] }
 0x1d3   :  { %4514 = vmatmul.mubr.f32.vlgmr.msra.gmra.mxu1 %v10404_v16  ;;  %4585 = vmatmul.mubr.f32.vlgmr.msra.gmra.mxu0 %v10401_v12 }
 0x1d4   :  { %4591 = vmatprep.subr.mxu1 %v3477_v2  ;;  %4662 = vmatprep.subr.mxu0 %v3701_v17  ;;  %v3413_v2 = vld [vmem:[%s16881_s3 + $0x4750] sm:$0xff] }
 0x1d5   :  { %4592 = vmatpush1.msra.mxu1 %v3476_v46  ;;  %4655 = vmatprep.mubr.f32.mxu1 %v10416_v19  ;;  %v3637_v17 = vld [vmem:[%s16881_s3 + $0x4e50] sm:$0xff]  ;;  %v3407_v46 = vld [vmem:[%s16881_s3 + $0x4720] sm:$0xff] }
 0x1d6   :  { %4663 = vmatpush1.msra.mxu0 %v3700_v47  ;;  %4726 = vmatprep.mubr.f32.mxu0 %v10423_v58  ;;  %v3631_v47 = vld [vmem:[%s16881_s3 + $0x4e20] sm:$0xff] }
 0x1d7   :  { %4593 = vmatprep.subr.mxu1 %v3470_v35  ;;  %4664 = vmatprep.subr.mxu0 %v3694_v22  ;;  %v3406_v35 = vld [vmem:[%s16881_s3 + $0x4718] sm:$0xff] }
 0x1d8   :  { %4594 = vmatpush1.msra.mxu1 %v3469_v62  ;;  %4665 = vmatpush1.msra.mxu0 %v3693_v63  ;;  %v3630_v22 = vld [vmem:[%s16881_s3 + $0x4e18] sm:$0xff]  ;;  %v3400_v62 = vld [vmem:[%s16881_s3 + $0x46e8] sm:$0xff] }
 0x1d9   :  { %4595 = vmatprep.subr.mxu1 %v3463_v14  ;;  %4666 = vmatprep.subr.mxu0 %v3687_v36  ;;  %v3624_v63 = vld [vmem:[%s16881_s3 + $0x4de8] sm:$0xff]  ;;  %v3399_v14 = vld [vmem:[%s16881_s3 + $0x46e0] sm:$0xff] }
 0x1da   :  { %4596 = vmatpush1.msra.mxu1 %v3462_v20  ;;  %4667 = vmatpush1.msra.mxu0 %v3686_v37  ;;  %v3623_v36 = vld [vmem:[%s16881_s3 + $0x4de0] sm:$0xff]  ;;  %v3393_v20 = vld [vmem:[%s16881_s3 + $0x46b0] sm:$0xff] }
 0x1db   :  { %4597 = vmatprep.subr.mxu1 %v3456_v21  ;;  %4668 = vmatprep.subr.mxu0 %v3680_v28  ;;  %v3617_v37 = vld [vmem:[%s16881_s3 + $0x4db0] sm:$0xff]  ;;  %v3392_v21 = vld [vmem:[%s16881_s3 + $0x46a8] sm:$0xff] }
 0x1dc   :  { %4598 = vmatpush1.msra.mxu1 %v3455_v59  ;;  %4669 = vmatpush1.msra.mxu0 %v3679_v31  ;;  %v3616_v28 = vld [vmem:[%s16881_s3 + $0x4da8] sm:$0xff]  ;;  %v3386_v59 = vld [vmem:[%s16881_s3 + $0x4678] sm:$0xff] }
 0x1dd   :  { %4599 = vmatprep.subr.mxu1 %v3449_v33  ;;  %4670 = vmatprep.subr.mxu0 %v3673_v51  ;;  %v3610_v31 = vld [vmem:[%s16881_s3 + $0x4d78] sm:$0xff]  ;;  %v3385_v33 = vld [vmem:[%s16881_s3 + $0x4670] sm:$0xff] }
 0x1de   :  { %4600 = vmatpush1.msra.mxu1 %v3448_v60  ;;  %4671 = vmatpush1.msra.mxu0 %v3672_v38  ;;  %v3609_v51 = vld [vmem:[%s16881_s3 + $0x4d70] sm:$0xff]  ;;  %v3379_v60 = vld [vmem:[%s16881_s3 + $0x4640] sm:$0xff] }
 0x1df   :  { %4601 = vmatprep.subr.mxu1 %v3442_v24  ;;  %4672 = vmatprep.subr.mxu0 %v3666_v25  ;;  %v3603_v38 = vld [vmem:[%s16881_s3 + $0x4d40] sm:$0xff]  ;;  %v3378_v24 = vld [vmem:[%s16881_s3 + $0x4638] sm:$0xff] }
 0x1e0   :  { %4602 = vmatpush1.msra.mxu1 %v3441_v43  ;;  %4673 = vmatpush1.msra.mxu0 %v3665_v44  ;;  %v3602_v25 = vld [vmem:[%s16881_s3 + $0x4d38] sm:$0xff]  ;;  %v3372_v43 = vld [vmem:[%s16881_s3 + $0x4608] sm:$0xff] }
 0x1e1   :  { %4603 = vmatprep.subr.mxu1 %v3435_v49  ;;  %4674 = vmatprep.subr.mxu0 %v3659_v56  ;;  %v3596_v44 = vld [vmem:[%s16881_s3 + $0x4d08] sm:$0xff]  ;;  %v3371_v49 = vld [vmem:[%s16881_s3 + $0x4600] sm:$0xff] }
 0x1e2   :  { %4604 = vmatpush1.msra.mxu1 %v3434_v4  ;;  %4675 = vmatpush1.msra.mxu0 %v3658_v5  ;;  %v3595_v56 = vld [vmem:[%s16881_s3 + $0x4d00] sm:$0xff]  ;;  %v3589_v4 = vld [vmem:[%s16881_s3 + $0x4cd0] sm:$0xff] }
 0x1e3   :  { %4605 = vmatprep.subr.mxu1 %v3428_v30  ;;  %4676 = vmatprep.subr.mxu0 %v3652_v61  ;;  %v3813_v5 = vld [vmem:[%s16881_s3 + $0x53d0] sm:$0xff]  ;;  %v3588_v30 = vld [vmem:[%s16881_s3 + $0x4cc8] sm:$0xff] }
 0x1e4   :  { %4606 = vmatpush1.msra.mxu1 %v3427_v32  ;;  %4677 = vmatpush1.msra.mxu0 %v3651_v7  ;;  %v3812_v61 = vld [vmem:[%s16881_s3 + $0x53c8] sm:$0xff]  ;;  %v3582_v32 = vld [vmem:[%s16881_s3 + $0x4c98] sm:$0xff] }
 0x1e5   :  { %4607 = vmatprep.subr.mxu1 %v3421_v48  ;;  %4678 = vmatprep.subr.mxu0 %v3645_v13  ;;  %v3806_v7 = vld [vmem:[%s16881_s3 + $0x5398] sm:$0xff]  ;;  %v3581_v48 = vld [vmem:[%s16881_s3 + $0x4c90] sm:$0xff] }
 0x1e6   :  { %4608 = vmatpush1.msra.mxu1 %v3420_v8  ;;  %4679 = vmatpush1.msra.mxu0 %v3644_v29  ;;  %v3805_v13 = vld [vmem:[%s16881_s3 + $0x5390] sm:$0xff]  ;;  %v3575_v8 = vld [vmem:[%s16881_s3 + $0x4c60] sm:$0xff] }
 0x1e7   :  { %4609 = vmatprep.subr.mxu1 %v3414_v9  ;;  %4680 = vmatprep.subr.mxu0 %v3638_v10  ;;  %v3799_v29 = vld [vmem:[%s16881_s3 + $0x5360] sm:$0xff]  ;;  %v3574_v9 = vld [vmem:[%s16881_s3 + $0x4c58] sm:$0xff] }
 0x1e8   :  { %4610 = vmatpush1.msra.mxu1 %v3413_v2  ;;  %4681 = vmatpush1.msra.mxu0 %v3637_v17  ;;  %v3798_v10 = vld [vmem:[%s16881_s3 + $0x5358] sm:$0xff]  ;;  %v3568_v2 = vld [vmem:[%s16881_s3 + $0x4c28] sm:$0xff] }
 0x1e9   :  { %4611 = vmatprep.subr.mxu1 %v3407_v46  ;;  %4682 = vmatprep.subr.mxu0 %v3631_v47  ;;  %v3792_v17 = vld [vmem:[%s16881_s3 + $0x5328] sm:$0xff]  ;;  %v3567_v46 = vld [vmem:[%s16881_s3 + $0x4c20] sm:$0xff] }
 0x1ea   :  { %4612 = vmatpush1.msra.mxu1 %v3406_v35  ;;  %4683 = vmatpush1.msra.mxu0 %v3630_v22  ;;  %v3791_v47 = vld [vmem:[%s16881_s3 + $0x5320] sm:$0xff]  ;;  %v3561_v35 = vld [vmem:[%s16881_s3 + $0x4bf0] sm:$0xff] }
 0x1eb   :  { %4613 = vmatprep.subr.mxu1 %v3400_v62  ;;  %4684 = vmatprep.subr.mxu0 %v3624_v63  ;;  %v3785_v22 = vld [vmem:[%s16881_s3 + $0x52f0] sm:$0xff]  ;;  %v3560_v62 = vld [vmem:[%s16881_s3 + $0x4be8] sm:$0xff] }
 0x1ec   :  { %4614 = vmatpush1.msra.mxu1 %v3399_v14  ;;  %4685 = vmatpush1.msra.mxu0 %v3623_v36  ;;  %v3784_v63 = vld [vmem:[%s16881_s3 + $0x52e8] sm:$0xff]  ;;  %v3554_v14 = vld [vmem:[%s16881_s3 + $0x4bb8] sm:$0xff] }
 0x1ed   :  { %4615 = vmatprep.subr.mxu1 %v3393_v20  ;;  %4686 = vmatprep.subr.mxu0 %v3617_v37  ;;  %v3778_v36 = vld [vmem:[%s16881_s3 + $0x52b8] sm:$0xff]  ;;  %v3553_v20 = vld [vmem:[%s16881_s3 + $0x4bb0] sm:$0xff] }
 0x1ee   :  { %4616 = vmatpush1.msra.mxu1 %v3392_v21  ;;  %4687 = vmatpush1.msra.mxu0 %v3616_v28  ;;  %v3777_v37 = vld [vmem:[%s16881_s3 + $0x52b0] sm:$0xff]  ;;  %v3547_v21 = vld [vmem:[%s16881_s3 + $0x4b80] sm:$0xff] }
 0x1ef   :  { %4617 = vmatprep.subr.mxu1 %v3386_v59  ;;  %4688 = vmatprep.subr.mxu0 %v3610_v31  ;;  %v3771_v28 = vld [vmem:[%s16881_s3 + $0x5280] sm:$0xff]  ;;  %v3546_v59 = vld [vmem:[%s16881_s3 + $0x4b78] sm:$0xff] }
 0x1f0   :  { %4618 = vmatpush1.msra.mxu1 %v3385_v33  ;;  %4689 = vmatpush1.msra.mxu0 %v3609_v51  ;;  %v3770_v31 = vld [vmem:[%s16881_s3 + $0x5278] sm:$0xff]  ;;  %v3540_v33 = vld [vmem:[%s16881_s3 + $0x4b48] sm:$0xff] }
 0x1f1   :  { %4619 = vmatprep.subr.mxu1 %v3379_v60  ;;  %4690 = vmatprep.subr.mxu0 %v3603_v38  ;;  %v3764_v51 = vld [vmem:[%s16881_s3 + $0x5248] sm:$0xff]  ;;  %v3539_v60 = vld [vmem:[%s16881_s3 + $0x4b40] sm:$0xff] }
 0x1f2   :  { %4620 = vmatpush1.msra.mxu1 %v3378_v24  ;;  %4691 = vmatpush1.msra.mxu0 %v3602_v25  ;;  %v3763_v38 = vld [vmem:[%s16881_s3 + $0x5240] sm:$0xff]  ;;  %v3533_v24 = vld [vmem:[%s16881_s3 + $0x4b10] sm:$0xff] }
 0x1f3   :  { %4621 = vmatprep.subr.mxu1 %v3372_v43  ;;  %4692 = vmatprep.subr.mxu0 %v3596_v44  ;;  %v3757_v25 = vld [vmem:[%s16881_s3 + $0x5210] sm:$0xff]  ;;  %v3532_v43 = vld [vmem:[%s16881_s3 + $0x4b08] sm:$0xff] }
 0x1f4   :  { %4622 = vmatpush1.msra.mxu1 %v3371_v49  ;;  %4693 = vmatpush1.msra.mxu0 %v3595_v56  ;;  %v3756_v44 = vld [vmem:[%s16881_s3 + $0x5208] sm:$0xff]  ;;  %v3526_v49 = vld [vmem:[%s16881_s3 + $0x4ad8] sm:$0xff] }
 0x1f5   :  { %4623 = vmatprep.subr.mxu1 %v3589_v4  ;;  %4694 = vmatprep.subr.mxu0 %v3813_v5  ;;  %v3750_v56 = vld [vmem:[%s16881_s3 + $0x51d8] sm:$0xff]  ;;  %v3525_v4 = vld [vmem:[%s16881_s3 + $0x4ad0] sm:$0xff] }
 0x1f6   :  { %4624 = vmatpush2.msra.mxu1 %v3588_v30  ;;  %4695 = vmatpush2.msra.mxu0 %v3812_v61  ;;  %v3749_v5 = vld [vmem:[%s16881_s3 + $0x51d0] sm:$0xff]  ;;  %v3519_v30 = vld [vmem:[%s16881_s3 + $0x4aa0] sm:$0xff] }
 0x1f7   :  { %4625 = vmatprep.subr.mxu1 %v3582_v32  ;;  %4696 = vmatprep.subr.mxu0 %v3806_v7  ;;  %v3743_v61 = vld [vmem:[%s16881_s3 + $0x51a0] sm:$0xff]  ;;  %v3518_v32 = vld [vmem:[%s16881_s3 + $0x4a98] sm:$0xff] }
 0x1f8   :  { %4626 = vmatpush2.msra.mxu1 %v3581_v48  ;;  %4697 = vmatpush2.msra.mxu0 %v3805_v13  ;;  %v3742_v7 = vld [vmem:[%s16881_s3 + $0x5198] sm:$0xff]  ;;  %v3512_v48 = vld [vmem:[%s16881_s3 + $0x4a68] sm:$0xff] }
 0x1f9   :  { %4627 = vmatprep.subr.mxu1 %v3575_v8  ;;  %4698 = vmatprep.subr.mxu0 %v3799_v29  ;;  %v3736_v13 = vld [vmem:[%s16881_s3 + $0x5168] sm:$0xff]  ;;  %v3511_v8 = vld [vmem:[%s16881_s3 + $0x4a60] sm:$0xff] }
 0x1fa   :  { %4628 = vmatpush2.msra.mxu1 %v3574_v9  ;;  %4699 = vmatpush2.msra.mxu0 %v3798_v10  ;;  %v3735_v29 = vld [vmem:[%s16881_s3 + $0x5160] sm:$0xff]  ;;  %v3505_v9 = vld [vmem:[%s16881_s3 + $0x4a30] sm:$0xff] }
 0x1fb   :  { %4629 = vmatprep.subr.mxu1 %v3568_v2  ;;  %4700 = vmatprep.subr.mxu0 %v3792_v17  ;;  %v3729_v10 = vld [vmem:[%s16881_s3 + $0x5130] sm:$0xff]  ;;  %v3504_v2 = vld [vmem:[%s16881_s3 + $0x4a28] sm:$0xff] }
 0x1fc   :  { %4630 = vmatpush2.msra.mxu1 %v3567_v46  ;;  %4701 = vmatpush2.msra.mxu0 %v3791_v47  ;;  %v3728_v17 = vld [vmem:[%s16881_s3 + $0x5128] sm:$0xff]  ;;  %v3498_v46 = vld [vmem:[%s16881_s3 + $0x49f8] sm:$0xff] }
 0x1fd   :  { %4631 = vmatprep.subr.mxu1 %v3561_v35  ;;  %4702 = vmatprep.subr.mxu0 %v3785_v22  ;;  %v3722_v47 = vld [vmem:[%s16881_s3 + $0x50f8] sm:$0xff]  ;;  %v3497_v35 = vld [vmem:[%s16881_s3 + $0x49f0] sm:$0xff] }
 0x1fe   :  { %4632 = vmatpush2.msra.mxu1 %v3560_v62  ;;  %4703 = vmatpush2.msra.mxu0 %v3784_v63  ;;  %v3721_v22 = vld [vmem:[%s16881_s3 + $0x50f0] sm:$0xff]  ;;  %v3491_v62 = vld [vmem:[%s16881_s3 + $0x49c0] sm:$0xff] }
 0x1ff   :  { %4633 = vmatprep.subr.mxu1 %v3554_v14  ;;  %4704 = vmatprep.subr.mxu0 %v3778_v36  ;;  %v3715_v63 = vld [vmem:[%s16881_s3 + $0x50c0] sm:$0xff]  ;;  %v3490_v14 = vld [vmem:[%s16881_s3 + $0x49b8] sm:$0xff] }
 0x200   :  { %4634 = vmatpush2.msra.mxu1 %v3553_v20  ;;  %4705 = vmatpush2.msra.mxu0 %v3777_v37  ;;  %v3714_v36 = vld [vmem:[%s16881_s3 + $0x50b8] sm:$0xff]  ;;  %v3484_v20 = vld [vmem:[%s16881_s3 + $0x4988] sm:$0xff] }
 0x201   :  { %4635 = vmatprep.subr.mxu1 %v3547_v21  ;;  %4706 = vmatprep.subr.mxu0 %v3771_v28  ;;  %v3708_v37 = vld [vmem:[%s16881_s3 + $0x5088] sm:$0xff]  ;;  %v3483_v21 = vld [vmem:[%s16881_s3 + $0x4980] sm:$0xff] }
 0x202   :  { %4636 = vmatpush2.msra.mxu1 %v3546_v59  ;;  %4707 = vmatpush2.msra.mxu0 %v3770_v31  ;;  %v3707_v28 = vld [vmem:[%s16881_s3 + $0x5080] sm:$0xff]  ;;  %v10800_v59 = vmax.f32 %v8877_v18, 0.0  ;;  %v10803_v31 = vmax.f32 %v8869_v15, 0.0  ;;  %v3868_v18 = vld [vmem:[%s16881_s3 + $0x5588] sm:$0xff]  ;;  %v1238_v15 = vld [vmem:[%s16881_s3 + $0x358] sm:$0xff] }
 0x203   :  { %4637 = vmatprep.subr.mxu1 %v3540_v33  ;;  %4708 = vmatprep.subr.mxu0 %v3764_v51  ;;  %v3869_v33 = vld [vmem:[%s16881_s3 + $0x5590] sm:$0xff]  ;;  %v1239_v51 = vld [vmem:[%s16881_s3 + $0x360] sm:$0xff] }
 0x204   :  { %4638 = vmatpush2.msra.mxu1 %v3539_v60  ;;  %4709 = vmatpush2.msra.mxu0 %v3763_v38  ;;  %v3862_v60 = vld [vmem:[%s16881_s3 + $0x5558] sm:$0xff]  ;;  %v1232_v38 = vld [vmem:[%s16881_s3 + $0x328] sm:$0xff] }
 0x205   :  { %4639 = vmatprep.subr.mxu1 %v3533_v24  ;;  %4710 = vmatprep.subr.mxu0 %v3757_v25  ;;  %v3861_v24 = vld [vmem:[%s16881_s3 + $0x5550] sm:$0xff]  ;;  %v1231_v25 = vld [vmem:[%s16881_s3 + $0x320] sm:$0xff] }
 0x206   :  { %4640 = vmatpush2.msra.mxu1 %v3532_v43  ;;  %4711 = vmatpush2.msra.mxu0 %v3756_v44  ;;  %v3855_v43 = vld [vmem:[%s16881_s3 + $0x5520] sm:$0xff]  ;;  %v1225_v44 = vld [vmem:[%s16881_s3 + $0x2f0] sm:$0xff] }
 0x207   :  { %4641 = vmatprep.subr.mxu1 %v3526_v49  ;;  %4712 = vmatprep.subr.mxu0 %v3750_v56  ;;  %v3854_v49 = vld [vmem:[%s16881_s3 + $0x5518] sm:$0xff]  ;;  %v1224_v56 = vld [vmem:[%s16881_s3 + $0x2e8] sm:$0xff] }
 0x208   :  { %4642 = vmatpush2.msra.mxu1 %v3525_v4  ;;  %4713 = vmatpush2.msra.mxu0 %v3749_v5  ;;  %v3848_v4 = vld [vmem:[%s16881_s3 + $0x54e8] sm:$0xff]  ;;  %v1218_v5 = vld [vmem:[%s16881_s3 + $0x2b8] sm:$0xff] }
 0x209   :  { %4643 = vmatprep.subr.mxu1 %v3519_v30  ;;  %4714 = vmatprep.subr.mxu0 %v3743_v61  ;;  %v3847_v30 = vld [vmem:[%s16881_s3 + $0x54e0] sm:$0xff]  ;;  %v1217_v61 = vld [vmem:[%s16881_s3 + $0x2b0] sm:$0xff] }
 0x20a   :  { %4644 = vmatpush2.msra.mxu1 %v3518_v32  ;;  %4715 = vmatpush2.msra.mxu0 %v3742_v7  ;;  %v3841_v32 = vld [vmem:[%s16881_s3 + $0x54b0] sm:$0xff]  ;;  %v1211_v7 = vld [vmem:[%s16881_s3 + $0x280] sm:$0xff] }
 0x20b   :  { %4645 = vmatprep.subr.mxu1 %v3512_v48  ;;  %4716 = vmatprep.subr.mxu0 %v3736_v13  ;;  %v3840_v48 = vld [vmem:[%s16881_s3 + $0x54a8] sm:$0xff]  ;;  %v1210_v13 = vld [vmem:[%s16881_s3 + $0x278] sm:$0xff] }
 0x20c   :  { %4646 = vmatpush2.msra.mxu1 %v3511_v8  ;;  %4717 = vmatpush2.msra.mxu0 %v3735_v29  ;;  %v3834_v8 = vld [vmem:[%s16881_s3 + $0x5478] sm:$0xff] }
 0x20d   :  { %4647 = vmatprep.subr.mxu1 %v3505_v9  ;;  %4718 = vmatprep.subr.mxu0 %v3729_v10  ;;  %v7614_v29 = vld [vmem:[%s16882_s2 + $0x18] ss:$0 sm:$0xff]  ;;  %v1204_v9 = vld [vmem:[%s16881_s3 + $0x248] sm:$0xff]  ;;  %v3833_v10 = vld [vmem:[%s16881_s3 + $0x5470] sm:$0xff] }
 0x20e   :  { %4648 = vmatpush2.msra.mxu1 %v3504_v2  ;;  %4719 = vmatpush2.msra.mxu0 %v3728_v17  ;;  %v1203_v2 = vld [vmem:[%s16881_s3 + $0x240] sm:$0xff] }
 0x20f   :  { %4649 = vmatprep.subr.mxu1 %v3498_v46  ;;  %4720 = vmatprep.subr.mxu0 %v3722_v47  ;;  %v3827_v17 = vld [vmem:[%s16881_s3 + $0x5440] sm:$0xff]  ;;  %v1197_v46 = vld [vmem:[%s16881_s3 + $0x210] sm:$0xff]  ;;  %v3826_v47 = vld [vmem:[%s16881_s3 + $0x5438] sm:$0xff] }
 0x210   :  { %4650 = vmatpush2.msra.mxu1 %v3497_v35  ;;  %4721 = vmatpush2.msra.mxu0 %v3721_v22  ;;  %v1103_v35 = vadd.f32 %v7614_v29, %v8893_v27  ;;  %v1196_v22 = vld [vmem:[%s16881_s3 + $0x208] sm:$0xff]  ;;  %v3819_v27 = vld [vmem:[%s16881_s3 + $0x5400] sm:$0xff]  ;;  %v1421_v29 = vld [vmem:[%s16881_s3 + $0x910] sm:$0xff] }
 0x211   :  { %4651 = vmatprep.subr.mxu1 %v3491_v62  ;;  %4722 = vmatprep.subr.mxu0 %v3715_v63  ;;  %v3820_v62 = vld [vmem:[%s16881_s3 + $0x5408] sm:$0xff]  ;;  %v1190_v63 = vld [vmem:[%s16881_s3 + $0x1d8] sm:$0xff] }
 0x212   :  { %4652 = vmatpush2.msra.mxu1 %v3490_v14  ;;  %4723 = vmatpush2.msra.mxu0 %v3714_v36  ;;  %v1189_v14 = vld [vmem:[%s16881_s3 + $0x1d0] sm:$0xff]  ;;  %v1183_v36 = vld [vmem:[%s16881_s3 + $0x1a0] sm:$0xff] }
 0x213   :  { %4653 = vmatprep.subr.mxu1 %v3484_v20  ;;  %4724 = vmatprep.subr.mxu0 %v3708_v37  ;;  %v10911_v20 = vmax.f32 %v1103_v35, 0.0  ;;  %v1463_v37 = vld [vmem:[%s16881_s3 + $0xa60] sm:$0xff] }
 0x214   :  { %4654 = vmatpush2.msra.mxu1 %v3483_v21  ;;  %4725 = vmatpush2.msra.mxu0 %v3707_v28  ;;  %v1182_v21 = vld [vmem:[%s16881_s3 + $0x198] sm:$0xff]  ;;  %v1351_v35 = vld [vmem:[%s16881_s3 + $0x6e0] sm:$0xff] }
 0x215   :  { %4656 = vmatmul.mubr.f32.vlgmr.msra.gmra.mxu1 %v10803_v31  ;;  %4727 = vmatmul.mubr.f32.vlgmr.msra.gmra.mxu0 %v10800_v59  ;;  %v1462_v28 = vld [vmem:[%s16881_s3 + $0xa58] sm:$0xff] }
 0x216   :  { %4749 = vmatprep.subr.mxu1 %v3869_v33  ;;  %4804 = vmatprep.subr.mxu0 %v1239_v51  ;;  %v1176_v33 = vld [vmem:[%s16881_s3 + $0x168] sm:$0xff] }
 0x217   :  { %4750 = vmatpush1.msra.mxu1 %v3868_v18  ;;  %4805 = vmatpush1.msra.mxu0 %v1238_v15  ;;  %v1456_v51 = vld [vmem:[%s16881_s3 + $0xa28] sm:$0xff]  ;;  %v1175_v18 = vld [vmem:[%s16881_s3 + $0x160] sm:$0xff] }
 0x218   :  { %4868 = vmatprep.mubr.f32.mxu0 %v8702_v53  ;;  %4751 = vmatprep.subr.mxu1 %v3862_v60  ;;  %v1455_v15 = vld [vmem:[%s16881_s3 + $0xa20] sm:$0xff]  ;;  %v1169_v60 = vld [vmem:[%s16881_s3 + $0x130] sm:$0xff] }
 0x219   :  { %4806 = vmatprep.subr.mxu0 %v1232_v38  ;;  %4752 = vmatpush1.msra.mxu1 %v3861_v24  ;;  %v1449_v38 = vld [vmem:[%s16881_s3 + $0x9f0] sm:$0xff]  ;;  %v1168_v24 = vld [vmem:[%s16881_s3 + $0x128] sm:$0xff] }
 0x21a   :  { %4807 = vmatpush1.msra.mxu0 %v1231_v25  ;;  %4753 = vmatprep.subr.mxu1 %v3855_v43  ;;  %v1448_v25 = vld [vmem:[%s16881_s3 + $0x9e8] sm:$0xff]  ;;  %v1162_v43 = vld [vmem:[%s16881_s3 + $0xf8] sm:$0xff] }
 0x21b   :  { %4808 = vmatprep.subr.mxu0 %v1225_v44  ;;  %4754 = vmatpush1.msra.mxu1 %v3854_v49  ;;  %v1442_v44 = vld [vmem:[%s16881_s3 + $0x9b8] sm:$0xff]  ;;  %v1161_v49 = vld [vmem:[%s16881_s3 + $0xf0] sm:$0xff] }
 0x21c   :  { %4809 = vmatpush1.msra.mxu0 %v1224_v56  ;;  %4755 = vmatprep.subr.mxu1 %v3848_v4  ;;  %v1441_v56 = vld [vmem:[%s16881_s3 + $0x9b0] sm:$0xff]  ;;  %v1155_v4 = vld [vmem:[%s16881_s3 + $0xc0] sm:$0xff] }
 0x21d   :  { %4810 = vmatprep.subr.mxu0 %v1218_v5  ;;  %4756 = vmatpush1.msra.mxu1 %v3847_v30  ;;  %v1435_v5 = vld [vmem:[%s16881_s3 + $0x980] sm:$0xff]  ;;  %v1154_v30 = vld [vmem:[%s16881_s3 + $0xb8] sm:$0xff] }
 0x21e   :  { %4811 = vmatpush1.msra.mxu0 %v1217_v61  ;;  %4757 = vmatprep.subr.mxu1 %v3841_v32  ;;  %v1434_v61 = vld [vmem:[%s16881_s3 + $0x978] sm:$0xff]  ;;  %v1148_v32 = vld [vmem:[%s16881_s3 + $0x88] sm:$0xff] }
 0x21f   :  { %4812 = vmatprep.subr.mxu0 %v1211_v7  ;;  %4758 = vmatpush1.msra.mxu1 %v3840_v48  ;;  %v1428_v7 = vld [vmem:[%s16881_s3 + $0x948] sm:$0xff]  ;;  %v1147_v48 = vld [vmem:[%s16881_s3 + $0x80] sm:$0xff] }
 0x220   :  { %4813 = vmatpush1.msra.mxu0 %v1210_v13  ;;  %4759 = vmatprep.subr.mxu1 %v3834_v8  ;;  %v1427_v13 = vld [vmem:[%s16881_s3 + $0x940] sm:$0xff]  ;;  %v1141_v8 = vld [vmem:[%s16881_s3 + $0x50] sm:$0xff] }
 0x221   :  { %4814 = vmatprep.subr.mxu0 %v1204_v9  ;;  %4760 = vmatpush1.msra.mxu1 %v3833_v10  ;;  %v1140_v9 = vld [vmem:[%s16881_s3 + $0x48] sm:$0xff] }
 0x222   :  { %4815 = vmatpush1.msra.mxu0 %v1203_v2  ;;  %4761 = vmatprep.subr.mxu1 %v3827_v17  ;;  %v1420_v10 = vld [vmem:[%s16881_s3 + $0x908] sm:$0xff]  ;;  %v1134_v2 = vld [vmem:[%s16881_s3 + $0x18] sm:$0xff] }
 0x223   :  { %4816 = vmatprep.subr.mxu0 %v1197_v46  ;;  %4762 = vmatpush1.msra.mxu1 %v3826_v47  ;;  %v1414_v17 = vld [vmem:[%s16881_s3 + $0x8d8] sm:$0xff]  ;;  %v1133_v46 = vld [vmem:[%s16881_s3 + $0x10] sm:$0xff] }
 0x224   :  { %4817 = vmatpush1.msra.mxu0 %v1196_v22  ;;  %4763 = vmatprep.subr.mxu1 %v3820_v62  ;;  %v1413_v47 = vld [vmem:[%s16881_s3 + $0x8d0] sm:$0xff]  ;;  %v1407_v22 = vld [vmem:[%s16881_s3 + $0x8a0] sm:$0xff]  ;;  %v1350_v62 = vld [vmem:[%s16881_s3 + $0x6d8] sm:$0xff] }
 0x225   :  { %4818 = vmatprep.subr.mxu0 %v1190_v63  ;;  %4764 = vmatpush1.msra.mxu1 %v3819_v27  ;;  %v1406_v63 = vld [vmem:[%s16881_s3 + $0x898] sm:$0xff]  ;;  %v1344_v27 = vld [vmem:[%s16881_s3 + $0x6a8] sm:$0xff] }
 0x226   :  { %4797 = vmatprep.mubr.f32.mxu1 %v8126_v3  ;;  %4819 = vmatpush1.msra.mxu0 %v1189_v14  ;;  %v1400_v14 = vld [vmem:[%s16881_s3 + $0x868] sm:$0xff] }
 0x227   :  { %7628 = vmatmul.mubr.msk.f32.vlgmr.msra.gmra.mxu1 %vm3877_vm2, %v10911_v20  ;;  %4820 = vmatprep.subr.mxu0 %v1183_v36  ;;  %v1343_v36 = vld [vmem:[%s16881_s3 + $0x6a0] sm:$0xff] }
 0x228   :  { %4875 = vmatprep.subr.mxu1 %v1463_v37  ;;  %4821 = vmatpush1.msra.mxu0 %v1182_v21  ;;  %v1399_v37 = vld [vmem:[%s16881_s3 + $0x860] sm:$0xff]  ;;  %v1337_v21 = vld [vmem:[%s16881_s3 + $0x670] sm:$0xff] }
 0x229   :  { %4876 = vmatpush1.msra.mxu1 %v1462_v28  ;;  %4939 = vmatprep.mubr.f32.mxu1 %v8704_v54  ;;  %v1393_v28 = vld [vmem:[%s16881_s3 + $0x830] sm:$0xff] }
 0x22a   :  { %4822 = vmatprep.subr.mxu0 %v1176_v33  ;;  %4877 = vmatprep.subr.mxu1 %v1456_v51  ;;  %v1336_v33 = vld [vmem:[%s16881_s3 + $0x668] sm:$0xff] }
 0x22b   :  { %4823 = vmatpush1.msra.mxu0 %v1175_v18  ;;  %4878 = vmatpush1.msra.mxu1 %v1455_v15  ;;  %v1392_v51 = vld [vmem:[%s16881_s3 + $0x828] sm:$0xff]  ;;  %v1330_v18 = vld [vmem:[%s16881_s3 + $0x638] sm:$0xff] }
 0x22c   :  { %4824 = vmatprep.subr.mxu0 %v1169_v60  ;;  %4879 = vmatprep.subr.mxu1 %v1449_v38  ;;  %v1386_v15 = vld [vmem:[%s16881_s3 + $0x7f8] sm:$0xff]  ;;  %v1329_v60 = vld [vmem:[%s16881_s3 + $0x630] sm:$0xff] }
 0x22d   :  { %4825 = vmatpush1.msra.mxu0 %v1168_v24  ;;  %4880 = vmatpush1.msra.mxu1 %v1448_v25  ;;  %v1385_v38 = vld [vmem:[%s16881_s3 + $0x7f0] sm:$0xff]  ;;  %v1323_v24 = vld [vmem:[%s16881_s3 + $0x600] sm:$0xff] }
 0x22e   :  { %4826 = vmatprep.subr.mxu0 %v1162_v43  ;;  %4881 = vmatprep.subr.mxu1 %v1442_v44  ;;  %v1379_v25 = vld [vmem:[%s16881_s3 + $0x7c0] sm:$0xff]  ;;  %v1322_v43 = vld [vmem:[%s16881_s3 + $0x5f8] sm:$0xff] }
 0x22f   :  { %4827 = vmatpush1.msra.mxu0 %v1161_v49  ;;  %4882 = vmatpush1.msra.mxu1 %v1441_v56  ;;  %v1378_v44 = vld [vmem:[%s16881_s3 + $0x7b8] sm:$0xff]  ;;  %v1316_v49 = vld [vmem:[%s16881_s3 + $0x5c8] sm:$0xff] }
 0x230   :  { %4828 = vmatprep.subr.mxu0 %v1155_v4  ;;  %4883 = vmatprep.subr.mxu1 %v1435_v5  ;;  %v1372_v56 = vld [vmem:[%s16881_s3 + $0x788] sm:$0xff]  ;;  %v1315_v4 = vld [vmem:[%s16881_s3 + $0x5c0] sm:$0xff] }
 0x231   :  { %4829 = vmatpush1.msra.mxu0 %v1154_v30  ;;  %4884 = vmatpush1.msra.mxu1 %v1434_v61  ;;  %v1371_v5 = vld [vmem:[%s16881_s3 + $0x780] sm:$0xff]  ;;  %v1309_v30 = vld [vmem:[%s16881_s3 + $0x590] sm:$0xff] }
 0x232   :  { %4830 = vmatprep.subr.mxu0 %v1148_v32  ;;  %4885 = vmatprep.subr.mxu1 %v1428_v7  ;;  %v1365_v61 = vld [vmem:[%s16881_s3 + $0x750] sm:$0xff]  ;;  %v1308_v32 = vld [vmem:[%s16881_s3 + $0x588] sm:$0xff] }
 0x233   :  { %4831 = vmatpush1.msra.mxu0 %v1147_v48  ;;  %4886 = vmatpush1.msra.mxu1 %v1427_v13  ;;  %v1364_v7 = vld [vmem:[%s16881_s3 + $0x748] sm:$0xff]  ;;  %v1302_v48 = vld [vmem:[%s16881_s3 + $0x558] sm:$0xff] }
 0x234   :  { %4832 = vmatprep.subr.mxu0 %v1141_v8  ;;  %4887 = vmatprep.subr.mxu1 %v1421_v29  ;;  %v1358_v13 = vld [vmem:[%s16881_s3 + $0x718] sm:$0xff]  ;;  %v1301_v8 = vld [vmem:[%s16881_s3 + $0x550] sm:$0xff] }
 0x235   :  { %4833 = vmatpush1.msra.mxu0 %v1140_v9  ;;  %4888 = vmatpush1.msra.mxu1 %v1420_v10  ;;  %v1357_v29 = vld [vmem:[%s16881_s3 + $0x710] sm:$0xff]  ;;  %v1295_v9 = vld [vmem:[%s16881_s3 + $0x520] sm:$0xff] }
 0x236   :  { %4834 = vmatprep.subr.mxu0 %v1134_v2  ;;  %4889 = vmatprep.subr.mxu1 %v1414_v17  ;;  %v1575_v10 = vld [vmem:[%s16881_s3 + $0xde0] sm:$0xff]  ;;  %v1294_v2 = vld [vmem:[%s16881_s3 + $0x518] sm:$0xff] }
 0x237   :  { %4835 = vmatpush1.msra.mxu0 %v1133_v46  ;;  %4890 = vmatpush1.msra.mxu1 %v1413_v47  ;;  %v1574_v17 = vld [vmem:[%s16881_s3 + $0xdd8] sm:$0xff]  ;;  %v1288_v46 = vld [vmem:[%s16881_s3 + $0x4e8] sm:$0xff] }
 0x238   :  { %4836 = vmatprep.subr.mxu0 %v1351_v35  ;;  %4891 = vmatprep.subr.mxu1 %v1407_v22  ;;  %v1568_v47 = vld [vmem:[%s16881_s3 + $0xda8] sm:$0xff]  ;;  %v1287_v35 = vld [vmem:[%s16881_s3 + $0x4e0] sm:$0xff] }
 0x239   :  { %4837 = vmatpush2.msra.mxu0 %v1350_v62  ;;  %4892 = vmatpush1.msra.mxu1 %v1406_v63  ;;  %v1567_v22 = vld [vmem:[%s16881_s3 + $0xda0] sm:$0xff]  ;;  %v1281_v62 = vld [vmem:[%s16881_s3 + $0x4b0] sm:$0xff] }
 0x23a   :  { %4838 = vmatprep.subr.mxu0 %v1344_v27  ;;  %4893 = vmatprep.subr.mxu1 %v1400_v14  ;;  %v1561_v63 = vld [vmem:[%s16881_s3 + $0xd70] sm:$0xff]  ;;  %v1280_v27 = vld [vmem:[%s16881_s3 + $0x4a8] sm:$0xff] }
 0x23b   :  { %4839 = vmatpush2.msra.mxu0 %v1343_v36  ;;  %4894 = vmatpush1.msra.mxu1 %v1399_v37  ;;  %v1560_v14 = vld [vmem:[%s16881_s3 + $0xd68] sm:$0xff]  ;;  %v1274_v36 = vld [vmem:[%s16881_s3 + $0x478] sm:$0xff] }
 0x23c   :  { %4840 = vmatprep.subr.mxu0 %v1337_v21  ;;  %4895 = vmatprep.subr.mxu1 %v1393_v28  ;;  %v1554_v37 = vld [vmem:[%s16881_s3 + $0xd38] sm:$0xff]  ;;  %v1273_v21 = vld [vmem:[%s16881_s3 + $0x470] sm:$0xff] }
 0x23d   :  { %4841 = vmatpush2.msra.mxu0 %v1336_v33  ;;  %4896 = vmatpush1.msra.mxu1 %v1392_v51  ;;  %v1553_v28 = vld [vmem:[%s16881_s3 + $0xd30] sm:$0xff]  ;;  %v1267_v33 = vld [vmem:[%s16881_s3 + $0x440] sm:$0xff] }
 0x23e   :  { %4842 = vmatprep.subr.mxu0 %v1330_v18  ;;  %4897 = vmatprep.subr.mxu1 %v1386_v15  ;;  %v1547_v51 = vld [vmem:[%s16881_s3 + $0xd00] sm:$0xff]  ;;  %v1266_v18 = vld [vmem:[%s16881_s3 + $0x438] sm:$0xff] }
 0x23f   :  { %4843 = vmatpush2.msra.mxu0 %v1329_v60  ;;  %4898 = vmatpush1.msra.mxu1 %v1385_v38  ;;  %v1546_v15 = vld [vmem:[%s16881_s3 + $0xcf8] sm:$0xff]  ;;  %v1260_v60 = vld [vmem:[%s16881_s3 + $0x408] sm:$0xff] }
 0x240   :  { %4844 = vmatprep.subr.mxu0 %v1323_v24  ;;  %4899 = vmatprep.subr.mxu1 %v1379_v25  ;;  %v1540_v38 = vld [vmem:[%s16881_s3 + $0xcc8] sm:$0xff]  ;;  %v1259_v24 = vld [vmem:[%s16881_s3 + $0x400] sm:$0xff] }
 0x241   :  { %4845 = vmatpush2.msra.mxu0 %v1322_v43  ;;  %4900 = vmatpush1.msra.mxu1 %v1378_v44  ;;  %v1539_v25 = vld [vmem:[%s16881_s3 + $0xcc0] sm:$0xff]  ;;  %v1253_v43 = vld [vmem:[%s16881_s3 + $0x3d0] sm:$0xff] }
 0x242   :  { %4846 = vmatprep.subr.mxu0 %v1316_v49  ;;  %4901 = vmatprep.subr.mxu1 %v1372_v56  ;;  %v1533_v44 = vld [vmem:[%s16881_s3 + $0xc90] sm:$0xff]  ;;  %v1252_v49 = vld [vmem:[%s16881_s3 + $0x3c8] sm:$0xff] }
 0x243   :  { %4847 = vmatpush2.msra.mxu0 %v1315_v4  ;;  %4902 = vmatpush1.msra.mxu1 %v1371_v5  ;;  %v1532_v56 = vld [vmem:[%s16881_s3 + $0xc88] sm:$0xff]  ;;  %v1246_v4 = vld [vmem:[%s16881_s3 + $0x398] sm:$0xff] }
 0x244   :  { %4848 = vmatprep.subr.mxu0 %v1309_v30  ;;  %4903 = vmatprep.subr.mxu1 %v1365_v61  ;;  %v1526_v5 = vld [vmem:[%s16881_s3 + $0xc58] sm:$0xff]  ;;  %v1245_v30 = vld [vmem:[%s16881_s3 + $0x390] sm:$0xff] }
 0x245   :  { %4849 = vmatpush2.msra.mxu0 %v1308_v32  ;;  %4904 = vmatpush1.msra.mxu1 %v1364_v7  ;;  %v1525_v61 = vld [vmem:[%s16881_s3 + $0xc50] sm:$0xff]  ;;  %v1519_v32 = vld [vmem:[%s16881_s3 + $0xc20] sm:$0xff] }
 0x246   :  { %4850 = vmatprep.subr.mxu0 %v1302_v48  ;;  %4905 = vmatprep.subr.mxu1 %v1358_v13  ;;  %v1687_v7 = vld [vmem:[%s16881_s3 + $0x1160] sm:$0xff]  ;;  %v1518_v48 = vld [vmem:[%s16881_s3 + $0xc18] sm:$0xff] }
 0x247   :  { %4851 = vmatpush2.msra.mxu0 %v1301_v8  ;;  %4906 = vmatpush1.msra.mxu1 %v1357_v29  ;;  %v1686_v13 = vld [vmem:[%s16881_s3 + $0x1158] sm:$0xff]  ;;  %v1512_v8 = vld [vmem:[%s16881_s3 + $0xbe8] sm:$0xff] }
 0x248   :  { %4852 = vmatprep.subr.mxu0 %v1295_v9  ;;  %4907 = vmatprep.subr.mxu1 %v1575_v10  ;;  %v1680_v29 = vld [vmem:[%s16881_s3 + $0x1128] sm:$0xff]  ;;  %v1511_v9 = vld [vmem:[%s16881_s3 + $0xbe0] sm:$0xff] }
 0x249   :  { %4853 = vmatpush2.msra.mxu0 %v1294_v2  ;;  %4908 = vmatpush2.msra.mxu1 %v1574_v17  ;;  %v1679_v10 = vld [vmem:[%s16881_s3 + $0x1120] sm:$0xff]  ;;  %v1505_v2 = vld [vmem:[%s16881_s3 + $0xbb0] sm:$0xff] }
 0x24a   :  { %4854 = vmatprep.subr.mxu0 %v1288_v46  ;;  %4909 = vmatprep.subr.mxu1 %v1568_v47  ;;  %v1673_v17 = vld [vmem:[%s16881_s3 + $0x10f0] sm:$0xff]  ;;  %v1504_v46 = vld [vmem:[%s16881_s3 + $0xba8] sm:$0xff] }
 0x24b   :  { %4855 = vmatpush2.msra.mxu0 %v1287_v35  ;;  %4910 = vmatpush2.msra.mxu1 %v1567_v22  ;;  %v1672_v47 = vld [vmem:[%s16881_s3 + $0x10e8] sm:$0xff]  ;;  %v1498_v35 = vld [vmem:[%s16881_s3 + $0xb78] sm:$0xff] }
 0x24c   :  { %4856 = vmatprep.subr.mxu0 %v1281_v62  ;;  %4911 = vmatprep.subr.mxu1 %v1561_v63  ;;  %v1666_v22 = vld [vmem:[%s16881_s3 + $0x10b8] sm:$0xff]  ;;  %v1497_v62 = vld [vmem:[%s16881_s3 + $0xb70] sm:$0xff] }
 0x24d   :  { %4857 = vmatpush2.msra.mxu0 %v1280_v27  ;;  %4912 = vmatpush2.msra.mxu1 %v1560_v14  ;;  %v1665_v63 = vld [vmem:[%s16881_s3 + $0x10b0] sm:$0xff]  ;;  %v1491_v27 = vld [vmem:[%s16881_s3 + $0xb40] sm:$0xff] }
 0x24e   :  { %4858 = vmatprep.subr.mxu0 %v1274_v36  ;;  %4913 = vmatprep.subr.mxu1 %v1554_v37  ;;  %v1659_v14 = vld [vmem:[%s16881_s3 + $0x1080] sm:$0xff]  ;;  %v1490_v36 = vld [vmem:[%s16881_s3 + $0xb38] sm:$0xff] }
 0x24f   :  { %4859 = vmatpush2.msra.mxu0 %v1273_v21  ;;  %4914 = vmatpush2.msra.mxu1 %v1553_v28  ;;  %v1658_v37 = vld [vmem:[%s16881_s3 + $0x1078] sm:$0xff]  ;;  %v1484_v21 = vld [vmem:[%s16881_s3 + $0xb08] sm:$0xff] }
 0x250   :  { %4860 = vmatprep.subr.mxu0 %v1267_v33  ;;  %4915 = vmatprep.subr.mxu1 %v1547_v51  ;;  %v1652_v28 = vld [vmem:[%s16881_s3 + $0x1048] sm:$0xff]  ;;  %v1483_v33 = vld [vmem:[%s16881_s3 + $0xb00] sm:$0xff] }
 0x251   :  { %4861 = vmatpush2.msra.mxu0 %v1266_v18  ;;  %4916 = vmatpush2.msra.mxu1 %v1546_v15  ;;  %v1651_v51 = vld [vmem:[%s16881_s3 + $0x1040] sm:$0xff]  ;;  %v1477_v18 = vld [vmem:[%s16881_s3 + $0xad0] sm:$0xff] }
 0x252   :  { %4862 = vmatprep.subr.mxu0 %v1260_v60  ;;  %4917 = vmatprep.subr.mxu1 %v1540_v38  ;;  %v1645_v15 = vld [vmem:[%s16881_s3 + $0x1010] sm:$0xff]  ;;  %v1476_v60 = vld [vmem:[%s16881_s3 + $0xac8] sm:$0xff] }
 0x253   :  { %4863 = vmatpush2.msra.mxu0 %v1259_v24  ;;  %4918 = vmatpush2.msra.mxu1 %v1539_v25  ;;  %v1644_v38 = vld [vmem:[%s16881_s3 + $0x1008] sm:$0xff]  ;;  %v1470_v24 = vld [vmem:[%s16881_s3 + $0xa98] sm:$0xff] }
 0x254   :  { %4864 = vmatprep.subr.mxu0 %v1253_v43  ;;  %4919 = vmatprep.subr.mxu1 %v1533_v44  ;;  %v1638_v25 = vld [vmem:[%s16881_s3 + $0xfd8] sm:$0xff]  ;;  %v1469_v43 = vld [vmem:[%s16881_s3 + $0xa90] sm:$0xff] }
 0x255   :  { %4865 = vmatpush2.msra.mxu0 %v1252_v49  ;;  %4920 = vmatpush2.msra.mxu1 %v1532_v56  ;;  %v1637_v44 = vld [vmem:[%s16881_s3 + $0xfd0] sm:$0xff]  ;;  %v1631_v49 = vld [vmem:[%s16881_s3 + $0xfa0] sm:$0xff] }
 0x256   :  { %4866 = vmatprep.subr.mxu0 %v1246_v4  ;;  %4921 = vmatprep.subr.mxu1 %v1526_v5  ;;  %v1911_v56 = vld [vmem:[%s16881_s3 + $0x1860] sm:$0xff]  ;;  %v1630_v4 = vld [vmem:[%s16881_s3 + $0xf98] sm:$0xff] }
 0x257   :  { %4867 = vmatpush2.msra.mxu0 %v1245_v30  ;;  %4922 = vmatpush2.msra.mxu1 %v1525_v61  ;;  %v1910_v5 = vld [vmem:[%s16881_s3 + $0x1858] sm:$0xff]  ;;  %v1624_v30 = vld [vmem:[%s16881_s3 + $0xf68] sm:$0xff] }
 0x258   :  { %4869 = vmatmul.mubr.f32.vlgmr.msra.gmra.mxu0 %v8706_v55  ;;  %4923 = vmatprep.subr.mxu1 %v1519_v32  ;;  %v1904_v61 = vld [vmem:[%s16881_s3 + $0x1828] sm:$0xff]  ;;  %v1623_v32 = vld [vmem:[%s16881_s3 + $0xf60] sm:$0xff] }
 0x259   :  { %4946 = vmatprep.subr.mxu0 %v1687_v7  ;;  %4924 = vmatpush2.msra.mxu1 %v1518_v48  ;;  %v1903_v7 = vld [vmem:[%s16881_s3 + $0x1820] sm:$0xff]  ;;  %v1617_v48 = vld [vmem:[%s16881_s3 + $0xf30] sm:$0xff] }
 0x25a   :  { %4947 = vmatpush1.msra.mxu0 %v1686_v13  ;;  %5010 = vmatprep.mubr.f32.mxu0 %v9155_v26  ;;  %v1897_v13 = vld [vmem:[%s16881_s3 + $0x17f0] sm:$0xff] }
 0x25b   :  { %4925 = vmatprep.subr.mxu1 %v1512_v8  ;;  %4948 = vmatprep.subr.mxu0 %v1680_v29  ;;  %v1616_v8 = vld [vmem:[%s16881_s3 + $0xf28] sm:$0xff] }
 0x25c   :  { %4926 = vmatpush2.msra.mxu1 %v1511_v9  ;;  %4949 = vmatpush1.msra.mxu0 %v1679_v10  ;;  %v1896_v29 = vld [vmem:[%s16881_s3 + $0x17e8] sm:$0xff]  ;;  %v1610_v9 = vld [vmem:[%s16881_s3 + $0xef8] sm:$0xff] }
 0x25d   :  { %4927 = vmatprep.subr.mxu1 %v1505_v2  ;;  %4950 = vmatprep.subr.mxu0 %v1673_v17  ;;  %v1890_v10 = vld [vmem:[%s16881_s3 + $0x17b8] sm:$0xff]  ;;  %v1609_v2 = vld [vmem:[%s16881_s3 + $0xef0] sm:$0xff] }
 0x25e   :  { %4928 = vmatpush2.msra.mxu1 %v1504_v46  ;;  %4951 = vmatpush1.msra.mxu0 %v1672_v47  ;;  %v1889_v17 = vld [vmem:[%s16881_s3 + $0x17b0] sm:$0xff]  ;;  %v1603_v46 = vld [vmem:[%s16881_s3 + $0xec0] sm:$0xff] }
 0x25f   :  { %4929 = vmatprep.subr.mxu1 %v1498_v35  ;;  %4952 = vmatprep.subr.mxu0 %v1666_v22  ;;  %v1883_v47 = vld [vmem:[%s16881_s3 + $0x1780] sm:$0xff]  ;;  %v1602_v35 = vld [vmem:[%s16881_s3 + $0xeb8] sm:$0xff] }
 0x260   :  { %4930 = vmatpush2.msra.mxu1 %v1497_v62  ;;  %4953 = vmatpush1.msra.mxu0 %v1665_v63  ;;  %v1882_v22 = vld [vmem:[%s16881_s3 + $0x1778] sm:$0xff]  ;;  %v1596_v62 = vld [vmem:[%s16881_s3 + $0xe88] sm:$0xff] }
 0x261   :  { %4931 = vmatprep.subr.mxu1 %v1491_v27  ;;  %4954 = vmatprep.subr.mxu0 %v1659_v14  ;;  %v1876_v63 = vld [vmem:[%s16881_s3 + $0x1748] sm:$0xff]  ;;  %v1595_v27 = vld [vmem:[%s16881_s3 + $0xe80] sm:$0xff] }
 0x262   :  { %4932 = vmatpush2.msra.mxu1 %v1490_v36  ;;  %4955 = vmatpush1.msra.mxu0 %v1658_v37  ;;  %v1875_v14 = vld [vmem:[%s16881_s3 + $0x1740] sm:$0xff]  ;;  %v1589_v36 = vld [vmem:[%s16881_s3 + $0xe50] sm:$0xff] }
 0x263   :  { %4933 = vmatprep.subr.mxu1 %v1484_v21  ;;  %4956 = vmatprep.subr.mxu0 %v1652_v28  ;;  %v1869_v37 = vld [vmem:[%s16881_s3 + $0x1710] sm:$0xff]  ;;  %v1588_v21 = vld [vmem:[%s16881_s3 + $0xe48] sm:$0xff] }
 0x264   :  { %4934 = vmatpush2.msra.mxu1 %v1483_v33  ;;  %4957 = vmatpush1.msra.mxu0 %v1651_v51  ;;  %v1868_v28 = vld [vmem:[%s16881_s3 + $0x1708] sm:$0xff]  ;;  %v1582_v33 = vld [vmem:[%s16881_s3 + $0xe18] sm:$0xff] }
 0x265   :  { %4935 = vmatprep.subr.mxu1 %v1477_v18  ;;  %4958 = vmatprep.subr.mxu0 %v1645_v15  ;;  %v1862_v51 = vld [vmem:[%s16881_s3 + $0x16d8] sm:$0xff]  ;;  %v1581_v18 = vld [vmem:[%s16881_s3 + $0xe10] sm:$0xff] }
 0x266   :  { %4936 = vmatpush2.msra.mxu1 %v1476_v60  ;;  %4959 = vmatpush1.msra.mxu0 %v1644_v38  ;;  %v1861_v15 = vld [vmem:[%s16881_s3 + $0x16d0] sm:$0xff]  ;;  %v1799_v60 = vld [vmem:[%s16881_s3 + $0x14e0] sm:$0xff] }
 0x267   :  { %4937 = vmatprep.subr.mxu1 %v1470_v24  ;;  %4960 = vmatprep.subr.mxu0 %v1638_v25  ;;  %v1855_v38 = vld [vmem:[%s16881_s3 + $0x16a0] sm:$0xff]  ;;  %v1798_v24 = vld [vmem:[%s16881_s3 + $0x14d8] sm:$0xff] }
 0x268   :  { %4938 = vmatpush2.msra.mxu1 %v1469_v43  ;;  %4961 = vmatpush1.msra.mxu0 %v1637_v44  ;;  %v1854_v25 = vld [vmem:[%s16881_s3 + $0x1698] sm:$0xff]  ;;  %v1792_v43 = vld [vmem:[%s16881_s3 + $0x14a8] sm:$0xff] }
 0x269   :  { %4940 = vmatmul.mubr.f32.vlgmr.msra.gmra.mxu1 %v8696_v50  ;;  %4962 = vmatprep.subr.mxu0 %v1631_v49  ;;  %v1848_v44 = vld [vmem:[%s16881_s3 + $0x1668] sm:$0xff]  ;;  %v1791_v49 = vld [vmem:[%s16881_s3 + $0x14a0] sm:$0xff] }
 0x26a   :  { %5017 = vmatprep.subr.mxu1 %v1911_v56  ;;  %4963 = vmatpush1.msra.mxu0 %v1630_v4  ;;  %v1847_v56 = vld [vmem:[%s16881_s3 + $0x1660] sm:$0xff]  ;;  %v1785_v4 = vld [vmem:[%s16881_s3 + $0x1470] sm:$0xff] }
 0x26b   :  { %5018 = vmatpush1.msra.mxu1 %v1910_v5  ;;  %5081 = vmatprep.mubr.f32.mxu1 %v9173_v39  ;;  %v1841_v5 = vld [vmem:[%s16881_s3 + $0x1630] sm:$0xff] }
 0x26c   :  { %4964 = vmatprep.subr.mxu0 %v1624_v30  ;;  %5019 = vmatprep.subr.mxu1 %v1904_v61  ;;  %v1784_v30 = vld [vmem:[%s16881_s3 + $0x1468] sm:$0xff] }
 0x26d   :  { %4965 = vmatpush1.msra.mxu0 %v1623_v32  ;;  %5020 = vmatpush1.msra.mxu1 %v1903_v7  ;;  %v1840_v61 = vld [vmem:[%s16881_s3 + $0x1628] sm:$0xff]  ;;  %v1778_v32 = vld [vmem:[%s16881_s3 + $0x1438] sm:$0xff] }
 0x26e   :  { %4966 = vmatprep.subr.mxu0 %v1617_v48  ;;  %5021 = vmatprep.subr.mxu1 %v1897_v13  ;;  %v1834_v7 = vld [vmem:[%s16881_s3 + $0x15f8] sm:$0xff]  ;;  %v1777_v48 = vld [vmem:[%s16881_s3 + $0x1430] sm:$0xff] }
 0x26f   :  { %4967 = vmatpush1.msra.mxu0 %v1616_v8  ;;  %5022 = vmatpush1.msra.mxu1 %v1896_v29  ;;  %v1833_v13 = vld [vmem:[%s16881_s3 + $0x15f0] sm:$0xff]  ;;  %v1771_v8 = vld [vmem:[%s16881_s3 + $0x1400] sm:$0xff] }
 0x270   :  { %4968 = vmatprep.subr.mxu0 %v1610_v9  ;;  %5023 = vmatprep.subr.mxu1 %v1890_v10  ;;  %v1827_v29 = vld [vmem:[%s16881_s3 + $0x15c0] sm:$0xff]  ;;  %v1770_v9 = vld [vmem:[%s16881_s3 + $0x13f8] sm:$0xff] }
 0x271   :  { %4969 = vmatpush1.msra.mxu0 %v1609_v2  ;;  %5024 = vmatpush1.msra.mxu1 %v1889_v17  ;;  %v1826_v10 = vld [vmem:[%s16881_s3 + $0x15b8] sm:$0xff]  ;;  %v1764_v2 = vld [vmem:[%s16881_s3 + $0x13c8] sm:$0xff] }
 0x272   :  { %4970 = vmatprep.subr.mxu0 %v1603_v46  ;;  %5025 = vmatprep.subr.mxu1 %v1883_v47  ;;  %v1820_v17 = vld [vmem:[%s16881_s3 + $0x1588] sm:$0xff]  ;;  %v1763_v46 = vld [vmem:[%s16881_s3 + $0x13c0] sm:$0xff] }
 0x273   :  { %4971 = vmatpush1.msra.mxu0 %v1602_v35  ;;  %5026 = vmatpush1.msra.mxu1 %v1882_v22  ;;  %v1819_v47 = vld [vmem:[%s16881_s3 + $0x1580] sm:$0xff]  ;;  %v1757_v35 = vld [vmem:[%s16881_s3 + $0x1390] sm:$0xff] }
 0x274   :  { %4972 = vmatprep.subr.mxu0 %v1596_v62  ;;  %5027 = vmatprep.subr.mxu1 %v1876_v63  ;;  %v1813_v22 = vld [vmem:[%s16881_s3 + $0x1550] sm:$0xff]  ;;  %v1756_v62 = vld [vmem:[%s16881_s3 + $0x1388] sm:$0xff] }
 0x275   :  { %4973 = vmatpush1.msra.mxu0 %v1595_v27  ;;  %5028 = vmatpush1.msra.mxu1 %v1875_v14  ;;  %v1812_v63 = vld [vmem:[%s16881_s3 + $0x1548] sm:$0xff]  ;;  %v1750_v27 = vld [vmem:[%s16881_s3 + $0x1358] sm:$0xff] }
 0x276   :  { %4974 = vmatprep.subr.mxu0 %v1589_v36  ;;  %5029 = vmatprep.subr.mxu1 %v1869_v37  ;;  %v1806_v14 = vld [vmem:[%s16881_s3 + $0x1518] sm:$0xff]  ;;  %v1749_v36 = vld [vmem:[%s16881_s3 + $0x1350] sm:$0xff] }
 0x277   :  { %4975 = vmatpush1.msra.mxu0 %v1588_v21  ;;  %5030 = vmatpush1.msra.mxu1 %v1868_v28  ;;  %v1805_v37 = vld [vmem:[%s16881_s3 + $0x1510] sm:$0xff]  ;;  %v1743_v21 = vld [vmem:[%s16881_s3 + $0x1320] sm:$0xff] }
 0x278   :  { %4976 = vmatprep.subr.mxu0 %v1582_v33  ;;  %5031 = vmatprep.subr.mxu1 %v1862_v51  ;;  %v2023_v28 = vld [vmem:[%s16881_s3 + $0x1be0] sm:$0xff]  ;;  %v1742_v33 = vld [vmem:[%s16881_s3 + $0x1318] sm:$0xff] }
 0x279   :  { %4977 = vmatpush1.msra.mxu0 %v1581_v18  ;;  %5032 = vmatpush1.msra.mxu1 %v1861_v15  ;;  %v2022_v51 = vld [vmem:[%s16881_s3 + $0x1bd8] sm:$0xff]  ;;  %v1736_v18 = vld [vmem:[%s16881_s3 + $0x12e8] sm:$0xff] }
 0x27a   :  { %4978 = vmatprep.subr.mxu0 %v1799_v60  ;;  %5033 = vmatprep.subr.mxu1 %v1855_v38  ;;  %v2016_v15 = vld [vmem:[%s16881_s3 + $0x1ba8] sm:$0xff]  ;;  %v1735_v60 = vld [vmem:[%s16881_s3 + $0x12e0] sm:$0xff] }
 0x27b   :  { %4979 = vmatpush2.msra.mxu0 %v1798_v24  ;;  %5034 = vmatpush1.msra.mxu1 %v1854_v25  ;;  %v2015_v38 = vld [vmem:[%s16881_s3 + $0x1ba0] sm:$0xff]  ;;  %v1729_v24 = vld [vmem:[%s16881_s3 + $0x12b0] sm:$0xff] }
 0x27c   :  { %4980 = vmatprep.subr.mxu0 %v1792_v43  ;;  %5035 = vmatprep.subr.mxu1 %v1848_v44  ;;  %v2009_v25 = vld [vmem:[%s16881_s3 + $0x1b70] sm:$0xff]  ;;  %v1728_v43 = vld [vmem:[%s16881_s3 + $0x12a8] sm:$0xff] }
 0x27d   :  { %4981 = vmatpush2.msra.mxu0 %v1791_v49  ;;  %5036 = vmatpush1.msra.mxu1 %v1847_v56  ;;  %v2008_v44 = vld [vmem:[%s16881_s3 + $0x1b68] sm:$0xff]  ;;  %v1722_v49 = vld [vmem:[%s16881_s3 + $0x1278] sm:$0xff] }
 0x27e   :  { %4982 = vmatprep.subr.mxu0 %v1785_v4  ;;  %5037 = vmatprep.subr.mxu1 %v1841_v5  ;;  %v2002_v56 = vld [vmem:[%s16881_s3 + $0x1b38] sm:$0xff]  ;;  %v1721_v4 = vld [vmem:[%s16881_s3 + $0x1270] sm:$0xff] }
 0x27f   :  { %4983 = vmatpush2.msra.mxu0 %v1784_v30  ;;  %5038 = vmatpush1.msra.mxu1 %v1840_v61  ;;  %v2001_v5 = vld [vmem:[%s16881_s3 + $0x1b30] sm:$0xff]  ;;  %v1715_v30 = vld [vmem:[%s16881_s3 + $0x1240] sm:$0xff] }
 0x280   :  { %4984 = vmatprep.subr.mxu0 %v1778_v32  ;;  %5039 = vmatprep.subr.mxu1 %v1834_v7  ;;  %v1995_v61 = vld [vmem:[%s16881_s3 + $0x1b00] sm:$0xff]  ;;  %v1714_v32 = vld [vmem:[%s16881_s3 + $0x1238] sm:$0xff] }
 0x281   :  { %4985 = vmatpush2.msra.mxu0 %v1777_v48  ;;  %5040 = vmatpush1.msra.mxu1 %v1833_v13  ;;  %v1994_v7 = vld [vmem:[%s16881_s3 + $0x1af8] sm:$0xff]  ;;  %v1708_v48 = vld [vmem:[%s16881_s3 + $0x1208] sm:$0xff] }
 0x282   :  { %4986 = vmatprep.subr.mxu0 %v1771_v8  ;;  %5041 = vmatprep.subr.mxu1 %v1827_v29  ;;  %v1988_v13 = vld [vmem:[%s16881_s3 + $0x1ac8] sm:$0xff]  ;;  %v1707_v8 = vld [vmem:[%s16881_s3 + $0x1200] sm:$0xff] }
 0x283   :  { %4987 = vmatpush2.msra.mxu0 %v1770_v9  ;;  %5042 = vmatpush1.msra.mxu1 %v1826_v10  ;;  %v1987_v29 = vld [vmem:[%s16881_s3 + $0x1ac0] sm:$0xff]  ;;  %v1701_v9 = vld [vmem:[%s16881_s3 + $0x11d0] sm:$0xff] }
 0x284   :  { %4988 = vmatprep.subr.mxu0 %v1764_v2  ;;  %5043 = vmatprep.subr.mxu1 %v1820_v17  ;;  %v1981_v10 = vld [vmem:[%s16881_s3 + $0x1a90] sm:$0xff]  ;;  %v1700_v2 = vld [vmem:[%s16881_s3 + $0x11c8] sm:$0xff] }
 0x285   :  { %4989 = vmatpush2.msra.mxu0 %v1763_v46  ;;  %5044 = vmatpush1.msra.mxu1 %v1819_v47  ;;  %v1980_v17 = vld [vmem:[%s16881_s3 + $0x1a88] sm:$0xff]  ;;  %v1694_v46 = vld [vmem:[%s16881_s3 + $0x1198] sm:$0xff] }
 0x286   :  { %4990 = vmatprep.subr.mxu0 %v1757_v35  ;;  %5045 = vmatprep.subr.mxu1 %v1813_v22  ;;  %v1974_v47 = vld [vmem:[%s16881_s3 + $0x1a58] sm:$0xff]  ;;  %v1693_v35 = vld [vmem:[%s16881_s3 + $0x1190] sm:$0xff] }
 0x287   :  { %4991 = vmatpush2.msra.mxu0 %v1756_v62  ;;  %5046 = vmatpush1.msra.mxu1 %v1812_v63  ;;  %v1973_v22 = vld [vmem:[%s16881_s3 + $0x1a50] sm:$0xff]  ;;  %v1967_v62 = vld [vmem:[%s16881_s3 + $0x1a20] sm:$0xff] }
 0x288   :  { %4992 = vmatprep.subr.mxu0 %v1750_v27  ;;  %5047 = vmatprep.subr.mxu1 %v1806_v14  ;;  %v2135_v63 = vld [vmem:[%s16881_s3 + $0x1f60] sm:$0xff]  ;;  %v1966_v27 = vld [vmem:[%s16881_s3 + $0x1a18] sm:$0xff] }
 0x289   :  { %4993 = vmatpush2.msra.mxu0 %v1749_v36  ;;  %5048 = vmatpush1.msra.mxu1 %v1805_v37  ;;  %v2134_v14 = vld [vmem:[%s16881_s3 + $0x1f58] sm:$0xff]  ;;  %v1960_v36 = vld [vmem:[%s16881_s3 + $0x19e8] sm:$0xff] }
 0x28a   :  { %4994 = vmatprep.subr.mxu0 %v1743_v21  ;;  %5049 = vmatprep.subr.mxu1 %v2023_v28  ;;  %v2128_v37 = vld [vmem:[%s16881_s3 + $0x1f28] sm:$0xff]  ;;  %v1959_v21 = vld [vmem:[%s16881_s3 + $0x19e0] sm:$0xff] }
 0x28b   :  { %4995 = vmatpush2.msra.mxu0 %v1742_v33  ;;  %5050 = vmatpush2.msra.mxu1 %v2022_v51  ;;  %v2127_v28 = vld [vmem:[%s16881_s3 + $0x1f20] sm:$0xff]  ;;  %v1953_v33 = vld [vmem:[%s16881_s3 + $0x19b0] sm:$0xff] }
 0x28c   :  { %4996 = vmatprep.subr.mxu0 %v1736_v18  ;;  %5051 = vmatprep.subr.mxu1 %v2016_v15  ;;  %v2121_v51 = vld [vmem:[%s16881_s3 + $0x1ef0] sm:$0xff]  ;;  %v1952_v18 = vld [vmem:[%s16881_s3 + $0x19a8] sm:$0xff] }
 0x28d   :  { %4997 = vmatpush2.msra.mxu0 %v1735_v60  ;;  %5052 = vmatpush2.msra.mxu1 %v2015_v38  ;;  %v2120_v15 = vld [vmem:[%s16881_s3 + $0x1ee8] sm:$0xff]  ;;  %v1946_v60 = vld [vmem:[%s16881_s3 + $0x1978] sm:$0xff] }
 0x28e   :  { %4998 = vmatprep.subr.mxu0 %v1729_v24  ;;  %5053 = vmatprep.subr.mxu1 %v2009_v25  ;;  %v2114_v38 = vld [vmem:[%s16881_s3 + $0x1eb8] sm:$0xff]  ;;  %v1945_v24 = vld [vmem:[%s16881_s3 + $0x1970] sm:$0xff] }
 0x28f   :  { %4999 = vmatpush2.msra.mxu0 %v1728_v43  ;;  %5054 = vmatpush2.msra.mxu1 %v2008_v44  ;;  %v2113_v25 = vld [vmem:[%s16881_s3 + $0x1eb0] sm:$0xff]  ;;  %v1939_v43 = vld [vmem:[%s16881_s3 + $0x1940] sm:$0xff] }
 0x290   :  { %5000 = vmatprep.subr.mxu0 %v1722_v49  ;;  %5055 = vmatprep.subr.mxu1 %v2002_v56  ;;  %v2107_v44 = vld [vmem:[%s16881_s3 + $0x1e80] sm:$0xff]  ;;  %v1938_v49 = vld [vmem:[%s16881_s3 + $0x1938] sm:$0xff] }
 0x291   :  { %5001 = vmatpush2.msra.mxu0 %v1721_v4  ;;  %5056 = vmatpush2.msra.mxu1 %v2001_v5  ;;  %v2106_v56 = vld [vmem:[%s16881_s3 + $0x1e78] sm:$0xff]  ;;  %v1932_v4 = vld [vmem:[%s16881_s3 + $0x1908] sm:$0xff] }
 0x292   :  { %5002 = vmatprep.subr.mxu0 %v1715_v30  ;;  %5057 = vmatprep.subr.mxu1 %v1995_v61  ;;  %v2100_v5 = vld [vmem:[%s16881_s3 + $0x1e48] sm:$0xff]  ;;  %v1931_v30 = vld [vmem:[%s16881_s3 + $0x1900] sm:$0xff] }
 0x293   :  { %5003 = vmatpush2.msra.mxu0 %v1714_v32  ;;  %5058 = vmatpush2.msra.mxu1 %v1994_v7  ;;  %v2099_v61 = vld [vmem:[%s16881_s3 + $0x1e40] sm:$0xff]  ;;  %v1925_v32 = vld [vmem:[%s16881_s3 + $0x18d0] sm:$0xff] }
 0x294   :  { %5004 = vmatprep.subr.mxu0 %v1708_v48  ;;  %5059 = vmatprep.subr.mxu1 %v1988_v13  ;;  %v2093_v7 = vld [vmem:[%s16881_s3 + $0x1e10] sm:$0xff]  ;;  %v1924_v48 = vld [vmem:[%s16881_s3 + $0x18c8] sm:$0xff] }
 0x295   :  { %5005 = vmatpush2.msra.mxu0 %v1707_v8  ;;  %5060 = vmatpush2.msra.mxu1 %v1987_v29  ;;  %v2092_v13 = vld [vmem:[%s16881_s3 + $0x1e08] sm:$0xff]  ;;  %v1918_v8 = vld [vmem:[%s16881_s3 + $0x1898] sm:$0xff] }
 0x296   :  { %5006 = vmatprep.subr.mxu0 %v1701_v9  ;;  %5061 = vmatprep.subr.mxu1 %v1981_v10  ;;  %v2086_v29 = vld [vmem:[%s16881_s3 + $0x1dd8] sm:$0xff]  ;;  %v1917_v9 = vld [vmem:[%s16881_s3 + $0x1890] sm:$0xff] }
 0x297   :  { %5007 = vmatpush2.msra.mxu0 %v1700_v2  ;;  %5062 = vmatpush2.msra.mxu1 %v1980_v17  ;;  %v2085_v10 = vld [vmem:[%s16881_s3 + $0x1dd0] sm:$0xff]  ;;  %v2079_v2 = vld [vmem:[%s16881_s3 + $0x1da0] sm:$0xff] }
 0x298   :  { %5008 = vmatprep.subr.mxu0 %v1694_v46  ;;  %5063 = vmatprep.subr.mxu1 %v1974_v47  ;;  %v2359_v17 = vld [vmem:[%s16881_s3 + $0x2660] sm:$0xff]  ;;  %v2078_v46 = vld [vmem:[%s16881_s3 + $0x1d98] sm:$0xff] }
 0x299   :  { %5009 = vmatpush2.msra.mxu0 %v1693_v35  ;;  %5064 = vmatpush2.msra.mxu1 %v1973_v22  ;;  %v2358_v47 = vld [vmem:[%s16881_s3 + $0x2658] sm:$0xff]  ;;  %v2072_v35 = vld [vmem:[%s16881_s3 + $0x1d68] sm:$0xff] }
 0x29a   :  { %5011 = vmatmul.mubr.f32.vlgmr.msra.gmra.mxu0 %v9178_v41  ;;  %5065 = vmatprep.subr.mxu1 %v1967_v62  ;;  %v2352_v22 = vld [vmem:[%s16881_s3 + $0x2628] sm:$0xff]  ;;  %v2071_v62 = vld [vmem:[%s16881_s3 + $0x1d60] sm:$0xff] }
 0x29b   :  { %5088 = vmatprep.subr.mxu0 %v2135_v63  ;;  %5066 = vmatpush2.msra.mxu1 %v1966_v27  ;;  %v2351_v63 = vld [vmem:[%s16881_s3 + $0x2620] sm:$0xff]  ;;  %v2065_v27 = vld [vmem:[%s16881_s3 + $0x1d30] sm:$0xff] }
 0x29c   :  { %5089 = vmatpush1.msra.mxu0 %v2134_v14  ;;  %5152 = vmatprep.mubr.f32.mxu0 %v9557_v34  ;;  %v2345_v14 = vld [vmem:[%s16881_s3 + $0x25f0] sm:$0xff] }
 0x29d   :  { %5067 = vmatprep.subr.mxu1 %v1960_v36  ;;  %5090 = vmatprep.subr.mxu0 %v2128_v37  ;;  %v2064_v36 = vld [vmem:[%s16881_s3 + $0x1d28] sm:$0xff] }
 0x29e   :  { %5068 = vmatpush2.msra.mxu1 %v1959_v21  ;;  %5091 = vmatpush1.msra.mxu0 %v2127_v28  ;;  %v2344_v37 = vld [vmem:[%s16881_s3 + $0x25e8] sm:$0xff]  ;;  %v2058_v21 = vld [vmem:[%s16881_s3 + $0x1cf8] sm:$0xff] }
 0x29f   :  { %5069 = vmatprep.subr.mxu1 %v1953_v33  ;;  %5092 = vmatprep.subr.mxu0 %v2121_v51  ;;  %v2338_v28 = vld [vmem:[%s16881_s3 + $0x25b8] sm:$0xff]  ;;  %v2057_v33 = vld [vmem:[%s16881_s3 + $0x1cf0] sm:$0xff] }
 0x2a0   :  { %5070 = vmatpush2.msra.mxu1 %v1952_v18  ;;  %5093 = vmatpush1.msra.mxu0 %v2120_v15  ;;  %v2337_v51 = vld [vmem:[%s16881_s3 + $0x25b0] sm:$0xff]  ;;  %v2051_v18 = vld [vmem:[%s16881_s3 + $0x1cc0] sm:$0xff] }
 0x2a1   :  { %5071 = vmatprep.subr.mxu1 %v1946_v60  ;;  %5094 = vmatprep.subr.mxu0 %v2114_v38  ;;  %v2331_v15 = vld [vmem:[%s16881_s3 + $0x2580] sm:$0xff]  ;;  %v2050_v60 = vld [vmem:[%s16881_s3 + $0x1cb8] sm:$0xff] }
 0x2a2   :  { %5072 = vmatpush2.msra.mxu1 %v1945_v24  ;;  %5095 = vmatpush1.msra.mxu0 %v2113_v25  ;;  %v2330_v38 = vld [vmem:[%s16881_s3 + $0x2578] sm:$0xff]  ;;  %v2044_v24 = vld [vmem:[%s16881_s3 + $0x1c88] sm:$0xff] }
 0x2a3   :  { %5073 = vmatprep.subr.mxu1 %v1939_v43  ;;  %5096 = vmatprep.subr.mxu0 %v2107_v44  ;;  %v2324_v25 = vld [vmem:[%s16881_s3 + $0x2548] sm:$0xff]  ;;  %v2043_v43 = vld [vmem:[%s16881_s3 + $0x1c80] sm:$0xff] }
 0x2a4   :  { %5074 = vmatpush2.msra.mxu1 %v1938_v49  ;;  %5097 = vmatpush1.msra.mxu0 %v2106_v56  ;;  %v2323_v44 = vld [vmem:[%s16881_s3 + $0x2540] sm:$0xff]  ;;  %v2037_v49 = vld [vmem:[%s16881_s3 + $0x1c50] sm:$0xff] }
 0x2a5   :  { %5075 = vmatprep.subr.mxu1 %v1932_v4  ;;  %5098 = vmatprep.subr.mxu0 %v2100_v5  ;;  %v2317_v56 = vld [vmem:[%s16881_s3 + $0x2510] sm:$0xff]  ;;  %v2036_v4 = vld [vmem:[%s16881_s3 + $0x1c48] sm:$0xff] }
 0x2a6   :  { %5076 = vmatpush2.msra.mxu1 %v1931_v30  ;;  %5099 = vmatpush1.msra.mxu0 %v2099_v61  ;;  %v2316_v5 = vld [vmem:[%s16881_s3 + $0x2508] sm:$0xff]  ;;  %v2030_v30 = vld [vmem:[%s16881_s3 + $0x1c18] sm:$0xff] }
 0x2a7   :  { %5077 = vmatprep.subr.mxu1 %v1925_v32  ;;  %5100 = vmatprep.subr.mxu0 %v2093_v7  ;;  %v2310_v61 = vld [vmem:[%s16881_s3 + $0x24d8] sm:$0xff]  ;;  %v2029_v32 = vld [vmem:[%s16881_s3 + $0x1c10] sm:$0xff] }
 0x2a8   :  { %5078 = vmatpush2.msra.mxu1 %v1924_v48  ;;  %5101 = vmatpush1.msra.mxu0 %v2092_v13  ;;  %v2309_v7 = vld [vmem:[%s16881_s3 + $0x24d0] sm:$0xff]  ;;  %v2247_v48 = vld [vmem:[%s16881_s3 + $0x22e0] sm:$0xff] }
 0x2a9   :  { %5079 = vmatprep.subr.mxu1 %v1918_v8  ;;  %5102 = vmatprep.subr.mxu0 %v2086_v29  ;;  %v2303_v13 = vld [vmem:[%s16881_s3 + $0x24a0] sm:$0xff]  ;;  %v2246_v8 = vld [vmem:[%s16881_s3 + $0x22d8] sm:$0xff] }
 0x2aa   :  { %5080 = vmatpush2.msra.mxu1 %v1917_v9  ;;  %5103 = vmatpush1.msra.mxu0 %v2085_v10  ;;  %v2302_v29 = vld [vmem:[%s16881_s3 + $0x2498] sm:$0xff]  ;;  %v2240_v9 = vld [vmem:[%s16881_s3 + $0x22a8] sm:$0xff] }
 0x2ab   :  { %5082 = vmatmul.mubr.f32.vlgmr.msra.gmra.mxu1 %v9180_v42  ;;  %5104 = vmatprep.subr.mxu0 %v2079_v2  ;;  %v2296_v10 = vld [vmem:[%s16881_s3 + $0x2468] sm:$0xff]  ;;  %v2239_v2 = vld [vmem:[%s16881_s3 + $0x22a0] sm:$0xff] }
 0x2ac   :  { %5159 = vmatprep.subr.mxu1 %v2359_v17  ;;  %5105 = vmatpush1.msra.mxu0 %v2078_v46  ;;  %v2295_v17 = vld [vmem:[%s16881_s3 + $0x2460] sm:$0xff]  ;;  %v2233_v46 = vld [vmem:[%s16881_s3 + $0x2270] sm:$0xff] }
 0x2ad   :  { %5160 = vmatpush1.msra.mxu1 %v2358_v47  ;;  %5223 = vmatprep.mubr.f32.mxu1 %v9545_v23  ;;  %v2289_v47 = vld [vmem:[%s16881_s3 + $0x2430] sm:$0xff] }
 0x2ae   :  { %5106 = vmatprep.subr.mxu0 %v2072_v35  ;;  %5161 = vmatprep.subr.mxu1 %v2352_v22  ;;  %v2232_v35 = vld [vmem:[%s16881_s3 + $0x2268] sm:$0xff] }
 0x2af   :  { %5107 = vmatpush1.msra.mxu0 %v2071_v62  ;;  %5162 = vmatpush1.msra.mxu1 %v2351_v63  ;;  %v2288_v22 = vld [vmem:[%s16881_s3 + $0x2428] sm:$0xff]  ;;  %v3947_v62 = vpop.f32.mrf.mxu1  ;;  %v2226_v63 = vld [vmem:[%s16881_s3 + $0x2238] sm:$0xff] }
 0x2b0   :  { %5108 = vmatprep.subr.mxu0 %v2065_v27  ;;  %5163 = vmatprep.subr.mxu1 %v2345_v14  ;;  %v2282_v27 = vld [vmem:[%s16881_s3 + $0x23f8] sm:$0xff]  ;;  %v2225_v14 = vld [vmem:[%s16881_s3 + $0x2230] sm:$0xff] }
 0x2b1   :  { %5109 = vmatpush1.msra.mxu0 %v2064_v36  ;;  %5164 = vmatpush1.msra.mxu1 %v2344_v37  ;;  %v2281_v36 = vld [vmem:[%s16881_s3 + $0x23f0] sm:$0xff]  ;;  %v11837_v37 = vstv %s16883_s4 }
 0x2b2   :  { %5110 = vmatprep.subr.mxu0 %v2058_v21  ;;  %5165 = vmatprep.subr.mxu1 %v2338_v28  ;;  %v2219_v21 = vld [vmem:[%s16881_s3 + $0x2200] sm:$0xff] }
 0x2b3   :  { %5111 = vmatpush1.msra.mxu0 %v2057_v33  ;;  %5166 = vmatpush1.msra.mxu1 %v2337_v51  ;;  %v2275_v28 = vld [vmem:[%s16881_s3 + $0x23c0] sm:$0xff]  ;;  %v2218_v33 = vld [vmem:[%s16881_s3 + $0x21f8] sm:$0xff] }
 0x2b4   :  { %5112 = vmatprep.subr.mxu0 %v2051_v18  ;;  %5167 = vmatprep.subr.mxu1 %v2331_v15  ;;  %v2274_v51 = vld [vmem:[%s16881_s3 + $0x23b8] sm:$0xff]  ;;  %v4018_v18 = vpop.f32.mrf.mxu0  ;;  %v3949_v15 = vpop.f32.mrf.mxu1 }
 0x2b5   :  { %5113 = vmatpush1.msra.mxu0 %v2050_v60  ;;  %5168 = vmatpush1.msra.mxu1 %v2330_v38  ;;  %v2212_v60 = vld [vmem:[%s16881_s3 + $0x21c8] sm:$0xff] }
 0x2b6   :  { %5114 = vmatprep.subr.mxu0 %v2044_v24  ;;  %5169 = vmatprep.subr.mxu1 %v2324_v25  ;;  %v2268_v38 = vld [vmem:[%s16881_s3 + $0x2388] sm:$0xff]  ;;  %v3948_v24 = vadd.f32 %v3947_v62, %v11837_v37  ;;  %v2211_v25 = vld [vmem:[%s16881_s3 + $0x21c0] sm:$0xff] }
 0x2b7   :  { %5115 = vmatpush1.msra.mxu0 %v2043_v43  ;;  %5170 = vmatpush1.msra.mxu1 %v2323_v44  ;;  %v2267_v43 = vld [vmem:[%s16881_s3 + $0x2380] sm:$0xff]  ;;  %v4089_v44 = vpop.f32.mrf.mxu1  ;;  %v2184_v62 = vld [vmem:[%s16881_s3 + $0x20e8] sm:$0xff] }
 0x2b8   :  { %5116 = vmatprep.subr.mxu0 %v2037_v49  ;;  %5171 = vmatprep.subr.mxu1 %v2317_v56  ;;  %v2205_v49 = vld [vmem:[%s16881_s3 + $0x2190] sm:$0xff] }
 0x2b9   :  { %5117 = vmatpush1.msra.mxu0 %v2036_v4  ;;  %5172 = vmatpush1.msra.mxu1 %v2316_v5  ;;  %v2261_v56 = vld [vmem:[%s16881_s3 + $0x2350] sm:$0xff]  ;;  %v3950_v4 = vadd.f32 %v3949_v15, %v11837_v37  ;;  %v2204_v5 = vld [vmem:[%s16881_s3 + $0x2188] sm:$0xff] }
 0x2ba   :  { %5118 = vmatprep.subr.mxu0 %v2030_v30  ;;  %5173 = vmatprep.subr.mxu1 %v2310_v61  ;;  %v2260_v30 = vld [vmem:[%s16881_s3 + $0x2348] sm:$0xff]  ;;  %v4020_v61 = vpop.f32.mrf.mxu0 }
 0x2bb   :  { %5119 = vmatpush1.msra.mxu0 %v2029_v32  ;;  %5174 = vmatpush1.msra.mxu1 %v2309_v7  ;;  %v2198_v32 = vld [vmem:[%s16881_s3 + $0x2158] sm:$0xff]  ;;  %v2456_v15 = vld [vmem:[%s16881_s3 + $0x2968] sm:$0xff] }
 0x2bc   :  { %5120 = vmatprep.subr.mxu0 %v2247_v48  ;;  %5175 = vmatprep.subr.mxu1 %v2303_v13  ;;  %v2254_v7 = vld [vmem:[%s16881_s3 + $0x2318] sm:$0xff]  ;;  %v4019_v48 = vadd.f32 %v4018_v18, %v3948_v24  ;;  %v2197_v13 = vld [vmem:[%s16881_s3 + $0x2150] sm:$0xff]  ;;  %v2176_v18 = vld [vmem:[%s16881_s3 + $0x20a8] sm:$0xff] }
 0x2bd   :  { %5121 = vmatpush2.msra.mxu0 %v2246_v8  ;;  %5176 = vmatpush1.msra.mxu1 %v2302_v29  ;;  %v2253_v8 = vld [vmem:[%s16881_s3 + $0x2310] sm:$0xff]  ;;  %v4091_v29 = vpop.f32.mrf.mxu1  ;;  %v2450_v24 = vld [vmem:[%s16881_s3 + $0x2938] sm:$0xff] }
 0x2be   :  { %5122 = vmatprep.subr.mxu0 %v2240_v9  ;;  %5177 = vmatprep.subr.mxu1 %v2296_v10  ;;  %v4160_v9 = vpop.f32.mrf.mxu0  ;;  %v2191_v10 = vld [vmem:[%s16881_s3 + $0x2120] sm:$0xff] }
 0x2bf   :  { %5123 = vmatpush2.msra.mxu0 %v2239_v2  ;;  %5178 = vmatpush1.msra.mxu1 %v2295_v17  ;;  %v2471_v2 = vld [vmem:[%s16881_s3 + $0x29e0] sm:$0xff]  ;;  %v4021_v17 = vadd.f32 %v4020_v61, %v3950_v4 }
 0x2c0   :  { %5124 = vmatprep.subr.mxu0 %v2233_v46  ;;  %5179 = vmatprep.subr.mxu1 %v2289_v47  ;;  %v4090_v46 = vadd.f32 %v4089_v44, %v4019_v48  ;;  %v2190_v47 = vld [vmem:[%s16881_s3 + $0x2118] sm:$0xff]  ;;  %v2169_v44 = vld [vmem:[%s16881_s3 + $0x2070] sm:$0xff]  ;;  %v2156_v48 = vld [vmem:[%s16881_s3 + $0x2008] sm:$0xff] }
 0x2c1   :  { %5125 = vmatpush2.msra.mxu0 %v2232_v35  ;;  %5180 = vmatpush1.msra.mxu1 %v2288_v22  ;;  %v2470_v35 = vld [vmem:[%s16881_s3 + $0x29d8] sm:$0xff]  ;;  %v4231_v22 = vpop.f32.mrf.mxu1 }
 0x2c2   :  { %5126 = vmatprep.subr.mxu0 %v2226_v63  ;;  %5181 = vmatprep.subr.mxu1 %v2282_v27  ;;  %v2464_v63 = vld [vmem:[%s16881_s3 + $0x29a8] sm:$0xff]  ;;  %v4092_v27 = vadd.f32 %v4091_v29, %v4021_v17  ;;  %v2155_v29 = vld [vmem:[%s16881_s3 + $0x2000] sm:$0xff]  ;;  %v2149_v17 = vld [vmem:[%s16881_s3 + $0x1fd0] sm:$0xff] }
 0x2c3   :  { %5127 = vmatpush2.msra.mxu0 %v2225_v14  ;;  %5182 = vmatpush1.msra.mxu1 %v2281_v36  ;;  %v2183_v14 = vld [vmem:[%s16881_s3 + $0x20e0] sm:$0xff] }
 0x2c4   :  { %5128 = vmatprep.subr.mxu0 %v2219_v21  ;;  %5183 = vmatprep.subr.mxu1 %v2275_v28  ;;  %v2463_v36 = vld [vmem:[%s16881_s3 + $0x29a0] sm:$0xff]  ;;  %v4162_v21 = vpop.f32.mrf.mxu0  ;;  %v2177_v28 = vld [vmem:[%s16881_s3 + $0x20b0] sm:$0xff] }
 0x2c5   :  { %5129 = vmatpush2.msra.mxu0 %v2218_v33  ;;  %5184 = vmatpush1.msra.mxu1 %v2274_v51  ;;  %v2457_v33 = vld [vmem:[%s16881_s3 + $0x2970] sm:$0xff]  ;;  %v4161_v51 = vadd.f32 %v4160_v9, %v4090_v46  ;;  %v2435_v9 = vld [vmem:[%s16881_s3 + $0x28c0] sm:$0xff] }
 0x2c6   :  { %5130 = vmatprep.subr.mxu0 %v2212_v60  ;;  %5185 = vmatprep.subr.mxu1 %v2268_v38  ;;  %v4233_v60 = vpop.f32.mrf.mxu1  ;;  %v2170_v38 = vld [vmem:[%s16881_s3 + $0x2078] sm:$0xff]  ;;  %v2429_v46 = vld [vmem:[%s16881_s3 + $0x2890] sm:$0xff] }
 0x2c7   :  { %5131 = vmatpush2.msra.mxu0 %v2211_v25  ;;  %5186 = vmatpush1.msra.mxu1 %v2267_v43  ;;  %v4163_v25 = vadd.f32 %v4162_v21, %v4092_v27  ;;  %v4232_v43 = vadd.f32 %v4231_v22, %v4161_v51  ;;  %v2148_v22 = vld [vmem:[%s16881_s3 + $0x1fc8] sm:$0xff]  ;;  %v2415_v51 = vld [vmem:[%s16881_s3 + $0x2820] sm:$0xff] }
 0x2c8   :  { %5132 = vmatprep.subr.mxu0 %v2205_v49  ;;  %5187 = vmatprep.subr.mxu1 %v2261_v56  ;;  %v2449_v49 = vld [vmem:[%s16881_s3 + $0x2930] sm:$0xff]  ;;  %v4302_v56 = vpop.f32.mrf.mxu0  ;;  %v4373_v4 = vpop.f32.mrf.mxu1 }
 0x2c9   :  { %5133 = vmatpush2.msra.mxu0 %v2204_v5  ;;  %5188 = vmatpush1.msra.mxu1 %v2260_v30  ;;  %v2163_v5 = vld [vmem:[%s16881_s3 + $0x2040] sm:$0xff]  ;;  %v4234_v61 = vadd.f32 %v4233_v60, %v4163_v25  ;;  %v2414_v60 = vld [vmem:[%s16881_s3 + $0x2818] sm:$0xff] }
 0x2ca   :  { %5134 = vmatprep.subr.mxu0 %v2198_v32  ;;  %5189 = vmatprep.subr.mxu1 %v2254_v7  ;;  %v2443_v30 = vld [vmem:[%s16881_s3 + $0x2900] sm:$0xff]  ;;  %v2162_v32 = vld [vmem:[%s16881_s3 + $0x2038] sm:$0xff] }
 0x2cb   :  { %5135 = vmatpush2.msra.mxu0 %v2197_v13  ;;  %5190 = vmatpush1.msra.mxu1 %v2253_v8  ;;  %v2442_v7 = vld [vmem:[%s16881_s3 + $0x28f8] sm:$0xff]  ;;  %v2436_v13 = vld [vmem:[%s16881_s3 + $0x28c8] sm:$0xff]  ;;  %v4303_v8 = vadd.f32 %v4302_v56, %v4232_v43 }
 0x2cc   :  { %5136 = vmatprep.subr.mxu0 %v2191_v10  ;;  %5191 = vmatprep.subr.mxu1 %v2471_v2  ;;  %v4304_v10 = vpop.f32.mrf.mxu0  ;;  %v4375_v2 = vpop.f32.mrf.mxu1  ;;  %v2582_v25 = vld [vmem:[%s16881_s3 + $0x2d58] sm:$0xff]  ;;  %v2576_v56 = vld [vmem:[%s16881_s3 + $0x2d28] sm:$0xff] }
 0x2cd   :  { %5137 = vmatpush2.msra.mxu0 %v2190_v47  ;;  %5192 = vmatpush2.msra.mxu1 %v2470_v35  ;;  %v4305_v47 = vadd.f32 %v4304_v10, %v4234_v61  ;;  %v4374_v35 = vadd.f32 %v4373_v4, %v4303_v8  ;;  %v2575_v61 = vld [vmem:[%s16881_s3 + $0x2d20] sm:$0xff]  ;;  %v2568_v8 = vld [vmem:[%s16881_s3 + $0x2ce8] sm:$0xff]  ;;  %v2562_v10 = vld [vmem:[%s16881_s3 + $0x2cb8] sm:$0xff] }
 0x2ce   :  { %5138 = vmatprep.subr.mxu0 %v2184_v62  ;;  %5193 = vmatprep.subr.mxu1 %v2464_v63  ;;  %v2428_v62 = vld [vmem:[%s16881_s3 + $0x2888] sm:$0xff]  ;;  %v4444_v63 = vpop.f32.mrf.mxu0  ;;  %v4515_v27 = vpop.f32.mrf.mxu1 }
 0x2cf   :  { %5139 = vmatpush2.msra.mxu0 %v2183_v14  ;;  %5194 = vmatpush2.msra.mxu1 %v2463_v36  ;;  %v2142_v14 = vld [vmem:[%s16881_s3 + $0x1f98] sm:$0xff]  ;;  %v4376_v21 = vadd.f32 %v4375_v2, %v4305_v47  ;;  %v2561_v47 = vld [vmem:[%s16881_s3 + $0x2cb0] sm:$0xff] }
 0x2d0   :  { %5140 = vmatprep.subr.mxu0 %v2177_v28  ;;  %5195 = vmatprep.subr.mxu1 %v2457_v33  ;;  %v2422_v36 = vld [vmem:[%s16881_s3 + $0x2858] sm:$0xff]  ;;  %v2141_v28 = vld [vmem:[%s16881_s3 + $0x1f90] sm:$0xff] }
 0x2d1   :  { %5141 = vmatpush2.msra.mxu0 %v2176_v18  ;;  %5196 = vmatpush2.msra.mxu1 %v2456_v15  ;;  %v2421_v33 = vld [vmem:[%s16881_s3 + $0x2850] sm:$0xff]  ;;  %v4445_v18 = vadd.f32 %v4444_v63, %v4374_v35  ;;  %v2583_v15 = vld [vmem:[%s16881_s3 + $0x2d60] sm:$0xff] }
 0x2d2   :  { %5142 = vmatprep.subr.mxu0 %v2170_v38  ;;  %5197 = vmatprep.subr.mxu1 %v2450_v24  ;;  %v4446_v38 = vpop.f32.mrf.mxu0  ;;  %v4517_v24 = vpop.f32.mrf.mxu1  ;;  %v2555_v63 = vld [vmem:[%s16881_s3 + $0x2c80] sm:$0xff] }
 0x2d3   :  { %5143 = vmatpush2.msra.mxu0 %v2169_v44  ;;  %5198 = vmatpush2.msra.mxu1 %v2449_v49  ;;  %v4447_v43 = vadd.f32 %v4446_v38, %v4376_v21  ;;  %v4516_v44 = vadd.f32 %v4515_v27, %v4445_v18  ;;  %v2408_v49 = vld [vmem:[%s16881_s3 + $0x27e8] sm:$0xff]  ;;  %v2547_v18 = vld [vmem:[%s16881_s3 + $0x2c40] sm:$0xff]  ;;  %v2541_v38 = vld [vmem:[%s16881_s3 + $0x2c10] sm:$0xff] }
 0x2d4   :  { %5144 = vmatprep.subr.mxu0 %v2163_v5  ;;  %5199 = vmatprep.subr.mxu1 %v2443_v30  ;;  %v4586_v4 = vpop.f32.mrf.mxu0  ;;  %v2407_v30 = vld [vmem:[%s16881_s3 + $0x27e0] sm:$0xff] }
 0x2d5   :  { %5145 = vmatpush2.msra.mxu0 %v2162_v32  ;;  %5200 = vmatpush2.msra.mxu1 %v2442_v7  ;;  %v4657_v5 = vpop.f32.mrf.mxu1  ;;  %v4518_v32 = vadd.f32 %v4517_v24, %v4447_v43  ;;  %v2401_v7 = vld [vmem:[%s16881_s3 + $0x27b0] sm:$0xff]  ;;  %v2540_v43 = vld [vmem:[%s16881_s3 + $0x2c08] sm:$0xff] }
 0x2d6   :  { %5146 = vmatprep.subr.mxu0 %v2156_v48  ;;  %5201 = vmatprep.subr.mxu1 %v2436_v13  ;;  %v2569_v48 = vld [vmem:[%s16881_s3 + $0x2cf0] sm:$0xff]  ;;  %v2400_v13 = vld [vmem:[%s16881_s3 + $0x27a8] sm:$0xff]  ;;  %v4588_v2 = vpop.f32.mrf.mxu0 }
 0x2d7   :  { %5147 = vmatpush2.msra.mxu0 %v2155_v29  ;;  %5202 = vmatpush2.msra.mxu1 %v2435_v9  ;;  %v4587_v29 = vadd.f32 %v4586_v4, %v4516_v44  ;;  %v2394_v9 = vld [vmem:[%s16881_s3 + $0x2778] sm:$0xff]  ;;  %v4589_v35 = vadd.f32 %v4588_v2, %v4518_v32  ;;  %v2520_v2 = vld [vmem:[%s16881_s3 + $0x2b68] sm:$0xff] }
 0x2d8   :  { %5148 = vmatprep.subr.mxu0 %v2149_v17  ;;  %5203 = vmatprep.subr.mxu1 %v2429_v46  ;;  %v4659_v17 = vpop.f32.mrf.mxu1  ;;  %v2393_v46 = vld [vmem:[%s16881_s3 + $0x2770] sm:$0xff]  ;;  %v4728_v27 = vpop.f32.mrf.mxu0  ;;  %v2534_v4 = vld [vmem:[%s16881_s3 + $0x2bd8] sm:$0xff] }
 0x2d9   :  { %5149 = vmatpush2.msra.mxu0 %v2148_v22  ;;  %5204 = vmatpush2.msra.mxu1 %v2428_v62  ;;  %v4658_v22 = vadd.f32 %v4657_v5, %v4587_v29  ;;  %v2387_v62 = vld [vmem:[%s16881_s3 + $0x2740] sm:$0xff]  ;;  %v4660_v21 = vadd.f32 %v4659_v17, %v4589_v35  ;;  %v2526_v29 = vld [vmem:[%s16881_s3 + $0x2b98] sm:$0xff]  ;;  %v2800_v17 = vld [vmem:[%s16881_s3 + $0x3428] sm:$0xff] }
 0x2da   :  { %5150 = vmatprep.subr.mxu0 %v2142_v14  ;;  %5205 = vmatprep.subr.mxu1 %v2422_v36  ;;  %v2386_v14 = vld [vmem:[%s16881_s3 + $0x2738] sm:$0xff]  ;;  %v4730_v24 = vpop.f32.mrf.mxu0  ;;  %v2513_v35 = vld [vmem:[%s16881_s3 + $0x2b30] sm:$0xff] }
 0x2db   :  { %5151 = vmatpush2.msra.mxu0 %v2141_v28  ;;  %5206 = vmatpush2.msra.mxu1 %v2421_v33  ;;  %v2554_v36 = vld [vmem:[%s16881_s3 + $0x2c78] sm:$0xff]  ;;  %v2380_v28 = vld [vmem:[%s16881_s3 + $0x2708] sm:$0xff] }
 0x2dc   :  { %5153 = vmatmul.mubr.f32.vlgmr.msra.gmra.mxu0 %v9595_v1  ;;  %5207 = vmatprep.subr.mxu1 %v2415_v51  ;;  %v2548_v33 = vld [vmem:[%s16881_s3 + $0x2c48] sm:$0xff]  ;;  %v2379_v51 = vld [vmem:[%s16881_s3 + $0x2700] sm:$0xff] }
 0x2dd   :  { %5230 = vmatprep.subr.mxu0 %v2583_v15  ;;  %5208 = vmatpush2.msra.mxu1 %v2414_v60  ;;  %v4729_v15 = vadd.f32 %v4728_v27, %v4658_v22  ;;  %v2373_v60 = vld [vmem:[%s16881_s3 + $0x26d0] sm:$0xff]  ;;  %v2506_v27 = vld [vmem:[%s16881_s3 + $0x2af8] sm:$0xff] }
 0x2de   :  { %5231 = vmatpush1.msra.mxu0 %v2582_v25  ;;  %5294 = vmatprep.mubr.f32.mxu0 %v9597_v6  ;;  %v2372_v25 = vld [vmem:[%s16881_s3 + $0x26c8] sm:$0xff]  ;;  %v2793_v22 = vld [vmem:[%s16881_s3 + $0x33f0] sm:$0xff] }
 0x2df   :  { %5209 = vmatprep.subr.mxu1 %v2408_v49  ;;  %5232 = vmatprep.subr.mxu0 %v2576_v56  ;;  %v4731_v49 = vadd.f32 %v4730_v24, %v4660_v21  ;;  %v2366_v56 = vld [vmem:[%s16881_s3 + $0x2698] sm:$0xff]  ;;  %v2785_v21 = vld [vmem:[%s16881_s3 + $0x33b0] sm:$0xff]  ;;  %v2771_v24 = vld [vmem:[%s16881_s3 + $0x3340] sm:$0xff] }
 0x2e0   :  { %5210 = vmatpush2.msra.mxu1 %v2407_v30  ;;  %5233 = vmatpush1.msra.mxu0 %v2575_v61  ;;  %v2365_v30 = vld [vmem:[%s16881_s3 + $0x2690] sm:$0xff] }
 0x2e1   :  { %5211 = vmatprep.subr.mxu1 %v2401_v7  ;;  %5234 = vmatprep.subr.mxu0 %v2569_v48  ;;  %v2533_v61 = vld [vmem:[%s16881_s3 + $0x2bd0] sm:$0xff]  ;;  %v2527_v48 = vld [vmem:[%s16881_s3 + $0x2ba0] sm:$0xff] }
 0x2e2   :  { %5212 = vmatpush2.msra.mxu1 %v2400_v13  ;;  %5235 = vmatpush1.msra.mxu0 %v2568_v8  ;;  %v2807_v8 = vld [vmem:[%s16881_s3 + $0x3460] sm:$0xff] }
 0x2e3   :  { %5213 = vmatprep.subr.mxu1 %v2394_v9  ;;  %5236 = vmatprep.subr.mxu0 %v2562_v10  ;;  %v2806_v9 = vld [vmem:[%s16881_s3 + $0x3458] sm:$0xff] }
 0x2e4   :  { %5214 = vmatpush2.msra.mxu1 %v2393_v46  ;;  %5237 = vmatpush1.msra.mxu0 %v2561_v47  ;;  %v2519_v46 = vld [vmem:[%s16881_s3 + $0x2b60] sm:$0xff] }
 0x2e5   :  { %5215 = vmatprep.subr.mxu1 %v2387_v62  ;;  %5238 = vmatprep.subr.mxu0 %v2555_v63  ;;  %v2799_v47 = vld [vmem:[%s16881_s3 + $0x3420] sm:$0xff]  ;;  %v2512_v62 = vld [vmem:[%s16881_s3 + $0x2b28] sm:$0xff] }
 0x2e6   :  { %5216 = vmatpush2.msra.mxu1 %v2386_v14  ;;  %5239 = vmatpush1.msra.mxu0 %v2554_v36  ;;  %v2792_v63 = vld [vmem:[%s16881_s3 + $0x33e8] sm:$0xff]  ;;  %v2786_v14 = vld [vmem:[%s16881_s3 + $0x33b8] sm:$0xff]  ;;  %v2505_v36 = vld [vmem:[%s16881_s3 + $0x2af0] sm:$0xff] }
 0x2e7   :  { %5217 = vmatprep.subr.mxu1 %v2380_v28  ;;  %5240 = vmatprep.subr.mxu0 %v2548_v33  ;;  %v4799_v44 = vpop.f32.mrf.mxu1  ;;  %v2499_v28 = vld [vmem:[%s16881_s3 + $0x2ac0] sm:$0xff] }
 0x2e8   :  { %5218 = vmatpush2.msra.mxu1 %v2379_v51  ;;  %5241 = vmatpush1.msra.mxu0 %v2547_v18  ;;  %v4800_v5 = vadd.f32 %v4799_v44, %v4729_v15  ;;  %v2779_v33 = vld [vmem:[%s16881_s3 + $0x3380] sm:$0xff]  ;;  %v2498_v51 = vld [vmem:[%s16881_s3 + $0x2ab8] sm:$0xff]  ;;  %v2492_v15 = vld [vmem:[%s16881_s3 + $0x2a88] sm:$0xff] }
 0x2e9   :  { %5219 = vmatprep.subr.mxu1 %v2373_v60  ;;  %5242 = vmatprep.subr.mxu0 %v2541_v38  ;;  %v4801_v32 = vpop.f32.mrf.mxu1  ;;  %v2778_v18 = vld [vmem:[%s16881_s3 + $0x3378] sm:$0xff]  ;;  %v2772_v60 = vld [vmem:[%s16881_s3 + $0x3348] sm:$0xff]  ;;  %v2491_v38 = vld [vmem:[%s16881_s3 + $0x2a80] sm:$0xff] }
 0x2ea   :  { %5220 = vmatpush2.msra.mxu1 %v2372_v25  ;;  %5243 = vmatpush1.msra.mxu0 %v2540_v43  ;;  %v7632_v7 = vmul.f32 -1.442695, %v4800_v5  ;;  %v4802_v13 = vadd.f32 %v4801_v32, %v4731_v49  ;;  %v2485_v25 = vld [vmem:[%s16881_s3 + $0x2a50] sm:$0xff]  ;;  %v2484_v44 = vld [vmem:[%s16881_s3 + $0x2a48] sm:$0xff]  ;;  %v2758_v5 = vld [vmem:[%s16881_s3 + $0x32d8] sm:$0xff] }
 0x2eb   :  { %5221 = vmatprep.subr.mxu1 %v2366_v56  ;;  %5244 = vmatprep.subr.mxu0 %v2534_v4  ;;  %v2765_v43 = vld [vmem:[%s16881_s3 + $0x3310] sm:$0xff]  ;;  %v2764_v49 = vld [vmem:[%s16881_s3 + $0x3308] sm:$0xff]  ;;  %v2478_v4 = vld [vmem:[%s16881_s3 + $0x2a18] sm:$0xff] }
 0x2ec   :  { %5222 = vmatpush2.msra.mxu1 %v2365_v30  ;;  %5245 = vmatpush1.msra.mxu0 %v2533_v61  ;;  %8096 = vpow2.f32 %v7632_v7  ;;  %v7633_v10 = vmul.f32 -1.442695, %v4802_v13  ;;  %v2477_v61 = vld [vmem:[%s16881_s3 + $0x2a10] sm:$0xff]  ;;  %v2751_v13 = vld [vmem:[%s16881_s3 + $0x32a0] sm:$0xff] }
 0x2ed   :  { %5224 = vmatmul.mubr.f32.vlgmr.msra.gmra.mxu1 %v9593_v0  ;;  %5246 = vmatprep.subr.mxu0 %v2527_v48  ;;  %v2757_v32 = vld [vmem:[%s16881_s3 + $0x32d0] sm:$0xff]  ;;  %v2695_v48 = vld [vmem:[%s16881_s3 + $0x30e0] sm:$0xff] }
 0x2ee   :  { %5301 = vmatprep.subr.mxu1 %v2807_v8  ;;  %5247 = vmatpush1.msra.mxu0 %v2526_v29  ;;  %8098 = vpow2.f32 %v7633_v10  ;;  %v2694_v29 = vld [vmem:[%s16881_s3 + $0x30d8] sm:$0xff]  ;;  %v2688_v10 = vld [vmem:[%s16881_s3 + $0x30a8] sm:$0xff] }
 0x2ef   :  { %5302 = vmatpush1.msra.mxu1 %v2806_v9  ;;  %5365 = vmatprep.mubr.f32.mxu1 %v9613_v11  ;;  %v2750_v9 = vld [vmem:[%s16881_s3 + $0x3298] sm:$0xff] }
 0x2f0   :  { %5248 = vmatprep.subr.mxu0 %v2520_v2  ;;  %5303 = vmatprep.subr.mxu1 %v2800_v17  ;;  %v2744_v2 = vld [vmem:[%s16881_s3 + $0x3268] sm:$0xff]  ;;  %v2687_v17 = vld [vmem:[%s16881_s3 + $0x30a0] sm:$0xff] }
 0x2f1   :  { %5249 = vmatpush1.msra.mxu0 %v2519_v46  ;;  %5304 = vmatpush1.msra.mxu1 %v2799_v47  ;;  %v2743_v46 = vld [vmem:[%s16881_s3 + $0x3260] sm:$0xff]  ;;  %v2681_v47 = vld [vmem:[%s16881_s3 + $0x3070] sm:$0xff] }
 0x2f2   :  { %5250 = vmatprep.subr.mxu0 %v2513_v35  ;;  %5305 = vmatprep.subr.mxu1 %v2793_v22  ;;  %v2737_v35 = vld [vmem:[%s16881_s3 + $0x3230] sm:$0xff]  ;;  %v2680_v22 = vld [vmem:[%s16881_s3 + $0x3068] sm:$0xff] }
 0x2f3   :  { %5251 = vmatpush1.msra.mxu0 %v2512_v62  ;;  %5306 = vmatpush1.msra.mxu1 %v2792_v63  ;;  %v2736_v62 = vld [vmem:[%s16881_s3 + $0x3228] sm:$0xff]  ;;  %v2674_v63 = vld [vmem:[%s16881_s3 + $0x3038] sm:$0xff] }
 0x2f4   :  { %5252 = vmatprep.subr.mxu0 %v2506_v27  ;;  %5307 = vmatprep.subr.mxu1 %v2786_v14  ;;  %v2730_v27 = vld [vmem:[%s16881_s3 + $0x31f8] sm:$0xff]  ;;  %v2673_v14 = vld [vmem:[%s16881_s3 + $0x3030] sm:$0xff] }
 0x2f5   :  { %5253 = vmatpush1.msra.mxu0 %v2505_v36  ;;  %5308 = vmatpush1.msra.mxu1 %v2785_v21  ;;  %v2729_v36 = vld [vmem:[%s16881_s3 + $0x31f0] sm:$0xff]  ;;  %v2667_v21 = vld [vmem:[%s16881_s3 + $0x3000] sm:$0xff] }
 0x2f6   :  { %5254 = vmatprep.subr.mxu0 %v2499_v28  ;;  %5309 = vmatprep.subr.mxu1 %v2779_v33  ;;  %v2723_v28 = vld [vmem:[%s16881_s3 + $0x31c0] sm:$0xff]  ;;  %v2666_v33 = vld [vmem:[%s16881_s3 + $0x2ff8] sm:$0xff] }
 0x2f7   :  { %5255 = vmatpush1.msra.mxu0 %v2498_v51  ;;  %5310 = vmatpush1.msra.mxu1 %v2778_v18  ;;  %v2722_v51 = vld [vmem:[%s16881_s3 + $0x31b8] sm:$0xff]  ;;  %v2660_v18 = vld [vmem:[%s16881_s3 + $0x2fc8] sm:$0xff] }
 0x2f8   :  { %5256 = vmatprep.subr.mxu0 %v2492_v15  ;;  %5311 = vmatprep.subr.mxu1 %v2772_v60  ;;  %v2716_v15 = vld [vmem:[%s16881_s3 + $0x3188] sm:$0xff]  ;;  %v2659_v60 = vld [vmem:[%s16881_s3 + $0x2fc0] sm:$0xff] }
 0x2f9   :  { %v8097_v56 = vpop.eup %8096  ;;  %5257 = vmatpush1.msra.mxu0 %v2491_v38  ;;  %5312 = vmatpush1.msra.mxu1 %v2771_v24  ;;  %v2715_v38 = vld [vmem:[%s16881_s3 + $0x3180] sm:$0xff]  ;;  %v2653_v24 = vld [vmem:[%s16881_s3 + $0x2f90] sm:$0xff] }
 0x2fa   :  { %v7581_v30 = vadd.f32 1.0, %v8097_v56  ;;  %5258 = vmatprep.subr.mxu0 %v2485_v25  ;;  %5313 = vmatprep.subr.mxu1 %v2765_v43  ;;  %v2709_v25 = vld [vmem:[%s16881_s3 + $0x3150] sm:$0xff]  ;;  %v2652_v43 = vld [vmem:[%s16881_s3 + $0x2f88] sm:$0xff]  ;;  %v2646_v56 = vld [vmem:[%s16881_s3 + $0x2f58] sm:$0xff] }
 0x2fb   :  { %v8099_v7 = vpop.eup %8098  ;;  %5259 = vmatpush1.msra.mxu0 %v2484_v44  ;;  %5314 = vmatpush1.msra.mxu1 %v2764_v49  ;;  %v2708_v44 = vld [vmem:[%s16881_s3 + $0x3148] sm:$0xff] }
 0x2fc   :  { %8100 = vrcp.f32 %v7581_v30  ;;  %v7582_v8 = vadd.f32 1.0, %v8099_v7  ;;  %5260 = vmatprep.subr.mxu0 %v2478_v4  ;;  %5315 = vmatprep.subr.mxu1 %v2758_v5  ;;  %v2702_v4 = vld [vmem:[%s16881_s3 + $0x3118] sm:$0xff]  ;;  %v2645_v5 = vld [vmem:[%s16881_s3 + $0x2f50] sm:$0xff]  ;;  %v2919_v7 = vld [vmem:[%s16881_s3 + $0x37e0] sm:$0xff] }
 0x2fd   :  { %5261 = vmatpush1.msra.mxu0 %v2477_v61  ;;  %5316 = vmatpush1.msra.mxu1 %v2757_v32  ;;  %v2701_v30 = vld [vmem:[%s16881_s3 + $0x3110] sm:$0xff]  ;;  %v2639_v32 = vld [vmem:[%s16881_s3 + $0x2f20] sm:$0xff] }
 0x2fe   :  { %8102 = vrcp.f32 %v7582_v8  ;;  %5262 = vmatprep.subr.mxu0 %v2695_v48  ;;  %5317 = vmatprep.subr.mxu1 %v2751_v13  ;;  %v2638_v48 = vld [vmem:[%s16881_s3 + $0x2f18] sm:$0xff]  ;;  %v2632_v8 = vld [vmem:[%s16881_s3 + $0x2ee8] sm:$0xff] }
 0x2ff   :  { %5263 = vmatpush2.msra.mxu0 %v2694_v29  ;;  %5318 = vmatpush1.msra.mxu1 %v2750_v9  ;;  %v2918_v13 = vld [vmem:[%s16881_s3 + $0x37d8] sm:$0xff]  ;;  %v2912_v29 = vld [vmem:[%s16881_s3 + $0x37a8] sm:$0xff]  ;;  %v2631_v9 = vld [vmem:[%s16881_s3 + $0x2ee0] sm:$0xff] }
 0x300   :  { %5264 = vmatprep.subr.mxu0 %v2688_v10  ;;  %5319 = vmatprep.subr.mxu1 %v2744_v2  ;;  %v2911_v10 = vld [vmem:[%s16881_s3 + $0x37a0] sm:$0xff]  ;;  %v2625_v2 = vld [vmem:[%s16881_s3 + $0x2eb0] sm:$0xff] }
 0x301   :  { %5265 = vmatpush2.msra.mxu0 %v2687_v17  ;;  %5320 = vmatpush1.msra.mxu1 %v2743_v46  ;;  %v2905_v17 = vld [vmem:[%s16881_s3 + $0x3770] sm:$0xff]  ;;  %v2624_v46 = vld [vmem:[%s16881_s3 + $0x2ea8] sm:$0xff] }
 0x302   :  { %5266 = vmatprep.subr.mxu0 %v2681_v47  ;;  %5321 = vmatprep.subr.mxu1 %v2737_v35  ;;  %v2904_v47 = vld [vmem:[%s16881_s3 + $0x3768] sm:$0xff]  ;;  %v2618_v35 = vld [vmem:[%s16881_s3 + $0x2e78] sm:$0xff] }
 0x303   :  { %5267 = vmatpush2.msra.mxu0 %v2680_v22  ;;  %5322 = vmatpush1.msra.mxu1 %v2736_v62  ;;  %v2898_v22 = vld [vmem:[%s16881_s3 + $0x3738] sm:$0xff]  ;;  %v2617_v62 = vld [vmem:[%s16881_s3 + $0x2e70] sm:$0xff] }
 0x304   :  { %5268 = vmatprep.subr.mxu0 %v2674_v63  ;;  %5323 = vmatprep.subr.mxu1 %v2730_v27  ;;  %v2897_v63 = vld [vmem:[%s16881_s3 + $0x3730] sm:$0xff]  ;;  %v2611_v27 = vld [vmem:[%s16881_s3 + $0x2e40] sm:$0xff] }
 0x305   :  { %5269 = vmatpush2.msra.mxu0 %v2673_v14  ;;  %5324 = vmatpush1.msra.mxu1 %v2729_v36  ;;  %v2891_v14 = vld [vmem:[%s16881_s3 + $0x3700] sm:$0xff]  ;;  %v2610_v36 = vld [vmem:[%s16881_s3 + $0x2e38] sm:$0xff] }
 0x306   :  { %5270 = vmatprep.subr.mxu0 %v2667_v21  ;;  %5325 = vmatprep.subr.mxu1 %v2723_v28  ;;  %v2890_v21 = vld [vmem:[%s16881_s3 + $0x36f8] sm:$0xff]  ;;  %v2604_v28 = vld [vmem:[%s16881_s3 + $0x2e08] sm:$0xff] }
 0x307   :  { %5271 = vmatpush2.msra.mxu0 %v2666_v33  ;;  %5326 = vmatpush1.msra.mxu1 %v2722_v51  ;;  %v2884_v33 = vld [vmem:[%s16881_s3 + $0x36c8] sm:$0xff]  ;;  %v2603_v51 = vld [vmem:[%s16881_s3 + $0x2e00] sm:$0xff] }
 0x308   :  { %5272 = vmatprep.subr.mxu0 %v2660_v18  ;;  %5327 = vmatprep.subr.mxu1 %v2716_v15  ;;  %v2883_v18 = vld [vmem:[%s16881_s3 + $0x36c0] sm:$0xff]  ;;  %v2597_v15 = vld [vmem:[%s16881_s3 + $0x2dd0] sm:$0xff] }
 0x309   :  { %v8101_v49 = vpop.eup %8100  ;;  %5273 = vmatpush2.msra.mxu0 %v2659_v60  ;;  %5328 = vmatpush1.msra.mxu1 %v2715_v38  ;;  %v2877_v60 = vld [vmem:[%s16881_s3 + $0x3690] sm:$0xff]  ;;  %v2596_v38 = vld [vmem:[%s16881_s3 + $0x2dc8] sm:$0xff] }
 0x30a   :  { %7602 = vst [vmem:[%s16884_s5] sm:$0xff] %v8101_v49  ;;  %5274 = vmatprep.subr.mxu0 %v2653_v24  ;;  %5329 = vmatprep.subr.mxu1 %v2709_v25  ;;  %v2876_v24 = vld [vmem:[%s16881_s3 + $0x3688] sm:$0xff]  ;;  %v2590_v25 = vld [vmem:[%s16881_s3 + $0x2d98] sm:$0xff]  ;;  %v2869_v49 = vld [vmem:[%s16881_s3 + $0x3650] sm:$0xff] }
 0x30b   :  { %v8103_v61 = vpop.eup %8102  ;;  %5275 = vmatpush2.msra.mxu0 %v2652_v43  ;;  %5330 = vmatpush1.msra.mxu1 %v2708_v44  ;;  %v2870_v43 = vld [vmem:[%s16881_s3 + $0x3658] sm:$0xff]  ;;  %v2589_v44 = vld [vmem:[%s16881_s3 + $0x2d90] sm:$0xff] }
 0x30c   :  { %7603 = vst [vmem:[%s16884_s5 + $0x8] sm:$0xff] %v8103_v61  ;;  %5276 = vmatprep.subr.mxu0 %v2646_v56  ;;  %5331 = vmatprep.subr.mxu1 %v2702_v4  ;;  %v2863_v56 = vld [vmem:[%s16881_s3 + $0x3620] sm:$0xff]  ;;  %v2856_v61 = vld [vmem:[%s16881_s3 + $0x35e8] sm:$0xff] }
 0x30d   :  { %5277 = vmatpush2.msra.mxu0 %v2645_v5  ;;  %5332 = vmatpush1.msra.mxu1 %v2701_v30  ;;  %v3031_v4 = vld [vmem:[%s16881_s3 + $0x3b60] sm:$0xff]  ;;  %v2862_v5 = vld [vmem:[%s16881_s3 + $0x3618] sm:$0xff] }
 0x30e   :  { %5278 = vmatprep.subr.mxu0 %v2639_v32  ;;  %5333 = vmatprep.subr.mxu1 %v2919_v7  ;;  %v3030_v30 = vld [vmem:[%s16881_s3 + $0x3b58] sm:$0xff]  ;;  %v3024_v32 = vld [vmem:[%s16881_s3 + $0x3b28] sm:$0xff]  ;;  %v2855_v7 = vld [vmem:[%s16881_s3 + $0x35e0] sm:$0xff] }
 0x30f   :  { %5279 = vmatpush2.msra.mxu0 %v2638_v48  ;;  %5334 = vmatpush2.msra.mxu1 %v2918_v13  ;;  %v3023_v48 = vld [vmem:[%s16881_s3 + $0x3b20] sm:$0xff]  ;;  %v2849_v13 = vld [vmem:[%s16881_s3 + $0x35b0] sm:$0xff] }
 0x310   :  { %5280 = vmatprep.subr.mxu0 %v2632_v8  ;;  %5335 = vmatprep.subr.mxu1 %v2912_v29  ;;  %v3017_v8 = vld [vmem:[%s16881_s3 + $0x3af0] sm:$0xff]  ;;  %v2848_v29 = vld [vmem:[%s16881_s3 + $0x35a8] sm:$0xff] }
 0x311   :  { %5281 = vmatpush2.msra.mxu0 %v2631_v9  ;;  %5336 = vmatpush2.msra.mxu1 %v2911_v10  ;;  %v3016_v9 = vld [vmem:[%s16881_s3 + $0x3ae8] sm:$0xff]  ;;  %v2842_v10 = vld [vmem:[%s16881_s3 + $0x3578] sm:$0xff] }
 0x312   :  { %5282 = vmatprep.subr.mxu0 %v2625_v2  ;;  %5337 = vmatprep.subr.mxu1 %v2905_v17  ;;  %v3010_v2 = vld [vmem:[%s16881_s3 + $0x3ab8] sm:$0xff]  ;;  %v2841_v17 = vld [vmem:[%s16881_s3 + $0x3570] sm:$0xff] }
 0x313   :  { %5283 = vmatpush2.msra.mxu0 %v2624_v46  ;;  %5338 = vmatpush2.msra.mxu1 %v2904_v47  ;;  %v3009_v46 = vld [vmem:[%s16881_s3 + $0x3ab0] sm:$0xff]  ;;  %v2835_v47 = vld [vmem:[%s16881_s3 + $0x3540] sm:$0xff] }
 0x314   :  { %5284 = vmatprep.subr.mxu0 %v2618_v35  ;;  %5339 = vmatprep.subr.mxu1 %v2898_v22  ;;  %v3003_v35 = vld [vmem:[%s16881_s3 + $0x3a80] sm:$0xff]  ;;  %v2834_v22 = vld [vmem:[%s16881_s3 + $0x3538] sm:$0xff] }
 0x315   :  { %5285 = vmatpush2.msra.mxu0 %v2617_v62  ;;  %5340 = vmatpush2.msra.mxu1 %v2897_v63  ;;  %v3002_v62 = vld [vmem:[%s16881_s3 + $0x3a78] sm:$0xff]  ;;  %v2828_v63 = vld [vmem:[%s16881_s3 + $0x3508] sm:$0xff] }
 0x316   :  { %5286 = vmatprep.subr.mxu0 %v2611_v27  ;;  %5341 = vmatprep.subr.mxu1 %v2891_v14  ;;  %v2996_v27 = vld [vmem:[%s16881_s3 + $0x3a48] sm:$0xff]  ;;  %v2827_v14 = vld [vmem:[%s16881_s3 + $0x3500] sm:$0xff] }
 0x317   :  { %5287 = vmatpush2.msra.mxu0 %v2610_v36  ;;  %5342 = vmatpush2.msra.mxu1 %v2890_v21  ;;  %v2995_v36 = vld [vmem:[%s16881_s3 + $0x3a40] sm:$0xff]  ;;  %v2821_v21 = vld [vmem:[%s16881_s3 + $0x34d0] sm:$0xff] }
 0x318   :  { %5288 = vmatprep.subr.mxu0 %v2604_v28  ;;  %5343 = vmatprep.subr.mxu1 %v2884_v33  ;;  %v2989_v28 = vld [vmem:[%s16881_s3 + $0x3a10] sm:$0xff]  ;;  %v2820_v33 = vld [vmem:[%s16881_s3 + $0x34c8] sm:$0xff] }
 0x319   :  { %5289 = vmatpush2.msra.mxu0 %v2603_v51  ;;  %5344 = vmatpush2.msra.mxu1 %v2883_v18  ;;  %v2988_v51 = vld [vmem:[%s16881_s3 + $0x3a08] sm:$0xff]  ;;  %v2814_v18 = vld [vmem:[%s16881_s3 + $0x3498] sm:$0xff] }
 0x31a   :  { %5290 = vmatprep.subr.mxu0 %v2597_v15  ;;  %5345 = vmatprep.subr.mxu1 %v2877_v60  ;;  %v2982_v15 = vld [vmem:[%s16881_s3 + $0x39d8] sm:$0xff]  ;;  %v2813_v60 = vld [vmem:[%s16881_s3 + $0x3490] sm:$0xff] }
 0x31b   :  { %5291 = vmatpush2.msra.mxu0 %v2596_v38  ;;  %5346 = vmatpush2.msra.mxu1 %v2876_v24  ;;  %v2981_v38 = vld [vmem:[%s16881_s3 + $0x39d0] sm:$0xff]  ;;  %v2975_v24 = vld [vmem:[%s16881_s3 + $0x39a0] sm:$0xff] }
 0x31c   :  { %5292 = vmatprep.subr.mxu0 %v2590_v25  ;;  %5347 = vmatprep.subr.mxu1 %v2870_v43  ;;  %v3255_v25 = vld [vmem:[%s16881_s3 + $0x4260] sm:$0xff]  ;;  %v2974_v43 = vld [vmem:[%s16881_s3 + $0x3998] sm:$0xff] }
 0x31d   :  { %5293 = vmatpush2.msra.mxu0 %v2589_v44  ;;  %5348 = vmatpush2.msra.mxu1 %v2869_v49  ;;  %v3254_v44 = vld [vmem:[%s16881_s3 + $0x4258] sm:$0xff]  ;;  %v2968_v49 = vld [vmem:[%s16881_s3 + $0x3968] sm:$0xff] }
 0x31e   :  { %5295 = vmatmul.mubr.f32.vlgmr.msra.gmra.mxu0 %v10004_v45  ;;  %5349 = vmatprep.subr.mxu1 %v2863_v56  ;;  %v3248_v56 = vld [vmem:[%s16881_s3 + $0x4228] sm:$0xff] }
 0x31f   :  { %5372 = vmatprep.subr.mxu0 %v3031_v4  ;;  %5350 = vmatpush2.msra.mxu1 %v2862_v5  ;;  %v2967_v4 = vld [vmem:[%s16881_s3 + $0x3960] sm:$0xff] }
 0x320   :  { %5373 = vmatpush1.msra.mxu0 %v3030_v30  ;;  %5436 = vmatprep.mubr.f32.mxu0 %v10015_v57  ;;  %v3247_v5 = vld [vmem:[%s16881_s3 + $0x4220] sm:$0xff]  ;;  %v2961_v30 = vld [vmem:[%s16881_s3 + $0x3930] sm:$0xff] }
 0x321   :  { %5351 = vmatprep.subr.mxu1 %v2856_v61  ;;  %5374 = vmatprep.subr.mxu0 %v3024_v32  ;;  %v3241_v61 = vld [vmem:[%s16881_s3 + $0x41f0] sm:$0xff]  ;;  %v2960_v32 = vld [vmem:[%s16881_s3 + $0x3928] sm:$0xff] }
 0x322   :  { %5352 = vmatpush2.msra.mxu1 %v2855_v7  ;;  %5375 = vmatpush1.msra.mxu0 %v3023_v48  ;;  %v3240_v7 = vld [vmem:[%s16881_s3 + $0x41e8] sm:$0xff]  ;;  %v2954_v48 = vld [vmem:[%s16881_s3 + $0x38f8] sm:$0xff] }
 0x323   :  { %5353 = vmatprep.subr.mxu1 %v2849_v13  ;;  %5376 = vmatprep.subr.mxu0 %v3017_v8  ;;  %v3234_v13 = vld [vmem:[%s16881_s3 + $0x41b8] sm:$0xff]  ;;  %v2953_v8 = vld [vmem:[%s16881_s3 + $0x38f0] sm:$0xff] }
 0x324   :  { %5354 = vmatpush2.msra.mxu1 %v2848_v29  ;;  %5377 = vmatpush1.msra.mxu0 %v3016_v9  ;;  %v3233_v29 = vld [vmem:[%s16881_s3 + $0x41b0] sm:$0xff]  ;;  %v2947_v9 = vld [vmem:[%s16881_s3 + $0x38c0] sm:$0xff] }
 0x325   :  { %5355 = vmatprep.subr.mxu1 %v2842_v10  ;;  %5378 = vmatprep.subr.mxu0 %v3010_v2  ;;  %v3227_v10 = vld [vmem:[%s16881_s3 + $0x4180] sm:$0xff]  ;;  %v2946_v2 = vld [vmem:[%s16881_s3 + $0x38b8] sm:$0xff] }
 0x326   :  { %5356 = vmatpush2.msra.mxu1 %v2841_v17  ;;  %5379 = vmatpush1.msra.mxu0 %v3009_v46  ;;  %v3226_v17 = vld [vmem:[%s16881_s3 + $0x4178] sm:$0xff]  ;;  %v2940_v46 = vld [vmem:[%s16881_s3 + $0x3888] sm:$0xff] }
 0x327   :  { %5357 = vmatprep.subr.mxu1 %v2835_v47  ;;  %5380 = vmatprep.subr.mxu0 %v3003_v35  ;;  %v3220_v47 = vld [vmem:[%s16881_s3 + $0x4148] sm:$0xff]  ;;  %v2939_v35 = vld [vmem:[%s16881_s3 + $0x3880] sm:$0xff] }
 0x328   :  { %5358 = vmatpush2.msra.mxu1 %v2834_v22  ;;  %5381 = vmatpush1.msra.mxu0 %v3002_v62  ;;  %v3219_v22 = vld [vmem:[%s16881_s3 + $0x4140] sm:$0xff]  ;;  %v2933_v62 = vld [vmem:[%s16881_s3 + $0x3850] sm:$0xff] }
 0x329   :  { %5359 = vmatprep.subr.mxu1 %v2828_v63  ;;  %5382 = vmatprep.subr.mxu0 %v2996_v27  ;;  %v3213_v63 = vld [vmem:[%s16881_s3 + $0x4110] sm:$0xff]  ;;  %v2932_v27 = vld [vmem:[%s16881_s3 + $0x3848] sm:$0xff] }
 0x32a   :  { %5360 = vmatpush2.msra.mxu1 %v2827_v14  ;;  %5383 = vmatpush1.msra.mxu0 %v2995_v36  ;;  %v3212_v14 = vld [vmem:[%s16881_s3 + $0x4108] sm:$0xff]  ;;  %v2926_v36 = vld [vmem:[%s16881_s3 + $0x3818] sm:$0xff] }
 0x32b   :  { %5361 = vmatprep.subr.mxu1 %v2821_v21  ;;  %5384 = vmatprep.subr.mxu0 %v2989_v28  ;;  %v3206_v21 = vld [vmem:[%s16881_s3 + $0x40d8] sm:$0xff]  ;;  %v2925_v28 = vld [vmem:[%s16881_s3 + $0x3810] sm:$0xff] }
 0x32c   :  { %5362 = vmatpush2.msra.mxu1 %v2820_v33  ;;  %5385 = vmatpush1.msra.mxu0 %v2988_v51  ;;  %v3205_v33 = vld [vmem:[%s16881_s3 + $0x40d0] sm:$0xff]  ;;  %v3143_v51 = vld [vmem:[%s16881_s3 + $0x3ee0] sm:$0xff] }
 0x32d   :  { %5363 = vmatprep.subr.mxu1 %v2814_v18  ;;  %5386 = vmatprep.subr.mxu0 %v2982_v15  ;;  %v3199_v18 = vld [vmem:[%s16881_s3 + $0x40a0] sm:$0xff]  ;;  %v3142_v15 = vld [vmem:[%s16881_s3 + $0x3ed8] sm:$0xff] }
 0x32e   :  { %5364 = vmatpush2.msra.mxu1 %v2813_v60  ;;  %5387 = vmatpush1.msra.mxu0 %v2981_v38  ;;  %v3198_v60 = vld [vmem:[%s16881_s3 + $0x4098] sm:$0xff]  ;;  %v3136_v38 = vld [vmem:[%s16881_s3 + $0x3ea8] sm:$0xff] }
 0x32f   :  { %5366 = vmatmul.mubr.f32.vlgmr.msra.gmra.mxu1 %v10001_v52  ;;  %5388 = vmatprep.subr.mxu0 %v2975_v24  ;;  %v3192_v24 = vld [vmem:[%s16881_s3 + $0x4068] sm:$0xff] }
 0x330   :  { %5443 = vmatprep.subr.mxu1 %v3255_v25  ;;  %5389 = vmatpush1.msra.mxu0 %v2974_v43  ;;  %v3135_v25 = vld [vmem:[%s16881_s3 + $0x3ea0] sm:$0xff] }
 0x331   :  { %5444 = vmatpush1.msra.mxu1 %v3254_v44  ;;  %5507 = vmatprep.mubr.f32.mxu1 %v10022_v40  ;;  %v3191_v43 = vld [vmem:[%s16881_s3 + $0x4060] sm:$0xff]  ;;  %v3129_v44 = vld [vmem:[%s16881_s3 + $0x3e70] sm:$0xff] }
 0x332   :  { %5390 = vmatprep.subr.mxu0 %v2968_v49  ;;  %5445 = vmatprep.subr.mxu1 %v3248_v56  ;;  %v3185_v49 = vld [vmem:[%s16881_s3 + $0x4030] sm:$0xff]  ;;  %v3128_v56 = vld [vmem:[%s16881_s3 + $0x3e68] sm:$0xff] }
 0x333   :  { %5391 = vmatpush1.msra.mxu0 %v2967_v4  ;;  %5446 = vmatpush1.msra.mxu1 %v3247_v5  ;;  %v3184_v4 = vld [vmem:[%s16881_s3 + $0x4028] sm:$0xff]  ;;  %v3122_v5 = vld [vmem:[%s16881_s3 + $0x3e38] sm:$0xff] }
 0x334   :  { %5392 = vmatprep.subr.mxu0 %v2961_v30  ;;  %5447 = vmatprep.subr.mxu1 %v3241_v61  ;;  %v3178_v30 = vld [vmem:[%s16881_s3 + $0x3ff8] sm:$0xff]  ;;  %v3121_v61 = vld [vmem:[%s16881_s3 + $0x3e30] sm:$0xff] }
 0x335   :  { %5393 = vmatpush1.msra.mxu0 %v2960_v32  ;;  %5448 = vmatpush1.msra.mxu1 %v3240_v7  ;;  %v3177_v32 = vld [vmem:[%s16881_s3 + $0x3ff0] sm:$0xff]  ;;  %v3115_v7 = vld [vmem:[%s16881_s3 + $0x3e00] sm:$0xff] }
 0x336   :  { %5394 = vmatprep.subr.mxu0 %v2954_v48  ;;  %5449 = vmatprep.subr.mxu1 %v3234_v13  ;;  %v3171_v48 = vld [vmem:[%s16881_s3 + $0x3fc0] sm:$0xff]  ;;  %v3114_v13 = vld [vmem:[%s16881_s3 + $0x3df8] sm:$0xff] }
 0x337   :  { %5395 = vmatpush1.msra.mxu0 %v2953_v8  ;;  %5450 = vmatpush1.msra.mxu1 %v3233_v29  ;;  %v3170_v8 = vld [vmem:[%s16881_s3 + $0x3fb8] sm:$0xff]  ;;  %v3108_v29 = vld [vmem:[%s16881_s3 + $0x3dc8] sm:$0xff] }
 0x338   :  { %5396 = vmatprep.subr.mxu0 %v2947_v9  ;;  %5451 = vmatprep.subr.mxu1 %v3227_v10  ;;  %v3164_v9 = vld [vmem:[%s16881_s3 + $0x3f88] sm:$0xff]  ;;  %v3107_v10 = vld [vmem:[%s16881_s3 + $0x3dc0] sm:$0xff] }
 0x339   :  { %5397 = vmatpush1.msra.mxu0 %v2946_v2  ;;  %5452 = vmatpush1.msra.mxu1 %v3226_v17  ;;  %v3163_v2 = vld [vmem:[%s16881_s3 + $0x3f80] sm:$0xff]  ;;  %v3101_v17 = vld [vmem:[%s16881_s3 + $0x3d90] sm:$0xff] }
 0x33a   :  { %5398 = vmatprep.subr.mxu0 %v2940_v46  ;;  %5453 = vmatprep.subr.mxu1 %v3220_v47  ;;  %v3157_v46 = vld [vmem:[%s16881_s3 + $0x3f50] sm:$0xff]  ;;  %v3100_v47 = vld [vmem:[%s16881_s3 + $0x3d88] sm:$0xff] }
 0x33b   :  { %5399 = vmatpush1.msra.mxu0 %v2939_v35  ;;  %5454 = vmatpush1.msra.mxu1 %v3219_v22  ;;  %v3156_v35 = vld [vmem:[%s16881_s3 + $0x3f48] sm:$0xff]  ;;  %v3094_v22 = vld [vmem:[%s16881_s3 + $0x3d58] sm:$0xff] }
 0x33c   :  { %5400 = vmatprep.subr.mxu0 %v2933_v62  ;;  %5455 = vmatprep.subr.mxu1 %v3213_v63  ;;  %v3150_v62 = vld [vmem:[%s16881_s3 + $0x3f18] sm:$0xff]  ;;  %v3093_v63 = vld [vmem:[%s16881_s3 + $0x3d50] sm:$0xff] }
 0x33d   :  { %5401 = vmatpush1.msra.mxu0 %v2932_v27  ;;  %5456 = vmatpush1.msra.mxu1 %v3212_v14  ;;  %v3149_v27 = vld [vmem:[%s16881_s3 + $0x3f10] sm:$0xff]  ;;  %v3087_v14 = vld [vmem:[%s16881_s3 + $0x3d20] sm:$0xff] }
 0x33e   :  { %5402 = vmatprep.subr.mxu0 %v2926_v36  ;;  %5457 = vmatprep.subr.mxu1 %v3206_v21  ;;  %v3367_v36 = vld [vmem:[%s16881_s3 + $0x45e0] sm:$0xff]  ;;  %v3086_v21 = vld [vmem:[%s16881_s3 + $0x3d18] sm:$0xff] }
 0x33f   :  { %5403 = vmatpush1.msra.mxu0 %v2925_v28  ;;  %5458 = vmatpush1.msra.mxu1 %v3205_v33  ;;  %v3366_v28 = vld [vmem:[%s16881_s3 + $0x45d8] sm:$0xff]  ;;  %v3080_v33 = vld [vmem:[%s16881_s3 + $0x3ce8] sm:$0xff] }
 0x340   :  { %5404 = vmatprep.subr.mxu0 %v3143_v51  ;;  %5459 = vmatprep.subr.mxu1 %v3199_v18  ;;  %v3360_v51 = vld [vmem:[%s16881_s3 + $0x45a8] sm:$0xff]  ;;  %v3079_v18 = vld [vmem:[%s16881_s3 + $0x3ce0] sm:$0xff] }
 0x341   :  { %5405 = vmatpush2.msra.mxu0 %v3142_v15  ;;  %5460 = vmatpush1.msra.mxu1 %v3198_v60  ;;  %v3359_v15 = vld [vmem:[%s16881_s3 + $0x45a0] sm:$0xff]  ;;  %v3073_v60 = vld [vmem:[%s16881_s3 + $0x3cb0] sm:$0xff] }
 0x342   :  { %5406 = vmatprep.subr.mxu0 %v3136_v38  ;;  %5461 = vmatprep.subr.mxu1 %v3192_v24  ;;  %v3353_v38 = vld [vmem:[%s16881_s3 + $0x4570] sm:$0xff]  ;;  %v3072_v24 = vld [vmem:[%s16881_s3 + $0x3ca8] sm:$0xff] }
 0x343   :  { %5407 = vmatpush2.msra.mxu0 %v3135_v25  ;;  %5462 = vmatpush1.msra.mxu1 %v3191_v43  ;;  %v3352_v25 = vld [vmem:[%s16881_s3 + $0x4568] sm:$0xff]  ;;  %v3066_v43 = vld [vmem:[%s16881_s3 + $0x3c78] sm:$0xff] }
 0x344   :  { %5408 = vmatprep.subr.mxu0 %v3129_v44  ;;  %5463 = vmatprep.subr.mxu1 %v3185_v49  ;;  %v3346_v44 = vld [vmem:[%s16881_s3 + $0x4538] sm:$0xff]  ;;  %v3065_v49 = vld [vmem:[%s16881_s3 + $0x3c70] sm:$0xff] }
 0x345   :  { %5409 = vmatpush2.msra.mxu0 %v3128_v56  ;;  %5464 = vmatpush1.msra.mxu1 %v3184_v4  ;;  %v3345_v56 = vld [vmem:[%s16881_s3 + $0x4530] sm:$0xff]  ;;  %v3059_v4 = vld [vmem:[%s16881_s3 + $0x3c40] sm:$0xff] }
 0x346   :  { %5410 = vmatprep.subr.mxu0 %v3122_v5  ;;  %5465 = vmatprep.subr.mxu1 %v3178_v30  ;;  %v3339_v5 = vld [vmem:[%s16881_s3 + $0x4500] sm:$0xff]  ;;  %v3058_v30 = vld [vmem:[%s16881_s3 + $0x3c38] sm:$0xff] }
 0x347   :  { %5411 = vmatpush2.msra.mxu0 %v3121_v61  ;;  %5466 = vmatpush1.msra.mxu1 %v3177_v32  ;;  %v3338_v61 = vld [vmem:[%s16881_s3 + $0x44f8] sm:$0xff]  ;;  %v3052_v32 = vld [vmem:[%s16881_s3 + $0x3c08] sm:$0xff] }
 0x348   :  { %5412 = vmatprep.subr.mxu0 %v3115_v7  ;;  %5467 = vmatprep.subr.mxu1 %v3171_v48  ;;  %v3332_v7 = vld [vmem:[%s16881_s3 + $0x44c8] sm:$0xff]  ;;  %v3051_v48 = vld [vmem:[%s16881_s3 + $0x3c00] sm:$0xff] }
 0x349   :  { %5413 = vmatpush2.msra.mxu0 %v3114_v13  ;;  %5468 = vmatpush1.msra.mxu1 %v3170_v8  ;;  %v3331_v13 = vld [vmem:[%s16881_s3 + $0x44c0] sm:$0xff]  ;;  %v3045_v8 = vld [vmem:[%s16881_s3 + $0x3bd0] sm:$0xff] }
 0x34a   :  { %5414 = vmatprep.subr.mxu0 %v3108_v29  ;;  %5469 = vmatprep.subr.mxu1 %v3164_v9  ;;  %v3325_v29 = vld [vmem:[%s16881_s3 + $0x4490] sm:$0xff]  ;;  %v3044_v9 = vld [vmem:[%s16881_s3 + $0x3bc8] sm:$0xff] }
 0x34b   :  { %5415 = vmatpush2.msra.mxu0 %v3107_v10  ;;  %5470 = vmatpush1.msra.mxu1 %v3163_v2  ;;  %v3324_v10 = vld [vmem:[%s16881_s3 + $0x4488] sm:$0xff]  ;;  %v3038_v2 = vld [vmem:[%s16881_s3 + $0x3b98] sm:$0xff] }
 0x34c   :  { %5416 = vmatprep.subr.mxu0 %v3101_v17  ;;  %5471 = vmatprep.subr.mxu1 %v3157_v46  ;;  %v3318_v17 = vld [vmem:[%s16881_s3 + $0x4458] sm:$0xff]  ;;  %v3037_v46 = vld [vmem:[%s16881_s3 + $0x3b90] sm:$0xff] }
 0x34d   :  { %5417 = vmatpush2.msra.mxu0 %v3100_v47  ;;  %5472 = vmatpush1.msra.mxu1 %v3156_v35  ;;  %v3317_v47 = vld [vmem:[%s16881_s3 + $0x4450] sm:$0xff]  ;;  %v3311_v35 = vld [vmem:[%s16881_s3 + $0x4420] sm:$0xff] }
 0x34e   :  { %5418 = vmatprep.subr.mxu0 %v3094_v22  ;;  %5473 = vmatprep.subr.mxu1 %v3150_v62  ;;  %v3479_v22 = vld [vmem:[%s16881_s3 + $0x4960] sm:$0xff]  ;;  %v3310_v62 = vld [vmem:[%s16881_s3 + $0x4418] sm:$0xff] }
 0x34f   :  { %5419 = vmatpush2.msra.mxu0 %v3093_v63  ;;  %5474 = vmatpush1.msra.mxu1 %v3149_v27  ;;  %v3478_v63 = vld [vmem:[%s16881_s3 + $0x4958] sm:$0xff]  ;;  %v3304_v27 = vld [vmem:[%s16881_s3 + $0x43e8] sm:$0xff] }
 0x350   :  { %5420 = vmatprep.subr.mxu0 %v3087_v14  ;;  %5475 = vmatprep.subr.mxu1 %v3367_v36  ;;  %v3472_v14 = vld [vmem:[%s16881_s3 + $0x4928] sm:$0xff]  ;;  %v3303_v36 = vld [vmem:[%s16881_s3 + $0x43e0] sm:$0xff] }
 0x351   :  { %5421 = vmatpush2.msra.mxu0 %v3086_v21  ;;  %5476 = vmatpush2.msra.mxu1 %v3366_v28  ;;  %v3471_v21 = vld [vmem:[%s16881_s3 + $0x4920] sm:$0xff]  ;;  %v3297_v28 = vld [vmem:[%s16881_s3 + $0x43b0] sm:$0xff] }
 0x352   :  { %5422 = vmatprep.subr.mxu0 %v3080_v33  ;;  %5477 = vmatprep.subr.mxu1 %v3360_v51  ;;  %v3465_v33 = vld [vmem:[%s16881_s3 + $0x48f0] sm:$0xff]  ;;  %v3296_v51 = vld [vmem:[%s16881_s3 + $0x43a8] sm:$0xff] }
 0x353   :  { %5423 = vmatpush2.msra.mxu0 %v3079_v18  ;;  %5478 = vmatpush2.msra.mxu1 %v3359_v15  ;;  %v3464_v18 = vld [vmem:[%s16881_s3 + $0x48e8] sm:$0xff]  ;;  %v3290_v15 = vld [vmem:[%s16881_s3 + $0x4378] sm:$0xff] }
 0x354   :  { %5424 = vmatprep.subr.mxu0 %v3073_v60  ;;  %5479 = vmatprep.subr.mxu1 %v3353_v38  ;;  %v3458_v60 = vld [vmem:[%s16881_s3 + $0x48b8] sm:$0xff]  ;;  %v3289_v38 = vld [vmem:[%s16881_s3 + $0x4370] sm:$0xff] }
 0x355   :  { %5425 = vmatpush2.msra.mxu0 %v3072_v24  ;;  %5480 = vmatpush2.msra.mxu1 %v3352_v25  ;;  %v3457_v24 = vld [vmem:[%s16881_s3 + $0x48b0] sm:$0xff]  ;;  %v3283_v25 = vld [vmem:[%s16881_s3 + $0x4340] sm:$0xff] }
 0x356   :  { %5426 = vmatprep.subr.mxu0 %v3066_v43  ;;  %5481 = vmatprep.subr.mxu1 %v3346_v44  ;;  %v3451_v43 = vld [vmem:[%s16881_s3 + $0x4880] sm:$0xff]  ;;  %v3282_v44 = vld [vmem:[%s16881_s3 + $0x4338] sm:$0xff] }
 0x357   :  { %5427 = vmatpush2.msra.mxu0 %v3065_v49  ;;  %5482 = vmatpush2.msra.mxu1 %v3345_v56  ;;  %v3450_v49 = vld [vmem:[%s16881_s3 + $0x4878] sm:$0xff]  ;;  %v3276_v56 = vld [vmem:[%s16881_s3 + $0x4308] sm:$0xff] }
 0x358   :  { %5428 = vmatprep.subr.mxu0 %v3059_v4  ;;  %5483 = vmatprep.subr.mxu1 %v3339_v5  ;;  %v3444_v4 = vld [vmem:[%s16881_s3 + $0x4848] sm:$0xff]  ;;  %v3275_v5 = vld [vmem:[%s16881_s3 + $0x4300] sm:$0xff] }
 0x359   :  { %5429 = vmatpush2.msra.mxu0 %v3058_v30  ;;  %5484 = vmatpush2.msra.mxu1 %v3338_v61  ;;  %v3443_v30 = vld [vmem:[%s16881_s3 + $0x4840] sm:$0xff]  ;;  %v3269_v61 = vld [vmem:[%s16881_s3 + $0x42d0] sm:$0xff] }
 0x35a   :  { %5430 = vmatprep.subr.mxu0 %v3052_v32  ;;  %5485 = vmatprep.subr.mxu1 %v3332_v7  ;;  %v3437_v32 = vld [vmem:[%s16881_s3 + $0x4810] sm:$0xff]  ;;  %v3268_v7 = vld [vmem:[%s16881_s3 + $0x42c8] sm:$0xff] }
 0x35b   :  { %5431 = vmatpush2.msra.mxu0 %v3051_v48  ;;  %5486 = vmatpush2.msra.mxu1 %v3331_v13  ;;  %v3436_v48 = vld [vmem:[%s16881_s3 + $0x4808] sm:$0xff]  ;;  %v3262_v13 = vld [vmem:[%s16881_s3 + $0x4298] sm:$0xff] }
 0x35c   :  { %5432 = vmatprep.subr.mxu0 %v3045_v8  ;;  %5487 = vmatprep.subr.mxu1 %v3325_v29  ;;  %v3430_v8 = vld [vmem:[%s16881_s3 + $0x47d8] sm:$0xff]  ;;  %v3261_v29 = vld [vmem:[%s16881_s3 + $0x4290] sm:$0xff] }
 0x35d   :  { %5433 = vmatpush2.msra.mxu0 %v3044_v9  ;;  %5488 = vmatpush2.msra.mxu1 %v3324_v10  ;;  %v3429_v9 = vld [vmem:[%s16881_s3 + $0x47d0] sm:$0xff]  ;;  %v3423_v10 = vld [vmem:[%s16881_s3 + $0x47a0] sm:$0xff] }
 0x35e   :  { %5434 = vmatprep.subr.mxu0 %v3038_v2  ;;  %5489 = vmatprep.subr.mxu1 %v3318_v17  ;;  %v3703_v2 = vld [vmem:[%s16881_s3 + $0x5060] sm:$0xff]  ;;  %v3422_v17 = vld [vmem:[%s16881_s3 + $0x4798] sm:$0xff] }
 0x35f   :  { %5435 = vmatpush2.msra.mxu0 %v3037_v46  ;;  %5490 = vmatpush2.msra.mxu1 %v3317_v47  ;;  %v3702_v46 = vld [vmem:[%s16881_s3 + $0x5058] sm:$0xff]  ;;  %v3416_v47 = vld [vmem:[%s16881_s3 + $0x4768] sm:$0xff] }
 0x360   :  { %5437 = vmatmul.mubr.f32.vlgmr.msra.gmra.mxu0 %v10404_v16  ;;  %5491 = vmatprep.subr.mxu1 %v3311_v35  ;;  %v3696_v35 = vld [vmem:[%s16881_s3 + $0x5028] sm:$0xff] }
 0x361   :  { %5514 = vmatprep.subr.mxu0 %v3479_v22  ;;  %5492 = vmatpush2.msra.mxu1 %v3310_v62  ;;  %v3415_v22 = vld [vmem:[%s16881_s3 + $0x4760] sm:$0xff] }
 0x362   :  { %5515 = vmatpush1.msra.mxu0 %v3478_v63  ;;  %5578 = vmatprep.mubr.f32.mxu0 %v10416_v19  ;;  %v3695_v62 = vld [vmem:[%s16881_s3 + $0x5020] sm:$0xff]  ;;  %v3409_v63 = vld [vmem:[%s16881_s3 + $0x4730] sm:$0xff] }
 0x363   :  { %5493 = vmatprep.subr.mxu1 %v3304_v27  ;;  %5516 = vmatprep.subr.mxu0 %v3472_v14  ;;  %v3689_v27 = vld [vmem:[%s16881_s3 + $0x4ff0] sm:$0xff]  ;;  %v3408_v14 = vld [vmem:[%s16881_s3 + $0x4728] sm:$0xff] }
 0x364   :  { %5494 = vmatpush2.msra.mxu1 %v3303_v36  ;;  %5517 = vmatpush1.msra.mxu0 %v3471_v21  ;;  %v3688_v36 = vld [vmem:[%s16881_s3 + $0x4fe8] sm:$0xff]  ;;  %v3402_v21 = vld [vmem:[%s16881_s3 + $0x46f8] sm:$0xff] }
 0x365   :  { %5495 = vmatprep.subr.mxu1 %v3297_v28  ;;  %5518 = vmatprep.subr.mxu0 %v3465_v33  ;;  %v3682_v28 = vld [vmem:[%s16881_s3 + $0x4fb8] sm:$0xff]  ;;  %v3401_v33 = vld [vmem:[%s16881_s3 + $0x46f0] sm:$0xff] }
 0x366   :  { %5496 = vmatpush2.msra.mxu1 %v3296_v51  ;;  %5519 = vmatpush1.msra.mxu0 %v3464_v18  ;;  %v3681_v51 = vld [vmem:[%s16881_s3 + $0x4fb0] sm:$0xff]  ;;  %v3395_v18 = vld [vmem:[%s16881_s3 + $0x46c0] sm:$0xff] }
 0x367   :  { %5497 = vmatprep.subr.mxu1 %v3290_v15  ;;  %5520 = vmatprep.subr.mxu0 %v3458_v60  ;;  %v3675_v15 = vld [vmem:[%s16881_s3 + $0x4f80] sm:$0xff]  ;;  %v3394_v60 = vld [vmem:[%s16881_s3 + $0x46b8] sm:$0xff] }
 0x368   :  { %5498 = vmatpush2.msra.mxu1 %v3289_v38  ;;  %5521 = vmatpush1.msra.mxu0 %v3457_v24  ;;  %v3674_v38 = vld [vmem:[%s16881_s3 + $0x4f78] sm:$0xff]  ;;  %v3388_v24 = vld [vmem:[%s16881_s3 + $0x4688] sm:$0xff] }
 0x369   :  { %5499 = vmatprep.subr.mxu1 %v3283_v25  ;;  %5522 = vmatprep.subr.mxu0 %v3451_v43  ;;  %v3668_v25 = vld [vmem:[%s16881_s3 + $0x4f48] sm:$0xff]  ;;  %v3387_v43 = vld [vmem:[%s16881_s3 + $0x4680] sm:$0xff] }
 0x36a   :  { %5500 = vmatpush2.msra.mxu1 %v3282_v44  ;;  %5523 = vmatpush1.msra.mxu0 %v3450_v49  ;;  %v3667_v44 = vld [vmem:[%s16881_s3 + $0x4f40] sm:$0xff]  ;;  %v3381_v49 = vld [vmem:[%s16881_s3 + $0x4650] sm:$0xff] }
 0x36b   :  { %5501 = vmatprep.subr.mxu1 %v3276_v56  ;;  %5524 = vmatprep.subr.mxu0 %v3444_v4  ;;  %v3661_v56 = vld [vmem:[%s16881_s3 + $0x4f10] sm:$0xff]  ;;  %v3380_v4 = vld [vmem:[%s16881_s3 + $0x4648] sm:$0xff] }
 0x36c   :  { %5502 = vmatpush2.msra.mxu1 %v3275_v5  ;;  %5525 = vmatpush1.msra.mxu0 %v3443_v30  ;;  %v3660_v5 = vld [vmem:[%s16881_s3 + $0x4f08] sm:$0xff]  ;;  %v3374_v30 = vld [vmem:[%s16881_s3 + $0x4618] sm:$0xff] }
 0x36d   :  { %5503 = vmatprep.subr.mxu1 %v3269_v61  ;;  %5526 = vmatprep.subr.mxu0 %v3437_v32  ;;  %v3654_v61 = vld [vmem:[%s16881_s3 + $0x4ed8] sm:$0xff]  ;;  %v3373_v32 = vld [vmem:[%s16881_s3 + $0x4610] sm:$0xff] }
 0x36e   :  { %5504 = vmatpush2.msra.mxu1 %v3268_v7  ;;  %5527 = vmatpush1.msra.mxu0 %v3436_v48  ;;  %v3653_v7 = vld [vmem:[%s16881_s3 + $0x4ed0] sm:$0xff]  ;;  %v3591_v48 = vld [vmem:[%s16881_s3 + $0x4ce0] sm:$0xff] }
 0x36f   :  { %5505 = vmatprep.subr.mxu1 %v3262_v13  ;;  %5528 = vmatprep.subr.mxu0 %v3430_v8  ;;  %v3647_v13 = vld [vmem:[%s16881_s3 + $0x4ea0] sm:$0xff]  ;;  %v3590_v8 = vld [vmem:[%s16881_s3 + $0x4cd8] sm:$0xff] }
 0x370   :  { %5506 = vmatpush2.msra.mxu1 %v3261_v29  ;;  %5529 = vmatpush1.msra.mxu0 %v3429_v9  ;;  %v3646_v29 = vld [vmem:[%s16881_s3 + $0x4e98] sm:$0xff]  ;;  %v3584_v9 = vld [vmem:[%s16881_s3 + $0x4ca8] sm:$0xff] }
 0x371   :  { %5508 = vmatmul.mubr.f32.vlgmr.msra.gmra.mxu1 %v10401_v12  ;;  %5530 = vmatprep.subr.mxu0 %v3423_v10  ;;  %v3640_v10 = vld [vmem:[%s16881_s3 + $0x4e68] sm:$0xff] }
 0x372   :  { %5585 = vmatprep.subr.mxu1 %v3703_v2  ;;  %5531 = vmatpush1.msra.mxu0 %v3422_v17  ;;  %v3583_v2 = vld [vmem:[%s16881_s3 + $0x4ca0] sm:$0xff] }
 0x373   :  { %5586 = vmatpush1.msra.mxu1 %v3702_v46  ;;  %5649 = vmatprep.mubr.f32.mxu1 %v10423_v58  ;;  %v3639_v17 = vld [vmem:[%s16881_s3 + $0x4e60] sm:$0xff]  ;;  %v3577_v46 = vld [vmem:[%s16881_s3 + $0x4c70] sm:$0xff] }
 0x374   :  { %5532 = vmatprep.subr.mxu0 %v3416_v47  ;;  %5587 = vmatprep.subr.mxu1 %v3696_v35  ;;  %v3633_v47 = vld [vmem:[%s16881_s3 + $0x4e30] sm:$0xff]  ;;  %v3576_v35 = vld [vmem:[%s16881_s3 + $0x4c68] sm:$0xff] }
 0x375   :  { %5533 = vmatpush1.msra.mxu0 %v3415_v22  ;;  %5588 = vmatpush1.msra.mxu1 %v3695_v62  ;;  %v3632_v22 = vld [vmem:[%s16881_s3 + $0x4e28] sm:$0xff]  ;;  %v3570_v62 = vld [vmem:[%s16881_s3 + $0x4c38] sm:$0xff] }
 0x376   :  { %5534 = vmatprep.subr.mxu0 %v3409_v63  ;;  %5589 = vmatprep.subr.mxu1 %v3689_v27  ;;  %v3626_v63 = vld [vmem:[%s16881_s3 + $0x4df8] sm:$0xff]  ;;  %v3569_v27 = vld [vmem:[%s16881_s3 + $0x4c30] sm:$0xff] }
 0x377   :  { %5535 = vmatpush1.msra.mxu0 %v3408_v14  ;;  %5590 = vmatpush1.msra.mxu1 %v3688_v36  ;;  %v3625_v14 = vld [vmem:[%s16881_s3 + $0x4df0] sm:$0xff]  ;;  %v3563_v36 = vld [vmem:[%s16881_s3 + $0x4c00] sm:$0xff] }
 0x378   :  { %5536 = vmatprep.subr.mxu0 %v3402_v21  ;;  %5591 = vmatprep.subr.mxu1 %v3682_v28  ;;  %v3619_v21 = vld [vmem:[%s16881_s3 + $0x4dc0] sm:$0xff]  ;;  %v3562_v28 = vld [vmem:[%s16881_s3 + $0x4bf8] sm:$0xff] }
 0x379   :  { %5537 = vmatpush1.msra.mxu0 %v3401_v33  ;;  %5592 = vmatpush1.msra.mxu1 %v3681_v51  ;;  %v3618_v33 = vld [vmem:[%s16881_s3 + $0x4db8] sm:$0xff]  ;;  %v3556_v51 = vld [vmem:[%s16881_s3 + $0x4bc8] sm:$0xff] }
 0x37a   :  { %5538 = vmatprep.subr.mxu0 %v3395_v18  ;;  %5593 = vmatprep.subr.mxu1 %v3675_v15  ;;  %v3612_v18 = vld [vmem:[%s16881_s3 + $0x4d88] sm:$0xff]  ;;  %v3555_v15 = vld [vmem:[%s16881_s3 + $0x4bc0] sm:$0xff] }
 0x37b   :  { %5539 = vmatpush1.msra.mxu0 %v3394_v60  ;;  %5594 = vmatpush1.msra.mxu1 %v3674_v38  ;;  %v3611_v60 = vld [vmem:[%s16881_s3 + $0x4d80] sm:$0xff]  ;;  %v3549_v38 = vld [vmem:[%s16881_s3 + $0x4b90] sm:$0xff] }
 0x37c   :  { %5540 = vmatprep.subr.mxu0 %v3388_v24  ;;  %5595 = vmatprep.subr.mxu1 %v3668_v25  ;;  %v3605_v24 = vld [vmem:[%s16881_s3 + $0x4d50] sm:$0xff]  ;;  %v3548_v25 = vld [vmem:[%s16881_s3 + $0x4b88] sm:$0xff] }
 0x37d   :  { %5541 = vmatpush1.msra.mxu0 %v3387_v43  ;;  %5596 = vmatpush1.msra.mxu1 %v3667_v44  ;;  %v3604_v43 = vld [vmem:[%s16881_s3 + $0x4d48] sm:$0xff]  ;;  %v3542_v44 = vld [vmem:[%s16881_s3 + $0x4b58] sm:$0xff] }
 0x37e   :  { %5542 = vmatprep.subr.mxu0 %v3381_v49  ;;  %5597 = vmatprep.subr.mxu1 %v3661_v56  ;;  %v3598_v49 = vld [vmem:[%s16881_s3 + $0x4d18] sm:$0xff]  ;;  %v3541_v56 = vld [vmem:[%s16881_s3 + $0x4b50] sm:$0xff] }
 0x37f   :  { %5543 = vmatpush1.msra.mxu0 %v3380_v4  ;;  %5598 = vmatpush1.msra.mxu1 %v3660_v5  ;;  %v3597_v4 = vld [vmem:[%s16881_s3 + $0x4d10] sm:$0xff]  ;;  %v3535_v5 = vld [vmem:[%s16881_s3 + $0x4b20] sm:$0xff] }
 0x380   :  { %5544 = vmatprep.subr.mxu0 %v3374_v30  ;;  %5599 = vmatprep.subr.mxu1 %v3654_v61  ;;  %v3815_v30 = vld [vmem:[%s16881_s3 + $0x53e0] sm:$0xff]  ;;  %v3534_v61 = vld [vmem:[%s16881_s3 + $0x4b18] sm:$0xff] }
 0x381   :  { %5545 = vmatpush1.msra.mxu0 %v3373_v32  ;;  %5600 = vmatpush1.msra.mxu1 %v3653_v7  ;;  %v3814_v32 = vld [vmem:[%s16881_s3 + $0x53d8] sm:$0xff]  ;;  %v3528_v7 = vld [vmem:[%s16881_s3 + $0x4ae8] sm:$0xff] }
 0x382   :  { %5546 = vmatprep.subr.mxu0 %v3591_v48  ;;  %5601 = vmatprep.subr.mxu1 %v3647_v13  ;;  %v3808_v48 = vld [vmem:[%s16881_s3 + $0x53a8] sm:$0xff]  ;;  %v3527_v13 = vld [vmem:[%s16881_s3 + $0x4ae0] sm:$0xff] }
 0x383   :  { %5547 = vmatpush2.msra.mxu0 %v3590_v8  ;;  %5602 = vmatpush1.msra.mxu1 %v3646_v29  ;;  %v3807_v8 = vld [vmem:[%s16881_s3 + $0x53a0] sm:$0xff]  ;;  %v3521_v29 = vld [vmem:[%s16881_s3 + $0x4ab0] sm:$0xff] }
 0x384   :  { %5548 = vmatprep.subr.mxu0 %v3584_v9  ;;  %5603 = vmatprep.subr.mxu1 %v3640_v10  ;;  %v3801_v9 = vld [vmem:[%s16881_s3 + $0x5370] sm:$0xff]  ;;  %v3520_v10 = vld [vmem:[%s16881_s3 + $0x4aa8] sm:$0xff] }
 0x385   :  { %5549 = vmatpush2.msra.mxu0 %v3583_v2  ;;  %5604 = vmatpush1.msra.mxu1 %v3639_v17  ;;  %v3800_v2 = vld [vmem:[%s16881_s3 + $0x5368] sm:$0xff]  ;;  %v3514_v17 = vld [vmem:[%s16881_s3 + $0x4a78] sm:$0xff] }
 0x386   :  { %5550 = vmatprep.subr.mxu0 %v3577_v46  ;;  %5605 = vmatprep.subr.mxu1 %v3633_v47  ;;  %v3794_v46 = vld [vmem:[%s16881_s3 + $0x5338] sm:$0xff]  ;;  %v3513_v47 = vld [vmem:[%s16881_s3 + $0x4a70] sm:$0xff] }
 0x387   :  { %5551 = vmatpush2.msra.mxu0 %v3576_v35  ;;  %5606 = vmatpush1.msra.mxu1 %v3632_v22  ;;  %v3793_v35 = vld [vmem:[%s16881_s3 + $0x5330] sm:$0xff]  ;;  %v3507_v22 = vld [vmem:[%s16881_s3 + $0x4a40] sm:$0xff] }
 0x388   :  { %5552 = vmatprep.subr.mxu0 %v3570_v62  ;;  %5607 = vmatprep.subr.mxu1 %v3626_v63  ;;  %v3787_v62 = vld [vmem:[%s16881_s3 + $0x5300] sm:$0xff]  ;;  %v3506_v63 = vld [vmem:[%s16881_s3 + $0x4a38] sm:$0xff] }
 0x389   :  { %5553 = vmatpush2.msra.mxu0 %v3569_v27  ;;  %5608 = vmatpush1.msra.mxu1 %v3625_v14  ;;  %v3786_v27 = vld [vmem:[%s16881_s3 + $0x52f8] sm:$0xff]  ;;  %v3500_v14 = vld [vmem:[%s16881_s3 + $0x4a08] sm:$0xff] }
 0x38a   :  { %5554 = vmatprep.subr.mxu0 %v3563_v36  ;;  %5609 = vmatprep.subr.mxu1 %v3619_v21  ;;  %v3780_v36 = vld [vmem:[%s16881_s3 + $0x52c8] sm:$0xff]  ;;  %v3499_v21 = vld [vmem:[%s16881_s3 + $0x4a00] sm:$0xff] }
 0x38b   :  { %5555 = vmatpush2.msra.mxu0 %v3562_v28  ;;  %5610 = vmatpush1.msra.mxu1 %v3618_v33  ;;  %v3779_v28 = vld [vmem:[%s16881_s3 + $0x52c0] sm:$0xff]  ;;  %v3493_v33 = vld [vmem:[%s16881_s3 + $0x49d0] sm:$0xff] }
 0x38c   :  { %5556 = vmatprep.subr.mxu0 %v3556_v51  ;;  %5611 = vmatprep.subr.mxu1 %v3612_v18  ;;  %v3773_v51 = vld [vmem:[%s16881_s3 + $0x5290] sm:$0xff]  ;;  %v3492_v18 = vld [vmem:[%s16881_s3 + $0x49c8] sm:$0xff] }
 0x38d   :  { %5557 = vmatpush2.msra.mxu0 %v3555_v15  ;;  %5612 = vmatpush1.msra.mxu1 %v3611_v60  ;;  %v3772_v15 = vld [vmem:[%s16881_s3 + $0x5288] sm:$0xff]  ;;  %v3486_v60 = vld [vmem:[%s16881_s3 + $0x4998] sm:$0xff] }
 0x38e   :  { %5558 = vmatprep.subr.mxu0 %v3549_v38  ;;  %5613 = vmatprep.subr.mxu1 %v3605_v24  ;;  %v3766_v38 = vld [vmem:[%s16881_s3 + $0x5258] sm:$0xff]  ;;  %v3485_v24 = vld [vmem:[%s16881_s3 + $0x4990] sm:$0xff] }
 0x38f   :  { %5559 = vmatpush2.msra.mxu0 %v3548_v25  ;;  %5614 = vmatpush1.msra.mxu1 %v3604_v43  ;;  %v3765_v25 = vld [vmem:[%s16881_s3 + $0x5250] sm:$0xff]  ;;  %v3759_v43 = vld [vmem:[%s16881_s3 + $0x5220] sm:$0xff] }
 0x390   :  { %5560 = vmatprep.subr.mxu0 %v3542_v44  ;;  %5615 = vmatprep.subr.mxu1 %v3598_v49  ;;  %v3871_v44 = vld [vmem:[%s16881_s3 + $0x55a0] sm:$0xff]  ;;  %v3758_v49 = vld [vmem:[%s16881_s3 + $0x5218] sm:$0xff] }
 0x391   :  { %5561 = vmatpush2.msra.mxu0 %v3541_v56  ;;  %5616 = vmatpush1.msra.mxu1 %v3597_v4  ;;  %v3870_v56 = vld [vmem:[%s16881_s3 + $0x5598] sm:$0xff]  ;;  %v3752_v4 = vld [vmem:[%s16881_s3 + $0x51e8] sm:$0xff] }
 0x392   :  { %5562 = vmatprep.subr.mxu0 %v3535_v5  ;;  %5617 = vmatprep.subr.mxu1 %v3815_v30  ;;  %v3864_v5 = vld [vmem:[%s16881_s3 + $0x5568] sm:$0xff]  ;;  %v3751_v30 = vld [vmem:[%s16881_s3 + $0x51e0] sm:$0xff] }
 0x393   :  { %5563 = vmatpush2.msra.mxu0 %v3534_v61  ;;  %5618 = vmatpush2.msra.mxu1 %v3814_v32  ;;  %v3863_v61 = vld [vmem:[%s16881_s3 + $0x5560] sm:$0xff]  ;;  %v3745_v32 = vld [vmem:[%s16881_s3 + $0x51b0] sm:$0xff] }
 0x394   :  { %5564 = vmatprep.subr.mxu0 %v3528_v7  ;;  %5619 = vmatprep.subr.mxu1 %v3808_v48  ;;  %v3857_v7 = vld [vmem:[%s16881_s3 + $0x5530] sm:$0xff]  ;;  %v3744_v48 = vld [vmem:[%s16881_s3 + $0x51a8] sm:$0xff] }
 0x395   :  { %5565 = vmatpush2.msra.mxu0 %v3527_v13  ;;  %5620 = vmatpush2.msra.mxu1 %v3807_v8  ;;  %v3856_v13 = vld [vmem:[%s16881_s3 + $0x5528] sm:$0xff]  ;;  %v3738_v8 = vld [vmem:[%s16881_s3 + $0x5178] sm:$0xff] }
 0x396   :  { %5566 = vmatprep.subr.mxu0 %v3521_v29  ;;  %5621 = vmatprep.subr.mxu1 %v3801_v9  ;;  %v3850_v29 = vld [vmem:[%s16881_s3 + $0x54f8] sm:$0xff]  ;;  %v3737_v9 = vld [vmem:[%s16881_s3 + $0x5170] sm:$0xff] }
 0x397   :  { %5567 = vmatpush2.msra.mxu0 %v3520_v10  ;;  %5622 = vmatpush2.msra.mxu1 %v3800_v2  ;;  %v3849_v10 = vld [vmem:[%s16881_s3 + $0x54f0] sm:$0xff]  ;;  %v3731_v2 = vld [vmem:[%s16881_s3 + $0x5140] sm:$0xff] }
 0x398   :  { %5568 = vmatprep.subr.mxu0 %v3514_v17  ;;  %5623 = vmatprep.subr.mxu1 %v3794_v46  ;;  %v3843_v17 = vld [vmem:[%s16881_s3 + $0x54c0] sm:$0xff]  ;;  %v3730_v46 = vld [vmem:[%s16881_s3 + $0x5138] sm:$0xff] }
 0x399   :  { %5569 = vmatpush2.msra.mxu0 %v3513_v47  ;;  %5624 = vmatpush2.msra.mxu1 %v3793_v35  ;;  %v3842_v47 = vld [vmem:[%s16881_s3 + $0x54b8] sm:$0xff]  ;;  %v3724_v35 = vld [vmem:[%s16881_s3 + $0x5108] sm:$0xff] }
 0x39a   :  { %5570 = vmatprep.subr.mxu0 %v3507_v22  ;;  %5625 = vmatprep.subr.mxu1 %v3787_v62  ;;  %v3836_v22 = vld [vmem:[%s16881_s3 + $0x5488] sm:$0xff]  ;;  %v3723_v62 = vld [vmem:[%s16881_s3 + $0x5100] sm:$0xff] }
 0x39b   :  { %5571 = vmatpush2.msra.mxu0 %v3506_v63  ;;  %5626 = vmatpush2.msra.mxu1 %v3786_v27  ;;  %v3835_v63 = vld [vmem:[%s16881_s3 + $0x5480] sm:$0xff]  ;;  %v3717_v27 = vld [vmem:[%s16881_s3 + $0x50d0] sm:$0xff] }
 0x39c   :  { %5572 = vmatprep.subr.mxu0 %v3500_v14  ;;  %5627 = vmatprep.subr.mxu1 %v3780_v36  ;;  %v3829_v14 = vld [vmem:[%s16881_s3 + $0x5450] sm:$0xff]  ;;  %v3716_v36 = vld [vmem:[%s16881_s3 + $0x50c8] sm:$0xff] }
 0x39d   :  { %5573 = vmatpush2.msra.mxu0 %v3499_v21  ;;  %5628 = vmatpush2.msra.mxu1 %v3779_v28  ;;  %v3828_v21 = vld [vmem:[%s16881_s3 + $0x5448] sm:$0xff]  ;;  %v3710_v28 = vld [vmem:[%s16881_s3 + $0x5098] sm:$0xff] }
 0x39e   :  { %5574 = vmatprep.subr.mxu0 %v3493_v33  ;;  %5629 = vmatprep.subr.mxu1 %v3773_v51  ;;  %v3822_v33 = vld [vmem:[%s16881_s3 + $0x5418] sm:$0xff]  ;;  %v3709_v51 = vld [vmem:[%s16881_s3 + $0x5090] sm:$0xff] }
 0x39f   :  { %5575 = vmatpush2.msra.mxu0 %v3492_v18  ;;  %5630 = vmatpush2.msra.mxu1 %v3772_v15  ;;  %v3821_v18 = vld [vmem:[%s16881_s3 + $0x5410] sm:$0xff] }
 0x3a0   :  { %5576 = vmatprep.subr.mxu0 %v3486_v60  ;;  %5631 = vmatprep.subr.mxu1 %v3766_v38  ;;  %v1241_v15 = vld [vmem:[%s16881_s3 + $0x370] sm:$0xff]  ;;  %v1240_v38 = vld [vmem:[%s16881_s3 + $0x368] sm:$0xff] }
 0x3a1   :  { %5577 = vmatpush2.msra.mxu0 %v3485_v24  ;;  %5632 = vmatpush2.msra.mxu1 %v3765_v25  ;;  %v1465_v60 = vld [vmem:[%s16881_s3 + $0xa70] sm:$0xff]  ;;  %v1464_v24 = vld [vmem:[%s16881_s3 + $0xa68] sm:$0xff]  ;;  %v1234_v25 = vld [vmem:[%s16881_s3 + $0x338] sm:$0xff] }
 0x3a2   :  { %5579 = vmatmul.mubr.f32.vlgmr.msra.gmra.mxu0 %v10803_v31  ;;  %5633 = vmatprep.subr.mxu1 %v3759_v43  ;;  %v1458_v43 = vld [vmem:[%s16881_s3 + $0xa38] sm:$0xff] }
 0x3a3   :  { %5672 = vmatprep.subr.mxu0 %v3871_v44  ;;  %5634 = vmatpush2.msra.mxu1 %v3758_v49  ;;  %v1233_v44 = vld [vmem:[%s16881_s3 + $0x330] sm:$0xff] }
 0x3a4   :  { %5673 = vmatpush1.msra.mxu0 %v3870_v56  ;;  %5635 = vmatprep.subr.mxu1 %v3752_v4  ;;  %v1457_v49 = vld [vmem:[%s16881_s3 + $0xa30] sm:$0xff]  ;;  %v1227_v56 = vld [vmem:[%s16881_s3 + $0x300] sm:$0xff] }
 0x3a5   :  { %5674 = vmatprep.subr.mxu0 %v3864_v5  ;;  %5636 = vmatpush2.msra.mxu1 %v3751_v30  ;;  %v1451_v4 = vld [vmem:[%s16881_s3 + $0xa00] sm:$0xff]  ;;  %v1226_v5 = vld [vmem:[%s16881_s3 + $0x2f8] sm:$0xff] }
 0x3a6   :  { %5675 = vmatpush1.msra.mxu0 %v3863_v61  ;;  %5637 = vmatprep.subr.mxu1 %v3745_v32  ;;  %v1450_v30 = vld [vmem:[%s16881_s3 + $0x9f8] sm:$0xff]  ;;  %v1220_v61 = vld [vmem:[%s16881_s3 + $0x2c8] sm:$0xff] }
 0x3a7   :  { %5676 = vmatprep.subr.mxu0 %v3857_v7  ;;  %5638 = vmatpush2.msra.mxu1 %v3744_v48  ;;  %v1444_v32 = vld [vmem:[%s16881_s3 + $0x9c8] sm:$0xff]  ;;  %v1219_v7 = vld [vmem:[%s16881_s3 + $0x2c0] sm:$0xff] }
 0x3a8   :  { %5677 = vmatpush1.msra.mxu0 %v3856_v13  ;;  %5639 = vmatprep.subr.mxu1 %v3738_v8  ;;  %v1443_v48 = vld [vmem:[%s16881_s3 + $0x9c0] sm:$0xff]  ;;  %v1213_v13 = vld [vmem:[%s16881_s3 + $0x290] sm:$0xff] }
 0x3a9   :  { %5678 = vmatprep.subr.mxu0 %v3850_v29  ;;  %5640 = vmatpush2.msra.mxu1 %v3737_v9  ;;  %v1437_v8 = vld [vmem:[%s16881_s3 + $0x990] sm:$0xff]  ;;  %v1212_v29 = vld [vmem:[%s16881_s3 + $0x288] sm:$0xff] }
 0x3aa   :  { %5679 = vmatpush1.msra.mxu0 %v3849_v10  ;;  %5641 = vmatprep.subr.mxu1 %v3731_v2  ;;  %v1436_v9 = vld [vmem:[%s16881_s3 + $0x988] sm:$0xff]  ;;  %v1206_v10 = vld [vmem:[%s16881_s3 + $0x258] sm:$0xff] }
 0x3ab   :  { %5680 = vmatprep.subr.mxu0 %v3843_v17  ;;  %5642 = vmatpush2.msra.mxu1 %v3730_v46  ;;  %v1430_v2 = vld [vmem:[%s16881_s3 + $0x958] sm:$0xff]  ;;  %v1205_v17 = vld [vmem:[%s16881_s3 + $0x250] sm:$0xff] }
 0x3ac   :  { %5681 = vmatpush1.msra.mxu0 %v3842_v47  ;;  %5643 = vmatprep.subr.mxu1 %v3724_v35  ;;  %v1429_v46 = vld [vmem:[%s16881_s3 + $0x950] sm:$0xff]  ;;  %v1199_v47 = vld [vmem:[%s16881_s3 + $0x220] sm:$0xff] }
 0x3ad   :  { %5682 = vmatprep.subr.mxu0 %v3836_v22  ;;  %5644 = vmatpush2.msra.mxu1 %v3723_v62  ;;  %v1423_v35 = vld [vmem:[%s16881_s3 + $0x920] sm:$0xff]  ;;  %v1198_v22 = vld [vmem:[%s16881_s3 + $0x218] sm:$0xff] }
 0x3ae   :  { %5683 = vmatpush1.msra.mxu0 %v3835_v63  ;;  %5645 = vmatprep.subr.mxu1 %v3717_v27  ;;  %v1422_v62 = vld [vmem:[%s16881_s3 + $0x918] sm:$0xff]  ;;  %v1192_v63 = vld [vmem:[%s16881_s3 + $0x1e8] sm:$0xff] }
 0x3af   :  { %5684 = vmatprep.subr.mxu0 %v3829_v14  ;;  %5646 = vmatpush2.msra.mxu1 %v3716_v36  ;;  %v1416_v27 = vld [vmem:[%s16881_s3 + $0x8e8] sm:$0xff]  ;;  %v1191_v14 = vld [vmem:[%s16881_s3 + $0x1e0] sm:$0xff] }
 0x3b0   :  { %5685 = vmatpush1.msra.mxu0 %v3828_v21  ;;  %5647 = vmatprep.subr.mxu1 %v3710_v28  ;;  %v1415_v36 = vld [vmem:[%s16881_s3 + $0x8e0] sm:$0xff]  ;;  %v1185_v21 = vld [vmem:[%s16881_s3 + $0x1b0] sm:$0xff] }
 0x3b1   :  { %5686 = vmatprep.subr.mxu0 %v3822_v33  ;;  %5648 = vmatpush2.msra.mxu1 %v3709_v51  ;;  %v1409_v28 = vld [vmem:[%s16881_s3 + $0x8b0] sm:$0xff]  ;;  %v1184_v33 = vld [vmem:[%s16881_s3 + $0x1a8] sm:$0xff] }
 0x3b2   :  { %5687 = vmatpush1.msra.mxu0 %v3821_v18  ;;  %5720 = vmatprep.mubr.f32.mxu0 %v8126_v3  ;;  %v1408_v51 = vld [vmem:[%s16881_s3 + $0x8a8] sm:$0xff]  ;;  %v1178_v18 = vld [vmem:[%s16881_s3 + $0x178] sm:$0xff] }
 0x3b3   :  { %5650 = vmatmul.mubr.f32.vlgmr.msra.gmra.mxu1 %v10800_v59  ;;  %7629 = vmatmul.mubr.msk.f32.vlgmr.msra.gmra.mxu0 %vm3877_vm2, %v10911_v20 }
 0x3b4   :  { %5727 = vmatprep.subr.mxu1 %v1241_v15  ;;  %5798 = vmatprep.subr.mxu0 %v1465_v60  ;;  %v1402_v15 = vld [vmem:[%s16881_s3 + $0x878] sm:$0xff]  ;;  %v1177_v60 = vld [vmem:[%s16881_s3 + $0x170] sm:$0xff] }
 0x3b5   :  { %5728 = vmatpush1.msra.mxu1 %v1240_v38  ;;  %5791 = vmatprep.mubr.f32.mxu1 %v8702_v53  ;;  %v1401_v38 = vld [vmem:[%s16881_s3 + $0x870] sm:$0xff] }
 0x3b6   :  { %5799 = vmatpush1.msra.mxu0 %v1464_v24  ;;  %5862 = vmatprep.mubr.f32.mxu0 %v8704_v54  ;;  %v1171_v24 = vld [vmem:[%s16881_s3 + $0x140] sm:$0xff] }
 0x3b7   :  { %5729 = vmatprep.subr.mxu1 %v1234_v25  ;;  %5800 = vmatprep.subr.mxu0 %v1458_v43  ;;  %v1395_v25 = vld [vmem:[%s16881_s3 + $0x840] sm:$0xff]  ;;  %v1170_v43 = vld [vmem:[%s16881_s3 + $0x138] sm:$0xff] }
 0x3b8   :  { %5730 = vmatpush1.msra.mxu1 %v1233_v44  ;;  %5801 = vmatpush1.msra.mxu0 %v1457_v49  ;;  %v1394_v44 = vld [vmem:[%s16881_s3 + $0x838] sm:$0xff]  ;;  %v1164_v49 = vld [vmem:[%s16881_s3 + $0x108] sm:$0xff] }
 0x3b9   :  { %5731 = vmatprep.subr.mxu1 %v1227_v56  ;;  %5802 = vmatprep.subr.mxu0 %v1451_v4  ;;  %v1388_v56 = vld [vmem:[%s16881_s3 + $0x808] sm:$0xff]  ;;  %v1163_v4 = vld [vmem:[%s16881_s3 + $0x100] sm:$0xff] }
 0x3ba   :  { %5732 = vmatpush1.msra.mxu1 %v1226_v5  ;;  %5803 = vmatpush1.msra.mxu0 %v1450_v30  ;;  %v1387_v5 = vld [vmem:[%s16881_s3 + $0x800] sm:$0xff]  ;;  %v1157_v30 = vld [vmem:[%s16881_s3 + $0xd0] sm:$0xff] }
 0x3bb   :  { %5733 = vmatprep.subr.mxu1 %v1220_v61  ;;  %5804 = vmatprep.subr.mxu0 %v1444_v32  ;;  %v1381_v61 = vld [vmem:[%s16881_s3 + $0x7d0] sm:$0xff]  ;;  %v1156_v32 = vld [vmem:[%s16881_s3 + $0xc8] sm:$0xff] }
 0x3bc   :  { %5734 = vmatpush1.msra.mxu1 %v1219_v7  ;;  %5805 = vmatpush1.msra.mxu0 %v1443_v48  ;;  %v1380_v7 = vld [vmem:[%s16881_s3 + $0x7c8] sm:$0xff]  ;;  %v1150_v48 = vld [vmem:[%s16881_s3 + $0x98] sm:$0xff] }
 0x3bd   :  { %5735 = vmatprep.subr.mxu1 %v1213_v13  ;;  %5806 = vmatprep.subr.mxu0 %v1437_v8  ;;  %v1374_v13 = vld [vmem:[%s16881_s3 + $0x798] sm:$0xff]  ;;  %v1149_v8 = vld [vmem:[%s16881_s3 + $0x90] sm:$0xff] }
 0x3be   :  { %5736 = vmatpush1.msra.mxu1 %v1212_v29  ;;  %5807 = vmatpush1.msra.mxu0 %v1436_v9  ;;  %v1373_v29 = vld [vmem:[%s16881_s3 + $0x790] sm:$0xff]  ;;  %v1143_v9 = vld [vmem:[%s16881_s3 + $0x60] sm:$0xff] }
 0x3bf   :  { %5737 = vmatprep.subr.mxu1 %v1206_v10  ;;  %5808 = vmatprep.subr.mxu0 %v1430_v2  ;;  %v1367_v10 = vld [vmem:[%s16881_s3 + $0x760] sm:$0xff]  ;;  %v1142_v2 = vld [vmem:[%s16881_s3 + $0x58] sm:$0xff] }
 0x3c0   :  { %5738 = vmatpush1.msra.mxu1 %v1205_v17  ;;  %5809 = vmatpush1.msra.mxu0 %v1429_v46  ;;  %v1366_v17 = vld [vmem:[%s16881_s3 + $0x758] sm:$0xff]  ;;  %v1136_v46 = vld [vmem:[%s16881_s3 + $0x28] sm:$0xff] }
 0x3c1   :  { %5739 = vmatprep.subr.mxu1 %v1199_v47  ;;  %5810 = vmatprep.subr.mxu0 %v1423_v35  ;;  %v1360_v47 = vld [vmem:[%s16881_s3 + $0x728] sm:$0xff]  ;;  %v1135_v35 = vld [vmem:[%s16881_s3 + $0x20] sm:$0xff] }
 0x3c2   :  { %5740 = vmatpush1.msra.mxu1 %v1198_v22  ;;  %5811 = vmatpush1.msra.mxu0 %v1422_v62  ;;  %v1359_v22 = vld [vmem:[%s16881_s3 + $0x720] sm:$0xff]  ;;  %v1353_v62 = vld [vmem:[%s16881_s3 + $0x6f0] sm:$0xff] }
 0x3c3   :  { %5741 = vmatprep.subr.mxu1 %v1192_v63  ;;  %5812 = vmatprep.subr.mxu0 %v1416_v27  ;;  %v1577_v63 = vld [vmem:[%s16881_s3 + $0xdf0] sm:$0xff]  ;;  %v1352_v27 = vld [vmem:[%s16881_s3 + $0x6e8] sm:$0xff] }
 0x3c4   :  { %5742 = vmatpush1.msra.mxu1 %v1191_v14  ;;  %5813 = vmatpush1.msra.mxu0 %v1415_v36  ;;  %v1576_v14 = vld [vmem:[%s16881_s3 + $0xde8] sm:$0xff]  ;;  %v1346_v36 = vld [vmem:[%s16881_s3 + $0x6b8] sm:$0xff] }
 0x3c5   :  { %5743 = vmatprep.subr.mxu1 %v1185_v21  ;;  %5814 = vmatprep.subr.mxu0 %v1409_v28  ;;  %v1570_v21 = vld [vmem:[%s16881_s3 + $0xdb8] sm:$0xff]  ;;  %v1345_v28 = vld [vmem:[%s16881_s3 + $0x6b0] sm:$0xff] }
 0x3c6   :  { %5744 = vmatpush1.msra.mxu1 %v1184_v33  ;;  %5815 = vmatpush1.msra.mxu0 %v1408_v51  ;;  %v1569_v33 = vld [vmem:[%s16881_s3 + $0xdb0] sm:$0xff]  ;;  %v1339_v51 = vld [vmem:[%s16881_s3 + $0x680] sm:$0xff] }
 0x3c7   :  { %5745 = vmatprep.subr.mxu1 %v1178_v18  ;;  %5816 = vmatprep.subr.mxu0 %v1402_v15  ;;  %v1563_v18 = vld [vmem:[%s16881_s3 + $0xd80] sm:$0xff]  ;;  %v1338_v15 = vld [vmem:[%s16881_s3 + $0x678] sm:$0xff] }
 0x3c8   :  { %5746 = vmatpush1.msra.mxu1 %v1177_v60  ;;  %5817 = vmatpush1.msra.mxu0 %v1401_v38  ;;  %v1562_v60 = vld [vmem:[%s16881_s3 + $0xd78] sm:$0xff]  ;;  %v1332_v38 = vld [vmem:[%s16881_s3 + $0x648] sm:$0xff] }
 0x3c9   :  { %5747 = vmatprep.subr.mxu1 %v1171_v24  ;;  %5818 = vmatprep.subr.mxu0 %v1395_v25  ;;  %v1556_v24 = vld [vmem:[%s16881_s3 + $0xd48] sm:$0xff]  ;;  %v1331_v25 = vld [vmem:[%s16881_s3 + $0x640] sm:$0xff] }
 0x3ca   :  { %5748 = vmatpush1.msra.mxu1 %v1170_v43  ;;  %5819 = vmatpush1.msra.mxu0 %v1394_v44  ;;  %v1555_v43 = vld [vmem:[%s16881_s3 + $0xd40] sm:$0xff]  ;;  %v1325_v44 = vld [vmem:[%s16881_s3 + $0x610] sm:$0xff] }
 0x3cb   :  { %5749 = vmatprep.subr.mxu1 %v1164_v49  ;;  %5820 = vmatprep.subr.mxu0 %v1388_v56  ;;  %v1549_v49 = vld [vmem:[%s16881_s3 + $0xd10] sm:$0xff]  ;;  %v1324_v56 = vld [vmem:[%s16881_s3 + $0x608] sm:$0xff] }
 0x3cc   :  { %5750 = vmatpush1.msra.mxu1 %v1163_v4  ;;  %5821 = vmatpush1.msra.mxu0 %v1387_v5  ;;  %v1548_v4 = vld [vmem:[%s16881_s3 + $0xd08] sm:$0xff]  ;;  %v1318_v5 = vld [vmem:[%s16881_s3 + $0x5d8] sm:$0xff] }
 0x3cd   :  { %5751 = vmatprep.subr.mxu1 %v1157_v30  ;;  %5822 = vmatprep.subr.mxu0 %v1381_v61  ;;  %v1542_v30 = vld [vmem:[%s16881_s3 + $0xcd8] sm:$0xff]  ;;  %v1317_v61 = vld [vmem:[%s16881_s3 + $0x5d0] sm:$0xff] }
 0x3ce   :  { %5752 = vmatpush1.msra.mxu1 %v1156_v32  ;;  %5823 = vmatpush1.msra.mxu0 %v1380_v7  ;;  %v1541_v32 = vld [vmem:[%s16881_s3 + $0xcd0] sm:$0xff]  ;;  %v1311_v7 = vld [vmem:[%s16881_s3 + $0x5a0] sm:$0xff] }
 0x3cf   :  { %5753 = vmatprep.subr.mxu1 %v1150_v48  ;;  %5824 = vmatprep.subr.mxu0 %v1374_v13  ;;  %v1535_v48 = vld [vmem:[%s16881_s3 + $0xca0] sm:$0xff]  ;;  %v1310_v13 = vld [vmem:[%s16881_s3 + $0x598] sm:$0xff] }
 0x3d0   :  { %5754 = vmatpush1.msra.mxu1 %v1149_v8  ;;  %5825 = vmatpush1.msra.mxu0 %v1373_v29  ;;  %v1534_v8 = vld [vmem:[%s16881_s3 + $0xc98] sm:$0xff]  ;;  %v1304_v29 = vld [vmem:[%s16881_s3 + $0x568] sm:$0xff] }
 0x3d1   :  { %5755 = vmatprep.subr.mxu1 %v1143_v9  ;;  %5826 = vmatprep.subr.mxu0 %v1367_v10  ;;  %v1528_v9 = vld [vmem:[%s16881_s3 + $0xc68] sm:$0xff]  ;;  %v1303_v10 = vld [vmem:[%s16881_s3 + $0x560] sm:$0xff] }
 0x3d2   :  { %5756 = vmatpush1.msra.mxu1 %v1142_v2  ;;  %5827 = vmatpush1.msra.mxu0 %v1366_v17  ;;  %v1527_v2 = vld [vmem:[%s16881_s3 + $0xc60] sm:$0xff]  ;;  %v1297_v17 = vld [vmem:[%s16881_s3 + $0x530] sm:$0xff] }
 0x3d3   :  { %5757 = vmatprep.subr.mxu1 %v1136_v46  ;;  %5828 = vmatprep.subr.mxu0 %v1360_v47  ;;  %v1521_v46 = vld [vmem:[%s16881_s3 + $0xc30] sm:$0xff]  ;;  %v1296_v47 = vld [vmem:[%s16881_s3 + $0x528] sm:$0xff] }
 0x3d4   :  { %5758 = vmatpush1.msra.mxu1 %v1135_v35  ;;  %5829 = vmatpush1.msra.mxu0 %v1359_v22  ;;  %v1520_v35 = vld [vmem:[%s16881_s3 + $0xc28] sm:$0xff]  ;;  %v1290_v22 = vld [vmem:[%s16881_s3 + $0x4f8] sm:$0xff] }
 0x3d5   :  { %5759 = vmatprep.subr.mxu1 %v1353_v62  ;;  %5830 = vmatprep.subr.mxu0 %v1577_v63  ;;  %v1514_v62 = vld [vmem:[%s16881_s3 + $0xbf8] sm:$0xff]  ;;  %v1289_v63 = vld [vmem:[%s16881_s3 + $0x4f0] sm:$0xff] }
 0x3d6   :  { %5760 = vmatpush2.msra.mxu1 %v1352_v27  ;;  %5831 = vmatpush2.msra.mxu0 %v1576_v14  ;;  %v1513_v27 = vld [vmem:[%s16881_s3 + $0xbf0] sm:$0xff]  ;;  %v1283_v14 = vld [vmem:[%s16881_s3 + $0x4c0] sm:$0xff] }
 0x3d7   :  { %5761 = vmatprep.subr.mxu1 %v1346_v36  ;;  %5832 = vmatprep.subr.mxu0 %v1570_v21  ;;  %v1507_v36 = vld [vmem:[%s16881_s3 + $0xbc0] sm:$0xff]  ;;  %v1282_v21 = vld [vmem:[%s16881_s3 + $0x4b8] sm:$0xff] }
 0x3d8   :  { %5762 = vmatpush2.msra.mxu1 %v1345_v28  ;;  %5833 = vmatpush2.msra.mxu0 %v1569_v33  ;;  %v1506_v28 = vld [vmem:[%s16881_s3 + $0xbb8] sm:$0xff]  ;;  %v1276_v33 = vld [vmem:[%s16881_s3 + $0x488] sm:$0xff] }
 0x3d9   :  { %5763 = vmatprep.subr.mxu1 %v1339_v51  ;;  %5834 = vmatprep.subr.mxu0 %v1563_v18  ;;  %v1500_v51 = vld [vmem:[%s16881_s3 + $0xb88] sm:$0xff]  ;;  %v1275_v18 = vld [vmem:[%s16881_s3 + $0x480] sm:$0xff] }
 0x3da   :  { %5764 = vmatpush2.msra.mxu1 %v1338_v15  ;;  %5835 = vmatpush2.msra.mxu0 %v1562_v60  ;;  %v1499_v15 = vld [vmem:[%s16881_s3 + $0xb80] sm:$0xff]  ;;  %v1269_v60 = vld [vmem:[%s16881_s3 + $0x450] sm:$0xff] }
 0x3db   :  { %5765 = vmatprep.subr.mxu1 %v1332_v38  ;;  %5836 = vmatprep.subr.mxu0 %v1556_v24  ;;  %v1493_v38 = vld [vmem:[%s16881_s3 + $0xb50] sm:$0xff]  ;;  %v1268_v24 = vld [vmem:[%s16881_s3 + $0x448] sm:$0xff] }
 0x3dc   :  { %5766 = vmatpush2.msra.mxu1 %v1331_v25  ;;  %5837 = vmatpush2.msra.mxu0 %v1555_v43  ;;  %v1492_v25 = vld [vmem:[%s16881_s3 + $0xb48] sm:$0xff]  ;;  %v1262_v43 = vld [vmem:[%s16881_s3 + $0x418] sm:$0xff] }
 0x3dd   :  { %5767 = vmatprep.subr.mxu1 %v1325_v44  ;;  %5838 = vmatprep.subr.mxu0 %v1549_v49  ;;  %v1486_v44 = vld [vmem:[%s16881_s3 + $0xb18] sm:$0xff]  ;;  %v1261_v49 = vld [vmem:[%s16881_s3 + $0x410] sm:$0xff] }
 0x3de   :  { %5768 = vmatpush2.msra.mxu1 %v1324_v56  ;;  %5839 = vmatpush2.msra.mxu0 %v1548_v4  ;;  %v1485_v56 = vld [vmem:[%s16881_s3 + $0xb10] sm:$0xff]  ;;  %v1255_v4 = vld [vmem:[%s16881_s3 + $0x3e0] sm:$0xff] }
 0x3df   :  { %5769 = vmatprep.subr.mxu1 %v1318_v5  ;;  %5840 = vmatprep.subr.mxu0 %v1542_v30  ;;  %v1479_v5 = vld [vmem:[%s16881_s3 + $0xae0] sm:$0xff]  ;;  %v1254_v30 = vld [vmem:[%s16881_s3 + $0x3d8] sm:$0xff] }
 0x3e0   :  { %5770 = vmatpush2.msra.mxu1 %v1317_v61  ;;  %5841 = vmatpush2.msra.mxu0 %v1541_v32  ;;  %v1478_v61 = vld [vmem:[%s16881_s3 + $0xad8] sm:$0xff]  ;;  %v1248_v32 = vld [vmem:[%s16881_s3 + $0x3a8] sm:$0xff] }
 0x3e1   :  { %5771 = vmatprep.subr.mxu1 %v1311_v7  ;;  %5842 = vmatprep.subr.mxu0 %v1535_v48  ;;  %v1472_v7 = vld [vmem:[%s16881_s3 + $0xaa8] sm:$0xff]  ;;  %v1247_v48 = vld [vmem:[%s16881_s3 + $0x3a0] sm:$0xff] }
 0x3e2   :  { %5772 = vmatpush2.msra.mxu1 %v1310_v13  ;;  %5843 = vmatpush2.msra.mxu0 %v1534_v8  ;;  %v1471_v13 = vld [vmem:[%s16881_s3 + $0xaa0] sm:$0xff]  ;;  %v1689_v8 = vld [vmem:[%s16881_s3 + $0x1170] sm:$0xff] }
 0x3e3   :  { %5773 = vmatprep.subr.mxu1 %v1304_v29  ;;  %5844 = vmatprep.subr.mxu0 %v1528_v9  ;;  %v1913_v29 = vld [vmem:[%s16881_s3 + $0x1870] sm:$0xff]  ;;  %v1688_v9 = vld [vmem:[%s16881_s3 + $0x1168] sm:$0xff] }
 0x3e4   :  { %5774 = vmatpush2.msra.mxu1 %v1303_v10  ;;  %5845 = vmatpush2.msra.mxu0 %v1527_v2  ;;  %v1912_v10 = vld [vmem:[%s16881_s3 + $0x1868] sm:$0xff]  ;;  %v1682_v2 = vld [vmem:[%s16881_s3 + $0x1138] sm:$0xff] }
 0x3e5   :  { %5775 = vmatprep.subr.mxu1 %v1297_v17  ;;  %5846 = vmatprep.subr.mxu0 %v1521_v46  ;;  %v1906_v17 = vld [vmem:[%s16881_s3 + $0x1838] sm:$0xff]  ;;  %v1681_v46 = vld [vmem:[%s16881_s3 + $0x1130] sm:$0xff] }
 0x3e6   :  { %5776 = vmatpush2.msra.mxu1 %v1296_v47  ;;  %5847 = vmatpush2.msra.mxu0 %v1520_v35  ;;  %v1905_v47 = vld [vmem:[%s16881_s3 + $0x1830] sm:$0xff]  ;;  %v1675_v35 = vld [vmem:[%s16881_s3 + $0x1100] sm:$0xff] }
 0x3e7   :  { %5777 = vmatprep.subr.mxu1 %v1290_v22  ;;  %5848 = vmatprep.subr.mxu0 %v1514_v62  ;;  %v1899_v22 = vld [vmem:[%s16881_s3 + $0x1800] sm:$0xff]  ;;  %v1674_v62 = vld [vmem:[%s16881_s3 + $0x10f8] sm:$0xff] }
 0x3e8   :  { %5778 = vmatpush2.msra.mxu1 %v1289_v63  ;;  %5849 = vmatpush2.msra.mxu0 %v1513_v27  ;;  %v1898_v63 = vld [vmem:[%s16881_s3 + $0x17f8] sm:$0xff]  ;;  %v1668_v27 = vld [vmem:[%s16881_s3 + $0x10c8] sm:$0xff] }
 0x3e9   :  { %5779 = vmatprep.subr.mxu1 %v1283_v14  ;;  %5850 = vmatprep.subr.mxu0 %v1507_v36  ;;  %v1892_v14 = vld [vmem:[%s16881_s3 + $0x17c8] sm:$0xff]  ;;  %v1667_v36 = vld [vmem:[%s16881_s3 + $0x10c0] sm:$0xff] }
 0x3ea   :  { %5780 = vmatpush2.msra.mxu1 %v1282_v21  ;;  %5851 = vmatpush2.msra.mxu0 %v1506_v28  ;;  %v1891_v21 = vld [vmem:[%s16881_s3 + $0x17c0] sm:$0xff]  ;;  %v1661_v28 = vld [vmem:[%s16881_s3 + $0x1090] sm:$0xff] }
 0x3eb   :  { %5781 = vmatprep.subr.mxu1 %v1276_v33  ;;  %5852 = vmatprep.subr.mxu0 %v1500_v51  ;;  %v1885_v33 = vld [vmem:[%s16881_s3 + $0x1790] sm:$0xff]  ;;  %v1660_v51 = vld [vmem:[%s16881_s3 + $0x1088] sm:$0xff] }
 0x3ec   :  { %5782 = vmatpush2.msra.mxu1 %v1275_v18  ;;  %5853 = vmatpush2.msra.mxu0 %v1499_v15  ;;  %v1884_v18 = vld [vmem:[%s16881_s3 + $0x1788] sm:$0xff]  ;;  %v1654_v15 = vld [vmem:[%s16881_s3 + $0x1058] sm:$0xff] }
 0x3ed   :  { %5783 = vmatprep.subr.mxu1 %v1269_v60  ;;  %5854 = vmatprep.subr.mxu0 %v1493_v38  ;;  %v1878_v60 = vld [vmem:[%s16881_s3 + $0x1758] sm:$0xff]  ;;  %v1653_v38 = vld [vmem:[%s16881_s3 + $0x1050] sm:$0xff] }
 0x3ee   :  { %5784 = vmatpush2.msra.mxu1 %v1268_v24  ;;  %5855 = vmatpush2.msra.mxu0 %v1492_v25  ;;  %v1877_v24 = vld [vmem:[%s16881_s3 + $0x1750] sm:$0xff]  ;;  %v1647_v25 = vld [vmem:[%s16881_s3 + $0x1020] sm:$0xff] }
 0x3ef   :  { %5785 = vmatprep.subr.mxu1 %v1262_v43  ;;  %5856 = vmatprep.subr.mxu0 %v1486_v44  ;;  %v1871_v43 = vld [vmem:[%s16881_s3 + $0x1720] sm:$0xff]  ;;  %v1646_v44 = vld [vmem:[%s16881_s3 + $0x1018] sm:$0xff] }
 0x3f0   :  { %5786 = vmatpush2.msra.mxu1 %v1261_v49  ;;  %5857 = vmatpush2.msra.mxu0 %v1485_v56  ;;  %v1870_v49 = vld [vmem:[%s16881_s3 + $0x1718] sm:$0xff]  ;;  %v1640_v56 = vld [vmem:[%s16881_s3 + $0xfe8] sm:$0xff] }
 0x3f1   :  { %5787 = vmatprep.subr.mxu1 %v1255_v4  ;;  %5858 = vmatprep.subr.mxu0 %v1479_v5  ;;  %v1864_v4 = vld [vmem:[%s16881_s3 + $0x16e8] sm:$0xff]  ;;  %v1639_v5 = vld [vmem:[%s16881_s3 + $0xfe0] sm:$0xff] }
 0x3f2   :  { %5788 = vmatpush2.msra.mxu1 %v1254_v30  ;;  %5859 = vmatpush2.msra.mxu0 %v1478_v61  ;;  %v1863_v30 = vld [vmem:[%s16881_s3 + $0x16e0] sm:$0xff]  ;;  %v1633_v61 = vld [vmem:[%s16881_s3 + $0xfb0] sm:$0xff] }
 0x3f3   :  { %5789 = vmatprep.subr.mxu1 %v1248_v32  ;;  %5860 = vmatprep.subr.mxu0 %v1472_v7  ;;  %v1857_v32 = vld [vmem:[%s16881_s3 + $0x16b0] sm:$0xff]  ;;  %v1632_v7 = vld [vmem:[%s16881_s3 + $0xfa8] sm:$0xff] }
 0x3f4   :  { %5790 = vmatpush2.msra.mxu1 %v1247_v48  ;;  %5861 = vmatpush2.msra.mxu0 %v1471_v13  ;;  %v1856_v48 = vld [vmem:[%s16881_s3 + $0x16a8] sm:$0xff]  ;;  %v1626_v13 = vld [vmem:[%s16881_s3 + $0xf78] sm:$0xff] }
 0x3f5   :  { %5792 = vmatmul.mubr.f32.vlgmr.msra.gmra.mxu1 %v8706_v55  ;;  %5863 = vmatmul.mubr.f32.vlgmr.msra.gmra.mxu0 %v8696_v50 }
 0x3f6   :  { %5869 = vmatprep.subr.mxu1 %v1689_v8  ;;  %5940 = vmatprep.subr.mxu0 %v1913_v29  ;;  %v1850_v8 = vld [vmem:[%s16881_s3 + $0x1678] sm:$0xff]  ;;  %v1625_v29 = vld [vmem:[%s16881_s3 + $0xf70] sm:$0xff] }
 0x3f7   :  { %5870 = vmatpush1.msra.mxu1 %v1688_v9  ;;  %5933 = vmatprep.mubr.f32.mxu1 %v9155_v26  ;;  %v1849_v9 = vld [vmem:[%s16881_s3 + $0x1670] sm:$0xff] }
 0x3f8   :  { %5941 = vmatpush1.msra.mxu0 %v1912_v10  ;;  %6004 = vmatprep.mubr.f32.mxu0 %v9173_v39  ;;  %v1619_v10 = vld [vmem:[%s16881_s3 + $0xf40] sm:$0xff] }
 0x3f9   :  { %5871 = vmatprep.subr.mxu1 %v1682_v2  ;;  %5942 = vmatprep.subr.mxu0 %v1906_v17  ;;  %v1843_v2 = vld [vmem:[%s16881_s3 + $0x1640] sm:$0xff]  ;;  %v1618_v17 = vld [vmem:[%s16881_s3 + $0xf38] sm:$0xff] }
 0x3fa   :  { %5872 = vmatpush1.msra.mxu1 %v1681_v46  ;;  %5943 = vmatpush1.msra.mxu0 %v1905_v47  ;;  %v1842_v46 = vld [vmem:[%s16881_s3 + $0x1638] sm:$0xff]  ;;  %v1612_v47 = vld [vmem:[%s16881_s3 + $0xf08] sm:$0xff] }
 0x3fb   :  { %5873 = vmatprep.subr.mxu1 %v1675_v35  ;;  %5944 = vmatprep.subr.mxu0 %v1899_v22  ;;  %v1836_v35 = vld [vmem:[%s16881_s3 + $0x1608] sm:$0xff]  ;;  %v1611_v22 = vld [vmem:[%s16881_s3 + $0xf00] sm:$0xff] }
 0x3fc   :  { %5874 = vmatpush1.msra.mxu1 %v1674_v62  ;;  %5945 = vmatpush1.msra.mxu0 %v1898_v63  ;;  %v1835_v62 = vld [vmem:[%s16881_s3 + $0x1600] sm:$0xff]  ;;  %v1605_v63 = vld [vmem:[%s16881_s3 + $0xed0] sm:$0xff] }
 0x3fd   :  { %5875 = vmatprep.subr.mxu1 %v1668_v27  ;;  %5946 = vmatprep.subr.mxu0 %v1892_v14  ;;  %v1829_v27 = vld [vmem:[%s16881_s3 + $0x15d0] sm:$0xff]  ;;  %v1604_v14 = vld [vmem:[%s16881_s3 + $0xec8] sm:$0xff] }
 0x3fe   :  { %5876 = vmatpush1.msra.mxu1 %v1667_v36  ;;  %5947 = vmatpush1.msra.mxu0 %v1891_v21  ;;  %v1828_v36 = vld [vmem:[%s16881_s3 + $0x15c8] sm:$0xff]  ;;  %v1598_v21 = vld [vmem:[%s16881_s3 + $0xe98] sm:$0xff] }
 0x3ff   :  { %5877 = vmatprep.subr.mxu1 %v1661_v28  ;;  %5948 = vmatprep.subr.mxu0 %v1885_v33  ;;  %v1822_v28 = vld [vmem:[%s16881_s3 + $0x1598] sm:$0xff]  ;;  %v1597_v33 = vld [vmem:[%s16881_s3 + $0xe90] sm:$0xff] }
 0x400   :  { %5878 = vmatpush1.msra.mxu1 %v1660_v51  ;;  %5949 = vmatpush1.msra.mxu0 %v1884_v18  ;;  %v1821_v51 = vld [vmem:[%s16881_s3 + $0x1590] sm:$0xff]  ;;  %v1591_v18 = vld [vmem:[%s16881_s3 + $0xe60] sm:$0xff] }
 0x401   :  { %5879 = vmatprep.subr.mxu1 %v1654_v15  ;;  %5950 = vmatprep.subr.mxu0 %v1878_v60  ;;  %v1815_v15 = vld [vmem:[%s16881_s3 + $0x1560] sm:$0xff]  ;;  %v1590_v60 = vld [vmem:[%s16881_s3 + $0xe58] sm:$0xff] }
 0x402   :  { %5880 = vmatpush1.msra.mxu1 %v1653_v38  ;;  %5951 = vmatpush1.msra.mxu0 %v1877_v24  ;;  %v1814_v38 = vld [vmem:[%s16881_s3 + $0x1558] sm:$0xff]  ;;  %v1584_v24 = vld [vmem:[%s16881_s3 + $0xe28] sm:$0xff] }
 0x403   :  { %5881 = vmatprep.subr.mxu1 %v1647_v25  ;;  %5952 = vmatprep.subr.mxu0 %v1871_v43  ;;  %v1808_v25 = vld [vmem:[%s16881_s3 + $0x1528] sm:$0xff]  ;;  %v1583_v43 = vld [vmem:[%s16881_s3 + $0xe20] sm:$0xff] }
 0x404   :  { %5882 = vmatpush1.msra.mxu1 %v1646_v44  ;;  %5953 = vmatpush1.msra.mxu0 %v1870_v49  ;;  %v1807_v44 = vld [vmem:[%s16881_s3 + $0x1520] sm:$0xff]  ;;  %v1801_v49 = vld [vmem:[%s16881_s3 + $0x14f0] sm:$0xff] }
 0x405   :  { %5883 = vmatprep.subr.mxu1 %v1640_v56  ;;  %5954 = vmatprep.subr.mxu0 %v1864_v4  ;;  %v2025_v56 = vld [vmem:[%s16881_s3 + $0x1bf0] sm:$0xff]  ;;  %v1800_v4 = vld [vmem:[%s16881_s3 + $0x14e8] sm:$0xff] }
 0x406   :  { %5884 = vmatpush1.msra.mxu1 %v1639_v5  ;;  %5955 = vmatpush1.msra.mxu0 %v1863_v30  ;;  %v2024_v5 = vld [vmem:[%s16881_s3 + $0x1be8] sm:$0xff]  ;;  %v1794_v30 = vld [vmem:[%s16881_s3 + $0x14b8] sm:$0xff] }
 0x407   :  { %5885 = vmatprep.subr.mxu1 %v1633_v61  ;;  %5956 = vmatprep.subr.mxu0 %v1857_v32  ;;  %v2018_v61 = vld [vmem:[%s16881_s3 + $0x1bb8] sm:$0xff]  ;;  %v1793_v32 = vld [vmem:[%s16881_s3 + $0x14b0] sm:$0xff] }
 0x408   :  { %5886 = vmatpush1.msra.mxu1 %v1632_v7  ;;  %5957 = vmatpush1.msra.mxu0 %v1856_v48  ;;  %v2017_v7 = vld [vmem:[%s16881_s3 + $0x1bb0] sm:$0xff]  ;;  %v1787_v48 = vld [vmem:[%s16881_s3 + $0x1480] sm:$0xff] }
 0x409   :  { %5887 = vmatprep.subr.mxu1 %v1626_v13  ;;  %5958 = vmatprep.subr.mxu0 %v1850_v8  ;;  %v2011_v13 = vld [vmem:[%s16881_s3 + $0x1b80] sm:$0xff]  ;;  %v1786_v8 = vld [vmem:[%s16881_s3 + $0x1478] sm:$0xff] }
 0x40a   :  { %5888 = vmatpush1.msra.mxu1 %v1625_v29  ;;  %5959 = vmatpush1.msra.mxu0 %v1849_v9  ;;  %v2010_v29 = vld [vmem:[%s16881_s3 + $0x1b78] sm:$0xff]  ;;  %v1780_v9 = vld [vmem:[%s16881_s3 + $0x1448] sm:$0xff] }
 0x40b   :  { %5889 = vmatprep.subr.mxu1 %v1619_v10  ;;  %5960 = vmatprep.subr.mxu0 %v1843_v2  ;;  %v2004_v10 = vld [vmem:[%s16881_s3 + $0x1b48] sm:$0xff]  ;;  %v1779_v2 = vld [vmem:[%s16881_s3 + $0x1440] sm:$0xff] }
 0x40c   :  { %5890 = vmatpush1.msra.mxu1 %v1618_v17  ;;  %5961 = vmatpush1.msra.mxu0 %v1842_v46  ;;  %v2003_v17 = vld [vmem:[%s16881_s3 + $0x1b40] sm:$0xff]  ;;  %v1773_v46 = vld [vmem:[%s16881_s3 + $0x1410] sm:$0xff] }
 0x40d   :  { %5891 = vmatprep.subr.mxu1 %v1612_v47  ;;  %5962 = vmatprep.subr.mxu0 %v1836_v35  ;;  %v1997_v47 = vld [vmem:[%s16881_s3 + $0x1b10] sm:$0xff]  ;;  %v1772_v35 = vld [vmem:[%s16881_s3 + $0x1408] sm:$0xff] }
 0x40e   :  { %5892 = vmatpush1.msra.mxu1 %v1611_v22  ;;  %5963 = vmatpush1.msra.mxu0 %v1835_v62  ;;  %v1996_v22 = vld [vmem:[%s16881_s3 + $0x1b08] sm:$0xff]  ;;  %v1766_v62 = vld [vmem:[%s16881_s3 + $0x13d8] sm:$0xff] }
 0x40f   :  { %5893 = vmatprep.subr.mxu1 %v1605_v63  ;;  %5964 = vmatprep.subr.mxu0 %v1829_v27  ;;  %v1990_v63 = vld [vmem:[%s16881_s3 + $0x1ad8] sm:$0xff]  ;;  %v1765_v27 = vld [vmem:[%s16881_s3 + $0x13d0] sm:$0xff] }
 0x410   :  { %5894 = vmatpush1.msra.mxu1 %v1604_v14  ;;  %5965 = vmatpush1.msra.mxu0 %v1828_v36  ;;  %v1989_v14 = vld [vmem:[%s16881_s3 + $0x1ad0] sm:$0xff]  ;;  %v1759_v36 = vld [vmem:[%s16881_s3 + $0x13a0] sm:$0xff] }
 0x411   :  { %5895 = vmatprep.subr.mxu1 %v1598_v21  ;;  %5966 = vmatprep.subr.mxu0 %v1822_v28  ;;  %v1983_v21 = vld [vmem:[%s16881_s3 + $0x1aa0] sm:$0xff]  ;;  %v1758_v28 = vld [vmem:[%s16881_s3 + $0x1398] sm:$0xff] }
 0x412   :  { %5896 = vmatpush1.msra.mxu1 %v1597_v33  ;;  %5967 = vmatpush1.msra.mxu0 %v1821_v51  ;;  %v1982_v33 = vld [vmem:[%s16881_s3 + $0x1a98] sm:$0xff]  ;;  %v1752_v51 = vld [vmem:[%s16881_s3 + $0x1368] sm:$0xff] }
 0x413   :  { %5897 = vmatprep.subr.mxu1 %v1591_v18  ;;  %5968 = vmatprep.subr.mxu0 %v1815_v15  ;;  %v1976_v18 = vld [vmem:[%s16881_s3 + $0x1a68] sm:$0xff]  ;;  %v1751_v15 = vld [vmem:[%s16881_s3 + $0x1360] sm:$0xff] }
 0x414   :  { %5898 = vmatpush1.msra.mxu1 %v1590_v60  ;;  %5969 = vmatpush1.msra.mxu0 %v1814_v38  ;;  %v1975_v60 = vld [vmem:[%s16881_s3 + $0x1a60] sm:$0xff]  ;;  %v1745_v38 = vld [vmem:[%s16881_s3 + $0x1330] sm:$0xff] }
 0x415   :  { %5899 = vmatprep.subr.mxu1 %v1584_v24  ;;  %5970 = vmatprep.subr.mxu0 %v1808_v25  ;;  %v1969_v24 = vld [vmem:[%s16881_s3 + $0x1a30] sm:$0xff]  ;;  %v1744_v25 = vld [vmem:[%s16881_s3 + $0x1328] sm:$0xff] }
 0x416   :  { %5900 = vmatpush1.msra.mxu1 %v1583_v43  ;;  %5971 = vmatpush1.msra.mxu0 %v1807_v44  ;;  %v1968_v43 = vld [vmem:[%s16881_s3 + $0x1a28] sm:$0xff]  ;;  %v1738_v44 = vld [vmem:[%s16881_s3 + $0x12f8] sm:$0xff] }
 0x417   :  { %5901 = vmatprep.subr.mxu1 %v1801_v49  ;;  %5972 = vmatprep.subr.mxu0 %v2025_v56  ;;  %v1962_v49 = vld [vmem:[%s16881_s3 + $0x19f8] sm:$0xff]  ;;  %v1737_v56 = vld [vmem:[%s16881_s3 + $0x12f0] sm:$0xff] }
 0x418   :  { %5902 = vmatpush2.msra.mxu1 %v1800_v4  ;;  %5973 = vmatpush2.msra.mxu0 %v2024_v5  ;;  %v1961_v4 = vld [vmem:[%s16881_s3 + $0x19f0] sm:$0xff]  ;;  %v1731_v5 = vld [vmem:[%s16881_s3 + $0x12c0] sm:$0xff] }
 0x419   :  { %5903 = vmatprep.subr.mxu1 %v1794_v30  ;;  %5974 = vmatprep.subr.mxu0 %v2018_v61  ;;  %v1955_v30 = vld [vmem:[%s16881_s3 + $0x19c0] sm:$0xff]  ;;  %v1730_v61 = vld [vmem:[%s16881_s3 + $0x12b8] sm:$0xff] }
 0x41a   :  { %5904 = vmatpush2.msra.mxu1 %v1793_v32  ;;  %5975 = vmatpush2.msra.mxu0 %v2017_v7  ;;  %v1954_v32 = vld [vmem:[%s16881_s3 + $0x19b8] sm:$0xff]  ;;  %v1724_v7 = vld [vmem:[%s16881_s3 + $0x1288] sm:$0xff] }
 0x41b   :  { %5905 = vmatprep.subr.mxu1 %v1787_v48  ;;  %5976 = vmatprep.subr.mxu0 %v2011_v13  ;;  %v1948_v48 = vld [vmem:[%s16881_s3 + $0x1988] sm:$0xff]  ;;  %v1723_v13 = vld [vmem:[%s16881_s3 + $0x1280] sm:$0xff] }
 0x41c   :  { %5906 = vmatpush2.msra.mxu1 %v1786_v8  ;;  %5977 = vmatpush2.msra.mxu0 %v2010_v29  ;;  %v1947_v8 = vld [vmem:[%s16881_s3 + $0x1980] sm:$0xff]  ;;  %v1717_v29 = vld [vmem:[%s16881_s3 + $0x1250] sm:$0xff] }
 0x41d   :  { %5907 = vmatprep.subr.mxu1 %v1780_v9  ;;  %5978 = vmatprep.subr.mxu0 %v2004_v10  ;;  %v1941_v9 = vld [vmem:[%s16881_s3 + $0x1950] sm:$0xff]  ;;  %v1716_v10 = vld [vmem:[%s16881_s3 + $0x1248] sm:$0xff] }
 0x41e   :  { %5908 = vmatpush2.msra.mxu1 %v1779_v2  ;;  %5979 = vmatpush2.msra.mxu0 %v2003_v17  ;;  %v1940_v2 = vld [vmem:[%s16881_s3 + $0x1948] sm:$0xff]  ;;  %v1710_v17 = vld [vmem:[%s16881_s3 + $0x1218] sm:$0xff] }
 0x41f   :  { %5909 = vmatprep.subr.mxu1 %v1773_v46  ;;  %5980 = vmatprep.subr.mxu0 %v1997_v47  ;;  %v1934_v46 = vld [vmem:[%s16881_s3 + $0x1918] sm:$0xff]  ;;  %v1709_v47 = vld [vmem:[%s16881_s3 + $0x1210] sm:$0xff] }
 0x420   :  { %5910 = vmatpush2.msra.mxu1 %v1772_v35  ;;  %5981 = vmatpush2.msra.mxu0 %v1996_v22  ;;  %v1933_v35 = vld [vmem:[%s16881_s3 + $0x1910] sm:$0xff]  ;;  %v1703_v22 = vld [vmem:[%s16881_s3 + $0x11e0] sm:$0xff] }
 0x421   :  { %5911 = vmatprep.subr.mxu1 %v1766_v62  ;;  %5982 = vmatprep.subr.mxu0 %v1990_v63  ;;  %v1927_v62 = vld [vmem:[%s16881_s3 + $0x18e0] sm:$0xff]  ;;  %v1702_v63 = vld [vmem:[%s16881_s3 + $0x11d8] sm:$0xff] }
 0x422   :  { %5912 = vmatpush2.msra.mxu1 %v1765_v27  ;;  %5983 = vmatpush2.msra.mxu0 %v1989_v14  ;;  %v1926_v27 = vld [vmem:[%s16881_s3 + $0x18d8] sm:$0xff]  ;;  %v1696_v14 = vld [vmem:[%s16881_s3 + $0x11a8] sm:$0xff] }
 0x423   :  { %5913 = vmatprep.subr.mxu1 %v1759_v36  ;;  %5984 = vmatprep.subr.mxu0 %v1983_v21  ;;  %v1920_v36 = vld [vmem:[%s16881_s3 + $0x18a8] sm:$0xff]  ;;  %v1695_v21 = vld [vmem:[%s16881_s3 + $0x11a0] sm:$0xff] }
 0x424   :  { %5914 = vmatpush2.msra.mxu1 %v1758_v28  ;;  %5985 = vmatpush2.msra.mxu0 %v1982_v33  ;;  %v1919_v28 = vld [vmem:[%s16881_s3 + $0x18a0] sm:$0xff]  ;;  %v2137_v33 = vld [vmem:[%s16881_s3 + $0x1f70] sm:$0xff] }
 0x425   :  { %5915 = vmatprep.subr.mxu1 %v1752_v51  ;;  %5986 = vmatprep.subr.mxu0 %v1976_v18  ;;  %v2361_v51 = vld [vmem:[%s16881_s3 + $0x2670] sm:$0xff]  ;;  %v2136_v18 = vld [vmem:[%s16881_s3 + $0x1f68] sm:$0xff] }
 0x426   :  { %5916 = vmatpush2.msra.mxu1 %v1751_v15  ;;  %5987 = vmatpush2.msra.mxu0 %v1975_v60  ;;  %v2360_v15 = vld [vmem:[%s16881_s3 + $0x2668] sm:$0xff]  ;;  %v2130_v60 = vld [vmem:[%s16881_s3 + $0x1f38] sm:$0xff] }
 0x427   :  { %5917 = vmatprep.subr.mxu1 %v1745_v38  ;;  %5988 = vmatprep.subr.mxu0 %v1969_v24  ;;  %v2354_v38 = vld [vmem:[%s16881_s3 + $0x2638] sm:$0xff]  ;;  %v2129_v24 = vld [vmem:[%s16881_s3 + $0x1f30] sm:$0xff] }
 0x428   :  { %5918 = vmatpush2.msra.mxu1 %v1744_v25  ;;  %5989 = vmatpush2.msra.mxu0 %v1968_v43  ;;  %v2353_v25 = vld [vmem:[%s16881_s3 + $0x2630] sm:$0xff]  ;;  %v2123_v43 = vld [vmem:[%s16881_s3 + $0x1f00] sm:$0xff] }
 0x429   :  { %5919 = vmatprep.subr.mxu1 %v1738_v44  ;;  %5990 = vmatprep.subr.mxu0 %v1962_v49  ;;  %v2347_v44 = vld [vmem:[%s16881_s3 + $0x2600] sm:$0xff]  ;;  %v2122_v49 = vld [vmem:[%s16881_s3 + $0x1ef8] sm:$0xff] }
 0x42a   :  { %5920 = vmatpush2.msra.mxu1 %v1737_v56  ;;  %5991 = vmatpush2.msra.mxu0 %v1961_v4  ;;  %v2346_v56 = vld [vmem:[%s16881_s3 + $0x25f8] sm:$0xff]  ;;  %v2116_v4 = vld [vmem:[%s16881_s3 + $0x1ec8] sm:$0xff] }
 0x42b   :  { %5921 = vmatprep.subr.mxu1 %v1731_v5  ;;  %5992 = vmatprep.subr.mxu0 %v1955_v30  ;;  %v2340_v5 = vld [vmem:[%s16881_s3 + $0x25c8] sm:$0xff]  ;;  %v2115_v30 = vld [vmem:[%s16881_s3 + $0x1ec0] sm:$0xff] }
 0x42c   :  { %5922 = vmatpush2.msra.mxu1 %v1730_v61  ;;  %5993 = vmatpush2.msra.mxu0 %v1954_v32  ;;  %v2339_v61 = vld [vmem:[%s16881_s3 + $0x25c0] sm:$0xff]  ;;  %v2109_v32 = vld [vmem:[%s16881_s3 + $0x1e90] sm:$0xff] }
 0x42d   :  { %5923 = vmatprep.subr.mxu1 %v1724_v7  ;;  %5994 = vmatprep.subr.mxu0 %v1948_v48  ;;  %v2333_v7 = vld [vmem:[%s16881_s3 + $0x2590] sm:$0xff]  ;;  %v2108_v48 = vld [vmem:[%s16881_s3 + $0x1e88] sm:$0xff] }
 0x42e   :  { %5924 = vmatpush2.msra.mxu1 %v1723_v13  ;;  %5995 = vmatpush2.msra.mxu0 %v1947_v8  ;;  %v2332_v13 = vld [vmem:[%s16881_s3 + $0x2588] sm:$0xff]  ;;  %v2102_v8 = vld [vmem:[%s16881_s3 + $0x1e58] sm:$0xff] }
 0x42f   :  { %5925 = vmatprep.subr.mxu1 %v1717_v29  ;;  %5996 = vmatprep.subr.mxu0 %v1941_v9  ;;  %v2326_v29 = vld [vmem:[%s16881_s3 + $0x2558] sm:$0xff]  ;;  %v2101_v9 = vld [vmem:[%s16881_s3 + $0x1e50] sm:$0xff] }
 0x430   :  { %5926 = vmatpush2.msra.mxu1 %v1716_v10  ;;  %5997 = vmatpush2.msra.mxu0 %v1940_v2  ;;  %v2325_v10 = vld [vmem:[%s16881_s3 + $0x2550] sm:$0xff]  ;;  %v2095_v2 = vld [vmem:[%s16881_s3 + $0x1e20] sm:$0xff] }
 0x431   :  { %5927 = vmatprep.subr.mxu1 %v1710_v17  ;;  %5998 = vmatprep.subr.mxu0 %v1934_v46  ;;  %v2319_v17 = vld [vmem:[%s16881_s3 + $0x2520] sm:$0xff]  ;;  %v2094_v46 = vld [vmem:[%s16881_s3 + $0x1e18] sm:$0xff] }
 0x432   :  { %5928 = vmatpush2.msra.mxu1 %v1709_v47  ;;  %5999 = vmatpush2.msra.mxu0 %v1933_v35  ;;  %v2318_v47 = vld [vmem:[%s16881_s3 + $0x2518] sm:$0xff]  ;;  %v2088_v35 = vld [vmem:[%s16881_s3 + $0x1de8] sm:$0xff] }
 0x433   :  { %5929 = vmatprep.subr.mxu1 %v1703_v22  ;;  %6000 = vmatprep.subr.mxu0 %v1927_v62  ;;  %v2312_v22 = vld [vmem:[%s16881_s3 + $0x24e8] sm:$0xff]  ;;  %v2087_v62 = vld [vmem:[%s16881_s3 + $0x1de0] sm:$0xff] }
 0x434   :  { %5930 = vmatpush2.msra.mxu1 %v1702_v63  ;;  %6001 = vmatpush2.msra.mxu0 %v1926_v27  ;;  %v2311_v63 = vld [vmem:[%s16881_s3 + $0x24e0] sm:$0xff]  ;;  %v2081_v27 = vld [vmem:[%s16881_s3 + $0x1db0] sm:$0xff] }
 0x435   :  { %5931 = vmatprep.subr.mxu1 %v1696_v14  ;;  %6002 = vmatprep.subr.mxu0 %v1920_v36  ;;  %v2305_v14 = vld [vmem:[%s16881_s3 + $0x24b0] sm:$0xff]  ;;  %v2080_v36 = vld [vmem:[%s16881_s3 + $0x1da8] sm:$0xff] }
 0x436   :  { %5932 = vmatpush2.msra.mxu1 %v1695_v21  ;;  %6003 = vmatpush2.msra.mxu0 %v1919_v28  ;;  %v2304_v21 = vld [vmem:[%s16881_s3 + $0x24a8] sm:$0xff]  ;;  %v2074_v28 = vld [vmem:[%s16881_s3 + $0x1d78] sm:$0xff] }
 0x437   :  { %5934 = vmatmul.mubr.f32.vlgmr.msra.gmra.mxu1 %v9178_v41  ;;  %6005 = vmatmul.mubr.f32.vlgmr.msra.gmra.mxu0 %v9180_v42 }
 0x438   :  { %6011 = vmatprep.subr.mxu1 %v2137_v33  ;;  %6082 = vmatprep.subr.mxu0 %v2361_v51  ;;  %v2298_v33 = vld [vmem:[%s16881_s3 + $0x2478] sm:$0xff]  ;;  %v2073_v51 = vld [vmem:[%s16881_s3 + $0x1d70] sm:$0xff] }
 0x439   :  { %6012 = vmatpush1.msra.mxu1 %v2136_v18  ;;  %6075 = vmatprep.mubr.f32.mxu1 %v9557_v34  ;;  %v2297_v18 = vld [vmem:[%s16881_s3 + $0x2470] sm:$0xff] }
 0x43a   :  { %6083 = vmatpush1.msra.mxu0 %v2360_v15  ;;  %6146 = vmatprep.mubr.f32.mxu0 %v9545_v23  ;;  %v2067_v15 = vld [vmem:[%s16881_s3 + $0x1d40] sm:$0xff] }
 0x43b   :  { %6013 = vmatprep.subr.mxu1 %v2130_v60  ;;  %6084 = vmatprep.subr.mxu0 %v2354_v38  ;;  %v2291_v60 = vld [vmem:[%s16881_s3 + $0x2440] sm:$0xff]  ;;  %v2066_v38 = vld [vmem:[%s16881_s3 + $0x1d38] sm:$0xff] }
 0x43c   :  { %6014 = vmatpush1.msra.mxu1 %v2129_v24  ;;  %6085 = vmatpush1.msra.mxu0 %v2353_v25  ;;  %v2290_v24 = vld [vmem:[%s16881_s3 + $0x2438] sm:$0xff]  ;;  %v2060_v25 = vld [vmem:[%s16881_s3 + $0x1d08] sm:$0xff] }
 0x43d   :  { %6015 = vmatprep.subr.mxu1 %v2123_v43  ;;  %6086 = vmatprep.subr.mxu0 %v2347_v44  ;;  %v2284_v43 = vld [vmem:[%s16881_s3 + $0x2408] sm:$0xff]  ;;  %v2059_v44 = vld [vmem:[%s16881_s3 + $0x1d00] sm:$0xff] }
 0x43e   :  { %6016 = vmatpush1.msra.mxu1 %v2122_v49  ;;  %6087 = vmatpush1.msra.mxu0 %v2346_v56  ;;  %v2283_v49 = vld [vmem:[%s16881_s3 + $0x2400] sm:$0xff]  ;;  %v2053_v56 = vld [vmem:[%s16881_s3 + $0x1cd0] sm:$0xff] }
 0x43f   :  { %6017 = vmatprep.subr.mxu1 %v2116_v4  ;;  %6088 = vmatprep.subr.mxu0 %v2340_v5  ;;  %v2277_v4 = vld [vmem:[%s16881_s3 + $0x23d0] sm:$0xff]  ;;  %v14184_v5 = vpop.f32.mrf.mxu0 }
 0x440   :  { %6018 = vmatpush1.msra.mxu1 %v2115_v30  ;;  %6089 = vmatpush1.msra.mxu0 %v2339_v61  ;;  %v2052_v30 = vld [vmem:[%s16881_s3 + $0x1cc8] sm:$0xff] }
 0x441   :  { %6019 = vmatprep.subr.mxu1 %v2109_v32  ;;  %6090 = vmatprep.subr.mxu0 %v2333_v7  ;;  %v2276_v61 = vld [vmem:[%s16881_s3 + $0x23c8] sm:$0xff]  ;;  %v2046_v32 = vld [vmem:[%s16881_s3 + $0x1c98] sm:$0xff] }
 0x442   :  { %6020 = vmatpush1.msra.mxu1 %v2108_v48  ;;  %6091 = vmatpush1.msra.mxu0 %v2332_v13  ;;  %v2270_v7 = vld [vmem:[%s16881_s3 + $0x2398] sm:$0xff]  ;;  %v2045_v48 = vld [vmem:[%s16881_s3 + $0x1c90] sm:$0xff] }
 0x443   :  { %6021 = vmatprep.subr.mxu1 %v2102_v8  ;;  %6092 = vmatprep.subr.mxu0 %v2326_v29  ;;  %v2269_v13 = vld [vmem:[%s16881_s3 + $0x2390] sm:$0xff]  ;;  %v2039_v8 = vld [vmem:[%s16881_s3 + $0x1c60] sm:$0xff] }
 0x444   :  { %6022 = vmatpush1.msra.mxu1 %v2101_v9  ;;  %6093 = vmatpush1.msra.mxu0 %v2325_v10  ;;  %v2263_v29 = vld [vmem:[%s16881_s3 + $0x2360] sm:$0xff]  ;;  %v14210_v9 = vpop.f32.mrf.mxu0  ;;  %v14212_v10 = vpop.f32.mrf.mxu1 }
 0x445   :  { %6023 = vmatprep.subr.mxu1 %v2095_v2  ;;  %6094 = vmatprep.subr.mxu0 %v2319_v17  ;;  %v2038_v2 = vld [vmem:[%s16881_s3 + $0x1c58] sm:$0xff] }
 0x446   :  { %6024 = vmatpush1.msra.mxu1 %v2094_v46  ;;  %6095 = vmatpush1.msra.mxu0 %v2318_v47  ;;  %v2262_v17 = vld [vmem:[%s16881_s3 + $0x2358] sm:$0xff]  ;;  %v2032_v46 = vld [vmem:[%s16881_s3 + $0x1c28] sm:$0xff] }
 0x447   :  { %6025 = vmatprep.subr.mxu1 %v2088_v35  ;;  %6096 = vmatprep.subr.mxu0 %v2312_v22  ;;  %v2256_v47 = vld [vmem:[%s16881_s3 + $0x2328] sm:$0xff]  ;;  %v14226_v35 = vpop.f32.mrf.mxu0  ;;  %v2031_v22 = vld [vmem:[%s16881_s3 + $0x1c20] sm:$0xff] }
 0x448   :  { %6026 = vmatpush1.msra.mxu1 %v2087_v62  ;;  %6097 = vmatpush1.msra.mxu0 %v2311_v63  ;;  %v2255_v62 = vld [vmem:[%s16881_s3 + $0x2320] sm:$0xff]  ;;  %v2249_v63 = vld [vmem:[%s16881_s3 + $0x22f0] sm:$0xff] }
 0x449   :  { %6027 = vmatprep.subr.mxu1 %v2081_v27  ;;  %6098 = vmatprep.subr.mxu0 %v2305_v14  ;;  %v2473_v27 = vld [vmem:[%s16881_s3 + $0x29f0] sm:$0xff]  ;;  %v4943_v14 = vpop.f32.mrf.mxu1 }
 0x44a   :  { %6028 = vmatpush1.msra.mxu1 %v2080_v36  ;;  %6099 = vmatpush1.msra.mxu0 %v2304_v21  ;;  %v2248_v36 = vld [vmem:[%s16881_s3 + $0x22e8] sm:$0xff] }
 0x44b   :  { %6029 = vmatprep.subr.mxu1 %v2074_v28  ;;  %6100 = vmatprep.subr.mxu0 %v2298_v33  ;;  %v2472_v21 = vld [vmem:[%s16881_s3 + $0x29e8] sm:$0xff]  ;;  %v2242_v28 = vld [vmem:[%s16881_s3 + $0x22b8] sm:$0xff] }
 0x44c   :  { %6030 = vmatpush1.msra.mxu1 %v2073_v51  ;;  %6101 = vmatpush1.msra.mxu0 %v2297_v18  ;;  %v2466_v33 = vld [vmem:[%s16881_s3 + $0x29b8] sm:$0xff]  ;;  %v5014_v51 = vpop.f32.mrf.mxu0  ;;  %v5083_v18 = vpop.f32.mrf.mxu1 }
 0x44d   :  { %6031 = vmatprep.subr.mxu1 %v2067_v15  ;;  %6102 = vmatprep.subr.mxu0 %v2291_v60  ;;  %v2241_v15 = vld [vmem:[%s16881_s3 + $0x22b0] sm:$0xff] }
 0x44e   :  { %6032 = vmatpush1.msra.mxu1 %v2066_v38  ;;  %6103 = vmatpush1.msra.mxu0 %v2290_v24  ;;  %v2465_v60 = vld [vmem:[%s16881_s3 + $0x29b0] sm:$0xff]  ;;  %v2235_v38 = vld [vmem:[%s16881_s3 + $0x2280] sm:$0xff] }
 0x44f   :  { %6033 = vmatprep.subr.mxu1 %v2060_v25  ;;  %6104 = vmatprep.subr.mxu0 %v2284_v43  ;;  %v2459_v24 = vld [vmem:[%s16881_s3 + $0x2980] sm:$0xff]  ;;  %v5154_v25 = vpop.f32.mrf.mxu0  ;;  %v2234_v43 = vld [vmem:[%s16881_s3 + $0x2278] sm:$0xff] }
 0x450   :  { %6034 = vmatpush1.msra.mxu1 %v2059_v44  ;;  %6105 = vmatpush1.msra.mxu0 %v2283_v49  ;;  %v2458_v44 = vld [vmem:[%s16881_s3 + $0x2978] sm:$0xff]  ;;  %v2228_v49 = vld [vmem:[%s16881_s3 + $0x2248] sm:$0xff] }
 0x451   :  { %6035 = vmatprep.subr.mxu1 %v2053_v56  ;;  %6106 = vmatprep.subr.mxu0 %v2277_v4  ;;  %v2452_v56 = vld [vmem:[%s16881_s3 + $0x2948] sm:$0xff]  ;;  %v5085_v4 = vpop.f32.mrf.mxu1 }
 0x452   :  { %6036 = vmatpush1.msra.mxu1 %v2052_v30  ;;  %6107 = vmatpush1.msra.mxu0 %v2276_v61  ;;  %v2227_v30 = vld [vmem:[%s16881_s3 + $0x2240] sm:$0xff] }
 0x453   :  { %6037 = vmatprep.subr.mxu1 %v2046_v32  ;;  %6108 = vmatprep.subr.mxu0 %v2270_v7  ;;  %v2451_v61 = vld [vmem:[%s16881_s3 + $0x2940] sm:$0xff]  ;;  %v4871_v32 = vadd.f32 %v14184_v5, %v11837_v37  ;;  %v2221_v7 = vld [vmem:[%s16881_s3 + $0x2210] sm:$0xff]  ;;  %v2444_v5 = vld [vmem:[%s16881_s3 + $0x2908] sm:$0xff] }
 0x454   :  { %6038 = vmatpush1.msra.mxu1 %v2045_v48  ;;  %6109 = vmatpush1.msra.mxu0 %v2269_v13  ;;  %v2445_v48 = vld [vmem:[%s16881_s3 + $0x2910] sm:$0xff]  ;;  %v5156_v13 = vpop.f32.mrf.mxu0 }
 0x455   :  { %6039 = vmatprep.subr.mxu1 %v2039_v8  ;;  %6110 = vmatprep.subr.mxu0 %v2263_v29  ;;  %v5225_v8 = vpop.f32.mrf.mxu1  ;;  %v2220_v29 = vld [vmem:[%s16881_s3 + $0x2208] sm:$0xff] }
 0x456   :  { %6040 = vmatpush1.msra.mxu1 %v2038_v2  ;;  %6111 = vmatpush1.msra.mxu0 %v2262_v17  ;;  %v4873_v2 = vadd.f32 %v14210_v9, %v11837_v37  ;;  %v4942_v17 = vadd.f32 %v14212_v10, %v4871_v32  ;;  %v2437_v9 = vld [vmem:[%s16881_s3 + $0x28d0] sm:$0xff] }
 0x457   :  { %6041 = vmatprep.subr.mxu1 %v2032_v46  ;;  %6112 = vmatprep.subr.mxu0 %v2256_v47  ;;  %v2214_v46 = vld [vmem:[%s16881_s3 + $0x21d8] sm:$0xff] }
 0x458   :  { %6042 = vmatpush1.msra.mxu1 %v2031_v22  ;;  %6113 = vmatpush1.msra.mxu0 %v2255_v62  ;;  %v2438_v47 = vld [vmem:[%s16881_s3 + $0x28d8] sm:$0xff]  ;;  %v5296_v22 = vpop.f32.mrf.mxu0  ;;  %v2213_v62 = vld [vmem:[%s16881_s3 + $0x21d0] sm:$0xff]  ;;  %v4944_v10 = vadd.f32 %v4943_v14, %v4873_v2 }
 0x459   :  { %6043 = vmatprep.subr.mxu1 %v2249_v63  ;;  %6114 = vmatprep.subr.mxu0 %v2473_v27  ;;  %v5013_v63 = vadd.f32 %v14226_v35, %v4942_v17  ;;  %v2207_v27 = vld [vmem:[%s16881_s3 + $0x21a0] sm:$0xff]  ;;  %v2430_v35 = vld [vmem:[%s16881_s3 + $0x2898] sm:$0xff] }
 0x45a   :  { %6044 = vmatpush2.msra.mxu1 %v2248_v36  ;;  %6115 = vmatpush2.msra.mxu0 %v2472_v21  ;;  %v2431_v36 = vld [vmem:[%s16881_s3 + $0x28a0] sm:$0xff]  ;;  %v5227_v21 = vpop.f32.mrf.mxu1  ;;  %v5015_v14 = vadd.f32 %v5014_v51, %v4944_v10 }
 0x45b   :  { %6045 = vmatprep.subr.mxu1 %v2242_v28  ;;  %6116 = vmatprep.subr.mxu0 %v2466_v33  ;;  %v2206_v28 = vld [vmem:[%s16881_s3 + $0x2198] sm:$0xff]  ;;  %v5084_v33 = vadd.f32 %v5083_v18, %v5013_v63  ;;  %v2423_v51 = vld [vmem:[%s16881_s3 + $0x2860] sm:$0xff] }
 0x45c   :  { %6046 = vmatpush2.msra.mxu1 %v2241_v15  ;;  %6117 = vmatpush2.msra.mxu0 %v2465_v60  ;;  %v2200_v15 = vld [vmem:[%s16881_s3 + $0x2168] sm:$0xff]  ;;  %v5086_v18 = vadd.f32 %v5085_v4, %v5015_v14  ;;  %v2179_v17 = vld [vmem:[%s16881_s3 + $0x20c0] sm:$0xff] }
 0x45d   :  { %6047 = vmatprep.subr.mxu1 %v2235_v38  ;;  %6118 = vmatprep.subr.mxu0 %v2459_v24  ;;  %v2424_v60 = vld [vmem:[%s16881_s3 + $0x2868] sm:$0xff]  ;;  %v5298_v38 = vpop.f32.mrf.mxu0  ;;  %v5367_v24 = vpop.f32.mrf.mxu1 }
 0x45e   :  { %6048 = vmatpush2.msra.mxu1 %v2234_v43  ;;  %6119 = vmatpush2.msra.mxu0 %v2458_v44  ;;  %v2199_v43 = vld [vmem:[%s16881_s3 + $0x2160] sm:$0xff]  ;;  %v5155_v44 = vadd.f32 %v5154_v25, %v5084_v33  ;;  %v2416_v25 = vld [vmem:[%s16881_s3 + $0x2828] sm:$0xff]  ;;  %v5157_v4 = vadd.f32 %v5156_v13, %v5086_v18  ;;  %v2409_v13 = vld [vmem:[%s16881_s3 + $0x27f0] sm:$0xff] }
 0x45f   :  { %6049 = vmatprep.subr.mxu1 %v2228_v49  ;;  %6120 = vmatprep.subr.mxu0 %v2452_v56  ;;  %v2193_v49 = vld [vmem:[%s16881_s3 + $0x2130] sm:$0xff] }
 0x460   :  { %6050 = vmatpush2.msra.mxu1 %v2227_v30  ;;  %6121 = vmatpush2.msra.mxu0 %v2451_v61  ;;  %v2417_v56 = vld [vmem:[%s16881_s3 + $0x2830] sm:$0xff]  ;;  %v5438_v30 = vpop.f32.mrf.mxu0  ;;  %v2192_v61 = vld [vmem:[%s16881_s3 + $0x2128] sm:$0xff]  ;;  %v5226_v32 = vadd.f32 %v5225_v8, %v5155_v44  ;;  %v5228_v8 = vadd.f32 %v5227_v21, %v5157_v4  ;;  %v2158_v44 = vld [vmem:[%s16881_s3 + $0x2018] sm:$0xff] }
 0x461   :  { %6051 = vmatprep.subr.mxu1 %v2221_v7  ;;  %6122 = vmatprep.subr.mxu0 %v2445_v48  ;;  %v2186_v7 = vld [vmem:[%s16881_s3 + $0x20f8] sm:$0xff] }
 0x462   :  { %6052 = vmatpush2.msra.mxu1 %v2220_v29  ;;  %6123 = vmatpush2.msra.mxu0 %v2444_v5  ;;  %v2410_v48 = vld [vmem:[%s16881_s3 + $0x27f8] sm:$0xff]  ;;  %v5369_v29 = vpop.f32.mrf.mxu1  ;;  %v2185_v5 = vld [vmem:[%s16881_s3 + $0x20f0] sm:$0xff]  ;;  %v5297_v2 = vadd.f32 %v5296_v22, %v5226_v32  ;;  %v5299_v10 = vadd.f32 %v5298_v38, %v5228_v8  ;;  %v2151_v32 = vld [vmem:[%s16881_s3 + $0x1fe0] sm:$0xff] }
 0x463   :  { %6053 = vmatprep.subr.mxu1 %v2214_v46  ;;  %6124 = vmatprep.subr.mxu0 %v2438_v47  ;;  %v2403_v46 = vld [vmem:[%s16881_s3 + $0x27c0] sm:$0xff]  ;;  %v5440_v47 = vpop.f32.mrf.mxu0  ;;  %v2402_v22 = vld [vmem:[%s16881_s3 + $0x27b8] sm:$0xff] }
 0x464   :  { %6054 = vmatpush2.msra.mxu1 %v2213_v62  ;;  %6125 = vmatpush2.msra.mxu0 %v2437_v9  ;;  %v5509_v62 = vpop.f32.mrf.mxu1  ;;  %v2178_v9 = vld [vmem:[%s16881_s3 + $0x20b8] sm:$0xff]  ;;  %v5368_v63 = vadd.f32 %v5367_v24, %v5297_v2  ;;  %v5370_v14 = vadd.f32 %v5369_v29, %v5299_v10  ;;  %v2164_v24 = vld [vmem:[%s16881_s3 + $0x2048] sm:$0xff] }
 0x465   :  { %6055 = vmatprep.subr.mxu1 %v2207_v27  ;;  %6126 = vmatprep.subr.mxu0 %v2431_v36  ;;  %v2172_v27 = vld [vmem:[%s16881_s3 + $0x2088] sm:$0xff]  ;;  %v5580_v21 = vpop.f32.mrf.mxu0  ;;  %v2374_v29 = vld [vmem:[%s16881_s3 + $0x26d8] sm:$0xff] }
 0x466   :  { %6056 = vmatpush2.msra.mxu1 %v2206_v28  ;;  %6127 = vmatpush2.msra.mxu0 %v2430_v35  ;;  %v2396_v36 = vld [vmem:[%s16881_s3 + $0x2788] sm:$0xff]  ;;  %v2171_v28 = vld [vmem:[%s16881_s3 + $0x2080] sm:$0xff]  ;;  %v5439_v33 = vadd.f32 %v5438_v30, %v5368_v63  ;;  %v5511_v38 = vpop.f32.mrf.mxu1  ;;  %v2157_v30 = vld [vmem:[%s16881_s3 + $0x2010] sm:$0xff] }
 0x467   :  { %6057 = vmatprep.subr.mxu1 %v2200_v15  ;;  %6128 = vmatprep.subr.mxu0 %v2424_v60  ;;  %v2395_v35 = vld [vmem:[%s16881_s3 + $0x2780] sm:$0xff]  ;;  %v2165_v15 = vld [vmem:[%s16881_s3 + $0x2050] sm:$0xff]  ;;  %v2144_v2 = vld [vmem:[%s16881_s3 + $0x1fa8] sm:$0xff] }
 0x468   :  { %6058 = vmatpush2.msra.mxu1 %v2199_v43  ;;  %6129 = vmatpush2.msra.mxu0 %v2423_v51  ;;  %v2389_v60 = vld [vmem:[%s16881_s3 + $0x2750] sm:$0xff]  ;;  %v2388_v43 = vld [vmem:[%s16881_s3 + $0x2748] sm:$0xff]  ;;  %v5441_v51 = vadd.f32 %v5440_v47, %v5370_v14  ;;  %v5510_v18 = vadd.f32 %v5509_v62, %v5439_v33  ;;  %v2143_v47 = vld [vmem:[%s16881_s3 + $0x1fa0] sm:$0xff] }
 0x469   :  { %6059 = vmatprep.subr.mxu1 %v2193_v49  ;;  %6130 = vmatprep.subr.mxu0 %v2417_v56  ;;  %v2382_v49 = vld [vmem:[%s16881_s3 + $0x2718] sm:$0xff]  ;;  %v5582_v56 = vpop.f32.mrf.mxu0  ;;  %v2367_v62 = vld [vmem:[%s16881_s3 + $0x26a0] sm:$0xff]  ;;  %v2585_v63 = vld [vmem:[%s16881_s3 + $0x2d70] sm:$0xff] }
 0x46a   :  { %6060 = vmatpush2.msra.mxu1 %v2192_v61  ;;  %6131 = vmatpush2.msra.mxu0 %v2416_v25  ;;  %v2381_v61 = vld [vmem:[%s16881_s3 + $0x2710] sm:$0xff]  ;;  %v5512_v25 = vadd.f32 %v5511_v38, %v5441_v51  ;;  %v5581_v4 = vadd.f32 %v5580_v21, %v5510_v18  ;;  %v2808_v14 = vld [vmem:[%s16881_s3 + $0x3468] sm:$0xff]  ;;  %v2795_v51 = vld [vmem:[%s16881_s3 + $0x3400] sm:$0xff] }
 0x46b   :  { %6061 = vmatprep.subr.mxu1 %v2186_v7  ;;  %6132 = vmatprep.subr.mxu0 %v2410_v48  ;;  %v2375_v7 = vld [vmem:[%s16881_s3 + $0x26e0] sm:$0xff]  ;;  %v2150_v48 = vld [vmem:[%s16881_s3 + $0x1fd8] sm:$0xff]  ;;  %v2577_v38 = vld [vmem:[%s16881_s3 + $0x2d30] sm:$0xff] }
 0x46c   :  { %6062 = vmatpush2.msra.mxu1 %v2185_v5  ;;  %6133 = vmatpush2.msra.mxu0 %v2409_v13  ;;  %v5583_v8 = vadd.f32 %v5582_v56, %v5512_v25  ;;  %v2570_v18 = vld [vmem:[%s16881_s3 + $0x2cf8] sm:$0xff]  ;;  %v2788_v56 = vld [vmem:[%s16881_s3 + $0x33c8] sm:$0xff]  ;;  %v2557_v25 = vld [vmem:[%s16881_s3 + $0x2c90] sm:$0xff] }
 0x46d   :  { %6063 = vmatprep.subr.mxu1 %v2179_v17  ;;  %6134 = vmatprep.subr.mxu0 %v2403_v46  ;;  %v2368_v17 = vld [vmem:[%s16881_s3 + $0x26a8] sm:$0xff] }
 0x46e   :  { %6064 = vmatpush2.msra.mxu1 %v2178_v9  ;;  %6135 = vmatpush2.msra.mxu0 %v2402_v22 }
 0x46f   :  { %6065 = vmatprep.subr.mxu1 %v2172_v27  ;;  %6136 = vmatprep.subr.mxu0 %v2396_v36  ;;  %v2809_v27 = vld [vmem:[%s16881_s3 + $0x3470] sm:$0xff] }
 0x470   :  { %6066 = vmatpush2.msra.mxu1 %v2171_v28  ;;  %6137 = vmatpush2.msra.mxu0 %v2395_v35  ;;  %v2584_v28 = vld [vmem:[%s16881_s3 + $0x2d68] sm:$0xff] }
 0x471   :  { %6067 = vmatprep.subr.mxu1 %v2165_v15  ;;  %6138 = vmatprep.subr.mxu0 %v2389_v60  ;;  %v2578_v15 = vld [vmem:[%s16881_s3 + $0x2d38] sm:$0xff] }
 0x472   :  { %6068 = vmatpush2.msra.mxu1 %v2164_v24  ;;  %6139 = vmatpush2.msra.mxu0 %v2388_v43  ;;  %v2802_v60 = vld [vmem:[%s16881_s3 + $0x3438] sm:$0xff]  ;;  %v2801_v24 = vld [vmem:[%s16881_s3 + $0x3430] sm:$0xff]  ;;  %v2571_v43 = vld [vmem:[%s16881_s3 + $0x2d00] sm:$0xff] }
 0x473   :  { %6069 = vmatprep.subr.mxu1 %v2158_v44  ;;  %6140 = vmatprep.subr.mxu0 %v2382_v49  ;;  %v5651_v5 = vpop.f32.mrf.mxu1  ;;  %v5722_v13 = vpop.f32.mrf.mxu0  ;;  %v2794_v44 = vld [vmem:[%s16881_s3 + $0x33f8] sm:$0xff]  ;;  %v2564_v49 = vld [vmem:[%s16881_s3 + $0x2cc8] sm:$0xff] }
 0x474   :  { %6070 = vmatpush2.msra.mxu1 %v2157_v30  ;;  %6141 = vmatpush2.msra.mxu0 %v2381_v61  ;;  %v5652_v46 = vadd.f32 %v5651_v5, %v5581_v4  ;;  %v2563_v30 = vld [vmem:[%s16881_s3 + $0x2cc0] sm:$0xff]  ;;  %v2781_v4 = vld [vmem:[%s16881_s3 + $0x3390] sm:$0xff] }
 0x475   :  { %6071 = vmatprep.subr.mxu1 %v2151_v32  ;;  %6142 = vmatprep.subr.mxu0 %v2375_v7  ;;  %v5653_v9 = vpop.f32.mrf.mxu1  ;;  %v5724_v36 = vpop.f32.mrf.mxu0  ;;  %v2787_v61 = vld [vmem:[%s16881_s3 + $0x33c0] sm:$0xff]  ;;  %v2556_v32 = vld [vmem:[%s16881_s3 + $0x2c88] sm:$0xff]  ;;  %v2549_v5 = vld [vmem:[%s16881_s3 + $0x2c50] sm:$0xff] }
 0x476   :  { %6072 = vmatpush2.msra.mxu1 %v2150_v48  ;;  %6143 = vmatpush2.msra.mxu0 %v2374_v29  ;;  %v5723_v22 = vadd.f32 %v5722_v13, %v5652_v46  ;;  %v5654_v10 = vadd.f32 %v5653_v9, %v5583_v8  ;;  %v2780_v7 = vld [vmem:[%s16881_s3 + $0x3388] sm:$0xff]  ;;  %v2550_v48 = vld [vmem:[%s16881_s3 + $0x2c58] sm:$0xff]  ;;  %v2773_v13 = vld [vmem:[%s16881_s3 + $0x3350] sm:$0xff] }
 0x477   :  { %6073 = vmatprep.subr.mxu1 %v2144_v2  ;;  %6144 = vmatprep.subr.mxu0 %v2368_v17  ;;  %v2774_v29 = vld [vmem:[%s16881_s3 + $0x3358] sm:$0xff]  ;;  %v2543_v8 = vld [vmem:[%s16881_s3 + $0x2c20] sm:$0xff] }
 0x478   :  { %6074 = vmatpush2.msra.mxu1 %v2143_v47  ;;  %6145 = vmatpush2.msra.mxu0 %v2367_v62  ;;  %v7634_v21 = vmul.f32 -1.442695, %v5723_v22  ;;  %v5725_v35 = vadd.f32 %v5724_v36, %v5654_v10  ;;  %v2767_v2 = vld [vmem:[%s16881_s3 + $0x3320] sm:$0xff]  ;;  %v2542_v17 = vld [vmem:[%s16881_s3 + $0x2c18] sm:$0xff]  ;;  %v2536_v47 = vld [vmem:[%s16881_s3 + $0x2be8] sm:$0xff] }
 0x479   :  { %6076 = vmatmul.mubr.f32.vlgmr.msra.gmra.mxu1 %v9595_v1  ;;  %6147 = vmatmul.mubr.f32.vlgmr.msra.gmra.mxu0 %v9593_v0  ;;  %v2766_v46 = vld [vmem:[%s16881_s3 + $0x3318] sm:$0xff]  ;;  %v2760_v62 = vld [vmem:[%s16881_s3 + $0x32e8] sm:$0xff]  ;;  %v2535_v22 = vld [vmem:[%s16881_s3 + $0x2be0] sm:$0xff] }
 0x47a   :  { %8104 = vpow2.f32 %v7634_v21  ;;  %6153 = vmatprep.subr.mxu1 %v2585_v63  ;;  %6224 = vmatprep.subr.mxu0 %v2809_v27  ;;  %v7635_v33 = vmul.f32 -1.442695, %v5725_v35  ;;  %v2759_v10 = vld [vmem:[%s16881_s3 + $0x32e0] sm:$0xff]  ;;  %v2529_v27 = vld [vmem:[%s16881_s3 + $0x2bb0] sm:$0xff]  ;;  %v2752_v35 = vld [vmem:[%s16881_s3 + $0x32a8] sm:$0xff] }
 0x47b   :  { %6154 = vmatpush1.msra.mxu1 %v2584_v28  ;;  %6217 = vmatprep.mubr.f32.mxu1 %v9597_v6  ;;  %v2753_v36 = vld [vmem:[%s16881_s3 + $0x32b0] sm:$0xff]  ;;  %v2528_v28 = vld [vmem:[%s16881_s3 + $0x2ba8] sm:$0xff] }
 0x47c   :  { %6225 = vmatpush1.msra.mxu0 %v2808_v14  ;;  %6288 = vmatprep.mubr.f32.mxu0 %v9613_v11  ;;  %8106 = vpow2.f32 %v7635_v33  ;;  %v2522_v33 = vld [vmem:[%s16881_s3 + $0x2b78] sm:$0xff] }
 0x47d   :  { %6155 = vmatprep.subr.mxu1 %v2578_v15  ;;  %6226 = vmatprep.subr.mxu0 %v2802_v60  ;;  %v2746_v15 = vld [vmem:[%s16881_s3 + $0x3278] sm:$0xff]  ;;  %v2521_v60 = vld [vmem:[%s16881_s3 + $0x2b70] sm:$0xff] }
 0x47e   :  { %6156 = vmatpush1.msra.mxu1 %v2577_v38  ;;  %6227 = vmatpush1.msra.mxu0 %v2801_v24  ;;  %v2745_v38 = vld [vmem:[%s16881_s3 + $0x3270] sm:$0xff]  ;;  %v2515_v24 = vld [vmem:[%s16881_s3 + $0x2b40] sm:$0xff] }
 0x47f   :  { %6157 = vmatprep.subr.mxu1 %v2571_v43  ;;  %6228 = vmatprep.subr.mxu0 %v2795_v51  ;;  %v2739_v43 = vld [vmem:[%s16881_s3 + $0x3240] sm:$0xff]  ;;  %v2514_v51 = vld [vmem:[%s16881_s3 + $0x2b38] sm:$0xff] }
 0x480   :  { %6158 = vmatpush1.msra.mxu1 %v2570_v18  ;;  %6229 = vmatpush1.msra.mxu0 %v2794_v44  ;;  %v2738_v18 = vld [vmem:[%s16881_s3 + $0x3238] sm:$0xff]  ;;  %v2508_v44 = vld [vmem:[%s16881_s3 + $0x2b08] sm:$0xff] }
 0x481   :  { %6159 = vmatprep.subr.mxu1 %v2564_v49  ;;  %6230 = vmatprep.subr.mxu0 %v2788_v56  ;;  %v2732_v49 = vld [vmem:[%s16881_s3 + $0x3208] sm:$0xff]  ;;  %v2507_v56 = vld [vmem:[%s16881_s3 + $0x2b00] sm:$0xff] }
 0x482   :  { %6160 = vmatpush1.msra.mxu1 %v2563_v30  ;;  %6231 = vmatpush1.msra.mxu0 %v2787_v61  ;;  %v2731_v30 = vld [vmem:[%s16881_s3 + $0x3200] sm:$0xff]  ;;  %v2501_v61 = vld [vmem:[%s16881_s3 + $0x2ad0] sm:$0xff] }
 0x483   :  { %6161 = vmatprep.subr.mxu1 %v2557_v25  ;;  %6232 = vmatprep.subr.mxu0 %v2781_v4  ;;  %v2725_v25 = vld [vmem:[%s16881_s3 + $0x31d0] sm:$0xff]  ;;  %v2500_v4 = vld [vmem:[%s16881_s3 + $0x2ac8] sm:$0xff] }
 0x484   :  { %6162 = vmatpush1.msra.mxu1 %v2556_v32  ;;  %6233 = vmatpush1.msra.mxu0 %v2780_v7  ;;  %v2724_v32 = vld [vmem:[%s16881_s3 + $0x31c8] sm:$0xff]  ;;  %v2494_v7 = vld [vmem:[%s16881_s3 + $0x2a98] sm:$0xff] }
 0x485   :  { %6163 = vmatprep.subr.mxu1 %v2550_v48  ;;  %6234 = vmatprep.subr.mxu0 %v2774_v29  ;;  %v2718_v48 = vld [vmem:[%s16881_s3 + $0x3198] sm:$0xff]  ;;  %v2493_v29 = vld [vmem:[%s16881_s3 + $0x2a90] sm:$0xff] }
 0x486   :  { %6164 = vmatpush1.msra.mxu1 %v2549_v5  ;;  %6235 = vmatpush1.msra.mxu0 %v2773_v13  ;;  %v2717_v5 = vld [vmem:[%s16881_s3 + $0x3190] sm:$0xff]  ;;  %v2487_v13 = vld [vmem:[%s16881_s3 + $0x2a60] sm:$0xff] }
 0x487   :  { %v8105_v9 = vpop.eup %8104  ;;  %6165 = vmatprep.subr.mxu1 %v2543_v8  ;;  %6236 = vmatprep.subr.mxu0 %v2767_v2  ;;  %v2711_v8 = vld [vmem:[%s16881_s3 + $0x3160] sm:$0xff]  ;;  %v2486_v2 = vld [vmem:[%s16881_s3 + $0x2a58] sm:$0xff] }
 0x488   :  { %v7583_v63 = vadd.f32 1.0, %v8105_v9  ;;  %6166 = vmatpush1.msra.mxu1 %v2542_v17  ;;  %6237 = vmatpush1.msra.mxu0 %v2766_v46  ;;  %v2710_v17 = vld [vmem:[%s16881_s3 + $0x3158] sm:$0xff]  ;;  %v2480_v46 = vld [vmem:[%s16881_s3 + $0x2a28] sm:$0xff]  ;;  %v2479_v9 = vld [vmem:[%s16881_s3 + $0x2a20] sm:$0xff] }
 0x489   :  { %v8107_v21 = vpop.eup %8106  ;;  %6167 = vmatprep.subr.mxu1 %v2536_v47  ;;  %6238 = vmatprep.subr.mxu0 %v2760_v62  ;;  %v2704_v47 = vld [vmem:[%s16881_s3 + $0x3128] sm:$0xff] }
 0x48a   :  { %8108 = vrcp.f32 %v7583_v63  ;;  %v7584_v14 = vadd.f32 1.0, %v8107_v21  ;;  %6168 = vmatpush1.msra.mxu1 %v2535_v22  ;;  %6239 = vmatpush1.msra.mxu0 %v2759_v10  ;;  %v2703_v22 = vld [vmem:[%s16881_s3 + $0x3120] sm:$0xff]  ;;  %v2697_v10 = vld [vmem:[%s16881_s3 + $0x30f0] sm:$0xff]  ;;  %v2920_v21 = vld [vmem:[%s16881_s3 + $0x37e8] sm:$0xff] }
 0x48b   :  { %6169 = vmatprep.subr.mxu1 %v2529_v27  ;;  %6240 = vmatprep.subr.mxu0 %v2753_v36  ;;  %v2921_v63 = vld [vmem:[%s16881_s3 + $0x37f0] sm:$0xff]  ;;  %v2696_v36 = vld [vmem:[%s16881_s3 + $0x30e8] sm:$0xff] }
 0x48c   :  { %8110 = vrcp.f32 %v7584_v14  ;;  %6170 = vmatpush1.msra.mxu1 %v2528_v28  ;;  %6241 = vmatpush1.msra.mxu0 %v2752_v35  ;;  %v2690_v28 = vld [vmem:[%s16881_s3 + $0x30b8] sm:$0xff]  ;;  %v2689_v14 = vld [vmem:[%s16881_s3 + $0x30b0] sm:$0xff] }
 0x48d   :  { %6171 = vmatprep.subr.mxu1 %v2522_v33  ;;  %6242 = vmatprep.subr.mxu0 %v2746_v15  ;;  %v2914_v35 = vld [vmem:[%s16881_s3 + $0x37b8] sm:$0xff]  ;;  %v2913_v33 = vld [vmem:[%s16881_s3 + $0x37b0] sm:$0xff]  ;;  %v2683_v15 = vld [vmem:[%s16881_s3 + $0x3080] sm:$0xff] }
 0x48e   :  { %6172 = vmatpush1.msra.mxu1 %v2521_v60  ;;  %6243 = vmatpush1.msra.mxu0 %v2745_v38  ;;  %v2907_v60 = vld [vmem:[%s16881_s3 + $0x3780] sm:$0xff]  ;;  %v2682_v38 = vld [vmem:[%s16881_s3 + $0x3078] sm:$0xff] }
 0x48f   :  { %6173 = vmatprep.subr.mxu1 %v2515_v24  ;;  %6244 = vmatprep.subr.mxu0 %v2739_v43  ;;  %v2906_v24 = vld [vmem:[%s16881_s3 + $0x3778] sm:$0xff]  ;;  %v2676_v43 = vld [vmem:[%s16881_s3 + $0x3048] sm:$0xff] }
 0x490   :  { %6174 = vmatpush1.msra.mxu1 %v2514_v51  ;;  %6245 = vmatpush1.msra.mxu0 %v2738_v18  ;;  %v2900_v51 = vld [vmem:[%s16881_s3 + $0x3748] sm:$0xff]  ;;  %v2675_v18 = vld [vmem:[%s16881_s3 + $0x3040] sm:$0xff] }
 0x491   :  { %6175 = vmatprep.subr.mxu1 %v2508_v44  ;;  %6246 = vmatprep.subr.mxu0 %v2732_v49  ;;  %v2899_v44 = vld [vmem:[%s16881_s3 + $0x3740] sm:$0xff]  ;;  %v2669_v49 = vld [vmem:[%s16881_s3 + $0x3010] sm:$0xff] }
 0x492   :  { %6176 = vmatpush1.msra.mxu1 %v2507_v56  ;;  %6247 = vmatpush1.msra.mxu0 %v2731_v30  ;;  %v2893_v56 = vld [vmem:[%s16881_s3 + $0x3710] sm:$0xff]  ;;  %v2668_v30 = vld [vmem:[%s16881_s3 + $0x3008] sm:$0xff] }
 0x493   :  { %6177 = vmatprep.subr.mxu1 %v2501_v61  ;;  %6248 = vmatprep.subr.mxu0 %v2725_v25  ;;  %v2892_v61 = vld [vmem:[%s16881_s3 + $0x3708] sm:$0xff]  ;;  %v2662_v25 = vld [vmem:[%s16881_s3 + $0x2fd8] sm:$0xff] }
 0x494   :  { %6178 = vmatpush1.msra.mxu1 %v2500_v4  ;;  %6249 = vmatpush1.msra.mxu0 %v2724_v32  ;;  %v2886_v4 = vld [vmem:[%s16881_s3 + $0x36d8] sm:$0xff]  ;;  %v2661_v32 = vld [vmem:[%s16881_s3 + $0x2fd0] sm:$0xff] }
 0x495   :  { %6179 = vmatprep.subr.mxu1 %v2494_v7  ;;  %6250 = vmatprep.subr.mxu0 %v2718_v48  ;;  %v2885_v7 = vld [vmem:[%s16881_s3 + $0x36d0] sm:$0xff]  ;;  %v2655_v48 = vld [vmem:[%s16881_s3 + $0x2fa0] sm:$0xff] }
 0x496   :  { %6180 = vmatpush1.msra.mxu1 %v2493_v29  ;;  %6251 = vmatpush1.msra.mxu0 %v2717_v5  ;;  %v2879_v29 = vld [vmem:[%s16881_s3 + $0x36a0] sm:$0xff]  ;;  %v2654_v5 = vld [vmem:[%s16881_s3 + $0x2f98] sm:$0xff] }
 0x497   :  { %v8109_v62 = vpop.eup %8108  ;;  %6181 = vmatprep.subr.mxu1 %v2487_v13  ;;  %6252 = vmatprep.subr.mxu0 %v2711_v8  ;;  %v2878_v13 = vld [vmem:[%s16881_s3 + $0x3698] sm:$0xff]  ;;  %v2648_v8 = vld [vmem:[%s16881_s3 + $0x2f68] sm:$0xff] }
 0x498   :  { %7604 = vst [vmem:[%s16884_s5 + $0x10] sm:$0xff] %v8109_v62  ;;  %6182 = vmatpush1.msra.mxu1 %v2486_v2  ;;  %6253 = vmatpush1.msra.mxu0 %v2710_v17  ;;  %v2872_v2 = vld [vmem:[%s16881_s3 + $0x3668] sm:$0xff]  ;;  %v2647_v17 = vld [vmem:[%s16881_s3 + $0x2f60] sm:$0xff]  ;;  %v2865_v62 = vld [vmem:[%s16881_s3 + $0x3630] sm:$0xff] }
 0x499   :  { %v8111_v27 = vpop.eup %8110  ;;  %6183 = vmatprep.subr.mxu1 %v2480_v46  ;;  %6254 = vmatprep.subr.mxu0 %v2704_v47  ;;  %v2871_v46 = vld [vmem:[%s16881_s3 + $0x3660] sm:$0xff]  ;;  %v2641_v47 = vld [vmem:[%s16881_s3 + $0x2f30] sm:$0xff] }
 0x49a   :  { %7605 = vst [vmem:[%s16884_s5 + $0x18] sm:$0xff] %v8111_v27  ;;  %6184 = vmatpush1.msra.mxu1 %v2479_v9  ;;  %6255 = vmatpush1.msra.mxu0 %v2703_v22  ;;  %v2640_v9 = vld [vmem:[%s16881_s3 + $0x2f28] sm:$0xff]  ;;  %v2633_v27 = vld [vmem:[%s16881_s3 + $0x2ef0] sm:$0xff] }
 0x49b   :  { %6185 = vmatprep.subr.mxu1 %v2697_v10  ;;  %6256 = vmatprep.subr.mxu0 %v2921_v63  ;;  %v2864_v22 = vld [vmem:[%s16881_s3 + $0x3628] sm:$0xff]  ;;  %v2634_v10 = vld [vmem:[%s16881_s3 + $0x2ef8] sm:$0xff] }
 0x49c   :  { %6186 = vmatpush2.msra.mxu1 %v2696_v36  ;;  %6257 = vmatpush2.msra.mxu0 %v2920_v21  ;;  %v2858_v63 = vld [vmem:[%s16881_s3 + $0x35f8] sm:$0xff]  ;;  %v2857_v36 = vld [vmem:[%s16881_s3 + $0x35f0] sm:$0xff]  ;;  %v2627_v21 = vld [vmem:[%s16881_s3 + $0x2ec0] sm:$0xff] }
 0x49d   :  { %6187 = vmatprep.subr.mxu1 %v2690_v28  ;;  %6258 = vmatprep.subr.mxu0 %v2914_v35  ;;  %v2851_v28 = vld [vmem:[%s16881_s3 + $0x35c0] sm:$0xff]  ;;  %v2626_v35 = vld [vmem:[%s16881_s3 + $0x2eb8] sm:$0xff] }
 0x49e   :  { %6188 = vmatpush2.msra.mxu1 %v2689_v14  ;;  %6259 = vmatpush2.msra.mxu0 %v2913_v33  ;;  %v2850_v14 = vld [vmem:[%s16881_s3 + $0x35b8] sm:$0xff]  ;;  %v2620_v33 = vld [vmem:[%s16881_s3 + $0x2e88] sm:$0xff] }
 0x49f   :  { %6189 = vmatprep.subr.mxu1 %v2683_v15  ;;  %6260 = vmatprep.subr.mxu0 %v2907_v60  ;;  %v2844_v15 = vld [vmem:[%s16881_s3 + $0x3588] sm:$0xff]  ;;  %v2619_v60 = vld [vmem:[%s16881_s3 + $0x2e80] sm:$0xff] }
 0x4a0   :  { %6190 = vmatpush2.msra.mxu1 %v2682_v38  ;;  %6261 = vmatpush2.msra.mxu0 %v2906_v24  ;;  %v2843_v38 = vld [vmem:[%s16881_s3 + $0x3580] sm:$0xff]  ;;  %v2613_v24 = vld [vmem:[%s16881_s3 + $0x2e50] sm:$0xff] }
 0x4a1   :  { %6191 = vmatprep.subr.mxu1 %v2676_v43  ;;  %6262 = vmatprep.subr.mxu0 %v2900_v51  ;;  %v2837_v43 = vld [vmem:[%s16881_s3 + $0x3550] sm:$0xff]  ;;  %v2612_v51 = vld [vmem:[%s16881_s3 + $0x2e48] sm:$0xff] }
 0x4a2   :  { %6192 = vmatpush2.msra.mxu1 %v2675_v18  ;;  %6263 = vmatpush2.msra.mxu0 %v2899_v44  ;;  %v2836_v18 = vld [vmem:[%s16881_s3 + $0x3548] sm:$0xff]  ;;  %v2606_v44 = vld [vmem:[%s16881_s3 + $0x2e18] sm:$0xff] }
 0x4a3   :  { %6193 = vmatprep.subr.mxu1 %v2669_v49  ;;  %6264 = vmatprep.subr.mxu0 %v2893_v56  ;;  %v2830_v49 = vld [vmem:[%s16881_s3 + $0x3518] sm:$0xff]  ;;  %v2605_v56 = vld [vmem:[%s16881_s3 + $0x2e10] sm:$0xff] }
 0x4a4   :  { %6194 = vmatpush2.msra.mxu1 %v2668_v30  ;;  %6265 = vmatpush2.msra.mxu0 %v2892_v61  ;;  %v2829_v30 = vld [vmem:[%s16881_s3 + $0x3510] sm:$0xff]  ;;  %v2599_v61 = vld [vmem:[%s16881_s3 + $0x2de0] sm:$0xff] }
 0x4a5   :  { %6195 = vmatprep.subr.mxu1 %v2662_v25  ;;  %6266 = vmatprep.subr.mxu0 %v2886_v4  ;;  %v2823_v25 = vld [vmem:[%s16881_s3 + $0x34e0] sm:$0xff]  ;;  %v2598_v4 = vld [vmem:[%s16881_s3 + $0x2dd8] sm:$0xff] }
 0x4a6   :  { %6196 = vmatpush2.msra.mxu1 %v2661_v32  ;;  %6267 = vmatpush2.msra.mxu0 %v2885_v7  ;;  %v2822_v32 = vld [vmem:[%s16881_s3 + $0x34d8] sm:$0xff]  ;;  %v2592_v7 = vld [vmem:[%s16881_s3 + $0x2da8] sm:$0xff] }
 0x4a7   :  { %6197 = vmatprep.subr.mxu1 %v2655_v48  ;;  %6268 = vmatprep.subr.mxu0 %v2879_v29  ;;  %v2816_v48 = vld [vmem:[%s16881_s3 + $0x34a8] sm:$0xff]  ;;  %v2591_v29 = vld [vmem:[%s16881_s3 + $0x2da0] sm:$0xff] }
 0x4a8   :  { %6198 = vmatpush2.msra.mxu1 %v2654_v5  ;;  %6269 = vmatpush2.msra.mxu0 %v2878_v13  ;;  %v2815_v5 = vld [vmem:[%s16881_s3 + $0x34a0] sm:$0xff]  ;;  %v3033_v13 = vld [vmem:[%s16881_s3 + $0x3b70] sm:$0xff] }
 0x4a9   :  { %6199 = vmatprep.subr.mxu1 %v2648_v8  ;;  %6270 = vmatprep.subr.mxu0 %v2872_v2  ;;  %v3257_v8 = vld [vmem:[%s16881_s3 + $0x4270] sm:$0xff]  ;;  %v3032_v2 = vld [vmem:[%s16881_s3 + $0x3b68] sm:$0xff] }
 0x4aa   :  { %6200 = vmatpush2.msra.mxu1 %v2647_v17  ;;  %6271 = vmatpush2.msra.mxu0 %v2871_v46  ;;  %v3256_v17 = vld [vmem:[%s16881_s3 + $0x4268] sm:$0xff]  ;;  %v3026_v46 = vld [vmem:[%s16881_s3 + $0x3b38] sm:$0xff] }
 0x4ab   :  { %6201 = vmatprep.subr.mxu1 %v2641_v47  ;;  %6272 = vmatprep.subr.mxu0 %v2865_v62  ;;  %v3250_v47 = vld [vmem:[%s16881_s3 + $0x4238] sm:$0xff]  ;;  %v3025_v62 = vld [vmem:[%s16881_s3 + $0x3b30] sm:$0xff] }
 0x4ac   :  { %6202 = vmatpush2.msra.mxu1 %v2640_v9  ;;  %6273 = vmatpush2.msra.mxu0 %v2864_v22  ;;  %v3249_v9 = vld [vmem:[%s16881_s3 + $0x4230] sm:$0xff]  ;;  %v3019_v22 = vld [vmem:[%s16881_s3 + $0x3b00] sm:$0xff] }
 0x4ad   :  { %6203 = vmatprep.subr.mxu1 %v2634_v10  ;;  %6274 = vmatprep.subr.mxu0 %v2858_v63  ;;  %v3243_v10 = vld [vmem:[%s16881_s3 + $0x4200] sm:$0xff]  ;;  %v3018_v63 = vld [vmem:[%s16881_s3 + $0x3af8] sm:$0xff] }
 0x4ae   :  { %6204 = vmatpush2.msra.mxu1 %v2633_v27  ;;  %6275 = vmatpush2.msra.mxu0 %v2857_v36  ;;  %v3242_v27 = vld [vmem:[%s16881_s3 + $0x41f8] sm:$0xff]  ;;  %v3012_v36 = vld [vmem:[%s16881_s3 + $0x3ac8] sm:$0xff] }
 0x4af   :  { %6205 = vmatprep.subr.mxu1 %v2627_v21  ;;  %6276 = vmatprep.subr.mxu0 %v2851_v28  ;;  %v3236_v21 = vld [vmem:[%s16881_s3 + $0x41c8] sm:$0xff]  ;;  %v3011_v28 = vld [vmem:[%s16881_s3 + $0x3ac0] sm:$0xff] }
 0x4b0   :  { %6206 = vmatpush2.msra.mxu1 %v2626_v35  ;;  %6277 = vmatpush2.msra.mxu0 %v2850_v14  ;;  %v3235_v35 = vld [vmem:[%s16881_s3 + $0x41c0] sm:$0xff]  ;;  %v3005_v14 = vld [vmem:[%s16881_s3 + $0x3a90] sm:$0xff] }
 0x4b1   :  { %6207 = vmatprep.subr.mxu1 %v2620_v33  ;;  %6278 = vmatprep.subr.mxu0 %v2844_v15  ;;  %v3229_v33 = vld [vmem:[%s16881_s3 + $0x4190] sm:$0xff]  ;;  %v3004_v15 = vld [vmem:[%s16881_s3 + $0x3a88] sm:$0xff] }
 0x4b2   :  { %6208 = vmatpush2.msra.mxu1 %v2619_v60  ;;  %6279 = vmatpush2.msra.mxu0 %v2843_v38  ;;  %v3228_v60 = vld [vmem:[%s16881_s3 + $0x4188] sm:$0xff]  ;;  %v2998_v38 = vld [vmem:[%s16881_s3 + $0x3a58] sm:$0xff] }
 0x4b3   :  { %6209 = vmatprep.subr.mxu1 %v2613_v24  ;;  %6280 = vmatprep.subr.mxu0 %v2837_v43  ;;  %v3222_v24 = vld [vmem:[%s16881_s3 + $0x4158] sm:$0xff]  ;;  %v2997_v43 = vld [vmem:[%s16881_s3 + $0x3a50] sm:$0xff] }
 0x4b4   :  { %6210 = vmatpush2.msra.mxu1 %v2612_v51  ;;  %6281 = vmatpush2.msra.mxu0 %v2836_v18  ;;  %v3221_v51 = vld [vmem:[%s16881_s3 + $0x4150] sm:$0xff]  ;;  %v2991_v18 = vld [vmem:[%s16881_s3 + $0x3a20] sm:$0xff] }
 0x4b5   :  { %6211 = vmatprep.subr.mxu1 %v2606_v44  ;;  %6282 = vmatprep.subr.mxu0 %v2830_v49  ;;  %v3215_v44 = vld [vmem:[%s16881_s3 + $0x4120] sm:$0xff]  ;;  %v2990_v49 = vld [vmem:[%s16881_s3 + $0x3a18] sm:$0xff] }
 0x4b6   :  { %6212 = vmatpush2.msra.mxu1 %v2605_v56  ;;  %6283 = vmatpush2.msra.mxu0 %v2829_v30  ;;  %v3214_v56 = vld [vmem:[%s16881_s3 + $0x4118] sm:$0xff]  ;;  %v2984_v30 = vld [vmem:[%s16881_s3 + $0x39e8] sm:$0xff] }
 0x4b7   :  { %6213 = vmatprep.subr.mxu1 %v2599_v61  ;;  %6284 = vmatprep.subr.mxu0 %v2823_v25  ;;  %v3208_v61 = vld [vmem:[%s16881_s3 + $0x40e8] sm:$0xff]  ;;  %v2983_v25 = vld [vmem:[%s16881_s3 + $0x39e0] sm:$0xff] }
 0x4b8   :  { %6214 = vmatpush2.msra.mxu1 %v2598_v4  ;;  %6285 = vmatpush2.msra.mxu0 %v2822_v32  ;;  %v3207_v4 = vld [vmem:[%s16881_s3 + $0x40e0] sm:$0xff]  ;;  %v2977_v32 = vld [vmem:[%s16881_s3 + $0x39b0] sm:$0xff] }
 0x4b9   :  { %6215 = vmatprep.subr.mxu1 %v2592_v7  ;;  %6286 = vmatprep.subr.mxu0 %v2816_v48  ;;  %v3201_v7 = vld [vmem:[%s16881_s3 + $0x40b0] sm:$0xff]  ;;  %v2976_v48 = vld [vmem:[%s16881_s3 + $0x39a8] sm:$0xff] }
 0x4ba   :  { %6216 = vmatpush2.msra.mxu1 %v2591_v29  ;;  %6287 = vmatpush2.msra.mxu0 %v2815_v5  ;;  %v3200_v29 = vld [vmem:[%s16881_s3 + $0x40a8] sm:$0xff]  ;;  %v2970_v5 = vld [vmem:[%s16881_s3 + $0x3978] sm:$0xff] }
 0x4bb   :  { %6218 = vmatmul.mubr.f32.vlgmr.msra.gmra.mxu1 %v10004_v45  ;;  %6289 = vmatmul.mubr.f32.vlgmr.msra.gmra.mxu0 %v10001_v52 }
 0x4bc   :  { %6295 = vmatprep.subr.mxu1 %v3033_v13  ;;  %6366 = vmatprep.subr.mxu0 %v3257_v8  ;;  %v3194_v13 = vld [vmem:[%s16881_s3 + $0x4078] sm:$0xff]  ;;  %v2969_v8 = vld [vmem:[%s16881_s3 + $0x3970] sm:$0xff] }
 0x4bd   :  { %6296 = vmatpush1.msra.mxu1 %v3032_v2  ;;  %6359 = vmatprep.mubr.f32.mxu1 %v10015_v57  ;;  %v3193_v2 = vld [vmem:[%s16881_s3 + $0x4070] sm:$0xff] }
 0x4be   :  { %6367 = vmatpush1.msra.mxu0 %v3256_v17  ;;  %6430 = vmatprep.mubr.f32.mxu0 %v10022_v40  ;;  %v2963_v17 = vld [vmem:[%s16881_s3 + $0x3940] sm:$0xff] }
 0x4bf   :  { %6297 = vmatprep.subr.mxu1 %v3026_v46  ;;  %6368 = vmatprep.subr.mxu0 %v3250_v47  ;;  %v3187_v46 = vld [vmem:[%s16881_s3 + $0x4040] sm:$0xff]  ;;  %v2962_v47 = vld [vmem:[%s16881_s3 + $0x3938] sm:$0xff] }
 0x4c0   :  { %6298 = vmatpush1.msra.mxu1 %v3025_v62  ;;  %6369 = vmatpush1.msra.mxu0 %v3249_v9  ;;  %v3186_v62 = vld [vmem:[%s16881_s3 + $0x4038] sm:$0xff]  ;;  %v2956_v9 = vld [vmem:[%s16881_s3 + $0x3908] sm:$0xff] }
 0x4c1   :  { %6299 = vmatprep.subr.mxu1 %v3019_v22  ;;  %6370 = vmatprep.subr.mxu0 %v3243_v10  ;;  %v3180_v22 = vld [vmem:[%s16881_s3 + $0x4008] sm:$0xff]  ;;  %v2955_v10 = vld [vmem:[%s16881_s3 + $0x3900] sm:$0xff] }
 0x4c2   :  { %6300 = vmatpush1.msra.mxu1 %v3018_v63  ;;  %6371 = vmatpush1.msra.mxu0 %v3242_v27  ;;  %v3179_v63 = vld [vmem:[%s16881_s3 + $0x4000] sm:$0xff]  ;;  %v2949_v27 = vld [vmem:[%s16881_s3 + $0x38d0] sm:$0xff] }
 0x4c3   :  { %6301 = vmatprep.subr.mxu1 %v3012_v36  ;;  %6372 = vmatprep.subr.mxu0 %v3236_v21  ;;  %v3173_v36 = vld [vmem:[%s16881_s3 + $0x3fd0] sm:$0xff]  ;;  %v2948_v21 = vld [vmem:[%s16881_s3 + $0x38c8] sm:$0xff] }
 0x4c4   :  { %6302 = vmatpush1.msra.mxu1 %v3011_v28  ;;  %6373 = vmatpush1.msra.mxu0 %v3235_v35  ;;  %v3172_v28 = vld [vmem:[%s16881_s3 + $0x3fc8] sm:$0xff]  ;;  %v2942_v35 = vld [vmem:[%s16881_s3 + $0x3898] sm:$0xff] }
 0x4c5   :  { %6303 = vmatprep.subr.mxu1 %v3005_v14  ;;  %6374 = vmatprep.subr.mxu0 %v3229_v33  ;;  %v3166_v14 = vld [vmem:[%s16881_s3 + $0x3f98] sm:$0xff]  ;;  %v2941_v33 = vld [vmem:[%s16881_s3 + $0x3890] sm:$0xff] }
 0x4c6   :  { %6304 = vmatpush1.msra.mxu1 %v3004_v15  ;;  %6375 = vmatpush1.msra.mxu0 %v3228_v60  ;;  %v3165_v15 = vld [vmem:[%s16881_s3 + $0x3f90] sm:$0xff]  ;;  %v2935_v60 = vld [vmem:[%s16881_s3 + $0x3860] sm:$0xff] }
 0x4c7   :  { %6305 = vmatprep.subr.mxu1 %v2998_v38  ;;  %6376 = vmatprep.subr.mxu0 %v3222_v24  ;;  %v3159_v38 = vld [vmem:[%s16881_s3 + $0x3f60] sm:$0xff]  ;;  %v2934_v24 = vld [vmem:[%s16881_s3 + $0x3858] sm:$0xff] }
 0x4c8   :  { %6306 = vmatpush1.msra.mxu1 %v2997_v43  ;;  %6377 = vmatpush1.msra.mxu0 %v3221_v51  ;;  %v3158_v43 = vld [vmem:[%s16881_s3 + $0x3f58] sm:$0xff]  ;;  %v2928_v51 = vld [vmem:[%s16881_s3 + $0x3828] sm:$0xff] }
 0x4c9   :  { %6307 = vmatprep.subr.mxu1 %v2991_v18  ;;  %6378 = vmatprep.subr.mxu0 %v3215_v44  ;;  %v3152_v18 = vld [vmem:[%s16881_s3 + $0x3f28] sm:$0xff]  ;;  %v2927_v44 = vld [vmem:[%s16881_s3 + $0x3820] sm:$0xff] }
 0x4ca   :  { %6308 = vmatpush1.msra.mxu1 %v2990_v49  ;;  %6379 = vmatpush1.msra.mxu0 %v3214_v56  ;;  %v3151_v49 = vld [vmem:[%s16881_s3 + $0x3f20] sm:$0xff]  ;;  %v3145_v56 = vld [vmem:[%s16881_s3 + $0x3ef0] sm:$0xff] }
 0x4cb   :  { %6309 = vmatprep.subr.mxu1 %v2984_v30  ;;  %6380 = vmatprep.subr.mxu0 %v3208_v61  ;;  %v3369_v30 = vld [vmem:[%s16881_s3 + $0x45f0] sm:$0xff]  ;;  %v3144_v61 = vld [vmem:[%s16881_s3 + $0x3ee8] sm:$0xff] }
 0x4cc   :  { %6310 = vmatpush1.msra.mxu1 %v2983_v25  ;;  %6381 = vmatpush1.msra.mxu0 %v3207_v4  ;;  %v3368_v25 = vld [vmem:[%s16881_s3 + $0x45e8] sm:$0xff]  ;;  %v3138_v4 = vld [vmem:[%s16881_s3 + $0x3eb8] sm:$0xff] }
 0x4cd   :  { %6311 = vmatprep.subr.mxu1 %v2977_v32  ;;  %6382 = vmatprep.subr.mxu0 %v3201_v7  ;;  %v3362_v32 = vld [vmem:[%s16881_s3 + $0x45b8] sm:$0xff]  ;;  %v3137_v7 = vld [vmem:[%s16881_s3 + $0x3eb0] sm:$0xff] }
 0x4ce   :  { %6312 = vmatpush1.msra.mxu1 %v2976_v48  ;;  %6383 = vmatpush1.msra.mxu0 %v3200_v29  ;;  %v3361_v48 = vld [vmem:[%s16881_s3 + $0x45b0] sm:$0xff]  ;;  %v3131_v29 = vld [vmem:[%s16881_s3 + $0x3e80] sm:$0xff] }
 0x4cf   :  { %6313 = vmatprep.subr.mxu1 %v2970_v5  ;;  %6384 = vmatprep.subr.mxu0 %v3194_v13  ;;  %v3355_v5 = vld [vmem:[%s16881_s3 + $0x4580] sm:$0xff]  ;;  %v3130_v13 = vld [vmem:[%s16881_s3 + $0x3e78] sm:$0xff] }
 0x4d0   :  { %6314 = vmatpush1.msra.mxu1 %v2969_v8  ;;  %6385 = vmatpush1.msra.mxu0 %v3193_v2  ;;  %v3354_v8 = vld [vmem:[%s16881_s3 + $0x4578] sm:$0xff]  ;;  %v3124_v2 = vld [vmem:[%s16881_s3 + $0x3e48] sm:$0xff] }
 0x4d1   :  { %6315 = vmatprep.subr.mxu1 %v2963_v17  ;;  %6386 = vmatprep.subr.mxu0 %v3187_v46  ;;  %v3348_v17 = vld [vmem:[%s16881_s3 + $0x4548] sm:$0xff]  ;;  %v3123_v46 = vld [vmem:[%s16881_s3 + $0x3e40] sm:$0xff] }
 0x4d2   :  { %6316 = vmatpush1.msra.mxu1 %v2962_v47  ;;  %6387 = vmatpush1.msra.mxu0 %v3186_v62  ;;  %v3347_v47 = vld [vmem:[%s16881_s3 + $0x4540] sm:$0xff]  ;;  %v3117_v62 = vld [vmem:[%s16881_s3 + $0x3e10] sm:$0xff] }
 0x4d3   :  { %6317 = vmatprep.subr.mxu1 %v2956_v9  ;;  %6388 = vmatprep.subr.mxu0 %v3180_v22  ;;  %v3341_v9 = vld [vmem:[%s16881_s3 + $0x4510] sm:$0xff]  ;;  %v3116_v22 = vld [vmem:[%s16881_s3 + $0x3e08] sm:$0xff] }
 0x4d4   :  { %6318 = vmatpush1.msra.mxu1 %v2955_v10  ;;  %6389 = vmatpush1.msra.mxu0 %v3179_v63  ;;  %v3340_v10 = vld [vmem:[%s16881_s3 + $0x4508] sm:$0xff]  ;;  %v3110_v63 = vld [vmem:[%s16881_s3 + $0x3dd8] sm:$0xff] }
 0x4d5   :  { %6319 = vmatprep.subr.mxu1 %v2949_v27  ;;  %6390 = vmatprep.subr.mxu0 %v3173_v36  ;;  %v3334_v27 = vld [vmem:[%s16881_s3 + $0x44d8] sm:$0xff]  ;;  %v3109_v36 = vld [vmem:[%s16881_s3 + $0x3dd0] sm:$0xff] }
 0x4d6   :  { %6320 = vmatpush1.msra.mxu1 %v2948_v21  ;;  %6391 = vmatpush1.msra.mxu0 %v3172_v28  ;;  %v3333_v21 = vld [vmem:[%s16881_s3 + $0x44d0] sm:$0xff]  ;;  %v3103_v28 = vld [vmem:[%s16881_s3 + $0x3da0] sm:$0xff] }
 0x4d7   :  { %6321 = vmatprep.subr.mxu1 %v2942_v35  ;;  %6392 = vmatprep.subr.mxu0 %v3166_v14  ;;  %v3327_v35 = vld [vmem:[%s16881_s3 + $0x44a0] sm:$0xff]  ;;  %v3102_v14 = vld [vmem:[%s16881_s3 + $0x3d98] sm:$0xff] }
 0x4d8   :  { %6322 = vmatpush1.msra.mxu1 %v2941_v33  ;;  %6393 = vmatpush1.msra.mxu0 %v3165_v15  ;;  %v3326_v33 = vld [vmem:[%s16881_s3 + $0x4498] sm:$0xff]  ;;  %v3096_v15 = vld [vmem:[%s16881_s3 + $0x3d68] sm:$0xff] }
 0x4d9   :  { %6323 = vmatprep.subr.mxu1 %v2935_v60  ;;  %6394 = vmatprep.subr.mxu0 %v3159_v38  ;;  %v3320_v60 = vld [vmem:[%s16881_s3 + $0x4468] sm:$0xff]  ;;  %v3095_v38 = vld [vmem:[%s16881_s3 + $0x3d60] sm:$0xff] }
 0x4da   :  { %6324 = vmatpush1.msra.mxu1 %v2934_v24  ;;  %6395 = vmatpush1.msra.mxu0 %v3158_v43  ;;  %v3319_v24 = vld [vmem:[%s16881_s3 + $0x4460] sm:$0xff]  ;;  %v3089_v43 = vld [vmem:[%s16881_s3 + $0x3d30] sm:$0xff] }
 0x4db   :  { %6325 = vmatprep.subr.mxu1 %v2928_v51  ;;  %6396 = vmatprep.subr.mxu0 %v3152_v18  ;;  %v3313_v51 = vld [vmem:[%s16881_s3 + $0x4430] sm:$0xff]  ;;  %v3088_v18 = vld [vmem:[%s16881_s3 + $0x3d28] sm:$0xff] }
 0x4dc   :  { %6326 = vmatpush1.msra.mxu1 %v2927_v44  ;;  %6397 = vmatpush1.msra.mxu0 %v3151_v49  ;;  %v3312_v44 = vld [vmem:[%s16881_s3 + $0x4428] sm:$0xff]  ;;  %v3082_v49 = vld [vmem:[%s16881_s3 + $0x3cf8] sm:$0xff] }
 0x4dd   :  { %6327 = vmatprep.subr.mxu1 %v3145_v56  ;;  %6398 = vmatprep.subr.mxu0 %v3369_v30  ;;  %v3306_v56 = vld [vmem:[%s16881_s3 + $0x43f8] sm:$0xff]  ;;  %v3081_v30 = vld [vmem:[%s16881_s3 + $0x3cf0] sm:$0xff] }
 0x4de   :  { %6328 = vmatpush2.msra.mxu1 %v3144_v61  ;;  %6399 = vmatpush2.msra.mxu0 %v3368_v25  ;;  %v3305_v61 = vld [vmem:[%s16881_s3 + $0x43f0] sm:$0xff]  ;;  %v3075_v25 = vld [vmem:[%s16881_s3 + $0x3cc0] sm:$0xff] }
 0x4df   :  { %6329 = vmatprep.subr.mxu1 %v3138_v4  ;;  %6400 = vmatprep.subr.mxu0 %v3362_v32  ;;  %v3299_v4 = vld [vmem:[%s16881_s3 + $0x43c0] sm:$0xff]  ;;  %v3074_v32 = vld [vmem:[%s16881_s3 + $0x3cb8] sm:$0xff] }
 0x4e0   :  { %6330 = vmatpush2.msra.mxu1 %v3137_v7  ;;  %6401 = vmatpush2.msra.mxu0 %v3361_v48  ;;  %v3298_v7 = vld [vmem:[%s16881_s3 + $0x43b8] sm:$0xff]  ;;  %v3068_v48 = vld [vmem:[%s16881_s3 + $0x3c88] sm:$0xff] }
 0x4e1   :  { %6331 = vmatprep.subr.mxu1 %v3131_v29  ;;  %6402 = vmatprep.subr.mxu0 %v3355_v5  ;;  %v3292_v29 = vld [vmem:[%s16881_s3 + $0x4388] sm:$0xff]  ;;  %v3067_v5 = vld [vmem:[%s16881_s3 + $0x3c80] sm:$0xff] }
 0x4e2   :  { %6332 = vmatpush2.msra.mxu1 %v3130_v13  ;;  %6403 = vmatpush2.msra.mxu0 %v3354_v8  ;;  %v3291_v13 = vld [vmem:[%s16881_s3 + $0x4380] sm:$0xff]  ;;  %v3061_v8 = vld [vmem:[%s16881_s3 + $0x3c50] sm:$0xff] }
 0x4e3   :  { %6333 = vmatprep.subr.mxu1 %v3124_v2  ;;  %6404 = vmatprep.subr.mxu0 %v3348_v17  ;;  %v3285_v2 = vld [vmem:[%s16881_s3 + $0x4350] sm:$0xff]  ;;  %v3060_v17 = vld [vmem:[%s16881_s3 + $0x3c48] sm:$0xff] }
 0x4e4   :  { %6334 = vmatpush2.msra.mxu1 %v3123_v46  ;;  %6405 = vmatpush2.msra.mxu0 %v3347_v47  ;;  %v3284_v46 = vld [vmem:[%s16881_s3 + $0x4348] sm:$0xff]  ;;  %v3054_v47 = vld [vmem:[%s16881_s3 + $0x3c18] sm:$0xff] }
 0x4e5   :  { %6335 = vmatprep.subr.mxu1 %v3117_v62  ;;  %6406 = vmatprep.subr.mxu0 %v3341_v9  ;;  %v3278_v62 = vld [vmem:[%s16881_s3 + $0x4318] sm:$0xff]  ;;  %v3053_v9 = vld [vmem:[%s16881_s3 + $0x3c10] sm:$0xff] }
 0x4e6   :  { %6336 = vmatpush2.msra.mxu1 %v3116_v22  ;;  %6407 = vmatpush2.msra.mxu0 %v3340_v10  ;;  %v3277_v22 = vld [vmem:[%s16881_s3 + $0x4310] sm:$0xff]  ;;  %v3047_v10 = vld [vmem:[%s16881_s3 + $0x3be0] sm:$0xff] }
 0x4e7   :  { %6337 = vmatprep.subr.mxu1 %v3110_v63  ;;  %6408 = vmatprep.subr.mxu0 %v3334_v27  ;;  %v3271_v63 = vld [vmem:[%s16881_s3 + $0x42e0] sm:$0xff]  ;;  %v3046_v27 = vld [vmem:[%s16881_s3 + $0x3bd8] sm:$0xff] }
 0x4e8   :  { %6338 = vmatpush2.msra.mxu1 %v3109_v36  ;;  %6409 = vmatpush2.msra.mxu0 %v3333_v21  ;;  %v3270_v36 = vld [vmem:[%s16881_s3 + $0x42d8] sm:$0xff]  ;;  %v3040_v21 = vld [vmem:[%s16881_s3 + $0x3ba8] sm:$0xff] }
 0x4e9   :  { %6339 = vmatprep.subr.mxu1 %v3103_v28  ;;  %6410 = vmatprep.subr.mxu0 %v3327_v35  ;;  %v3264_v28 = vld [vmem:[%s16881_s3 + $0x42a8] sm:$0xff]  ;;  %v3039_v35 = vld [vmem:[%s16881_s3 + $0x3ba0] sm:$0xff] }
 0x4ea   :  { %6340 = vmatpush2.msra.mxu1 %v3102_v14  ;;  %6411 = vmatpush2.msra.mxu0 %v3326_v33  ;;  %v3263_v14 = vld [vmem:[%s16881_s3 + $0x42a0] sm:$0xff]  ;;  %v3481_v33 = vld [vmem:[%s16881_s3 + $0x4970] sm:$0xff] }
 0x4eb   :  { %6341 = vmatprep.subr.mxu1 %v3096_v15  ;;  %6412 = vmatprep.subr.mxu0 %v3320_v60  ;;  %v3705_v15 = vld [vmem:[%s16881_s3 + $0x5070] sm:$0xff]  ;;  %v3480_v60 = vld [vmem:[%s16881_s3 + $0x4968] sm:$0xff] }
 0x4ec   :  { %6342 = vmatpush2.msra.mxu1 %v3095_v38  ;;  %6413 = vmatpush2.msra.mxu0 %v3319_v24  ;;  %v3704_v38 = vld [vmem:[%s16881_s3 + $0x5068] sm:$0xff]  ;;  %v3474_v24 = vld [vmem:[%s16881_s3 + $0x4938] sm:$0xff] }
 0x4ed   :  { %6343 = vmatprep.subr.mxu1 %v3089_v43  ;;  %6414 = vmatprep.subr.mxu0 %v3313_v51  ;;  %v3698_v43 = vld [vmem:[%s16881_s3 + $0x5038] sm:$0xff]  ;;  %v3473_v51 = vld [vmem:[%s16881_s3 + $0x4930] sm:$0xff] }
 0x4ee   :  { %6344 = vmatpush2.msra.mxu1 %v3088_v18  ;;  %6415 = vmatpush2.msra.mxu0 %v3312_v44  ;;  %v3697_v18 = vld [vmem:[%s16881_s3 + $0x5030] sm:$0xff]  ;;  %v3467_v44 = vld [vmem:[%s16881_s3 + $0x4900] sm:$0xff] }
 0x4ef   :  { %6345 = vmatprep.subr.mxu1 %v3082_v49  ;;  %6416 = vmatprep.subr.mxu0 %v3306_v56  ;;  %v3691_v49 = vld [vmem:[%s16881_s3 + $0x5000] sm:$0xff]  ;;  %v3466_v56 = vld [vmem:[%s16881_s3 + $0x48f8] sm:$0xff] }
 0x4f0   :  { %6346 = vmatpush2.msra.mxu1 %v3081_v30  ;;  %6417 = vmatpush2.msra.mxu0 %v3305_v61  ;;  %v3690_v30 = vld [vmem:[%s16881_s3 + $0x4ff8] sm:$0xff]  ;;  %v3460_v61 = vld [vmem:[%s16881_s3 + $0x48c8] sm:$0xff] }
 0x4f1   :  { %6347 = vmatprep.subr.mxu1 %v3075_v25  ;;  %6418 = vmatprep.subr.mxu0 %v3299_v4  ;;  %v3684_v25 = vld [vmem:[%s16881_s3 + $0x4fc8] sm:$0xff]  ;;  %v3459_v4 = vld [vmem:[%s16881_s3 + $0x48c0] sm:$0xff] }
 0x4f2   :  { %6348 = vmatpush2.msra.mxu1 %v3074_v32  ;;  %6419 = vmatpush2.msra.mxu0 %v3298_v7  ;;  %v3683_v32 = vld [vmem:[%s16881_s3 + $0x4fc0] sm:$0xff]  ;;  %v3453_v7 = vld [vmem:[%s16881_s3 + $0x4890] sm:$0xff] }
 0x4f3   :  { %6349 = vmatprep.subr.mxu1 %v3068_v48  ;;  %6420 = vmatprep.subr.mxu0 %v3292_v29  ;;  %v3677_v48 = vld [vmem:[%s16881_s3 + $0x4f90] sm:$0xff]  ;;  %v3452_v29 = vld [vmem:[%s16881_s3 + $0x4888] sm:$0xff] }
 0x4f4   :  { %6350 = vmatpush2.msra.mxu1 %v3067_v5  ;;  %6421 = vmatpush2.msra.mxu0 %v3291_v13  ;;  %v3676_v5 = vld [vmem:[%s16881_s3 + $0x4f88] sm:$0xff]  ;;  %v3446_v13 = vld [vmem:[%s16881_s3 + $0x4858] sm:$0xff] }
 0x4f5   :  { %6351 = vmatprep.subr.mxu1 %v3061_v8  ;;  %6422 = vmatprep.subr.mxu0 %v3285_v2  ;;  %v3670_v8 = vld [vmem:[%s16881_s3 + $0x4f58] sm:$0xff]  ;;  %v3445_v2 = vld [vmem:[%s16881_s3 + $0x4850] sm:$0xff] }
 0x4f6   :  { %6352 = vmatpush2.msra.mxu1 %v3060_v17  ;;  %6423 = vmatpush2.msra.mxu0 %v3284_v46  ;;  %v3669_v17 = vld [vmem:[%s16881_s3 + $0x4f50] sm:$0xff]  ;;  %v3439_v46 = vld [vmem:[%s16881_s3 + $0x4820] sm:$0xff] }
 0x4f7   :  { %6353 = vmatprep.subr.mxu1 %v3054_v47  ;;  %6424 = vmatprep.subr.mxu0 %v3278_v62  ;;  %v3663_v47 = vld [vmem:[%s16881_s3 + $0x4f20] sm:$0xff]  ;;  %v3438_v62 = vld [vmem:[%s16881_s3 + $0x4818] sm:$0xff] }
 0x4f8   :  { %6354 = vmatpush2.msra.mxu1 %v3053_v9  ;;  %6425 = vmatpush2.msra.mxu0 %v3277_v22  ;;  %v3662_v9 = vld [vmem:[%s16881_s3 + $0x4f18] sm:$0xff]  ;;  %v3432_v22 = vld [vmem:[%s16881_s3 + $0x47e8] sm:$0xff] }
 0x4f9   :  { %6355 = vmatprep.subr.mxu1 %v3047_v10  ;;  %6426 = vmatprep.subr.mxu0 %v3271_v63  ;;  %v3656_v10 = vld [vmem:[%s16881_s3 + $0x4ee8] sm:$0xff]  ;;  %v3431_v63 = vld [vmem:[%s16881_s3 + $0x47e0] sm:$0xff] }
 0x4fa   :  { %6356 = vmatpush2.msra.mxu1 %v3046_v27  ;;  %6427 = vmatpush2.msra.mxu0 %v3270_v36  ;;  %v3655_v27 = vld [vmem:[%s16881_s3 + $0x4ee0] sm:$0xff]  ;;  %v3425_v36 = vld [vmem:[%s16881_s3 + $0x47b0] sm:$0xff] }
 0x4fb   :  { %6357 = vmatprep.subr.mxu1 %v3040_v21  ;;  %6428 = vmatprep.subr.mxu0 %v3264_v28  ;;  %v3649_v21 = vld [vmem:[%s16881_s3 + $0x4eb0] sm:$0xff]  ;;  %v3424_v28 = vld [vmem:[%s16881_s3 + $0x47a8] sm:$0xff] }
 0x4fc   :  { %6358 = vmatpush2.msra.mxu1 %v3039_v35  ;;  %6429 = vmatpush2.msra.mxu0 %v3263_v14  ;;  %v3648_v35 = vld [vmem:[%s16881_s3 + $0x4ea8] sm:$0xff]  ;;  %v3418_v14 = vld [vmem:[%s16881_s3 + $0x4778] sm:$0xff] }
 0x4fd   :  { %6360 = vmatmul.mubr.f32.vlgmr.msra.gmra.mxu1 %v10404_v16  ;;  %6431 = vmatmul.mubr.f32.vlgmr.msra.gmra.mxu0 %v10401_v12 }
 0x4fe   :  { %6437 = vmatprep.subr.mxu1 %v3481_v33  ;;  %6508 = vmatprep.subr.mxu0 %v3705_v15  ;;  %v3642_v33 = vld [vmem:[%s16881_s3 + $0x4e78] sm:$0xff]  ;;  %v3417_v15 = vld [vmem:[%s16881_s3 + $0x4770] sm:$0xff] }
 0x4ff   :  { %6438 = vmatpush1.msra.mxu1 %v3480_v60  ;;  %6501 = vmatprep.mubr.f32.mxu1 %v10416_v19  ;;  %v3641_v60 = vld [vmem:[%s16881_s3 + $0x4e70] sm:$0xff] }
 0x500   :  { %6509 = vmatpush1.msra.mxu0 %v3704_v38  ;;  %6572 = vmatprep.mubr.f32.mxu0 %v10423_v58  ;;  %v3411_v38 = vld [vmem:[%s16881_s3 + $0x4740] sm:$0xff] }
 0x501   :  { %6439 = vmatprep.subr.mxu1 %v3474_v24  ;;  %6510 = vmatprep.subr.mxu0 %v3698_v43  ;;  %v3635_v24 = vld [vmem:[%s16881_s3 + $0x4e40] sm:$0xff]  ;;  %v3410_v43 = vld [vmem:[%s16881_s3 + $0x4738] sm:$0xff] }
 0x502   :  { %6440 = vmatpush1.msra.mxu1 %v3473_v51  ;;  %6511 = vmatpush1.msra.mxu0 %v3697_v18  ;;  %v3634_v51 = vld [vmem:[%s16881_s3 + $0x4e38] sm:$0xff]  ;;  %v3404_v18 = vld [vmem:[%s16881_s3 + $0x4708] sm:$0xff] }
 0x503   :  { %6441 = vmatprep.subr.mxu1 %v3467_v44  ;;  %6512 = vmatprep.subr.mxu0 %v3691_v49  ;;  %v3628_v44 = vld [vmem:[%s16881_s3 + $0x4e08] sm:$0xff]  ;;  %v3403_v49 = vld [vmem:[%s16881_s3 + $0x4700] sm:$0xff] }
 0x504   :  { %6442 = vmatpush1.msra.mxu1 %v3466_v56  ;;  %6513 = vmatpush1.msra.mxu0 %v3690_v30  ;;  %v3627_v56 = vld [vmem:[%s16881_s3 + $0x4e00] sm:$0xff]  ;;  %v3397_v30 = vld [vmem:[%s16881_s3 + $0x46d0] sm:$0xff] }
 0x505   :  { %6443 = vmatprep.subr.mxu1 %v3460_v61  ;;  %6514 = vmatprep.subr.mxu0 %v3684_v25  ;;  %v3621_v61 = vld [vmem:[%s16881_s3 + $0x4dd0] sm:$0xff]  ;;  %v3396_v25 = vld [vmem:[%s16881_s3 + $0x46c8] sm:$0xff] }
 0x506   :  { %6444 = vmatpush1.msra.mxu1 %v3459_v4  ;;  %6515 = vmatpush1.msra.mxu0 %v3683_v32  ;;  %v3620_v4 = vld [vmem:[%s16881_s3 + $0x4dc8] sm:$0xff]  ;;  %v3390_v32 = vld [vmem:[%s16881_s3 + $0x4698] sm:$0xff] }
 0x507   :  { %6445 = vmatprep.subr.mxu1 %v3453_v7  ;;  %6516 = vmatprep.subr.mxu0 %v3677_v48  ;;  %v3614_v7 = vld [vmem:[%s16881_s3 + $0x4d98] sm:$0xff]  ;;  %v3389_v48 = vld [vmem:[%s16881_s3 + $0x4690] sm:$0xff] }
 0x508   :  { %6446 = vmatpush1.msra.mxu1 %v3452_v29  ;;  %6517 = vmatpush1.msra.mxu0 %v3676_v5  ;;  %v3613_v29 = vld [vmem:[%s16881_s3 + $0x4d90] sm:$0xff]  ;;  %v3383_v5 = vld [vmem:[%s16881_s3 + $0x4660] sm:$0xff] }
 0x509   :  { %6447 = vmatprep.subr.mxu1 %v3446_v13  ;;  %6518 = vmatprep.subr.mxu0 %v3670_v8  ;;  %v3607_v13 = vld [vmem:[%s16881_s3 + $0x4d60] sm:$0xff]  ;;  %v3382_v8 = vld [vmem:[%s16881_s3 + $0x4658] sm:$0xff] }
 0x50a   :  { %6448 = vmatpush1.msra.mxu1 %v3445_v2  ;;  %6519 = vmatpush1.msra.mxu0 %v3669_v17  ;;  %v3606_v2 = vld [vmem:[%s16881_s3 + $0x4d58] sm:$0xff]  ;;  %v3376_v17 = vld [vmem:[%s16881_s3 + $0x4628] sm:$0xff] }
 0x50b   :  { %6449 = vmatprep.subr.mxu1 %v3439_v46  ;;  %6520 = vmatprep.subr.mxu0 %v3663_v47  ;;  %v3600_v46 = vld [vmem:[%s16881_s3 + $0x4d28] sm:$0xff]  ;;  %v3375_v47 = vld [vmem:[%s16881_s3 + $0x4620] sm:$0xff] }
 0x50c   :  { %6450 = vmatpush1.msra.mxu1 %v3438_v62  ;;  %6521 = vmatpush1.msra.mxu0 %v3662_v9  ;;  %v3599_v62 = vld [vmem:[%s16881_s3 + $0x4d20] sm:$0xff]  ;;  %v3593_v9 = vld [vmem:[%s16881_s3 + $0x4cf0] sm:$0xff] }
 0x50d   :  { %6451 = vmatprep.subr.mxu1 %v3432_v22  ;;  %6522 = vmatprep.subr.mxu0 %v3656_v10  ;;  %v3817_v22 = vld [vmem:[%s16881_s3 + $0x53f0] sm:$0xff]  ;;  %v3592_v10 = vld [vmem:[%s16881_s3 + $0x4ce8] sm:$0xff] }
 0x50e   :  { %6452 = vmatpush1.msra.mxu1 %v3431_v63  ;;  %6523 = vmatpush1.msra.mxu0 %v3655_v27  ;;  %v3816_v63 = vld [vmem:[%s16881_s3 + $0x53e8] sm:$0xff]  ;;  %v3586_v27 = vld [vmem:[%s16881_s3 + $0x4cb8] sm:$0xff] }
 0x50f   :  { %6453 = vmatprep.subr.mxu1 %v3425_v36  ;;  %6524 = vmatprep.subr.mxu0 %v3649_v21  ;;  %v3810_v36 = vld [vmem:[%s16881_s3 + $0x53b8] sm:$0xff]  ;;  %v3585_v21 = vld [vmem:[%s16881_s3 + $0x4cb0] sm:$0xff] }
 0x510   :  { %6454 = vmatpush1.msra.mxu1 %v3424_v28  ;;  %6525 = vmatpush1.msra.mxu0 %v3648_v35  ;;  %v3809_v28 = vld [vmem:[%s16881_s3 + $0x53b0] sm:$0xff]  ;;  %v3579_v35 = vld [vmem:[%s16881_s3 + $0x4c80] sm:$0xff] }
 0x511   :  { %6455 = vmatprep.subr.mxu1 %v3418_v14  ;;  %6526 = vmatprep.subr.mxu0 %v3642_v33  ;;  %v3803_v14 = vld [vmem:[%s16881_s3 + $0x5380] sm:$0xff]  ;;  %v3578_v33 = vld [vmem:[%s16881_s3 + $0x4c78] sm:$0xff] }
 0x512   :  { %6456 = vmatpush1.msra.mxu1 %v3417_v15  ;;  %6527 = vmatpush1.msra.mxu0 %v3641_v60  ;;  %v3802_v15 = vld [vmem:[%s16881_s3 + $0x5378] sm:$0xff]  ;;  %v3572_v60 = vld [vmem:[%s16881_s3 + $0x4c48] sm:$0xff] }
 0x513   :  { %6457 = vmatprep.subr.mxu1 %v3411_v38  ;;  %6528 = vmatprep.subr.mxu0 %v3635_v24  ;;  %v3796_v38 = vld [vmem:[%s16881_s3 + $0x5348] sm:$0xff]  ;;  %v3571_v24 = vld [vmem:[%s16881_s3 + $0x4c40] sm:$0xff] }
 0x514   :  { %6458 = vmatpush1.msra.mxu1 %v3410_v43  ;;  %6529 = vmatpush1.msra.mxu0 %v3634_v51  ;;  %v3795_v43 = vld [vmem:[%s16881_s3 + $0x5340] sm:$0xff]  ;;  %v3565_v51 = vld [vmem:[%s16881_s3 + $0x4c10] sm:$0xff] }
 0x515   :  { %6459 = vmatprep.subr.mxu1 %v3404_v18  ;;  %6530 = vmatprep.subr.mxu0 %v3628_v44  ;;  %v3789_v18 = vld [vmem:[%s16881_s3 + $0x5310] sm:$0xff]  ;;  %v3564_v44 = vld [vmem:[%s16881_s3 + $0x4c08] sm:$0xff] }
 0x516   :  { %6460 = vmatpush1.msra.mxu1 %v3403_v49  ;;  %6531 = vmatpush1.msra.mxu0 %v3627_v56  ;;  %v3788_v49 = vld [vmem:[%s16881_s3 + $0x5308] sm:$0xff]  ;;  %v3558_v56 = vld [vmem:[%s16881_s3 + $0x4bd8] sm:$0xff] }
 0x517   :  { %6461 = vmatprep.subr.mxu1 %v3397_v30  ;;  %6532 = vmatprep.subr.mxu0 %v3621_v61  ;;  %v3782_v30 = vld [vmem:[%s16881_s3 + $0x52d8] sm:$0xff]  ;;  %v3557_v61 = vld [vmem:[%s16881_s3 + $0x4bd0] sm:$0xff] }
 0x518   :  { %6462 = vmatpush1.msra.mxu1 %v3396_v25  ;;  %6533 = vmatpush1.msra.mxu0 %v3620_v4  ;;  %v3781_v25 = vld [vmem:[%s16881_s3 + $0x52d0] sm:$0xff]  ;;  %v3551_v4 = vld [vmem:[%s16881_s3 + $0x4ba0] sm:$0xff] }
 0x519   :  { %6463 = vmatprep.subr.mxu1 %v3390_v32  ;;  %6534 = vmatprep.subr.mxu0 %v3614_v7  ;;  %v3775_v32 = vld [vmem:[%s16881_s3 + $0x52a0] sm:$0xff]  ;;  %v3550_v7 = vld [vmem:[%s16881_s3 + $0x4b98] sm:$0xff] }
 0x51a   :  { %6464 = vmatpush1.msra.mxu1 %v3389_v48  ;;  %6535 = vmatpush1.msra.mxu0 %v3613_v29  ;;  %v3774_v48 = vld [vmem:[%s16881_s3 + $0x5298] sm:$0xff]  ;;  %v3544_v29 = vld [vmem:[%s16881_s3 + $0x4b68] sm:$0xff] }
 0x51b   :  { %6465 = vmatprep.subr.mxu1 %v3383_v5  ;;  %6536 = vmatprep.subr.mxu0 %v3607_v13  ;;  %v3768_v5 = vld [vmem:[%s16881_s3 + $0x5268] sm:$0xff]  ;;  %v3543_v13 = vld [vmem:[%s16881_s3 + $0x4b60] sm:$0xff] }
 0x51c   :  { %6466 = vmatpush1.msra.mxu1 %v3382_v8  ;;  %6537 = vmatpush1.msra.mxu0 %v3606_v2  ;;  %v3767_v8 = vld [vmem:[%s16881_s3 + $0x5260] sm:$0xff]  ;;  %v3537_v2 = vld [vmem:[%s16881_s3 + $0x4b30] sm:$0xff] }
 0x51d   :  { %6467 = vmatprep.subr.mxu1 %v3376_v17  ;;  %6538 = vmatprep.subr.mxu0 %v3600_v46  ;;  %v3761_v17 = vld [vmem:[%s16881_s3 + $0x5230] sm:$0xff]  ;;  %v3536_v46 = vld [vmem:[%s16881_s3 + $0x4b28] sm:$0xff] }
 0x51e   :  { %6468 = vmatpush1.msra.mxu1 %v3375_v47  ;;  %6539 = vmatpush1.msra.mxu0 %v3599_v62  ;;  %v3760_v47 = vld [vmem:[%s16881_s3 + $0x5228] sm:$0xff]  ;;  %v3530_v62 = vld [vmem:[%s16881_s3 + $0x4af8] sm:$0xff] }
 0x51f   :  { %6469 = vmatprep.subr.mxu1 %v3593_v9  ;;  %6540 = vmatprep.subr.mxu0 %v3817_v22  ;;  %v3754_v9 = vld [vmem:[%s16881_s3 + $0x51f8] sm:$0xff]  ;;  %v3529_v22 = vld [vmem:[%s16881_s3 + $0x4af0] sm:$0xff] }
 0x520   :  { %6470 = vmatpush2.msra.mxu1 %v3592_v10  ;;  %6541 = vmatpush2.msra.mxu0 %v3816_v63  ;;  %v3753_v10 = vld [vmem:[%s16881_s3 + $0x51f0] sm:$0xff]  ;;  %v3523_v63 = vld [vmem:[%s16881_s3 + $0x4ac0] sm:$0xff] }
 0x521   :  { %6471 = vmatprep.subr.mxu1 %v3586_v27  ;;  %6542 = vmatprep.subr.mxu0 %v3810_v36  ;;  %v3747_v27 = vld [vmem:[%s16881_s3 + $0x51c0] sm:$0xff]  ;;  %v3522_v36 = vld [vmem:[%s16881_s3 + $0x4ab8] sm:$0xff] }
 0x522   :  { %6472 = vmatpush2.msra.mxu1 %v3585_v21  ;;  %6543 = vmatpush2.msra.mxu0 %v3809_v28  ;;  %v3746_v21 = vld [vmem:[%s16881_s3 + $0x51b8] sm:$0xff]  ;;  %v3516_v28 = vld [vmem:[%s16881_s3 + $0x4a88] sm:$0xff] }
 0x523   :  { %6473 = vmatprep.subr.mxu1 %v3579_v35  ;;  %6544 = vmatprep.subr.mxu0 %v3803_v14  ;;  %v3740_v35 = vld [vmem:[%s16881_s3 + $0x5188] sm:$0xff]  ;;  %v3515_v14 = vld [vmem:[%s16881_s3 + $0x4a80] sm:$0xff] }
 0x524   :  { %6474 = vmatpush2.msra.mxu1 %v3578_v33  ;;  %6545 = vmatpush2.msra.mxu0 %v3802_v15  ;;  %v3739_v33 = vld [vmem:[%s16881_s3 + $0x5180] sm:$0xff]  ;;  %v3509_v15 = vld [vmem:[%s16881_s3 + $0x4a50] sm:$0xff] }
 0x525   :  { %6475 = vmatprep.subr.mxu1 %v3572_v60  ;;  %6546 = vmatprep.subr.mxu0 %v3796_v38  ;;  %v3733_v60 = vld [vmem:[%s16881_s3 + $0x5150] sm:$0xff]  ;;  %v3508_v38 = vld [vmem:[%s16881_s3 + $0x4a48] sm:$0xff] }
 0x526   :  { %6476 = vmatpush2.msra.mxu1 %v3571_v24  ;;  %6547 = vmatpush2.msra.mxu0 %v3795_v43  ;;  %v3732_v24 = vld [vmem:[%s16881_s3 + $0x5148] sm:$0xff]  ;;  %v3502_v43 = vld [vmem:[%s16881_s3 + $0x4a18] sm:$0xff] }
 0x527   :  { %6477 = vmatprep.subr.mxu1 %v3565_v51  ;;  %6548 = vmatprep.subr.mxu0 %v3789_v18  ;;  %v3726_v51 = vld [vmem:[%s16881_s3 + $0x5118] sm:$0xff]  ;;  %v3501_v18 = vld [vmem:[%s16881_s3 + $0x4a10] sm:$0xff] }
 0x528   :  { %6478 = vmatpush2.msra.mxu1 %v3564_v44  ;;  %6549 = vmatpush2.msra.mxu0 %v3788_v49  ;;  %v3725_v44 = vld [vmem:[%s16881_s3 + $0x5110] sm:$0xff]  ;;  %v3495_v49 = vld [vmem:[%s16881_s3 + $0x49e0] sm:$0xff] }
 0x529   :  { %6479 = vmatprep.subr.mxu1 %v3558_v56  ;;  %6550 = vmatprep.subr.mxu0 %v3782_v30  ;;  %v3719_v56 = vld [vmem:[%s16881_s3 + $0x50e0] sm:$0xff]  ;;  %v3494_v30 = vld [vmem:[%s16881_s3 + $0x49d8] sm:$0xff] }
 0x52a   :  { %6480 = vmatpush2.msra.mxu1 %v3557_v61  ;;  %6551 = vmatpush2.msra.mxu0 %v3781_v25  ;;  %v3718_v61 = vld [vmem:[%s16881_s3 + $0x50d8] sm:$0xff]  ;;  %v3488_v25 = vld [vmem:[%s16881_s3 + $0x49a8] sm:$0xff] }
 0x52b   :  { %6481 = vmatprep.subr.mxu1 %v3551_v4  ;;  %6552 = vmatprep.subr.mxu0 %v3775_v32  ;;  %v3712_v4 = vld [vmem:[%s16881_s3 + $0x50a8] sm:$0xff]  ;;  %v3487_v32 = vld [vmem:[%s16881_s3 + $0x49a0] sm:$0xff] }
 0x52c   :  { %6482 = vmatpush2.msra.mxu1 %v3550_v7  ;;  %6553 = vmatpush2.msra.mxu0 %v3774_v48  ;;  %v3711_v7 = vld [vmem:[%s16881_s3 + $0x50a0] sm:$0xff]  ;;  %v3873_v48 = vld [vmem:[%s16881_s3 + $0x55b0] sm:$0xff] }
 0x52d   :  { %6483 = vmatprep.subr.mxu1 %v3544_v29  ;;  %6554 = vmatprep.subr.mxu0 %v3768_v5  ;;  %v1354_v29 = vld [vmem:[%s16881_s3 + $0x6f8] sm:$0xff]  ;;  %v3872_v5 = vld [vmem:[%s16881_s3 + $0x55a8] sm:$0xff] }
 0x52e   :  { %6484 = vmatpush2.msra.mxu1 %v3543_v13  ;;  %6555 = vmatpush2.msra.mxu0 %v3767_v8  ;;  %v1242_v13 = vld [vmem:[%s16881_s3 + $0x378] sm:$0xff] }
 0x52f   :  { %6485 = vmatprep.subr.mxu1 %v3537_v2  ;;  %6556 = vmatprep.subr.mxu0 %v3761_v17  ;;  %v3866_v8 = vld [vmem:[%s16881_s3 + $0x5578] sm:$0xff]  ;;  %v1347_v2 = vld [vmem:[%s16881_s3 + $0x6c0] sm:$0xff]  ;;  %v3865_v17 = vld [vmem:[%s16881_s3 + $0x5570] sm:$0xff] }
 0x530   :  { %6486 = vmatpush2.msra.mxu1 %v3536_v46  ;;  %6557 = vmatpush2.msra.mxu0 %v3760_v47  ;;  %v1235_v46 = vld [vmem:[%s16881_s3 + $0x340] sm:$0xff] }
 0x531   :  { %6487 = vmatprep.subr.mxu1 %v3530_v62  ;;  %6558 = vmatprep.subr.mxu0 %v3754_v9  ;;  %v3859_v47 = vld [vmem:[%s16881_s3 + $0x5540] sm:$0xff]  ;;  %v1340_v62 = vld [vmem:[%s16881_s3 + $0x688] sm:$0xff]  ;;  %v3858_v9 = vld [vmem:[%s16881_s3 + $0x5538] sm:$0xff] }
 0x532   :  { %6488 = vmatpush2.msra.mxu1 %v3529_v22  ;;  %6559 = vmatpush2.msra.mxu0 %v3753_v10  ;;  %v1228_v22 = vld [vmem:[%s16881_s3 + $0x308] sm:$0xff] }
 0x533   :  { %6489 = vmatprep.subr.mxu1 %v3523_v63  ;;  %6560 = vmatprep.subr.mxu0 %v3747_v27  ;;  %v3852_v10 = vld [vmem:[%s16881_s3 + $0x5508] sm:$0xff]  ;;  %v3851_v63 = vld [vmem:[%s16881_s3 + $0x5500] sm:$0xff]  ;;  %v1221_v27 = vld [vmem:[%s16881_s3 + $0x2d0] sm:$0xff] }
 0x534   :  { %6490 = vmatpush2.msra.mxu1 %v3522_v36  ;;  %6561 = vmatpush2.msra.mxu0 %v3746_v21  ;;  %v3845_v36 = vld [vmem:[%s16881_s3 + $0x54d0] sm:$0xff]  ;;  %v1326_v21 = vld [vmem:[%s16881_s3 + $0x618] sm:$0xff] }
 0x535   :  { %6491 = vmatprep.subr.mxu1 %v3516_v28  ;;  %6562 = vmatprep.subr.mxu0 %v3740_v35  ;;  %v3844_v28 = vld [vmem:[%s16881_s3 + $0x54c8] sm:$0xff]  ;;  %v1214_v35 = vld [vmem:[%s16881_s3 + $0x298] sm:$0xff] }
 0x536   :  { %6492 = vmatpush2.msra.mxu1 %v3515_v14  ;;  %6563 = vmatpush2.msra.mxu0 %v3739_v33  ;;  %v3838_v14 = vld [vmem:[%s16881_s3 + $0x5498] sm:$0xff]  ;;  %v1319_v33 = vld [vmem:[%s16881_s3 + $0x5e0] sm:$0xff] }
 0x537   :  { %6493 = vmatprep.subr.mxu1 %v3509_v15  ;;  %6564 = vmatprep.subr.mxu0 %v3733_v60  ;;  %v3837_v15 = vld [vmem:[%s16881_s3 + $0x5490] sm:$0xff]  ;;  %v1207_v60 = vld [vmem:[%s16881_s3 + $0x260] sm:$0xff] }
 0x538   :  { %6494 = vmatpush2.msra.mxu1 %v3508_v38  ;;  %6565 = vmatpush2.msra.mxu0 %v3732_v24  ;;  %v3831_v38 = vld [vmem:[%s16881_s3 + $0x5460] sm:$0xff]  ;;  %v1312_v24 = vld [vmem:[%s16881_s3 + $0x5a8] sm:$0xff] }
 0x539   :  { %6495 = vmatprep.subr.mxu1 %v3502_v43  ;;  %6566 = vmatprep.subr.mxu0 %v3726_v51  ;;  %v3830_v43 = vld [vmem:[%s16881_s3 + $0x5458] sm:$0xff]  ;;  %v1200_v51 = vld [vmem:[%s16881_s3 + $0x228] sm:$0xff] }
 0x53a   :  { %6496 = vmatpush2.msra.mxu1 %v3501_v18  ;;  %6567 = vmatpush2.msra.mxu0 %v3725_v44  ;;  %v3824_v18 = vld [vmem:[%s16881_s3 + $0x5428] sm:$0xff]  ;;  %v1305_v44 = vld [vmem:[%s16881_s3 + $0x570] sm:$0xff] }
 0x53b   :  { %6497 = vmatprep.subr.mxu1 %v3495_v49  ;;  %6568 = vmatprep.subr.mxu0 %v3719_v56  ;;  %v3823_v49 = vld [vmem:[%s16881_s3 + $0x5420] sm:$0xff]  ;;  %v1193_v56 = vld [vmem:[%s16881_s3 + $0x1f0] sm:$0xff] }
 0x53c   :  { %6498 = vmatpush2.msra.mxu1 %v3494_v30  ;;  %6569 = vmatpush2.msra.mxu0 %v3718_v61  ;;  %v1298_v30 = vld [vmem:[%s16881_s3 + $0x538] sm:$0xff] }
 0x53d   :  { %6499 = vmatprep.subr.mxu1 %v3488_v25  ;;  %6570 = vmatprep.subr.mxu0 %v3712_v4  ;;  %v1578_v61 = vld [vmem:[%s16881_s3 + $0xdf8] sm:$0xff] }
 0x53e   :  { %6500 = vmatpush2.msra.mxu1 %v3487_v32  ;;  %6571 = vmatpush2.msra.mxu0 %v3711_v7  ;;  %v1186_v25 = vld [vmem:[%s16881_s3 + $0x1b8] sm:$0xff]  ;;  %v1291_v32 = vld [vmem:[%s16881_s3 + $0x500] sm:$0xff] }
 0x53f   :  { %6502 = vmatmul.mubr.f32.vlgmr.msra.gmra.mxu1 %v10803_v31  ;;  %6573 = vmatmul.mubr.f32.vlgmr.msra.gmra.mxu0 %v10800_v59  ;;  %v1466_v4 = vld [vmem:[%s16881_s3 + $0xa78] sm:$0xff]  ;;  %v1571_v7 = vld [vmem:[%s16881_s3 + $0xdc0] sm:$0xff] }
 0x540   :  { %6595 = vmatprep.subr.mxu1 %v3873_v48  ;;  %7641 = vmatprep.subr.mxu0 %v1354_v29  ;;  %v1179_v48 = vld [vmem:[%s16881_s3 + $0x180] sm:$0xff] }
 0x541   :  { %6596 = vmatpush1.msra.mxu1 %v3872_v5  ;;  %7642 = vmatpush3.msra.mxu0 %v1242_v13  ;;  %v1459_v29 = vld [vmem:[%s16881_s3 + $0xa40] sm:$0xff]  ;;  %v1284_v5 = vld [vmem:[%s16881_s3 + $0x4c8] sm:$0xff] }
 0x542   :  { %6714 = vmatprep.mubr.f32.mxu0 %v8702_v53  ;;  %6597 = vmatprep.subr.mxu1 %v3866_v8  ;;  %v1333_v53 = vld [vmem:[%s16881_s3 + $0x650] sm:$0xff]  ;;  %v1564_v13 = vld [vmem:[%s16881_s3 + $0xd88] sm:$0xff] }
 0x543   :  { %7643 = vmatprep.subr.mxu0 %v1347_v2  ;;  %6598 = vmatpush1.msra.mxu1 %v3865_v17  ;;  %v1172_v8 = vld [vmem:[%s16881_s3 + $0x148] sm:$0xff]  ;;  %v1557_v17 = vld [vmem:[%s16881_s3 + $0xd50] sm:$0xff] }
 0x544   :  { %7644 = vmatpush3.msra.mxu0 %v1235_v46  ;;  %6599 = vmatprep.subr.mxu1 %v3859_v47  ;;  %v1452_v2 = vld [vmem:[%s16881_s3 + $0xa08] sm:$0xff]  ;;  %v1165_v46 = vld [vmem:[%s16881_s3 + $0x110] sm:$0xff] }
 0x545   :  { %7645 = vmatprep.subr.mxu0 %v1340_v62  ;;  %6600 = vmatpush1.msra.mxu1 %v3858_v9  ;;  %v1445_v47 = vld [vmem:[%s16881_s3 + $0x9d0] sm:$0xff]  ;;  %v1270_v62 = vld [vmem:[%s16881_s3 + $0x458] sm:$0xff] }
 0x546   :  { %7646 = vmatpush3.msra.mxu0 %v1228_v22  ;;  %6601 = vmatprep.subr.mxu1 %v3852_v10  ;;  %v1550_v9 = vld [vmem:[%s16881_s3 + $0xd18] sm:$0xff] }
 0x547   :  { %7647 = vmatprep.subr.mxu0 %v1333_v53  ;;  %6602 = vmatpush1.msra.mxu1 %v3851_v63  ;;  %v1158_v22 = vld [vmem:[%s16881_s3 + $0xd8] sm:$0xff]  ;;  %v1263_v53 = vld [vmem:[%s16881_s3 + $0x420] sm:$0xff] }
 0x548   :  { %7648 = vmatpush3.msra.mxu0 %v1221_v27  ;;  %6603 = vmatprep.subr.mxu1 %v3845_v36  ;;  %v1438_v10 = vld [vmem:[%s16881_s3 + $0x998] sm:$0xff]  ;;  %v1543_v63 = vld [vmem:[%s16881_s3 + $0xce0] sm:$0xff] }
 0x549   :  { %7649 = vmatprep.subr.mxu0 %v1326_v21  ;;  %6604 = vmatpush1.msra.mxu1 %v3844_v28  ;;  %v1151_v27 = vld [vmem:[%s16881_s3 + $0xa0] sm:$0xff]  ;;  %v1256_v21 = vld [vmem:[%s16881_s3 + $0x3e8] sm:$0xff] }
 0x54a   :  { %7650 = vmatpush3.msra.mxu0 %v1214_v35  ;;  %6605 = vmatprep.subr.mxu1 %v3838_v14  ;;  %v1431_v36 = vld [vmem:[%s16881_s3 + $0x960] sm:$0xff]  ;;  %v1536_v28 = vld [vmem:[%s16881_s3 + $0xca8] sm:$0xff] }
 0x54b   :  { %7651 = vmatprep.subr.mxu0 %v1319_v33  ;;  %6606 = vmatpush1.msra.mxu1 %v3837_v15  ;;  %v1144_v35 = vld [vmem:[%s16881_s3 + $0x68] sm:$0xff]  ;;  %v1249_v33 = vld [vmem:[%s16881_s3 + $0x3b0] sm:$0xff] }
 0x54c   :  { %7652 = vmatpush3.msra.mxu0 %v1207_v60  ;;  %6607 = vmatprep.subr.mxu1 %v3831_v38  ;;  %v1424_v14 = vld [vmem:[%s16881_s3 + $0x928] sm:$0xff]  ;;  %v1529_v15 = vld [vmem:[%s16881_s3 + $0xc70] sm:$0xff] }
 0x54d   :  { %7653 = vmatprep.subr.mxu0 %v1312_v24  ;;  %6608 = vmatpush1.msra.mxu1 %v3830_v43  ;;  %v1137_v60 = vld [vmem:[%s16881_s3 + $0x30] sm:$0xff]  ;;  %v1522_v24 = vld [vmem:[%s16881_s3 + $0xc38] sm:$0xff] }
 0x54e   :  { %7654 = vmatpush3.msra.mxu0 %v1200_v51  ;;  %6609 = vmatprep.subr.mxu1 %v3824_v18  ;;  %v1417_v38 = vld [vmem:[%s16881_s3 + $0x8f0] sm:$0xff]  ;;  %v1802_v43 = vld [vmem:[%s16881_s3 + $0x14f8] sm:$0xff] }
 0x54f   :  { %7655 = vmatprep.subr.mxu0 %v1305_v44  ;;  %6610 = vmatpush1.msra.mxu1 %v3823_v49  ;;  %v1410_v51 = vld [vmem:[%s16881_s3 + $0x8b8] sm:$0xff]  ;;  %v1515_v44 = vld [vmem:[%s16881_s3 + $0xc00] sm:$0xff] }
 0x550   :  { %6643 = vmatprep.mubr.f32.mxu1 %v8126_v3  ;;  %7656 = vmatpush3.msra.mxu0 %v1193_v56  ;;  %v1690_v18 = vld [vmem:[%s16881_s3 + $0x1178] sm:$0xff]  ;;  %v1795_v49 = vld [vmem:[%s16881_s3 + $0x14c0] sm:$0xff] }
 0x551   :  { %7630 = vmatmul.mubr.msk.f32.vlgmr.msra.gmra.mxu1 %vm3877_vm2, %v10911_v20  ;;  %7657 = vmatprep.subr.mxu0 %v1298_v30  ;;  %v1403_v56 = vld [vmem:[%s16881_s3 + $0x880] sm:$0xff] }
 0x552   :  { %7676 = vmatprep.subr.mxu1 %v1578_v61  ;;  %7658 = vmatpush3.msra.mxu0 %v1186_v25  ;;  %v1683_v30 = vld [vmem:[%s16881_s3 + $0x1140] sm:$0xff]  ;;  %v1788_v61 = vld [vmem:[%s16881_s3 + $0x1488] sm:$0xff] }
 0x553   :  { %7677 = vmatpush3.msra.mxu1 %v1466_v4  ;;  %6784 = vmatprep.mubr.f32.mxu1 %v8704_v54  ;;  %v1277_v54 = vld [vmem:[%s16881_s3 + $0x490] sm:$0xff]  ;;  %v1396_v25 = vld [vmem:[%s16881_s3 + $0x848] sm:$0xff] }
 0x554   :  { %7659 = vmatprep.subr.mxu0 %v1291_v32  ;;  %7678 = vmatprep.subr.mxu1 %v1571_v7  ;;  %v1676_v4 = vld [vmem:[%s16881_s3 + $0x1108] sm:$0xff]  ;;  %v1781_v32 = vld [vmem:[%s16881_s3 + $0x1450] sm:$0xff] }
 0x555   :  { %7660 = vmatpush3.msra.mxu0 %v1179_v48  ;;  %7679 = vmatpush3.msra.mxu1 %v1459_v29  ;;  %v1389_v7 = vld [vmem:[%s16881_s3 + $0x810] sm:$0xff]  ;;  %v1494_v29 = vld [vmem:[%s16881_s3 + $0xb58] sm:$0xff] }
 0x556   :  { %7661 = vmatprep.subr.mxu0 %v1284_v5  ;;  %7680 = vmatprep.subr.mxu1 %v1564_v13  ;;  %v1669_v48 = vld [vmem:[%s16881_s3 + $0x10d0] sm:$0xff]  ;;  %v1774_v5 = vld [vmem:[%s16881_s3 + $0x1418] sm:$0xff] }
 0x557   :  { %7662 = vmatpush3.msra.mxu0 %v1172_v8  ;;  %7681 = vmatpush3.msra.mxu1 %v1452_v2  ;;  %v1382_v13 = vld [vmem:[%s16881_s3 + $0x7d8] sm:$0xff]  ;;  %v1487_v2 = vld [vmem:[%s16881_s3 + $0xb20] sm:$0xff] }
 0x558   :  { %7663 = vmatprep.subr.mxu0 %v1277_v54  ;;  %7682 = vmatprep.subr.mxu1 %v1557_v17  ;;  %v1662_v8 = vld [vmem:[%s16881_s3 + $0x1098] sm:$0xff]  ;;  %v1767_v54 = vld [vmem:[%s16881_s3 + $0x13e0] sm:$0xff] }
 0x559   :  { %7664 = vmatpush3.msra.mxu0 %v1165_v46  ;;  %7683 = vmatpush3.msra.mxu1 %v1445_v47  ;;  %v1375_v17 = vld [vmem:[%s16881_s3 + $0x7a0] sm:$0xff]  ;;  %v1480_v47 = vld [vmem:[%s16881_s3 + $0xae8] sm:$0xff] }
 0x55a   :  { %7665 = vmatprep.subr.mxu0 %v1270_v62  ;;  %7684 = vmatprep.subr.mxu1 %v1550_v9  ;;  %v1655_v46 = vld [vmem:[%s16881_s3 + $0x1060] sm:$0xff]  ;;  %v1760_v62 = vld [vmem:[%s16881_s3 + $0x13a8] sm:$0xff] }
 0x55b   :  { %7666 = vmatpush3.msra.mxu0 %v1158_v22  ;;  %7685 = vmatpush3.msra.mxu1 %v1438_v10  ;;  %v1368_v9 = vld [vmem:[%s16881_s3 + $0x768] sm:$0xff]  ;;  %v1473_v10 = vld [vmem:[%s16881_s3 + $0xab0] sm:$0xff] }
 0x55c   :  { %7667 = vmatprep.subr.mxu0 %v1263_v53  ;;  %7686 = vmatprep.subr.mxu1 %v1543_v63  ;;  %v1648_v22 = vld [vmem:[%s16881_s3 + $0x1028] sm:$0xff]  ;;  %v1753_v53 = vld [vmem:[%s16881_s3 + $0x1370] sm:$0xff] }
 0x55d   :  { %7668 = vmatpush3.msra.mxu0 %v1151_v27  ;;  %7687 = vmatpush3.msra.mxu1 %v1431_v36  ;;  %v1361_v63 = vld [vmem:[%s16881_s3 + $0x730] sm:$0xff]  ;;  %v1746_v36 = vld [vmem:[%s16881_s3 + $0x1338] sm:$0xff] }
 0x55e   :  { %7669 = vmatprep.subr.mxu0 %v1256_v21  ;;  %7688 = vmatprep.subr.mxu1 %v1536_v28  ;;  %v1641_v27 = vld [vmem:[%s16881_s3 + $0xff0] sm:$0xff]  ;;  %v2026_v21 = vld [vmem:[%s16881_s3 + $0x1bf8] sm:$0xff] }
 0x55f   :  { %7670 = vmatpush3.msra.mxu0 %v1144_v35  ;;  %7689 = vmatpush3.msra.mxu1 %v1424_v14  ;;  %v1634_v28 = vld [vmem:[%s16881_s3 + $0xfb8] sm:$0xff]  ;;  %v1739_v14 = vld [vmem:[%s16881_s3 + $0x1300] sm:$0xff] }
 0x560   :  { %7671 = vmatprep.subr.mxu0 %v1249_v33  ;;  %7690 = vmatprep.subr.mxu1 %v1529_v15  ;;  %v1914_v35 = vld [vmem:[%s16881_s3 + $0x1878] sm:$0xff]  ;;  %v2019_v33 = vld [vmem:[%s16881_s3 + $0x1bc0] sm:$0xff] }
 0x561   :  { %7672 = vmatpush3.msra.mxu0 %v1137_v60  ;;  %7691 = vmatpush3.msra.mxu1 %v1417_v38  ;;  %v1627_v15 = vld [vmem:[%s16881_s3 + $0xf80] sm:$0xff]  ;;  %v2012_v38 = vld [vmem:[%s16881_s3 + $0x1b88] sm:$0xff] }
 0x562   :  { %6715 = vmatmul.mubr.f32.vlgmr.msra.gmra.mxu0 %v8706_v55  ;;  %7692 = vmatprep.subr.mxu1 %v1522_v24  ;;  %v1508_v55 = vld [vmem:[%s16881_s3 + $0xbc8] sm:$0xff]  ;;  %v1907_v60 = vld [vmem:[%s16881_s3 + $0x1840] sm:$0xff] }
 0x563   :  { %7711 = vmatprep.subr.mxu0 %v1802_v43  ;;  %7693 = vmatpush3.msra.mxu1 %v1410_v51  ;;  %v1620_v24 = vld [vmem:[%s16881_s3 + $0xf48] sm:$0xff]  ;;  %v2005_v51 = vld [vmem:[%s16881_s3 + $0x1b50] sm:$0xff] }
 0x564   :  { %7712 = vmatpush3.msra.mxu0 %v1690_v18  ;;  %6854 = vmatprep.mubr.f32.mxu0 %v9155_v26  ;;  %v1501_v26 = vld [vmem:[%s16881_s3 + $0xb90] sm:$0xff]  ;;  %v1900_v43 = vld [vmem:[%s16881_s3 + $0x1808] sm:$0xff] }
 0x565   :  { %7694 = vmatprep.subr.mxu1 %v1515_v44  ;;  %7713 = vmatprep.subr.mxu0 %v1795_v49  ;;  %v1613_v18 = vld [vmem:[%s16881_s3 + $0xf10] sm:$0xff]  ;;  %v1718_v49 = vld [vmem:[%s16881_s3 + $0x1258] sm:$0xff] }
 0x566   :  { %7695 = vmatpush3.msra.mxu1 %v1403_v56  ;;  %7714 = vmatpush3.msra.mxu0 %v1683_v30  ;;  %v1893_v44 = vld [vmem:[%s16881_s3 + $0x17d0] sm:$0xff]  ;;  %v1998_v56 = vld [vmem:[%s16881_s3 + $0x1b18] sm:$0xff] }
 0x567   :  { %7696 = vmatprep.subr.mxu1 %v1508_v55  ;;  %7715 = vmatprep.subr.mxu0 %v1788_v61  ;;  %v1606_v30 = vld [vmem:[%s16881_s3 + $0xed8] sm:$0xff]  ;;  %v1711_v61 = vld [vmem:[%s16881_s3 + $0x1220] sm:$0xff] }
 0x568   :  { %7697 = vmatpush3.msra.mxu1 %v1396_v25  ;;  %7716 = vmatpush3.msra.mxu0 %v1676_v4  ;;  %v1886_v55 = vld [vmem:[%s16881_s3 + $0x1798] sm:$0xff]  ;;  %v1991_v25 = vld [vmem:[%s16881_s3 + $0x1ae0] sm:$0xff] }
 0x569   :  { %7698 = vmatprep.subr.mxu1 %v1501_v26  ;;  %7717 = vmatprep.subr.mxu0 %v1781_v32  ;;  %v1599_v4 = vld [vmem:[%s16881_s3 + $0xea0] sm:$0xff]  ;;  %v1704_v32 = vld [vmem:[%s16881_s3 + $0x11e8] sm:$0xff] }
 0x56a   :  { %7699 = vmatpush3.msra.mxu1 %v1389_v7  ;;  %7718 = vmatpush3.msra.mxu0 %v1669_v48  ;;  %v1879_v26 = vld [vmem:[%s16881_s3 + $0x1760] sm:$0xff]  ;;  %v1984_v7 = vld [vmem:[%s16881_s3 + $0x1aa8] sm:$0xff] }
 0x56b   :  { %7700 = vmatprep.subr.mxu1 %v1494_v29  ;;  %7719 = vmatprep.subr.mxu0 %v1774_v5  ;;  %v1592_v48 = vld [vmem:[%s16881_s3 + $0xe68] sm:$0xff]  ;;  %v1697_v5 = vld [vmem:[%s16881_s3 + $0x11b0] sm:$0xff] }
 0x56c   :  { %7701 = vmatpush3.msra.mxu1 %v1382_v13  ;;  %7720 = vmatpush3.msra.mxu0 %v1662_v8  ;;  %v1872_v29 = vld [vmem:[%s16881_s3 + $0x1728] sm:$0xff]  ;;  %v1977_v13 = vld [vmem:[%s16881_s3 + $0x1a70] sm:$0xff] }
 0x56d   :  { %7702 = vmatprep.subr.mxu1 %v1487_v2  ;;  %7721 = vmatprep.subr.mxu0 %v1767_v54  ;;  %v1585_v8 = vld [vmem:[%s16881_s3 + $0xe30] sm:$0xff]  ;;  %v1970_v54 = vld [vmem:[%s16881_s3 + $0x1a38] sm:$0xff] }
 0x56e   :  { %7703 = vmatpush3.msra.mxu1 %v1375_v17  ;;  %7722 = vmatpush3.msra.mxu0 %v1655_v46  ;;  %v1865_v2 = vld [vmem:[%s16881_s3 + $0x16f0] sm:$0xff]  ;;  %v2250_v17 = vld [vmem:[%s16881_s3 + $0x22f8] sm:$0xff] }
 0x56f   :  { %7704 = vmatprep.subr.mxu1 %v1480_v47  ;;  %7723 = vmatprep.subr.mxu0 %v1760_v62  ;;  %v1858_v46 = vld [vmem:[%s16881_s3 + $0x16b8] sm:$0xff]  ;;  %v1963_v62 = vld [vmem:[%s16881_s3 + $0x1a00] sm:$0xff] }
 0x570   :  { %7705 = vmatpush3.msra.mxu1 %v1368_v9  ;;  %7724 = vmatpush3.msra.mxu0 %v1648_v22  ;;  %v2138_v47 = vld [vmem:[%s16881_s3 + $0x1f78] sm:$0xff]  ;;  %v2243_v9 = vld [vmem:[%s16881_s3 + $0x22c0] sm:$0xff] }
 0x571   :  { %7706 = vmatprep.subr.mxu1 %v1473_v10  ;;  %7725 = vmatprep.subr.mxu0 %v1753_v53  ;;  %v1851_v22 = vld [vmem:[%s16881_s3 + $0x1680] sm:$0xff]  ;;  %v2236_v53 = vld [vmem:[%s16881_s3 + $0x2288] sm:$0xff] }
 0x572   :  { %7707 = vmatpush3.msra.mxu1 %v1361_v63  ;;  %7726 = vmatpush3.msra.mxu0 %v1641_v27  ;;  %v2131_v10 = vld [vmem:[%s16881_s3 + $0x1f40] sm:$0xff]  ;;  %v1844_v63 = vld [vmem:[%s16881_s3 + $0x1648] sm:$0xff] }
 0x573   :  { %6785 = vmatmul.mubr.f32.vlgmr.msra.gmra.mxu1 %v8696_v50  ;;  %7727 = vmatprep.subr.mxu0 %v1746_v36  ;;  %v1732_v50 = vld [vmem:[%s16881_s3 + $0x12c8] sm:$0xff]  ;;  %v2229_v36 = vld [vmem:[%s16881_s3 + $0x2250] sm:$0xff] }
 0x574   :  { %7746 = vmatprep.subr.mxu1 %v2026_v21  ;;  %7728 = vmatpush3.msra.mxu0 %v1634_v28  ;;  %v2124_v27 = vld [vmem:[%s16881_s3 + $0x1f08] sm:$0xff]  ;;  %v1837_v21 = vld [vmem:[%s16881_s3 + $0x1610] sm:$0xff] }
 0x575   :  { %7747 = vmatpush3.msra.mxu1 %v1914_v35  ;;  %6924 = vmatprep.mubr.f32.mxu1 %v9173_v39  ;;  %v1725_v39 = vld [vmem:[%s16881_s3 + $0x1290] sm:$0xff]  ;;  %v1942_v35 = vld [vmem:[%s16881_s3 + $0x1958] sm:$0xff] }
 0x576   :  { %7729 = vmatprep.subr.mxu0 %v1739_v14  ;;  %7748 = vmatprep.subr.mxu1 %v2019_v33  ;;  %v2117_v28 = vld [vmem:[%s16881_s3 + $0x1ed0] sm:$0xff]  ;;  %v2222_v14 = vld [vmem:[%s16881_s3 + $0x2218] sm:$0xff] }
 0x577   :  { %7730 = vmatpush3.msra.mxu0 %v1627_v15  ;;  %7749 = vmatpush3.msra.mxu1 %v1907_v60  ;;  %v1830_v33 = vld [vmem:[%s16881_s3 + $0x15d8] sm:$0xff]  ;;  %v1935_v60 = vld [vmem:[%s16881_s3 + $0x1920] sm:$0xff] }
 0x578   :  { %7731 = vmatprep.subr.mxu0 %v1732_v50  ;;  %7750 = vmatprep.subr.mxu1 %v2012_v38  ;;  %v2110_v15 = vld [vmem:[%s16881_s3 + $0x1e98] sm:$0xff]  ;;  %v2215_v50 = vld [vmem:[%s16881_s3 + $0x21e0] sm:$0xff] }
 0x579   :  { %7732 = vmatpush3.msra.mxu0 %v1620_v24  ;;  %7751 = vmatpush3.msra.mxu1 %v1900_v43  ;;  %v1823_v38 = vld [vmem:[%s16881_s3 + $0x15a0] sm:$0xff]  ;;  %v1928_v43 = vld [vmem:[%s16881_s3 + $0x18e8] sm:$0xff] }
 0x57a   :  { %7733 = vmatprep.subr.mxu0 %v1725_v39  ;;  %7752 = vmatprep.subr.mxu1 %v2005_v51  ;;  %v2103_v24 = vld [vmem:[%s16881_s3 + $0x1e60] sm:$0xff]  ;;  %v2208_v39 = vld [vmem:[%s16881_s3 + $0x21a8] sm:$0xff] }
 0x57b   :  { %7734 = vmatpush3.msra.mxu0 %v1613_v18  ;;  %7753 = vmatpush3.msra.mxu1 %v1893_v44  ;;  %v1816_v51 = vld [vmem:[%s16881_s3 + $0x1568] sm:$0xff]  ;;  %v1921_v44 = vld [vmem:[%s16881_s3 + $0x18b0] sm:$0xff] }
 0x57c   :  { %7735 = vmatprep.subr.mxu0 %v1718_v49  ;;  %7754 = vmatprep.subr.mxu1 %v1998_v56  ;;  %v2096_v18 = vld [vmem:[%s16881_s3 + $0x1e28] sm:$0xff]  ;;  %v2201_v49 = vld [vmem:[%s16881_s3 + $0x2170] sm:$0xff] }
 0x57d   :  { %7736 = vmatpush3.msra.mxu0 %v1606_v30  ;;  %7755 = vmatpush3.msra.mxu1 %v1886_v55  ;;  %v1809_v56 = vld [vmem:[%s16881_s3 + $0x1530] sm:$0xff]  ;;  %v2194_v55 = vld [vmem:[%s16881_s3 + $0x2138] sm:$0xff] }
 0x57e   :  { %7737 = vmatprep.subr.mxu0 %v1711_v61  ;;  %7756 = vmatprep.subr.mxu1 %v1991_v25  ;;  %v2089_v30 = vld [vmem:[%s16881_s3 + $0x1df0] sm:$0xff]  ;;  %v2474_v61 = vld [vmem:[%s16881_s3 + $0x29f8] sm:$0xff] }
 0x57f   :  { %7738 = vmatpush3.msra.mxu0 %v1599_v4  ;;  %7757 = vmatpush3.msra.mxu1 %v1879_v26  ;;  %v2082_v25 = vld [vmem:[%s16881_s3 + $0x1db8] sm:$0xff]  ;;  %v2187_v26 = vld [vmem:[%s16881_s3 + $0x2100] sm:$0xff] }
 0x580   :  { %7739 = vmatprep.subr.mxu0 %v1704_v32  ;;  %7758 = vmatprep.subr.mxu1 %v1984_v7  ;;  %v2362_v4 = vld [vmem:[%s16881_s3 + $0x2678] sm:$0xff]  ;;  %v2467_v32 = vld [vmem:[%s16881_s3 + $0x29c0] sm:$0xff] }
 0x581   :  { %7740 = vmatpush3.msra.mxu0 %v1592_v48  ;;  %7759 = vmatpush3.msra.mxu1 %v1872_v29  ;;  %v2075_v7 = vld [vmem:[%s16881_s3 + $0x1d80] sm:$0xff]  ;;  %v2460_v29 = vld [vmem:[%s16881_s3 + $0x2988] sm:$0xff] }
 0x582   :  { %7741 = vmatprep.subr.mxu0 %v1697_v5  ;;  %7760 = vmatprep.subr.mxu1 %v1977_v13  ;;  %v2355_v48 = vld [vmem:[%s16881_s3 + $0x2640] sm:$0xff]  ;;  %v2068_v5 = vld [vmem:[%s16881_s3 + $0x1d48] sm:$0xff] }
 0x583   :  { %7742 = vmatpush3.msra.mxu0 %v1585_v8  ;;  %7761 = vmatpush3.msra.mxu1 %v1865_v2  ;;  %v2348_v13 = vld [vmem:[%s16881_s3 + $0x2608] sm:$0xff]  ;;  %v2453_v8 = vld [vmem:[%s16881_s3 + $0x2950] sm:$0xff] }
 0x584   :  { %6855 = vmatmul.mubr.f32.vlgmr.msra.gmra.mxu0 %v9178_v41  ;;  %7762 = vmatprep.subr.mxu1 %v1970_v54  ;;  %v1956_v41 = vld [vmem:[%s16881_s3 + $0x19c8] sm:$0xff]  ;;  %v2061_v2 = vld [vmem:[%s16881_s3 + $0x1d10] sm:$0xff] }
 0x585   :  { %7781 = vmatprep.subr.mxu0 %v2250_v17  ;;  %7763 = vmatpush3.msra.mxu1 %v1858_v46  ;;  %v2341_v54 = vld [vmem:[%s16881_s3 + $0x25d0] sm:$0xff]  ;;  %v2166_v17 = vld [vmem:[%s16881_s3 + $0x2058] sm:$0xff] }
 0x586   :  { %7782 = vmatpush3.msra.mxu0 %v2138_v47  ;;  %6994 = vmatprep.mubr.f32.mxu0 %v9557_v34  ;;  %v1949_v34 = vld [vmem:[%s16881_s3 + $0x1990] sm:$0xff]  ;;  %v2446_v46 = vld [vmem:[%s16881_s3 + $0x2918] sm:$0xff] }
 0x587   :  { %7764 = vmatprep.subr.mxu1 %v1963_v62  ;;  %7783 = vmatprep.subr.mxu0 %v2243_v9  ;;  %v2054_v47 = vld [vmem:[%s16881_s3 + $0x1cd8] sm:$0xff]  ;;  %v2159_v9 = vld [vmem:[%s16881_s3 + $0x2020] sm:$0xff] }
 0x588   :  { %7765 = vmatpush3.msra.mxu1 %v1851_v22  ;;  %7784 = vmatpush3.msra.mxu0 %v2131_v10  ;;  %v2334_v62 = vld [vmem:[%s16881_s3 + $0x2598] sm:$0xff]  ;;  %v2439_v22 = vld [vmem:[%s16881_s3 + $0x28e0] sm:$0xff] }
 0x589   :  { %7766 = vmatprep.subr.mxu1 %v1956_v41  ;;  %7785 = vmatprep.subr.mxu0 %v2236_v53  ;;  %v2047_v10 = vld [vmem:[%s16881_s3 + $0x1ca0] sm:$0xff]  ;;  %v2152_v53 = vld [vmem:[%s16881_s3 + $0x1fe8] sm:$0xff] }
 0x58a   :  { %7767 = vmatpush3.msra.mxu1 %v1844_v63  ;;  %7786 = vmatpush3.msra.mxu0 %v2124_v27  ;;  %v2327_v41 = vld [vmem:[%s16881_s3 + $0x2560] sm:$0xff]  ;;  %v2432_v63 = vld [vmem:[%s16881_s3 + $0x28a8] sm:$0xff] }
 0x58b   :  { %7768 = vmatprep.subr.mxu1 %v1949_v34  ;;  %7787 = vmatprep.subr.mxu0 %v2229_v36  ;;  %v2040_v27 = vld [vmem:[%s16881_s3 + $0x1c68] sm:$0xff]  ;;  %v2145_v36 = vld [vmem:[%s16881_s3 + $0x1fb0] sm:$0xff] }
 0x58c   :  { %7769 = vmatpush3.msra.mxu1 %v1837_v21  ;;  %7788 = vmatpush3.msra.mxu0 %v2117_v28  ;;  %v2320_v34 = vld [vmem:[%s16881_s3 + $0x2528] sm:$0xff]  ;;  %v2425_v21 = vld [vmem:[%s16881_s3 + $0x2870] sm:$0xff] }
 0x58d   :  { %7770 = vmatprep.subr.mxu1 %v1942_v35  ;;  %7789 = vmatprep.subr.mxu0 %v2222_v14  ;;  %v2033_v28 = vld [vmem:[%s16881_s3 + $0x1c30] sm:$0xff]  ;;  %v2418_v14 = vld [vmem:[%s16881_s3 + $0x2838] sm:$0xff] }
 0x58e   :  { %7771 = vmatpush3.msra.mxu1 %v1830_v33  ;;  %7790 = vmatpush3.msra.mxu0 %v2110_v15  ;;  %v2313_v35 = vld [vmem:[%s16881_s3 + $0x24f0] sm:$0xff]  ;;  %v2698_v33 = vld [vmem:[%s16881_s3 + $0x30f8] sm:$0xff] }
 0x58f   :  { %7772 = vmatprep.subr.mxu1 %v1935_v60  ;;  %7791 = vmatprep.subr.mxu0 %v2215_v50  ;;  %v2306_v15 = vld [vmem:[%s16881_s3 + $0x24b8] sm:$0xff]  ;;  %v2411_v50 = vld [vmem:[%s16881_s3 + $0x2800] sm:$0xff] }
 0x590   :  { %7773 = vmatpush3.msra.mxu1 %v1823_v38  ;;  %7792 = vmatpush3.msra.mxu0 %v2103_v24  ;;  %v2586_v60 = vld [vmem:[%s16881_s3 + $0x2d78] sm:$0xff]  ;;  %v2691_v38 = vld [vmem:[%s16881_s3 + $0x30c0] sm:$0xff] }
 0x591   :  { %7774 = vmatprep.subr.mxu1 %v1928_v43  ;;  %7793 = vmatprep.subr.mxu0 %v2208_v39  ;;  %v2299_v24 = vld [vmem:[%s16881_s3 + $0x2480] sm:$0xff]  ;;  %v2684_v39 = vld [vmem:[%s16881_s3 + $0x3088] sm:$0xff] }
 0x592   :  { %7775 = vmatpush3.msra.mxu1 %v1816_v51  ;;  %7794 = vmatpush3.msra.mxu0 %v2096_v18  ;;  %v2579_v43 = vld [vmem:[%s16881_s3 + $0x2d40] sm:$0xff]  ;;  %v2292_v51 = vld [vmem:[%s16881_s3 + $0x2448] sm:$0xff] }
 0x593   :  { %7776 = vmatprep.subr.mxu1 %v1921_v44  ;;  %7795 = vmatprep.subr.mxu0 %v2201_v49  ;;  %v2572_v18 = vld [vmem:[%s16881_s3 + $0x2d08] sm:$0xff]  ;;  %v2677_v44 = vld [vmem:[%s16881_s3 + $0x3050] sm:$0xff] }
 0x594   :  { %7777 = vmatpush3.msra.mxu1 %v1809_v56  ;;  %7796 = vmatpush3.msra.mxu0 %v2089_v30  ;;  %v2285_v49 = vld [vmem:[%s16881_s3 + $0x2410] sm:$0xff]  ;;  %v2390_v30 = vld [vmem:[%s16881_s3 + $0x2758] sm:$0xff] }
 0x595   :  { %6925 = vmatmul.mubr.f32.vlgmr.msra.gmra.mxu1 %v9180_v42  ;;  %7797 = vmatprep.subr.mxu0 %v2194_v55  ;;  %v2180_v42 = vld [vmem:[%s16881_s3 + $0x20c8] sm:$0xff]  ;;  %v2565_v56 = vld [vmem:[%s16881_s3 + $0x2cd0] sm:$0xff]  ;;  %v2670_v55 = vld [vmem:[%s16881_s3 + $0x3018] sm:$0xff] }
 0x596   :  { %7816 = vmatprep.subr.mxu1 %v2474_v61  ;;  %7798 = vmatpush3.msra.mxu0 %v2082_v25  ;;  %v2278_v61 = vld [vmem:[%s16881_s3 + $0x23d8] sm:$0xff] }
 0x597   :  { %7817 = vmatpush3.msra.mxu1 %v2362_v4  ;;  %7064 = vmatprep.mubr.f32.mxu1 %v9545_v23  ;;  %v2173_v23 = vld [vmem:[%s16881_s3 + $0x2090] sm:$0xff]  ;;  %v2558_v25 = vld [vmem:[%s16881_s3 + $0x2c98] sm:$0xff]  ;;  %v2383_v4 = vld [vmem:[%s16881_s3 + $0x2720] sm:$0xff] }
 0x598   :  { %7799 = vmatprep.subr.mxu0 %v2187_v26  ;;  %7818 = vmatprep.subr.mxu1 %v2467_v32  ;;  %v2663_v26 = vld [vmem:[%s16881_s3 + $0x2fe0] sm:$0xff] }
 0x599   :  { %7800 = vmatpush3.msra.mxu0 %v2075_v7  ;;  %7819 = vmatpush3.msra.mxu1 %v2355_v48  ;;  %v2271_v32 = vld [vmem:[%s16881_s3 + $0x23a0] sm:$0xff]  ;;  %v2376_v48 = vld [vmem:[%s16881_s3 + $0x26e8] sm:$0xff] }
 0x59a   :  { %7801 = vmatprep.subr.mxu0 %v2180_v42  ;;  %7820 = vmatprep.subr.mxu1 %v2460_v29  ;;  %v2551_v7 = vld [vmem:[%s16881_s3 + $0x2c60] sm:$0xff]  ;;  %v2656_v42 = vld [vmem:[%s16881_s3 + $0x2fa8] sm:$0xff] }
 0x59b   :  { %7802 = vmatpush3.msra.mxu0 %v2068_v5  ;;  %7821 = vmatpush3.msra.mxu1 %v2348_v13  ;;  %v2264_v29 = vld [vmem:[%s16881_s3 + $0x2368] sm:$0xff]  ;;  %v2369_v13 = vld [vmem:[%s16881_s3 + $0x26b0] sm:$0xff] }
 0x59c   :  { %7803 = vmatprep.subr.mxu0 %v2173_v23  ;;  %7822 = vmatprep.subr.mxu1 %v2453_v8  ;;  %v2544_v5 = vld [vmem:[%s16881_s3 + $0x2c28] sm:$0xff]  ;;  %v2649_v23 = vld [vmem:[%s16881_s3 + $0x2f70] sm:$0xff] }
 0x59d   :  { %7804 = vmatpush3.msra.mxu0 %v2061_v2  ;;  %7823 = vmatpush3.msra.mxu1 %v2341_v54  ;;  %v2257_v8 = vld [vmem:[%s16881_s3 + $0x2330] sm:$0xff]  ;;  %v2642_v54 = vld [vmem:[%s16881_s3 + $0x2f38] sm:$0xff] }
 0x59e   :  { %7805 = vmatprep.subr.mxu0 %v2166_v17  ;;  %7824 = vmatprep.subr.mxu1 %v2446_v46  ;;  %v2537_v2 = vld [vmem:[%s16881_s3 + $0x2bf0] sm:$0xff]  ;;  %v2922_v17 = vld [vmem:[%s16881_s3 + $0x37f8] sm:$0xff] }
 0x59f   :  { %7806 = vmatpush3.msra.mxu0 %v2054_v47  ;;  %7825 = vmatpush3.msra.mxu1 %v2334_v62  ;;  %v2530_v46 = vld [vmem:[%s16881_s3 + $0x2bb8] sm:$0xff]  ;;  %v2635_v62 = vld [vmem:[%s16881_s3 + $0x2f00] sm:$0xff] }
 0x5a0   :  { %7807 = vmatprep.subr.mxu0 %v2159_v9  ;;  %7826 = vmatprep.subr.mxu1 %v2439_v22  ;;  %v2810_v47 = vld [vmem:[%s16881_s3 + $0x3478] sm:$0xff]  ;;  %v2915_v9 = vld [vmem:[%s16881_s3 + $0x37c0] sm:$0xff] }
 0x5a1   :  { %7808 = vmatpush3.msra.mxu0 %v2047_v10  ;;  %7827 = vmatpush3.msra.mxu1 %v2327_v41  ;;  %v2523_v22 = vld [vmem:[%s16881_s3 + $0x2b80] sm:$0xff]  ;;  %v2908_v41 = vld [vmem:[%s16881_s3 + $0x3788] sm:$0xff] }
 0x5a2   :  { %7809 = vmatprep.subr.mxu0 %v2152_v53  ;;  %7828 = vmatprep.subr.mxu1 %v2432_v63  ;;  %v2803_v10 = vld [vmem:[%s16881_s3 + $0x3440] sm:$0xff]  ;;  %v2516_v53 = vld [vmem:[%s16881_s3 + $0x2b48] sm:$0xff] }
 0x5a3   :  { %7810 = vmatpush3.msra.mxu0 %v2040_v27  ;;  %7829 = vmatpush3.msra.mxu1 %v2320_v34  ;;  %v2796_v63 = vld [vmem:[%s16881_s3 + $0x3408] sm:$0xff]  ;;  %v2901_v27 = vld [vmem:[%s16881_s3 + $0x3750] sm:$0xff] }
 0x5a4   :  { %7811 = vmatprep.subr.mxu0 %v2145_v36  ;;  %7830 = vmatprep.subr.mxu1 %v2425_v21  ;;  %v2509_v34 = vld [vmem:[%s16881_s3 + $0x2b10] sm:$0xff]  ;;  %v2614_v21 = vld [vmem:[%s16881_s3 + $0x2e58] sm:$0xff] }
 0x5a5   :  { %7812 = vmatpush3.msra.mxu0 %v2033_v28  ;;  %7831 = vmatpush3.msra.mxu1 %v2313_v35  ;;  %v2789_v36 = vld [vmem:[%s16881_s3 + $0x33d0] sm:$0xff]  ;;  %v2894_v28 = vld [vmem:[%s16881_s3 + $0x3718] sm:$0xff] }
 0x5a6   :  { %6995 = vmatmul.mubr.f32.vlgmr.msra.gmra.mxu0 %v9595_v1  ;;  %7832 = vmatprep.subr.mxu1 %v2418_v14  ;;  %v2404_v1 = vld [vmem:[%s16881_s3 + $0x27c8] sm:$0xff]  ;;  %v2502_v35 = vld [vmem:[%s16881_s3 + $0x2ad8] sm:$0xff] }
 0x5a7   :  { %7851 = vmatprep.subr.mxu0 %v2698_v33  ;;  %7833 = vmatpush3.msra.mxu1 %v2306_v15  ;;  %v2782_v14 = vld [vmem:[%s16881_s3 + $0x3398] sm:$0xff]  ;;  %v2607_v33 = vld [vmem:[%s16881_s3 + $0x2e20] sm:$0xff] }
 0x5a8   :  { %7852 = vmatpush3.msra.mxu0 %v2586_v60  ;;  %7134 = vmatprep.mubr.f32.mxu0 %v9597_v6  ;;  %v2397_v6 = vld [vmem:[%s16881_s3 + $0x2790] sm:$0xff]  ;;  %v2887_v15 = vld [vmem:[%s16881_s3 + $0x36e0] sm:$0xff] }
 0x5a9   :  { %7834 = vmatprep.subr.mxu1 %v2411_v50  ;;  %7853 = vmatprep.subr.mxu0 %v2691_v38  ;;  %v2495_v60 = vld [vmem:[%s16881_s3 + $0x2aa0] sm:$0xff]  ;;  %v2600_v38 = vld [vmem:[%s16881_s3 + $0x2de8] sm:$0xff] }
 0x5aa   :  { %7835 = vmatpush3.msra.mxu1 %v2299_v24  ;;  %7854 = vmatpush3.msra.mxu0 %v2579_v43  ;;  %v2775_v50 = vld [vmem:[%s16881_s3 + $0x3360] sm:$0xff]  ;;  %v2880_v24 = vld [vmem:[%s16881_s3 + $0x36a8] sm:$0xff] }
 0x5ab   :  { %7836 = vmatprep.subr.mxu1 %v2404_v1  ;;  %7855 = vmatprep.subr.mxu0 %v2684_v39  ;;  %v2488_v43 = vld [vmem:[%s16881_s3 + $0x2a68] sm:$0xff]  ;;  %v2593_v39 = vld [vmem:[%s16881_s3 + $0x2db0] sm:$0xff] }
 0x5ac   :  { %7837 = vmatpush3.msra.mxu1 %v2292_v51  ;;  %7856 = vmatpush3.msra.mxu0 %v2572_v18  ;;  %v2768_v1 = vld [vmem:[%s16881_s3 + $0x3328] sm:$0xff]  ;;  %v2873_v51 = vld [vmem:[%s16881_s3 + $0x3670] sm:$0xff] }
 0x5ad   :  { %7838 = vmatprep.subr.mxu1 %v2397_v6  ;;  %7857 = vmatprep.subr.mxu0 %v2677_v44  ;;  %v2481_v18 = vld [vmem:[%s16881_s3 + $0x2a30] sm:$0xff]  ;;  %v2866_v44 = vld [vmem:[%s16881_s3 + $0x3638] sm:$0xff] }
 0x5ae   :  { %7839 = vmatpush3.msra.mxu1 %v2285_v49  ;;  %7858 = vmatpush3.msra.mxu0 %v2565_v56  ;;  %v2761_v6 = vld [vmem:[%s16881_s3 + $0x32f0] sm:$0xff]  ;;  %v3146_v49 = vld [vmem:[%s16881_s3 + $0x3ef8] sm:$0xff] }
 0x5af   :  { %7840 = vmatprep.subr.mxu1 %v2390_v30  ;;  %7859 = vmatprep.subr.mxu0 %v2670_v55  ;;  %v2754_v56 = vld [vmem:[%s16881_s3 + $0x32b8] sm:$0xff]  ;;  %v2859_v55 = vld [vmem:[%s16881_s3 + $0x3600] sm:$0xff] }
 0x5b0   :  { %7841 = vmatpush3.msra.mxu1 %v2278_v61  ;;  %7860 = vmatpush3.msra.mxu0 %v2558_v25  ;;  %v3034_v30 = vld [vmem:[%s16881_s3 + $0x3b78] sm:$0xff]  ;;  %v3139_v61 = vld [vmem:[%s16881_s3 + $0x3ec0] sm:$0xff] }
 0x5b1   :  { %7842 = vmatprep.subr.mxu1 %v2383_v4  ;;  %7861 = vmatprep.subr.mxu0 %v2663_v26  ;;  %v2747_v25 = vld [vmem:[%s16881_s3 + $0x3280] sm:$0xff]  ;;  %v3132_v26 = vld [vmem:[%s16881_s3 + $0x3e88] sm:$0xff] }
 0x5b2   :  { %7843 = vmatpush3.msra.mxu1 %v2271_v32  ;;  %7862 = vmatpush3.msra.mxu0 %v2551_v7  ;;  %v3027_v4 = vld [vmem:[%s16881_s3 + $0x3b40] sm:$0xff]  ;;  %v2740_v32 = vld [vmem:[%s16881_s3 + $0x3248] sm:$0xff] }
 0x5b3   :  { %7844 = vmatprep.subr.mxu1 %v2376_v48  ;;  %7863 = vmatprep.subr.mxu0 %v2656_v42  ;;  %v3020_v7 = vld [vmem:[%s16881_s3 + $0x3b08] sm:$0xff]  ;;  %v3125_v48 = vld [vmem:[%s16881_s3 + $0x3e50] sm:$0xff] }
 0x5b4   :  { %7845 = vmatpush3.msra.mxu1 %v2264_v29  ;;  %7864 = vmatpush3.msra.mxu0 %v2544_v5  ;;  %v2733_v42 = vld [vmem:[%s16881_s3 + $0x3210] sm:$0xff]  ;;  %v2838_v5 = vld [vmem:[%s16881_s3 + $0x3558] sm:$0xff] }
 0x5b5   :  { %7846 = vmatprep.subr.mxu1 %v2369_v13  ;;  %7865 = vmatprep.subr.mxu0 %v2649_v23  ;;  %v3013_v29 = vld [vmem:[%s16881_s3 + $0x3ad0] sm:$0xff]  ;;  %v3118_v13 = vld [vmem:[%s16881_s3 + $0x3e18] sm:$0xff] }
 0x5b6   :  { %7847 = vmatpush3.msra.mxu1 %v2257_v8  ;;  %7866 = vmatpush3.msra.mxu0 %v2537_v2  ;;  %v2726_v23 = vld [vmem:[%s16881_s3 + $0x31d8] sm:$0xff]  ;;  %v2831_v2 = vld [vmem:[%s16881_s3 + $0x3520] sm:$0xff] }
 0x5b7   :  { %7065 = vmatmul.mubr.f32.vlgmr.msra.gmra.mxu1 %v9593_v0  ;;  %7867 = vmatprep.subr.mxu0 %v2642_v54  ;;  %v2628_v0 = vld [vmem:[%s16881_s3 + $0x2ec8] sm:$0xff]  ;;  %v3006_v8 = vld [vmem:[%s16881_s3 + $0x3a98] sm:$0xff]  ;;  %v3111_v54 = vld [vmem:[%s16881_s3 + $0x3de0] sm:$0xff] }
 0x5b8   :  { %7886 = vmatprep.subr.mxu1 %v2922_v17  ;;  %7868 = vmatpush3.msra.mxu0 %v2530_v46  ;;  %v2719_v17 = vld [vmem:[%s16881_s3 + $0x31a0] sm:$0xff] }
 0x5b9   :  { %7887 = vmatpush3.msra.mxu1 %v2810_v47  ;;  %7204 = vmatprep.mubr.f32.mxu1 %v9613_v11  ;;  %v2621_v11 = vld [vmem:[%s16881_s3 + $0x2e90] sm:$0xff]  ;;  %v2999_v46 = vld [vmem:[%s16881_s3 + $0x3a60] sm:$0xff]  ;;  %v2824_v47 = vld [vmem:[%s16881_s3 + $0x34e8] sm:$0xff] }
 0x5ba   :  { %7869 = vmatprep.subr.mxu0 %v2635_v62  ;;  %7888 = vmatprep.subr.mxu1 %v2915_v9  ;;  %v3104_v62 = vld [vmem:[%s16881_s3 + $0x3da8] sm:$0xff] }
 0x5bb   :  { %7870 = vmatpush3.msra.mxu0 %v2523_v22  ;;  %7889 = vmatpush3.msra.mxu1 %v2803_v10  ;;  %v2712_v9 = vld [vmem:[%s16881_s3 + $0x3168] sm:$0xff]  ;;  %v2817_v10 = vld [vmem:[%s16881_s3 + $0x34b0] sm:$0xff] }
 0x5bc   :  { %7871 = vmatprep.subr.mxu0 %v2628_v0  ;;  %7890 = vmatprep.subr.mxu1 %v2908_v41  ;;  %v2992_v22 = vld [vmem:[%s16881_s3 + $0x3a28] sm:$0xff]  ;;  %v3097_v0 = vld [vmem:[%s16881_s3 + $0x3d70] sm:$0xff] }
 0x5bd   :  { %7872 = vmatpush3.msra.mxu0 %v2516_v53  ;;  %7891 = vmatpush3.msra.mxu1 %v2796_v63  ;;  %v2705_v41 = vld [vmem:[%s16881_s3 + $0x3130] sm:$0xff]  ;;  %v3090_v63 = vld [vmem:[%s16881_s3 + $0x3d38] sm:$0xff] }
 0x5be   :  { %7873 = vmatprep.subr.mxu0 %v2621_v11  ;;  %7892 = vmatprep.subr.mxu1 %v2901_v27  ;;  %v2985_v53 = vld [vmem:[%s16881_s3 + $0x39f0] sm:$0xff]  ;;  %v3370_v11 = vld [vmem:[%s16881_s3 + $0x45f8] sm:$0xff] }
 0x5bf   :  { %7874 = vmatpush3.msra.mxu0 %v2509_v34  ;;  %7893 = vmatpush3.msra.mxu1 %v2789_v36  ;;  %v2978_v27 = vld [vmem:[%s16881_s3 + $0x39b8] sm:$0xff]  ;;  %v3083_v36 = vld [vmem:[%s16881_s3 + $0x3d00] sm:$0xff] }
 0x5c0   :  { %7875 = vmatprep.subr.mxu0 %v2614_v21  ;;  %7894 = vmatprep.subr.mxu1 %v2894_v28  ;;  %v3258_v34 = vld [vmem:[%s16881_s3 + $0x4278] sm:$0xff]  ;;  %v3363_v21 = vld [vmem:[%s16881_s3 + $0x45c0] sm:$0xff] }
 0x5c1   :  { %7876 = vmatpush3.msra.mxu0 %v2502_v35  ;;  %7895 = vmatpush3.msra.mxu1 %v2782_v14  ;;  %v2971_v28 = vld [vmem:[%s16881_s3 + $0x3980] sm:$0xff]  ;;  %v3356_v14 = vld [vmem:[%s16881_s3 + $0x4588] sm:$0xff] }
 0x5c2   :  { %7877 = vmatprep.subr.mxu0 %v2607_v33  ;;  %7896 = vmatprep.subr.mxu1 %v2887_v15  ;;  %v3251_v35 = vld [vmem:[%s16881_s3 + $0x4240] sm:$0xff]  ;;  %v2964_v33 = vld [vmem:[%s16881_s3 + $0x3948] sm:$0xff] }
 0x5c3   :  { %7878 = vmatpush3.msra.mxu0 %v2495_v60  ;;  %7897 = vmatpush3.msra.mxu1 %v2775_v50  ;;  %v3244_v15 = vld [vmem:[%s16881_s3 + $0x4208] sm:$0xff]  ;;  %v3349_v60 = vld [vmem:[%s16881_s3 + $0x4550] sm:$0xff] }
 0x5c4   :  { %7879 = vmatprep.subr.mxu0 %v2600_v38  ;;  %7898 = vmatprep.subr.mxu1 %v2880_v24  ;;  %v2957_v50 = vld [vmem:[%s16881_s3 + $0x3910] sm:$0xff]  ;;  %v3062_v24 = vld [vmem:[%s16881_s3 + $0x3c58] sm:$0xff] }
 0x5c5   :  { %7880 = vmatpush3.msra.mxu0 %v2488_v43  ;;  %7899 = vmatpush3.msra.mxu1 %v2768_v1  ;;  %v3237_v38 = vld [vmem:[%s16881_s3 + $0x41d0] sm:$0xff]  ;;  %v3342_v43 = vld [vmem:[%s16881_s3 + $0x4518] sm:$0xff] }
 0x5c6   :  { %7881 = vmatprep.subr.mxu0 %v2593_v39  ;;  %7900 = vmatprep.subr.mxu1 %v2873_v51  ;;  %v2950_v1 = vld [vmem:[%s16881_s3 + $0x38d8] sm:$0xff]  ;;  %v3055_v51 = vld [vmem:[%s16881_s3 + $0x3c20] sm:$0xff] }
 0x5c7   :  { %7882 = vmatpush3.msra.mxu0 %v2481_v18  ;;  %7901 = vmatpush3.msra.mxu1 %v2761_v6  ;;  %v3230_v39 = vld [vmem:[%s16881_s3 + $0x4198] sm:$0xff]  ;;  %v3335_v18 = vld [vmem:[%s16881_s3 + $0x44e0] sm:$0xff] }
 0x5c8   :  { %7135 = vmatmul.mubr.f32.vlgmr.msra.gmra.mxu0 %v10004_v45  ;;  %7902 = vmatprep.subr.mxu1 %v2866_v44  ;;  %v2852_v45 = vld [vmem:[%s16881_s3 + $0x35c8] sm:$0xff]  ;;  %v2943_v6 = vld [vmem:[%s16881_s3 + $0x38a0] sm:$0xff] }
 0x5c9   :  { %7921 = vmatprep.subr.mxu0 %v3146_v49  ;;  %7903 = vmatpush3.msra.mxu1 %v2754_v56  ;;  %v3223_v44 = vld [vmem:[%s16881_s3 + $0x4160] sm:$0xff]  ;;  %v3048_v49 = vld [vmem:[%s16881_s3 + $0x3be8] sm:$0xff] }
 0x5ca   :  { %7922 = vmatpush3.msra.mxu0 %v3034_v30  ;;  %7274 = vmatprep.mubr.f32.mxu0 %v10015_v57  ;;  %v2845_v57 = vld [vmem:[%s16881_s3 + $0x3590] sm:$0xff]  ;;  %v3328_v56 = vld [vmem:[%s16881_s3 + $0x44a8] sm:$0xff] }
 0x5cb   :  { %7904 = vmatprep.subr.mxu1 %v2859_v55  ;;  %7923 = vmatprep.subr.mxu0 %v3139_v61  ;;  %v2936_v30 = vld [vmem:[%s16881_s3 + $0x3868] sm:$0xff]  ;;  %v3041_v61 = vld [vmem:[%s16881_s3 + $0x3bb0] sm:$0xff] }
 0x5cc   :  { %7905 = vmatpush3.msra.mxu1 %v2747_v25  ;;  %7924 = vmatpush3.msra.mxu0 %v3027_v4  ;;  %v3216_v55 = vld [vmem:[%s16881_s3 + $0x4128] sm:$0xff]  ;;  %v3321_v25 = vld [vmem:[%s16881_s3 + $0x4470] sm:$0xff] }
 0x5cd   :  { %7906 = vmatprep.subr.mxu1 %v2852_v45  ;;  %7925 = vmatprep.subr.mxu0 %v3132_v26  ;;  %v2929_v4 = vld [vmem:[%s16881_s3 + $0x3830] sm:$0xff]  ;;  %v3314_v26 = vld [vmem:[%s16881_s3 + $0x4438] sm:$0xff] }
 0x5ce   :  { %7907 = vmatpush3.msra.mxu1 %v2740_v32  ;;  %7926 = vmatpush3.msra.mxu0 %v3020_v7  ;;  %v3209_v45 = vld [vmem:[%s16881_s3 + $0x40f0] sm:$0xff]  ;;  %v3594_v32 = vld [vmem:[%s16881_s3 + $0x4cf8] sm:$0xff] }
 0x5cf   :  { %7908 = vmatprep.subr.mxu1 %v2845_v57  ;;  %7927 = vmatprep.subr.mxu0 %v3125_v48  ;;  %v3202_v7 = vld [vmem:[%s16881_s3 + $0x40b8] sm:$0xff]  ;;  %v5793_v57 = vpop.f32.mrf.mxu1 }
 0x5d0   :  { %7909 = vmatpush3.msra.mxu1 %v2733_v42  ;;  %7928 = vmatpush3.msra.mxu0 %v3013_v29  ;;  %v3482_v48 = vld [vmem:[%s16881_s3 + $0x4978] sm:$0xff]  ;;  %v3307_v42 = vld [vmem:[%s16881_s3 + $0x4400] sm:$0xff] }
 0x5d1   :  { %7910 = vmatprep.subr.mxu1 %v2838_v5  ;;  %7929 = vmatprep.subr.mxu0 %v3118_v13  ;;  %v3587_v29 = vld [vmem:[%s16881_s3 + $0x4cc0] sm:$0xff] }
 0x5d2   :  { %7911 = vmatpush3.msra.mxu1 %v2726_v23  ;;  %7930 = vmatpush3.msra.mxu0 %v3006_v8  ;;  %v3195_v5 = vld [vmem:[%s16881_s3 + $0x4080] sm:$0xff]  ;;  %v3580_v23 = vld [vmem:[%s16881_s3 + $0x4c88] sm:$0xff]  ;;  %v5795_v8 = vpop.f32.mrf.mxu1 }
 0x5d3   :  { %7912 = vmatprep.subr.mxu1 %v2831_v2  ;;  %7931 = vmatprep.subr.mxu0 %v3111_v54  ;;  %v3475_v13 = vld [vmem:[%s16881_s3 + $0x4940] sm:$0xff]  ;;  %v3188_v2 = vld [vmem:[%s16881_s3 + $0x4048] sm:$0xff] }
 0x5d4   :  { %7913 = vmatpush3.msra.mxu1 %v2719_v17  ;;  %7932 = vmatpush3.msra.mxu0 %v2999_v46  ;;  %v3468_v54 = vld [vmem:[%s16881_s3 + $0x4908] sm:$0xff]  ;;  %v3293_v17 = vld [vmem:[%s16881_s3 + $0x4390] sm:$0xff] }
 0x5d5   :  { %7914 = vmatprep.subr.mxu1 %v2824_v47  ;;  %7933 = vmatprep.subr.mxu0 %v3104_v62  ;;  %v3573_v46 = vld [vmem:[%s16881_s3 + $0x4c50] sm:$0xff]  ;;  %v5864_v47 = vpop.f32.mrf.mxu0  ;;  %v5935_v62 = vpop.f32.mrf.mxu1 }
 0x5d6   :  { %7915 = vmatpush3.msra.mxu1 %v2712_v9  ;;  %7934 = vmatpush3.msra.mxu0 %v2992_v22  ;;  %v3181_v9 = vld [vmem:[%s16881_s3 + $0x4010] sm:$0xff] }
 0x5d7   :  { %7916 = vmatprep.subr.mxu1 %v2817_v10  ;;  %7935 = vmatprep.subr.mxu0 %v3097_v0  ;;  %v3461_v22 = vld [vmem:[%s16881_s3 + $0x48d0] sm:$0xff]  ;;  %v5796_v10 = vadd.f32 %v5795_v8, %v11837_v37  ;;  %v3286_v0 = vld [vmem:[%s16881_s3 + $0x4358] sm:$0xff] }
 0x5d8   :  { %7917 = vmatpush3.msra.mxu1 %v2705_v41  ;;  %7936 = vmatpush3.msra.mxu0 %v2985_v53  ;;  %v3566_v41 = vld [vmem:[%s16881_s3 + $0x4c18] sm:$0xff]  ;;  %v3797_v8 = vld [vmem:[%s16881_s3 + $0x5350] sm:$0xff] }
 0x5d9   :  { %7205 = vmatmul.mubr.f32.vlgmr.msra.gmra.mxu1 %v10001_v52  ;;  %7937 = vmatprep.subr.mxu0 %v3090_v63  ;;  %v3076_v52 = vld [vmem:[%s16881_s3 + $0x3cc8] sm:$0xff]  ;;  %v3174_v53 = vld [vmem:[%s16881_s3 + $0x3fd8] sm:$0xff] }
 0x5da   :  { %7956 = vmatprep.subr.mxu1 %v3370_v11  ;;  %7938 = vmatpush3.msra.mxu0 %v2978_v27  ;;  %v3454_v63 = vld [vmem:[%s16881_s3 + $0x4898] sm:$0xff]  ;;  %v3279_v27 = vld [vmem:[%s16881_s3 + $0x4320] sm:$0xff] }
 0x5db   :  { %7957 = vmatpush3.msra.mxu1 %v3258_v34  ;;  %7344 = vmatprep.mubr.f32.mxu1 %v10022_v40  ;;  %v3069_v40 = vld [vmem:[%s16881_s3 + $0x3c90] sm:$0xff]  ;;  %v3559_v34 = vld [vmem:[%s16881_s3 + $0x4be0] sm:$0xff] }
 0x5dc   :  { %7939 = vmatprep.subr.mxu0 %v3083_v36  ;;  %7958 = vmatprep.subr.mxu1 %v3363_v21  ;;  %v5866_v36 = vpop.f32.mrf.mxu0  ;;  %v5937_v21 = vpop.f32.mrf.mxu1 }
 0x5dd   :  { %7940 = vmatpush3.msra.mxu0 %v2971_v28  ;;  %7959 = vmatpush3.msra.mxu1 %v3251_v35  ;;  %v3167_v28 = vld [vmem:[%s16881_s3 + $0x3fa0] sm:$0xff] }
 0x5de   :  { %7941 = vmatprep.subr.mxu0 %v3076_v52  ;;  %7960 = vmatprep.subr.mxu1 %v3356_v14  ;;  %v3447_v35 = vld [vmem:[%s16881_s3 + $0x4860] sm:$0xff]  ;;  %v5867_v52 = vadd.f32 %v5866_v36, %v5796_v10  ;;  %v3398_v10 = vld [vmem:[%s16881_s3 + $0x46d8] sm:$0xff] }
 0x5df   :  { %7942 = vmatpush3.msra.mxu0 %v2964_v33  ;;  %7961 = vmatpush3.msra.mxu1 %v3244_v15  ;;  %v3272_v33 = vld [vmem:[%s16881_s3 + $0x42e8] sm:$0xff] }
 0x5e0   :  { %7943 = vmatprep.subr.mxu0 %v3069_v40  ;;  %7962 = vmatprep.subr.mxu1 %v3349_v60  ;;  %v3552_v15 = vld [vmem:[%s16881_s3 + $0x4ba8] sm:$0xff]  ;;  %v6006_v40 = vpop.f32.mrf.mxu0  ;;  %v6077_v60 = vpop.f32.mrf.mxu1 }
 0x5e1   :  { %7944 = vmatpush3.msra.mxu0 %v2957_v50  ;;  %7963 = vmatpush3.msra.mxu1 %v3237_v38  ;;  %v3160_v50 = vld [vmem:[%s16881_s3 + $0x3f68] sm:$0xff] }
 0x5e2   :  { %7945 = vmatprep.subr.mxu0 %v3062_v24  ;;  %7964 = vmatprep.subr.mxu1 %v3342_v43  ;;  %v3440_v38 = vld [vmem:[%s16881_s3 + $0x4828] sm:$0xff]  ;;  %v5938_v24 = vadd.f32 %v5937_v21, %v5867_v52  ;;  %v3265_v43 = vld [vmem:[%s16881_s3 + $0x42b0] sm:$0xff] }
 0x5e3   :  { %7946 = vmatpush3.msra.mxu0 %v2950_v1  ;;  %7965 = vmatpush3.msra.mxu1 %v3230_v39  ;;  %v3545_v1 = vld [vmem:[%s16881_s3 + $0x4b70] sm:$0xff]  ;;  %v3496_v21 = vld [vmem:[%s16881_s3 + $0x49e8] sm:$0xff] }
 0x5e4   :  { %7947 = vmatprep.subr.mxu0 %v3055_v51  ;;  %7966 = vmatprep.subr.mxu1 %v3335_v18  ;;  %v3153_v39 = vld [vmem:[%s16881_s3 + $0x3f30] sm:$0xff] }
 0x5e5   :  { %7948 = vmatpush3.msra.mxu0 %v2943_v6  ;;  %7967 = vmatpush3.msra.mxu1 %v3223_v44  ;;  %v3433_v51 = vld [vmem:[%s16881_s3 + $0x47f0] sm:$0xff]  ;;  %v3538_v6 = vld [vmem:[%s16881_s3 + $0x4b38] sm:$0xff]  ;;  %v6008_v44 = vpop.f32.mrf.mxu0 }
 0x5e6   :  { %7949 = vmatprep.subr.mxu0 %v3048_v49  ;;  %7968 = vmatprep.subr.mxu1 %v3328_v56  ;;  %v6079_v49 = vpop.f32.mrf.mxu1  ;;  %v3818_v56 = vld [vmem:[%s16881_s3 + $0x53f8] sm:$0xff] }
 0x5e7   :  { %7950 = vmatpush3.msra.mxu0 %v2936_v30  ;;  %7969 = vmatpush3.msra.mxu1 %v3216_v55  ;;  %v3426_v30 = vld [vmem:[%s16881_s3 + $0x47b8] sm:$0xff]  ;;  %v6009_v55 = vadd.f32 %v6008_v44, %v5938_v24  ;;  %v3377_v24 = vld [vmem:[%s16881_s3 + $0x4630] sm:$0xff] }
 0x5e8   :  { %7951 = vmatprep.subr.mxu0 %v3041_v61  ;;  %7970 = vmatprep.subr.mxu1 %v3321_v25  ;;  %v3706_v25 = vld [vmem:[%s16881_s3 + $0x5078] sm:$0xff] }
 0x5e9   :  { %7952 = vmatpush3.msra.mxu0 %v2929_v4  ;;  %7971 = vmatpush3.msra.mxu1 %v3209_v45  ;;  %v6148_v4 = vpop.f32.mrf.mxu0  ;;  %v6219_v45 = vpop.f32.mrf.mxu1 }
 0x5ea   :  { %7275 = vmatmul.mubr.f32.vlgmr.msra.gmra.mxu0 %v10404_v16  ;;  %7972 = vmatprep.subr.mxu1 %v3314_v26  ;;  %v3300_v16 = vld [vmem:[%s16881_s3 + $0x43c8] sm:$0xff]  ;;  %v3531_v26 = vld [vmem:[%s16881_s3 + $0x4b00] sm:$0xff] }
 0x5eb   :  { %7991 = vmatprep.subr.mxu0 %v3594_v32  ;;  %7973 = vmatpush3.msra.mxu1 %v3202_v7  ;;  %v3811_v32 = vld [vmem:[%s16881_s3 + $0x53c0] sm:$0xff]  ;;  %v6080_v7 = vadd.f32 %v6079_v49, %v6009_v55 }
 0x5ec   :  { %7992 = vmatpush3.msra.mxu0 %v3482_v48  ;;  %7414 = vmatprep.mubr.f32.mxu0 %v10416_v19  ;;  %v5794_v19 = vadd.f32 %v5793_v57, %v11837_v37  ;;  %v3419_v57 = vld [vmem:[%s16881_s3 + $0x4780] sm:$0xff]  ;;  %v3524_v48 = vld [vmem:[%s16881_s3 + $0x4ac8] sm:$0xff] }
 0x5ed   :  { %7974 = vmatprep.subr.mxu1 %v3307_v42  ;;  %7993 = vmatprep.subr.mxu0 %v3587_v29  ;;  %v3804_v42 = vld [vmem:[%s16881_s3 + $0x5388] sm:$0xff]  ;;  %v3755_v49 = vld [vmem:[%s16881_s3 + $0x5200] sm:$0xff] }
 0x5ee   :  { %7975 = vmatpush3.msra.mxu1 %v3195_v5  ;;  %7994 = vmatpush3.msra.mxu0 %v3475_v13  ;;  %v5865_v11 = vadd.f32 %v5864_v47, %v5794_v19  ;;  %v3412_v5 = vld [vmem:[%s16881_s3 + $0x4748] sm:$0xff]  ;;  %v3405_v19 = vld [vmem:[%s16881_s3 + $0x4710] sm:$0xff]  ;;  %v3643_v55 = vld [vmem:[%s16881_s3 + $0x4e80] sm:$0xff] }
 0x5ef   :  { %7976 = vmatprep.subr.mxu1 %v3300_v16  ;;  %7995 = vmatprep.subr.mxu0 %v3580_v23  ;;  %v3692_v13 = vld [vmem:[%s16881_s3 + $0x5008] sm:$0xff]  ;;  %v6221_v16 = vpop.f32.mrf.mxu1  ;;  %v3517_v23 = vld [vmem:[%s16881_s3 + $0x4a90] sm:$0xff] }
 0x5f0   :  { %7977 = vmatpush3.msra.mxu1 %v3188_v2  ;;  %7996 = vmatpush3.msra.mxu0 %v3468_v54  ;;  %v5936_v14 = vadd.f32 %v5935_v62, %v5865_v11  ;;  %v3510_v62 = vld [vmem:[%s16881_s3 + $0x4a58] sm:$0xff]  ;;  %v3391_v11 = vld [vmem:[%s16881_s3 + $0x46a0] sm:$0xff] }
 0x5f1   :  { %7978 = vmatprep.subr.mxu1 %v3293_v17  ;;  %7997 = vmatprep.subr.mxu0 %v3573_v46  ;;  %v3685_v17 = vld [vmem:[%s16881_s3 + $0x4fd0] sm:$0xff]  ;;  %v6361_v47 = vpop.f32.mrf.mxu1 }
 0x5f2   :  { %7979 = vmatpush3.msra.mxu1 %v3181_v9  ;;  %7998 = vmatpush3.msra.mxu0 %v3461_v22  ;;  %v6007_v18 = vadd.f32 %v6006_v40, %v5936_v14  ;;  %v3790_v9 = vld [vmem:[%s16881_s3 + $0x5318] sm:$0xff]  ;;  %v3384_v14 = vld [vmem:[%s16881_s3 + $0x4668] sm:$0xff]  ;;  %v3489_v40 = vld [vmem:[%s16881_s3 + $0x49b0] sm:$0xff] }
 0x5f3   :  { %7980 = vmatprep.subr.mxu1 %v3286_v0  ;;  %7999 = vmatprep.subr.mxu0 %v3566_v41  ;;  %v3678_v0 = vld [vmem:[%s16881_s3 + $0x4f98] sm:$0xff]  ;;  %v3503_v41 = vld [vmem:[%s16881_s3 + $0x4a20] sm:$0xff]  ;;  %v6363_v36 = vpop.f32.mrf.mxu1 }
 0x5f4   :  { %7981 = vmatpush3.msra.mxu1 %v3174_v53  ;;  %8000 = vmatpush3.msra.mxu0 %v3454_v63  ;;  %v6078_v61 = vadd.f32 %v6077_v60, %v6007_v18  ;;  %v3783_v53 = vld [vmem:[%s16881_s3 + $0x52e0] sm:$0xff]  ;;  %v3769_v60 = vld [vmem:[%s16881_s3 + $0x5270] sm:$0xff] }
 0x5f5   :  { %7982 = vmatprep.subr.mxu1 %v3279_v27  ;;  %8001 = vmatprep.subr.mxu0 %v3559_v34  ;;  %v3671_v27 = vld [vmem:[%s16881_s3 + $0x4f60] sm:$0xff] }
 0x5f6   :  { %7983 = vmatpush3.msra.mxu1 %v3167_v28  ;;  %8002 = vmatpush3.msra.mxu0 %v3447_v35  ;;  %v6149_v29 = vadd.f32 %v6148_v4, %v6078_v61  ;;  %v3776_v28 = vld [vmem:[%s16881_s3 + $0x52a8] sm:$0xff] }
 0x5f7   :  { %7984 = vmatprep.subr.mxu1 %v3272_v33  ;;  %8003 = vmatprep.subr.mxu0 %v3552_v15  ;;  %v3664_v33 = vld [vmem:[%s16881_s3 + $0x4f28] sm:$0xff] }
 0x5f8   :  { %7985 = vmatpush3.msra.mxu1 %v3160_v50  ;;  %8004 = vmatpush3.msra.mxu0 %v3440_v38  ;;  %v6220_v54 = vadd.f32 %v6219_v45, %v6149_v29  ;;  %v3748_v4 = vld [vmem:[%s16881_s3 + $0x51c8] sm:$0xff] }
 0x5f9   :  { %7986 = vmatprep.subr.mxu1 %v3265_v43  ;;  %8005 = vmatprep.subr.mxu0 %v3545_v1  ;;  %v3657_v43 = vld [vmem:[%s16881_s3 + $0x4ef0] sm:$0xff]  ;;  %v3762_v1 = vld [vmem:[%s16881_s3 + $0x5238] sm:$0xff] }
 0x5fa   :  { %7987 = vmatpush3.msra.mxu1 %v3153_v39  ;;  %8006 = vmatpush3.msra.mxu0 %v3433_v51  ;;  %v3650_v51 = vld [vmem:[%s16881_s3 + $0x4eb8] sm:$0xff] }
 0x5fb   :  { %7345 = vmatmul.mubr.f32.vlgmr.msra.gmra.mxu1 %v10401_v12  ;;  %8007 = vmatprep.subr.mxu0 %v3538_v6  ;;  %v3699_v12 = vld [vmem:[%s16881_s3 + $0x5040] sm:$0xff]  ;;  %v3874_v6 = vld [vmem:[%s16881_s3 + $0x55b8] sm:$0xff] }
 0x5fc   :  { %8026 = vmatprep.subr.mxu1 %v3818_v56  ;;  %8008 = vmatpush3.msra.mxu0 %v3426_v30 }
 0x5fd   :  { %8027 = vmatpush3.msra.mxu1 %v3706_v25  ;;  %7484 = vmatprep.mubr.f32.mxu1 %v10423_v58  ;;  %v6150_v58 = vpop.f32.mrf.mxu0  ;;  %v3867_v25 = vld [vmem:[%s16881_s3 + $0x5580] sm:$0xff] }
 0x5fe   :  { %8009 = vmatprep.subr.mxu0 %v3531_v26  ;;  %8028 = vmatprep.subr.mxu1 %v3811_v32  ;;  %v6151_v2 = vadd.f32 %v6150_v58, %v6080_v7  ;;  %v3860_v26 = vld [vmem:[%s16881_s3 + $0x5548] sm:$0xff]  ;;  %v3741_v32 = vld [vmem:[%s16881_s3 + $0x5190] sm:$0xff] }
 0x5ff   :  { %8010 = vmatpush3.msra.mxu0 %v3419_v57  ;;  %8029 = vmatpush3.msra.mxu1 %v3699_v12  ;;  %v6290_v46 = vpop.f32.mrf.mxu0  ;;  %v6503_v50 = vpop.f32.mrf.mxu1  ;;  %v3629_v57 = vld [vmem:[%s16881_s3 + $0x4e10] sm:$0xff] }
 0x600   :  { %8011 = vmatprep.subr.mxu0 %v3524_v48  ;;  %8030 = vmatprep.subr.mxu1 %v3804_v42  ;;  %v6222_v22 = vadd.f32 %v6221_v16, %v6151_v2  ;;  %v6291_v63 = vadd.f32 %v6290_v46, %v6220_v54  ;;  %v3853_v48 = vld [vmem:[%s16881_s3 + $0x5510] sm:$0xff]  ;;  %v3734_v42 = vld [vmem:[%s16881_s3 + $0x5158] sm:$0xff]  ;;  %v3615_v2 = vld [vmem:[%s16881_s3 + $0x4da0] sm:$0xff] }
 0x601   :  { %8012 = vmatpush3.msra.mxu0 %v3412_v5  ;;  %8031 = vmatpush3.msra.mxu1 %v3692_v13  ;;  %v6292_v34 = vpop.f32.mrf.mxu0  ;;  %v6505_v44 = vpop.f32.mrf.mxu1  ;;  %v3622_v13 = vld [vmem:[%s16881_s3 + $0x4dd8] sm:$0xff]  ;;  %v3720_v46 = vld [vmem:[%s16881_s3 + $0x50e8] sm:$0xff] }
 0x602   :  { %8013 = vmatprep.subr.mxu0 %v3517_v23  ;;  %8032 = vmatprep.subr.mxu1 %v3797_v8  ;;  %v6293_v35 = vadd.f32 %v6292_v34, %v6222_v22  ;;  %v6362_v52 = vadd.f32 %v6361_v47, %v6291_v63  ;;  %v3846_v16 = vld [vmem:[%s16881_s3 + $0x54d8] sm:$0xff]  ;;  %v3727_v23 = vld [vmem:[%s16881_s3 + $0x5120] sm:$0xff]  ;;  %v3608_v47 = vld [vmem:[%s16881_s3 + $0x4d68] sm:$0xff] }
 0x603   :  { %8014 = vmatpush3.msra.mxu0 %v3405_v19  ;;  %8033 = vmatpush3.msra.mxu1 %v3685_v17  ;;  %v6432_v15 = vpop.f32.mrf.mxu0  ;;  %v3839_v17 = vld [vmem:[%s16881_s3 + $0x54a0] sm:$0xff]  ;;  %v3713_v22 = vld [vmem:[%s16881_s3 + $0x50b0] sm:$0xff] }
 0x604   :  { %8015 = vmatprep.subr.mxu0 %v3510_v62  ;;  %8034 = vmatprep.subr.mxu1 %v3790_v9  ;;  %v6364_v38 = vadd.f32 %v6363_v36, %v6293_v35  ;;  %v6433_v39 = vadd.f32 %v6432_v15, %v6362_v52  ;;  %v3832_v9 = vld [vmem:[%s16881_s3 + $0x5468] sm:$0xff] }
 0x605   :  { %8016 = vmatpush3.msra.mxu0 %v3398_v10  ;;  %8035 = vmatpush3.msra.mxu1 %v3678_v0  ;;  %v6434_v18 = vpop.f32.mrf.mxu0  ;;  %v3601_v10 = vld [vmem:[%s16881_s3 + $0x4d30] sm:$0xff] }
 0x606   :  { %8017 = vmatprep.subr.mxu0 %v3503_v41  ;;  %8036 = vmatprep.subr.mxu1 %v3783_v53  ;;  %v6435_v56 = vadd.f32 %v6434_v18, %v6364_v38  ;;  %v6504_v30 = vadd.f32 %v6503_v50, %v6433_v39  ;;  %v3825_v0 = vld [vmem:[%s16881_s3 + $0x5430] sm:$0xff] }
 0x607   :  { %8018 = vmatpush3.msra.mxu0 %v3391_v11  ;;  %8037 = vmatpush3.msra.mxu1 %v3671_v27  ;;  %v6574_v61 = vpop.f32.mrf.mxu0 }
 0x608   :  { %8019 = vmatprep.subr.mxu0 %v3496_v21  ;;  %8038 = vmatprep.subr.mxu1 %v3776_v28  ;;  %v6506_v45 = vadd.f32 %v6505_v44, %v6435_v56  ;;  %v6575_v7 = vadd.f32 %v6574_v61, %v6504_v30 }
 0x609   :  { %8020 = vmatpush3.msra.mxu0 %v3384_v14  ;;  %8039 = vmatpush3.msra.mxu1 %v3664_v33  ;;  %v6576_v12 = vpop.f32.mrf.mxu0 }
 0x60a   :  { %8021 = vmatprep.subr.mxu0 %v3489_v40  ;;  %8040 = vmatprep.subr.mxu1 %v3769_v60  ;;  %v6577_v5 = vadd.f32 %v6576_v12, %v6506_v45 }
 0x60b   :  { %8022 = vmatpush3.msra.mxu0 %v3377_v24  ;;  %8041 = vmatpush3.msra.mxu1 %v3657_v43 }
 0x60c   :  { %7415 = vmatmul.mubr.f32.vlgmr.msra.gmra.mxu0 %v10803_v31  ;;  %8042 = vmatprep.subr.mxu1 %v3762_v1  ;;  %v3636_v31 = vld [vmem:[%s16881_s3 + $0x4e48] sm:$0xff] }
 0x60d   :  { %8075 = vmatprep.subr.mxu0 %v8126_v3  ;;  %8043 = vmatpush3.msra.mxu1 %v3650_v51 }
 0x60e   :  { %8076 = vmatpush3.msra.mxu0 %v3874_v6  ;;  %8044 = vmatprep.subr.mxu1 %v3755_v49 }
 0x60f   :  { %8077 = vmatprep.subr.mxu0 %v8126_v3  ;;  %8045 = vmatpush3.msra.mxu1 %v3643_v55 }
 0x610   :  { %8078 = vmatpush3.msra.mxu0 %v3867_v25  ;;  %8046 = vmatprep.subr.mxu1 %v3748_v4 }
 0x611   :  { %8079 = vmatprep.subr.mxu0 %v8126_v3  ;;  %8047 = vmatpush3.msra.mxu1 %v3636_v31  ;;  %v6645_v29 = vpop.f32.mrf.mxu1 }
 0x612   :  { %8080 = vmatpush3.msra.mxu0 %v3860_v26  ;;  %8048 = vmatprep.subr.mxu1 %v3741_v32  ;;  %v6646_v58 = vadd.f32 %v6645_v29, %v6575_v7 }
 0x613   :  { %8081 = vmatprep.subr.mxu0 %v8126_v3  ;;  %8049 = vmatpush3.msra.mxu1 %v3629_v57  ;;  %v6647_v8 = vpop.f32.mrf.mxu1 }
 0x614   :  { %8082 = vmatpush3.msra.mxu0 %v3853_v48  ;;  %8050 = vmatprep.subr.mxu1 %v3734_v42  ;;  %v7636_v54 = vmul.f32 -1.442695, %v6646_v58  ;;  %v6648_v19 = vadd.f32 %v6647_v8, %v6577_v5 }
 0x615   :  { %8083 = vmatprep.subr.mxu0 %v8126_v3  ;;  %8051 = vmatpush3.msra.mxu1 %v3622_v13 }
 0x616   :  { %8084 = vmatpush3.msra.mxu0 %v3846_v16  ;;  %8052 = vmatprep.subr.mxu1 %v3727_v23  ;;  %8112 = vpow2.f32 %v7636_v54  ;;  %v7637_v62 = vmul.f32 -1.442695, %v6648_v19 }
 0x617   :  { %8085 = vmatprep.subr.mxu0 %v8126_v3  ;;  %8053 = vmatpush3.msra.mxu1 %v3615_v2 }
 0x618   :  { %8086 = vmatpush3.msra.mxu0 %v3839_v17  ;;  %8054 = vmatprep.subr.mxu1 %v3720_v46  ;;  %8114 = vpow2.f32 %v7637_v62 }
 0x619   :  { %8087 = vmatprep.subr.mxu0 %v8126_v3  ;;  %8055 = vmatpush3.msra.mxu1 %v3608_v47 }
 0x61a   :  { %8088 = vmatpush3.msra.mxu0 %v3832_v9  ;;  %8056 = vmatprep.subr.mxu1 %v3713_v22 }
 0x61b   :  { %8089 = vmatprep.subr.mxu0 %v8126_v3  ;;  %8057 = vmatpush3.msra.mxu1 %v3601_v10 }
 0x61c   :  { %8090 = vmatpush3.msra.mxu0 %v3825_v0  ;;  %8091 = vmatprep.mubr.msk.f32.mxu0 %vm8127_vm1, %v8126_v3 }
 0x61d   :  { %7485 = vmatmul.mubr.f32.vlgmr.msra.gmra.mxu1 %v10800_v59  ;;  %8092 = vmatmul.mubr.msk.f32.vlgmr.msra.gmra.mxu0 %vm3877_vm2, %v10911_v20 }
 0x622   :  { %v7673_v3 = vpop.f32.mrf.mxu0 }
 0x623   :  { %v8113_v41 = vpop.eup %8112 }
 0x624   :  { %v7585_v53 = vadd.f32 1.0, %v8113_v41  ;;  %v7674_v59 = vpop.f32.mrf.mxu0 }
 0x625   :  { %v8115_v63 = vpop.eup %8114  ;;  %v7675_v40 = vadd.f32 %v7674_v59, %v7673_v3 }
 0x626   :  { %8116 = vrcp.f32 %v7585_v53  ;;  %v7586_v11 = vadd.f32 1.0, %v8115_v63 }
 0x627   :  { %v6717_v24 = vadd.f32 %v7675_v40, %v11837_v37 }
 0x628   :  { %8118 = vrcp.f32 %v7586_v11 }
 0x633   :  { %v8117_v27 = vpop.eup %8116  ;;  %v7708_v36 = vpop.f32.mrf.mxu1 }
 0x634   :  { %7606 = vst [vmem:[%s16884_s5 + $0x20] sm:$0xff] %v8117_v27 }
 0x635   :  { %v8119_v34 = vpop.eup %8118  ;;  %v7709_v21 = vpop.f32.mrf.mxu1 }
 0x636   :  { %7607 = vst [vmem:[%s16884_s5 + $0x28] sm:$0xff] %v8119_v34  ;;  %v7710_v50 = vadd.f32 %v7709_v21, %v7708_v36 }
 0x638   :  { %v6787_v51 = vadd.f32 %v7710_v50, %v6717_v24 }
 0x644   :  { %v7743_v20 = vpop.f32.mrf.mxu0 }
 0x646   :  { %v7744_v28 = vpop.f32.mrf.mxu0 }
 0x647   :  { %v7745_v43 = vadd.f32 %v7744_v28, %v7743_v20 }
 0x649   :  { %v6857_v44 = vadd.f32 %v7745_v43, %v6787_v51 }
 0x655   :  { %v7778_v35 = vpop.f32.mrf.mxu1 }
 0x657   :  { %v7779_v14 = vpop.f32.mrf.mxu1 }
 0x658   :  { %v7780_v18 = vadd.f32 %v7779_v14, %v7778_v35 }
 0x65a   :  { %v6927_v30 = vadd.f32 %v7780_v18, %v6857_v44 }
 0x666   :  { %v7813_v52 = vpop.f32.mrf.mxu0 }
 0x668   :  { %v7814_v33 = vpop.f32.mrf.mxu0 }
 0x669   :  { %v7815_v49 = vadd.f32 %v7814_v33, %v7813_v52 }
 0x66b   :  { %v6997_v4 = vadd.f32 %v7815_v49, %v6927_v30 }
 0x677   :  { %v7848_v15 = vpop.f32.mrf.mxu1 }
 0x679   :  { %v7849_v38 = vpop.f32.mrf.mxu1 }
 0x67a   :  { %v7850_v55 = vadd.f32 %v7849_v38, %v7848_v15 }
 0x67c   :  { %v7067_v26 = vadd.f32 %v7850_v55, %v6997_v4 }
 0x688   :  { %v7883_v60 = vpop.f32.mrf.mxu0 }
 0x68a   :  { %v7884_v1 = vpop.f32.mrf.mxu0 }
 0x68b   :  { %v7885_v45 = vadd.f32 %v7884_v1, %v7883_v60 }
 0x68d   :  { %v7137_v37 = vadd.f32 %v7885_v45, %v7067_v26 }
 0x699   :  { %v7918_v39 = vpop.f32.mrf.mxu1 }
 0x69b   :  { %v7919_v56 = vpop.f32.mrf.mxu1 }
 0x69c   :  { %v7920_v32 = vadd.f32 %v7919_v56, %v7918_v39 }
 0x69e   :  { %v7207_v48 = vadd.f32 %v7920_v32, %v7137_v37 }
 0x6aa   :  { %v7953_v6 = vpop.f32.mrf.mxu0 }
 0x6ac   :  { %v7954_v61 = vpop.f32.mrf.mxu0 }
 0x6ad   :  { %v7955_v57 = vadd.f32 %v7954_v61, %v7953_v6 }
 0x6af   :  { %v7277_v29 = vadd.f32 %v7955_v57, %v7207_v48 }
 0x6bb   :  { %v7988_v25 = vpop.f32.mrf.mxu1 }
 0x6bd   :  { %v7989_v7 = vpop.f32.mrf.mxu1 }
 0x6be   :  { %v7990_v42 = vadd.f32 %v7989_v7, %v7988_v25 }
 0x6c0   :  { %v7347_v16 = vadd.f32 %v7990_v42, %v7277_v29 }
 0x6cc   :  { %v8023_v31 = vpop.f32.mrf.mxu0 }
 0x6ce   :  { %v8024_v12 = vpop.f32.mrf.mxu0 }
 0x6cf   :  { %v8025_v5 = vadd.f32 %v8024_v12, %v8023_v31 }
 0x6d1   :  { %v7417_v2 = vadd.f32 %v8025_v5, %v7347_v16 }
 0x6dd   :  { %v8058_v13 = vpop.f32.mrf.mxu1  ;;  %v7556_v58 = vpop.f32.mrf.mxu0 }
 0x6df   :  { %v8059_v23 = vpop.f32.mrf.mxu1  ;;  %v8093_v8 = vpop.f32.mrf.mxu0 }
 0x6e0   :  { %v8060_v54 = vadd.f32 %v8059_v23, %v8058_v13 }
 0x6e2   :  { %v7487_v19 = vadd.f32 %v8060_v54, %v7417_v2 }
 0x6e4   :  { %v7557_v17 = vadd.f32 %v7556_v58, %v7487_v19 }
 0x6e6   :  { %v7638_v46 = vmul.f32 -1.442695, %v7557_v17 }
 0x6e8   :  { %8120 = vpow2.f32 %v7638_v46 }
 0x6f5   :  { %v8121_v47 = vpop.eup %8120 }
 0x6f6   :  { %v7587_v62 = vadd.f32 1.0, %v8121_v47 }
 0x6f8   :  { %8122 = vrcp.f32 %v7587_v62 }
 0x705   :  { %v8123_v9 = vpop.eup %8122 }
 0x706   :  { %7609 = vst.msk [vmem:[%s16884_s5 + $0x30] sm:$0xff] %vm7608_vm3, %v8123_v9 }

</bundles_post_ra>
